<compile_context>
chip_gen: v7x
topology: tpu7x:2x2x1
jax: 0.10.0
libtpu: 0.0.40
codegen_flags: <defaults>
</compile_context>

<pallas_src>
import functools

import jax
import jax.numpy as jnp
from jax.experimental import pallas as pl
from jax.experimental.pallas import tpu as pltpu


# ---------------------------------------------------------------------------
# layout helpers (XLA glue)
# ---------------------------------------------------------------------------
def nchw_to_bpc(x):
    b, c, h, w = x.shape
    return x.reshape(b, c, h * w).transpose(0, 2, 1)          # (B, P, C)


def bpc_to_nchw(x, h, w):
    b, p, c = x.shape
    return x.transpose(0, 2, 1).reshape(b, c, h, w)


def chw_to_pc(x):
    c, h, w = x.shape
    return x.reshape(c, h * w).T                               # (P, C)


def im2col(x, k, pad):
    """(B, C, H, W) -> (B, H*W, C*k*k), window flattened as (c, dy, dx)."""
    # TODO(synk): replace the XLA-side im2col with in-kernel per-tap
    # accumulation (shifted-window matmuls) to cut activation HBM traffic
    # ~k*k-fold for large frames; at this frame size the bf16 patches are tiny.
    b, c, h, w = x.shape
    xp = jnp.pad(x, ((0, 0), (0, 0), (pad, pad), (pad, pad)))
    cols = []
    for dy in range(k):
        for dx in range(k):
            cols.append(xp[:, :, dy:dy + h, dx:dx + w])
    p = jnp.stack(cols, axis=2)                                # (B, C, k*k, H, W)
    p = p.reshape(b, c * k * k, h * w)
    return p.transpose(0, 2, 1)


def _full_spec(shape):
    n = len(shape)
    return pl.BlockSpec(shape, lambda b: (0,) * n)


def _batch_spec(shape):
    n = len(shape)
    return pl.BlockSpec(shape, lambda b: (b,) + (0,) * (n - 1))


# ---------------------------------------------------------------------------
# in-kernel math helpers
# ---------------------------------------------------------------------------
def _dot(a, b):
    return jnp.dot(a, b, preferred_element_type=jnp.float32)


def _dot_t(a, b):  # a @ b.T without an explicit transpose
    return jax.lax.dot_general(a, b, (((1,), (1,)), ((), ())),
                               preferred_element_type=jnp.float32)


# ---------------------------------------------------------------------------
# fused kernel: ConvLSTM cell + self-attention memory (one batch per grid step)
# ---------------------------------------------------------------------------
def _sam_convlstm_kernel(patches_ref, conv_wT_ref, conv_b_ref, state_ref, peep_ref,
                         wh_ref, bh_ref, wm_ref, bm_ref, bfold_ref,
                         packed_ref, attn_ref, *, c_dim, hid):
    C = c_dim
    bf16 = jnp.bfloat16

    # ---- ConvLSTM cell: im2col matmul on MXU (bf16 in, f32 accumulate) ----
    conv = _dot(patches_ref[0], conv_wT_ref[...]) + conv_b_ref[...]   # (P, 4C) [i|f|g|o]
    state = state_ref[0]                                              # (P, 2C) = [c_prev|m_prev]
    cp = state[:, :C]
    m = state[:, C:]
    peep = peep_ref[...]                                              # (P, 3C) = [wci|wcf|wco]

    cp2 = jnp.concatenate([cp, cp], axis=-1)                          # (P, 2C)
    if_g = jax.nn.sigmoid(conv[:, :2 * C] + peep[:, :2 * C] * cp2)    # one 64-lane sigmoid
    ig = if_g[:, :C]
    fg = if_g[:, C:]
    c_new = fg * cp + ig * jnp.tanh(conv[:, 2 * C:3 * C])
    og = jax.nn.sigmoid(conv[:, 3 * C:] + peep[:, 2 * C:] * c_new)
    h = og * jnp.tanh(c_new)                                          # (P, C)

    # ---- self-attention memory (fused projections, fully folded weights) ----
    h_bf = h.astype(bf16)
    m_bf = m.astype(bf16)

    # h_proj cols: [ q (hid) | k_h (hid) | value_h∘z_h∘wz_top∘w_top (3C) | w_bot (3C) ]
    h_proj = _dot(h_bf, wh_ref[...]) + bh_ref[...]                    # (P, 2*hid + 6C)
    # m_proj cols: [ k_m (hid) | value_m∘z_m∘wz_bot∘w_top (3C) ]
    m_proj = _dot(m_bf, wm_ref[...]) + bm_ref[...]                    # (P, hid + 3C)

    q_bf = h_proj[:, :hid].astype(bf16)
    k_h_bf = h_proj[:, hid:2 * hid].astype(bf16)
    vzz_h = h_proj[:, 2 * hid:2 * hid + 3 * C]                        # (P, 3C)
    h_wout = h_proj[:, 2 * hid + 3 * C:]                              # (P, 3C) = h @ Ww_bot
    k_m_bf = m_proj[:, :hid].astype(bf16)
    vzz_m = m_proj[:, hid:]                                           # (P, 3C)

    # TODO(synk): flash-style blocking over keys (and a P-blocked grid axis for
    # the attn output) before scaling P: v7x has only 64 MiB VMEM per TC, so the
    # two (P,P) score matrices stop fitting at roughly half the P of v5e/v6e.

    # -- h-branch: normalized softmax (the attention map is a module output) --
    s_h = _dot_t(q_bf, k_h_bf)                                        # (P, P) f32
    e_h = jnp.exp(s_h - jnp.max(s_h, axis=-1, keepdims=True))
    inv_h = pl.reciprocal(jnp.sum(e_h, axis=-1, keepdims=True), approx=True)
    att_h_bf = (e_h * inv_h).astype(bf16)
    attn_ref[0] = att_h_bf                                            # bf16 writeback
    w_out = _dot(att_h_bf, vzz_h.astype(bf16))                        # (P, 3C)

    # -- m-branch: deferred normalization (scale the (P,3C) result, not (P,P)) --
    s_m = _dot_t(q_bf, k_m_bf)
    e_m = jnp.exp(s_m - jnp.max(s_m, axis=-1, keepdims=True))
    inv_m = pl.reciprocal(jnp.sum(e_m, axis=-1, keepdims=True), approx=True)
    w_out = w_out + _dot(e_m.astype(bf16), vzz_m.astype(bf16)) * inv_m

    # columns of w_out are pre-permuted in the wrapper to [mi | mo | mg]
    w_out = w_out + h_wout + bfold_ref[...]                           # (P, 3C)

    gates = jax.nn.sigmoid(w_out[:, :2 * C])                          # one 64-lane sigmoid
    gi = gates[:, :C]
    go = gates[:, C:]
    g = jnp.tanh(w_out[:, 2 * C:])
    new_m = (1.0 - gi) * m + gi * g
    new_h = go * new_m

    # lane-packed output: [new_h | new_cell | new_memory]  (P, 3C)
    # (v5e note: padding 96->128 lanes would give unmasked vst; measure first.)
    packed_ref[0] = jnp.concatenate([new_h, c_new, new_m], axis=-1)


# ---------------------------------------------------------------------------
# full SAMConvLSTMCell forward (glue + single pallas_call)
# ---------------------------------------------------------------------------
def sam_convlstm_forward(raw, X, prev_h, prev_cell, prev_memory, kernel_size):
    B, Cin, H, W = X.shape
    C = prev_h.shape[1]
    P = H * W
    k = kernel_size
    pad = k // 2  # 'same' padding
    hid = raw['q_h_w'].shape[0]
    bf16 = jnp.bfloat16
    f32 = jnp.float32

    # -- ConvLSTM operands --
    conv_in = jnp.concatenate([X, prev_h], axis=1)                   # (B, Cin+C, H, W)
    patches = im2col(conv_in, k, pad).astype(bf16)                   # (B, P, K) bf16
    K = patches.shape[-1]
    conv_wT = raw['conv_w'].reshape(4 * C, -1).T.astype(bf16)        # (K, 4C)
    conv_b = raw['conv_b'].reshape(1, 4 * C).astype(f32)
    peep = jnp.concatenate([chw_to_pc(raw['w_ci']),
                            chw_to_pc(raw['w_cf']),
                            chw_to_pc(raw['w_co'])], axis=-1).astype(f32)   # (P, 3C)
    state_prev = jnp.concatenate([nchw_to_bpc(prev_cell),
                                  nchw_to_bpc(prev_memory)], axis=-1)        # (B, P, 2C)

    def wmat(name):
        return raw[name + '_w'][:, :, 0, 0].T                        # (in, out)

    def bvec(name):
        return raw[name + '_b'].reshape(1, -1)

    # -- permute final-gate columns so mi/mo are adjacent: [mi | mo | mg] --
    perm = list(range(0, C)) + list(range(2 * C, 3 * C)) + list(range(C, 2 * C))
    Ww = wmat('w')                                                   # (3C, 3C)
    Ww_top = Ww[:2 * C][:, perm]                                     # (2C, 3C)  Z rows
    Ww_bot = Ww[2 * C:][:, perm]                                     # (C, 3C)   h rows
    bw = bvec('w')[:, perm]                                          # (1, 3C)

    # -- fold value/z/w_z/Ww_top weight chains (f32 math in the wrapper) --
    Wwz = wmat('w_z')                                                # (2C, 2C)
    Wwz_top, Wwz_bot = Wwz[:C, :], Wwz[C:, :]
    A_h = wmat('z_h') @ Wwz_top @ Ww_top                             # (C, 3C)
    A_m = wmat('z_m') @ Wwz_bot @ Ww_top
    M_h = wmat('value_h') @ A_h                                      # (C, 3C)
    M_m = wmat('value_m') @ A_m
    b1_h = bvec('value_h') @ A_h                                     # (1, 3C) (rides h_proj)
    b1_m = bvec('value_m') @ A_m                                     # (1, 3C) (rides m_proj)
    b_fold = ((bvec('z_h') @ Wwz_top + bvec('z_m') @ Wwz_bot + bvec('w_z')) @ Ww_top
              + bw).astype(f32)                                      # (1, 3C) applied once

    # -- fuse the skinny 1x1 projections into lane-dense matmuls --
    Wh_all = jnp.concatenate([wmat('q_h'), wmat('key_h'), M_h, Ww_bot],
                             axis=1).astype(bf16)                    # (C, 2*hid+6C)
    bh_all = jnp.concatenate([bvec('q_h'), bvec('key_h'), b1_h,
                              jnp.zeros((1, 3 * C), f32)], axis=1).astype(f32)
    Wm_all = jnp.concatenate([wmat('key_m'), M_m], axis=1).astype(bf16)   # (C, hid+3C)
    bm_all = jnp.concatenate([bvec('key_m'), b1_m], axis=1).astype(f32)

    kernel = functools.partial(_sam_convlstm_kernel, c_dim=C, hid=hid)
    packed, attn_h = pl.pallas_call(
        kernel,
        out_shape=(jax.ShapeDtypeStruct((B, P, 3 * C), f32),
                   jax.ShapeDtypeStruct((B, P, P), bf16)),
        grid_spec=pltpu.PrefetchScalarGridSpec(
            num_scalar_prefetch=0,
            grid=(B,),
            in_specs=[
                _batch_spec((1, P, K)),          # patches (bf16)
                _full_spec((K, 4 * C)),          # conv weight (bf16)
                _full_spec((1, 4 * C)),          # conv bias
                _batch_spec((1, P, 2 * C)),      # [prev_cell | prev_memory]
                _full_spec((P, 3 * C)),          # [W_ci | W_cf | W_co]
                _full_spec(Wh_all.shape),        # fused h projection (bf16)
                _full_spec(bh_all.shape),
                _full_spec(Wm_all.shape),        # fused m projection (bf16)
                _full_spec(bm_all.shape),
                _full_spec(b_fold.shape),        # folded final bias
            ],
            out_specs=(_batch_spec((1, P, 3 * C)),
                       _batch_spec((1, P, P))),
        ),
        compiler_params=pltpu.CompilerParams(
            dimension_semantics=("parallel",),
            vmem_limit_bytes=32 * 1024 * 1024),
    )(patches, conv_wT, conv_b, state_prev, peep,
      Wh_all, bh_all, Wm_all, bm_all, b_fold)

    new_h = packed[:, :, 0 * C:1 * C]
    new_c = packed[:, :, 1 * C:2 * C]
    new_m = packed[:, :, 2 * C:3 * C]
    # attention map is returned in bf16 (halves its HBM writeback); cast if f32 needed.
    return (bpc_to_nchw(new_h, H, W),
            bpc_to_nchw(new_c, H, W),
            bpc_to_nchw(new_m, H, W),
            attn_h)


# ---------------------------------------------------------------------------
# parameters (deterministic, PyTorch-default-style uniform init; W_c* = zeros)
# ---------------------------------------------------------------------------
def make_params(key, in_channels, out_channels, kernel_size, frame_size, attn_hidden):
    C = out_channels
    H, W = frame_size
    keys = jax.random.split(key, 20)

    def conv_param(kw, kb, out_ch, in_ch, ksz):
        fan_in = in_ch * ksz * ksz
        bound = fan_in ** -0.5
        w = jax.random.uniform(kw, (out_ch, in_ch, ksz, ksz), jnp.float32, -bound, bound)
        b = jax.random.uniform(kb, (out_ch,), jnp.float32, -bound, bound)
        return w, b

    raw = {}
    raw['conv_w'], raw['conv_b'] = conv_param(keys[0], keys[1],
                                              4 * C, in_channels + C, kernel_size)
    raw['w_ci'] = jnp.zeros((C, H, W), jnp.float32)   # WeightsInitializer.Zeros
    raw['w_cf'] = jnp.zeros((C, H, W), jnp.float32)
    raw['w_co'] = jnp.zeros((C, H, W), jnp.float32)
    names = [('q_h', attn_hidden, C), ('key_h', attn_hidden, C), ('value_h', C, C),
             ('z_h', C, C), ('key_m', attn_hidden, C), ('value_m', C, C),
             ('z_m', C, C), ('w_z', 2 * C, 2 * C), ('w', 3 * C, 3 * C)]
    kidx = 2
    for name, oc, ic in names:
        raw[name + '_w'], raw[name + '_b'] = conv_param(keys[kidx], keys[kidx + 1], oc, ic, 1)
        kidx += 2
    return raw


# ---------------------------------------------------------------------------
# pure-JAX f32 reference (mirrors the PyTorch forward exactly)
# ---------------------------------------------------------------------------
def reference_forward(raw, X, prev_h, prev_cell, prev_memory):
    conv_in = jnp.concatenate([X, prev_h], axis=1)
    conv = jax.lax.conv_general_dilated(
        conv_in, raw['conv_w'], window_strides=(1, 1), padding='SAME',
        dimension_numbers=('NCHW', 'OIHW', 'NCHW')) + raw['conv_b'][None, :, None, None]
    i_c, f_c, g_c, o_c = jnp.split(conv, 4, axis=1)
    ig = jax.nn.sigmoid(i_c + raw['w_ci'][None] * prev_cell)
    fg = jax.nn.sigmoid(f_c + raw['w_cf'][None] * prev_cell)
    c_new = fg * prev_cell + ig * jnp.tanh(g_c)
    og = jax.nn.sigmoid(o_c + raw['w_co'][None] * c_new)
    h_new = og * jnp.tanh(c_new)

    def conv1x1(x, name):
        w = raw[name + '_w'][:, :, 0, 0]
        b = raw[name + '_b']
        return jnp.einsum('bchw,oc->bohw', x, w) + b[None, :, None, None]

    B, C, H, W = h_new.shape
    hid = raw['q_h_w'].shape[0]
    P = H * W
    k_h = conv1x1(h_new, 'key_h').reshape(B, hid, P)
    q_h = conv1x1(h_new, 'q_h').reshape(B, hid, P).transpose(0, 2, 1)
    v_h = conv1x1(h_new, 'value_h').reshape(B, C, P)
    att_h = jax.nn.softmax(jnp.einsum('bph,bhq->bpq', q_h, k_h), axis=-1)
    z_h = jnp.einsum('bpq,bqc->bpc', att_h, v_h.transpose(0, 2, 1))
    z_h = conv1x1(z_h.transpose(0, 2, 1).reshape(B, C, H, W), 'z_h')

    k_m = conv1x1(prev_memory, 'key_m').reshape(B, hid, P)
    v_m = conv1x1(prev_memory, 'value_m').reshape(B, C, P)
    att_m = jax.nn.softmax(jnp.einsum('bph,bhq->bpq', q_h, k_m), axis=-1)
    z_m = jnp.einsum('bpq,bqc->bpc', att_m, v_m.transpose(0, 2, 1))
    z_m = conv1x1(z_m.transpose(0, 2, 1).reshape(B, C, H, W), 'z_m')

    Z = conv1x1(jnp.concatenate([z_h, z_m], axis=1), 'w_z')
    Wt = conv1x1(jnp.concatenate([Z, h_new], axis=1), 'w')
    mi, mg, mo = jnp.split(Wt, 3, axis=1)
    ig2 = jax.nn.sigmoid(mi)
    g2 = jnp.tanh(mg)
    new_M = (1 - ig2) * prev_memory + ig2 * g2
    new_H = jax.nn.sigmoid(mo) * new_M
    return new_H, c_new, new_M, att_h


# ---------------------------------------------------------------------------
if __name__ == "__main__":
    B, Cin, Cout, H, W = 2, 4, 32, 16, 16
    KSIZE = 3
    ATTN_HIDDEN = 16

    key = jax.random.PRNGKey(0)
    kp, kx, kh, kc, km, kci, kcf, kco = jax.random.split(key, 8)
    raw = make_params(kp, Cin, Cout, KSIZE, (H, W), ATTN_HIDDEN)
    # Module default is zero peepholes; give them small nonzero values in the
    # test so the W_ci/W_cf/W_co broadcast path is numerically exercised.
    raw['w_ci'] = 0.1 * jax.random.normal(kci, (Cout, H, W), jnp.float32)
    raw['w_cf'] = 0.1 * jax.random.normal(kcf, (Cout, H, W), jnp.float32)
    raw['w_co'] = 0.1 * jax.random.normal(kco, (Cout, H, W), jnp.float32)

    X = jax.random.normal(kx, (B, Cin, H, W), jnp.float32)
    prev_h = jax.random.normal(kh, (B, Cout, H, W), jnp.float32)
    prev_cell = jax.random.normal(kc, (B, Cout, H, W), jnp.float32)
    prev_mem = jax.random.normal(km, (B, Cout, H, W), jnp.float32)

    fwd = jax.jit(functools.partial(sam_convlstm_forward, kernel_size=KSIZE))
    out = fwd(raw, X, prev_h, prev_cell, prev_mem)
    out = jax.block_until_ready(out)

    ref = reference_forward(raw, X, prev_h, prev_cell, prev_mem)
    names = ("new_h", "new_cell", "new_memory", "attention_h")
    for n, o, r in zip(names, out, ref):
        err = float(jnp.max(jnp.abs(o.astype(jnp.float32) - r)))
        # bf16 MXU operands / bf16 attention output (f32 accumulation) -> loose tol.
        assert err < 2e-2, f"{n} mismatch: max abs err = {err}"

    print("KERNEL_OK")
</pallas_src>

<mosaic_0001>
module attributes {stable_mosaic.version = 11 : i64} {
  func.func @_sam_convlstm_kernel(%arg0: i32, %arg1: memref<1x256x324xbf16, #tpu.memory_space<vmem>>, %arg2: memref<324x128xbf16, #tpu.memory_space<vmem>>, %arg3: memref<1x128xf32, #tpu.memory_space<vmem>>, %arg4: memref<1x256x64xf32, #tpu.memory_space<vmem>>, %arg5: memref<256x96xf32, #tpu.memory_space<vmem>>, %arg6: memref<32x224xbf16, #tpu.memory_space<vmem>>, %arg7: memref<1x224xf32, #tpu.memory_space<vmem>>, %arg8: memref<32x112xbf16, #tpu.memory_space<vmem>>, %arg9: memref<1x112xf32, #tpu.memory_space<vmem>>, %arg10: memref<1x96xf32, #tpu.memory_space<vmem>>, %arg11: memref<1x256x96xf32, #tpu.memory_space<vmem>>, %arg12: memref<1x256x256xbf16, #tpu.memory_space<vmem>>) attributes {dimension_semantics = [#tpu.dimension_semantics<parallel>], iteration_bounds = array<i64: 2>, scalar_prefetch = 0 : i64, scratch_operands = 0 : i64, tpu.core_type = #tpu.core_type<tc>, window_params = [{transform_indices = @transform_0, window_bounds = array<i64: 1, 256, 324>}, {pipeline_mode = #tpu.pipeline_mode<synchronous>, transform_indices = @transform_1, window_bounds = array<i64: 324, 128>}, {pipeline_mode = #tpu.pipeline_mode<synchronous>, transform_indices = @transform_2, window_bounds = array<i64: 1, 128>}, {transform_indices = @transform_3, window_bounds = array<i64: 1, 256, 64>}, {pipeline_mode = #tpu.pipeline_mode<synchronous>, transform_indices = @transform_4, window_bounds = array<i64: 256, 96>}, {pipeline_mode = #tpu.pipeline_mode<synchronous>, transform_indices = @transform_5, window_bounds = array<i64: 32, 224>}, {pipeline_mode = #tpu.pipeline_mode<synchronous>, transform_indices = @transform_6, window_bounds = array<i64: 1, 224>}, {pipeline_mode = #tpu.pipeline_mode<synchronous>, transform_indices = @transform_7, window_bounds = array<i64: 32, 112>}, {pipeline_mode = #tpu.pipeline_mode<synchronous>, transform_indices = @transform_8, window_bounds = array<i64: 1, 112>}, {pipeline_mode = #tpu.pipeline_mode<synchronous>, transform_indices = @transform_9, window_bounds = array<i64: 1, 96>}, {transform_indices = @transform_10, window_bounds = array<i64: 1, 256, 96>}, {transform_indices = @transform_11, window_bounds = array<i64: 1, 256, 256>}]} {
    %c0 = arith.constant 0 : index
    %c0_0 = arith.constant 0 : index
    %c0_1 = arith.constant 0 : index
    %0 = vector.load %arg1[%c0, %c0_0, %c0_1] : memref<1x256x324xbf16, #tpu.memory_space<vmem>>, vector<1x256x324xbf16>
    %1 = vector.shape_cast %0 : vector<1x256x324xbf16> to vector<256x324xbf16>
    %c0_2 = arith.constant 0 : index
    %c0_3 = arith.constant 0 : index
    %2 = vector.load %arg2[%c0_2, %c0_3] : memref<324x128xbf16, #tpu.memory_space<vmem>>, vector<324x128xbf16>
    %cst = arith.constant dense<0.000000e+00> : vector<256x128xf32>
    %3 = tpu.matmul %1, %2, %cst {dimension_numbers = #tpu.dot_dimension_numbers<[1], [0], [0], [1], [0, 0, 1, 1], [], []>} : vector<256x324xbf16>, vector<324x128xbf16>, vector<256x128xf32> -> vector<256x128xf32>
    %c0_4 = arith.constant 0 : index
    %c0_5 = arith.constant 0 : index
    %4 = vector.load %arg3[%c0_4, %c0_5] : memref<1x128xf32, #tpu.memory_space<vmem>>, vector<1x128xf32>
    %5 = vector.broadcast %4 : vector<1x128xf32> to vector<256x128xf32>
    %6 = arith.addf %3, %5 : vector<256x128xf32>
    %c0_6 = arith.constant 0 : index
    %c0_7 = arith.constant 0 : index
    %c0_8 = arith.constant 0 : index
    %7 = vector.load %arg4[%c0_6, %c0_7, %c0_8] : memref<1x256x64xf32, #tpu.memory_space<vmem>>, vector<1x256x64xf32>
    %8 = vector.shape_cast %7 : vector<1x256x64xf32> to vector<256x64xf32>
    %9 = vector.extract_strided_slice %8 {offsets = [0, 0], sizes = [256, 32], strides = [1, 1]} : vector<256x64xf32> to vector<256x32xf32>
    %10 = vector.extract_strided_slice %8 {offsets = [0, 32], sizes = [256, 32], strides = [1, 1]} : vector<256x64xf32> to vector<256x32xf32>
    %c0_9 = arith.constant 0 : index
    %c0_10 = arith.constant 0 : index
    %11 = vector.load %arg5[%c0_9, %c0_10] : memref<256x96xf32, #tpu.memory_space<vmem>>, vector<256x96xf32>
    %12 = tpu.concatenate %9, %9 in 1 : vector<256x32xf32>, vector<256x32xf32> -> vector<256x64xf32>
    %13 = vector.extract_strided_slice %6 {offsets = [0, 0], sizes = [256, 64], strides = [1, 1]} : vector<256x128xf32> to vector<256x64xf32>
    %14 = vector.extract_strided_slice %11 {offsets = [0, 0], sizes = [256, 64], strides = [1, 1]} : vector<256x96xf32> to vector<256x64xf32>
    %15 = arith.mulf %14, %12 : vector<256x64xf32>
    %16 = arith.addf %13, %15 : vector<256x64xf32>
    %17 = arith.negf %16 : vector<256x64xf32>
    %18 = math.exp %17 : vector<256x64xf32>
    %cst_11 = arith.constant 1.000000e+00 : f32
    %19 = vector.broadcast %cst_11 : f32 to vector<256x64xf32>
    %20 = arith.addf %19, %18 : vector<256x64xf32>
    %21 = arith.divf %19, %20 : vector<256x64xf32>
    %22 = vector.extract_strided_slice %21 {offsets = [0, 0], sizes = [256, 32], strides = [1, 1]} : vector<256x64xf32> to vector<256x32xf32>
    %23 = vector.extract_strided_slice %21 {offsets = [0, 32], sizes = [256, 32], strides = [1, 1]} : vector<256x64xf32> to vector<256x32xf32>
    %24 = arith.mulf %23, %9 : vector<256x32xf32>
    %25 = vector.extract_strided_slice %6 {offsets = [0, 64], sizes = [256, 32], strides = [1, 1]} : vector<256x128xf32> to vector<256x32xf32>
    %26 = math.tanh %25 : vector<256x32xf32>
    %27 = arith.mulf %22, %26 : vector<256x32xf32>
    %28 = arith.addf %24, %27 : vector<256x32xf32>
    %29 = vector.extract_strided_slice %6 {offsets = [0, 96], sizes = [256, 32], strides = [1, 1]} : vector<256x128xf32> to vector<256x32xf32>
    %30 = vector.extract_strided_slice %11 {offsets = [0, 64], sizes = [256, 32], strides = [1, 1]} : vector<256x96xf32> to vector<256x32xf32>
    %31 = arith.mulf %30, %28 : vector<256x32xf32>
    %32 = arith.addf %29, %31 : vector<256x32xf32>
    %33 = arith.negf %32 : vector<256x32xf32>
    %34 = math.exp %33 : vector<256x32xf32>
    %cst_12 = arith.constant 1.000000e+00 : f32
    %35 = vector.broadcast %cst_12 : f32 to vector<256x32xf32>
    %36 = arith.addf %35, %34 : vector<256x32xf32>
    %37 = arith.divf %35, %36 : vector<256x32xf32>
    %38 = math.tanh %28 : vector<256x32xf32>
    %39 = arith.mulf %37, %38 : vector<256x32xf32>
    %40 = arith.truncf %39 : vector<256x32xf32> to vector<256x32xbf16>
    %41 = arith.truncf %10 : vector<256x32xf32> to vector<256x32xbf16>
    %c0_13 = arith.constant 0 : index
    %c0_14 = arith.constant 0 : index
    %42 = vector.load %arg6[%c0_13, %c0_14] : memref<32x224xbf16, #tpu.memory_space<vmem>>, vector<32x224xbf16>
    %cst_15 = arith.constant dense<0.000000e+00> : vector<256x224xf32>
    %43 = tpu.matmul %40, %42, %cst_15 {dimension_numbers = #tpu.dot_dimension_numbers<[1], [0], [0], [1], [0, 0, 1, 1], [], []>} : vector<256x32xbf16>, vector<32x224xbf16>, vector<256x224xf32> -> vector<256x224xf32>
    %c0_16 = arith.constant 0 : index
    %c0_17 = arith.constant 0 : index
    %44 = vector.load %arg7[%c0_16, %c0_17] : memref<1x224xf32, #tpu.memory_space<vmem>>, vector<1x224xf32>
    %45 = vector.broadcast %44 : vector<1x224xf32> to vector<256x224xf32>
    %46 = arith.addf %43, %45 : vector<256x224xf32>
    %c0_18 = arith.constant 0 : index
    %c0_19 = arith.constant 0 : index
    %47 = vector.load %arg8[%c0_18, %c0_19] : memref<32x112xbf16, #tpu.memory_space<vmem>>, vector<32x112xbf16>
    %cst_20 = arith.constant dense<0.000000e+00> : vector<256x112xf32>
    %48 = tpu.matmul %41, %47, %cst_20 {dimension_numbers = #tpu.dot_dimension_numbers<[1], [0], [0], [1], [0, 0, 1, 1], [], []>} : vector<256x32xbf16>, vector<32x112xbf16>, vector<256x112xf32> -> vector<256x112xf32>
    %c0_21 = arith.constant 0 : index
    %c0_22 = arith.constant 0 : index
    %49 = vector.load %arg9[%c0_21, %c0_22] : memref<1x112xf32, #tpu.memory_space<vmem>>, vector<1x112xf32>
    %50 = vector.broadcast %49 : vector<1x112xf32> to vector<256x112xf32>
    %51 = arith.addf %48, %50 : vector<256x112xf32>
    %52 = vector.extract_strided_slice %46 {offsets = [0, 0], sizes = [256, 16], strides = [1, 1]} : vector<256x224xf32> to vector<256x16xf32>
    %53 = arith.truncf %52 : vector<256x16xf32> to vector<256x16xbf16>
    %54 = vector.extract_strided_slice %46 {offsets = [0, 16], sizes = [256, 16], strides = [1, 1]} : vector<256x224xf32> to vector<256x16xf32>
    %55 = arith.truncf %54 : vector<256x16xf32> to vector<256x16xbf16>
    %56 = vector.extract_strided_slice %46 {offsets = [0, 32], sizes = [256, 96], strides = [1, 1]} : vector<256x224xf32> to vector<256x96xf32>
    %57 = vector.extract_strided_slice %46 {offsets = [0, 128], sizes = [256, 96], strides = [1, 1]} : vector<256x224xf32> to vector<256x96xf32>
    %58 = vector.extract_strided_slice %51 {offsets = [0, 0], sizes = [256, 16], strides = [1, 1]} : vector<256x112xf32> to vector<256x16xf32>
    %59 = arith.truncf %58 : vector<256x16xf32> to vector<256x16xbf16>
    %60 = vector.extract_strided_slice %51 {offsets = [0, 16], sizes = [256, 96], strides = [1, 1]} : vector<256x112xf32> to vector<256x96xf32>
    %cst_23 = arith.constant dense<0.000000e+00> : vector<256x256xf32>
    %61 = tpu.matmul %53, %55, %cst_23 {dimension_numbers = #tpu.dot_dimension_numbers<[1], [1], [0], [0], [0, 0, 1, 0], [], []>} : vector<256x16xbf16>, vector<256x16xbf16>, vector<256x256xf32> -> vector<256x256xf32>
    %cst_24 = arith.constant dense<0xFF800000> : vector<256xf32>
    %62 = vector.multi_reduction <maximumf>, %61, %cst_24 [1] : vector<256x256xf32> to vector<256xf32>
    %63 = vector.shape_cast %62 : vector<256xf32> to vector<256x1xf32>
    %64 = vector.broadcast %63 : vector<256x1xf32> to vector<256x256xf32>
    %65 = arith.subf %61, %64 : vector<256x256xf32>
    %66 = math.exp %65 : vector<256x256xf32>
    %cst_25 = arith.constant dense<0.000000e+00> : vector<256xf32>
    %67 = vector.multi_reduction <add>, %66, %cst_25 [1] : vector<256x256xf32> to vector<256xf32>
    %68 = vector.shape_cast %67 : vector<256xf32> to vector<256x1xf32>
    %69 = tpu.reciprocal %68 {approx = true} : vector<256x1xf32> -> vector<256x1xf32>
    %70 = vector.broadcast %69 : vector<256x1xf32> to vector<256x256xf32>
    %71 = arith.mulf %66, %70 : vector<256x256xf32>
    %72 = arith.truncf %71 : vector<256x256xf32> to vector<256x256xbf16>
    %c0_26 = arith.constant 0 : index
    %c0_27 = arith.constant 0 : index
    %c0_28 = arith.constant 0 : index
    %73 = vector.load %arg12[%c0_26, %c0_27, %c0_28] : memref<1x256x256xbf16, #tpu.memory_space<vmem>>, vector<1x256x256xbf16>
    %74 = vector.shape_cast %73 : vector<1x256x256xbf16> to vector<256x256xbf16>
    %75 = vector.shape_cast %72 : vector<256x256xbf16> to vector<1x256x256xbf16>
    tpu.vector_store %arg12[%c0_26, %c0_27, %c0_28], %75 {strides = array<i32>} : memref<1x256x256xbf16, #tpu.memory_space<vmem>>, vector<1x256x256xbf16>,
    %76 = arith.truncf %56 : vector<256x96xf32> to vector<256x96xbf16>
    %cst_29 = arith.constant dense<0.000000e+00> : vector<256x96xf32>
    %77 = tpu.matmul %72, %76, %cst_29 {dimension_numbers = #tpu.dot_dimension_numbers<[1], [0], [0], [1], [0, 0, 1, 1], [], []>} : vector<256x256xbf16>, vector<256x96xbf16>, vector<256x96xf32> -> vector<256x96xf32>
    %cst_30 = arith.constant dense<0.000000e+00> : vector<256x256xf32>
    %78 = tpu.matmul %53, %59, %cst_30 {dimension_numbers = #tpu.dot_dimension_numbers<[1], [1], [0], [0], [0, 0, 1, 0], [], []>} : vector<256x16xbf16>, vector<256x16xbf16>, vector<256x256xf32> -> vector<256x256xf32>
    %cst_31 = arith.constant dense<0xFF800000> : vector<256xf32>
    %79 = vector.multi_reduction <maximumf>, %78, %cst_31 [1] : vector<256x256xf32> to vector<256xf32>
    %80 = vector.shape_cast %79 : vector<256xf32> to vector<256x1xf32>
    %81 = vector.broadcast %80 : vector<256x1xf32> to vector<256x256xf32>
    %82 = arith.subf %78, %81 : vector<256x256xf32>
    %83 = math.exp %82 : vector<256x256xf32>
    %cst_32 = arith.constant dense<0.000000e+00> : vector<256xf32>
    %84 = vector.multi_reduction <add>, %83, %cst_32 [1] : vector<256x256xf32> to vector<256xf32>
    %85 = vector.shape_cast %84 : vector<256xf32> to vector<256x1xf32>
    %86 = tpu.reciprocal %85 {approx = true} : vector<256x1xf32> -> vector<256x1xf32>
    %87 = arith.truncf %83 : vector<256x256xf32> to vector<256x256xbf16>
    %88 = arith.truncf %60 : vector<256x96xf32> to vector<256x96xbf16>
    %cst_33 = arith.constant dense<0.000000e+00> : vector<256x96xf32>
    %89 = tpu.matmul %87, %88, %cst_33 {dimension_numbers = #tpu.dot_dimension_numbers<[1], [0], [0], [1], [0, 0, 1, 1], [], []>} : vector<256x256xbf16>, vector<256x96xbf16>, vector<256x96xf32> -> vector<256x96xf32>
    %90 = vector.broadcast %86 : vector<256x1xf32> to vector<256x96xf32>
    %91 = arith.mulf %89, %90 : vector<256x96xf32>
    %92 = arith.addf %77, %91 : vector<256x96xf32>
    %93 = arith.addf %92, %57 : vector<256x96xf32>
    %c0_34 = arith.constant 0 : index
    %c0_35 = arith.constant 0 : index
    %94 = vector.load %arg10[%c0_34, %c0_35] : memref<1x96xf32, #tpu.memory_space<vmem>>, vector<1x96xf32>
    %95 = vector.broadcast %94 : vector<1x96xf32> to vector<256x96xf32>
    %96 = arith.addf %93, %95 : vector<256x96xf32>
    %97 = vector.extract_strided_slice %96 {offsets = [0, 0], sizes = [256, 64], strides = [1, 1]} : vector<256x96xf32> to vector<256x64xf32>
    %98 = arith.negf %97 : vector<256x64xf32>
    %99 = math.exp %98 : vector<256x64xf32>
    %cst_36 = arith.constant 1.000000e+00 : f32
    %100 = vector.broadcast %cst_36 : f32 to vector<256x64xf32>
    %101 = arith.addf %100, %99 : vector<256x64xf32>
    %102 = arith.divf %100, %101 : vector<256x64xf32>
    %103 = vector.extract_strided_slice %102 {offsets = [0, 0], sizes = [256, 32], strides = [1, 1]} : vector<256x64xf32> to vector<256x32xf32>
    %104 = vector.extract_strided_slice %102 {offsets = [0, 32], sizes = [256, 32], strides = [1, 1]} : vector<256x64xf32> to vector<256x32xf32>
    %105 = vector.extract_strided_slice %96 {offsets = [0, 64], sizes = [256, 32], strides = [1, 1]} : vector<256x96xf32> to vector<256x32xf32>
    %106 = math.tanh %105 : vector<256x32xf32>
    %cst_37 = arith.constant 1.000000e+00 : f32
    %107 = vector.broadcast %cst_37 : f32 to vector<256x32xf32>
    %108 = arith.subf %107, %103 : vector<256x32xf32>
    %109 = arith.mulf %108, %10 : vector<256x32xf32>
    %110 = arith.mulf %103, %106 : vector<256x32xf32>
    %111 = arith.addf %109, %110 : vector<256x32xf32>
    %112 = arith.mulf %104, %111 : vector<256x32xf32>
    %113 = tpu.concatenate %112, %28, %111 in 1 : vector<256x32xf32>, vector<256x32xf32>, vector<256x32xf32> -> vector<256x96xf32>
    %c0_38 = arith.constant 0 : index
    %c0_39 = arith.constant 0 : index
    %c0_40 = arith.constant 0 : index
    %114 = vector.load %arg11[%c0_38, %c0_39, %c0_40] : memref<1x256x96xf32, #tpu.memory_space<vmem>>, vector<1x256x96xf32>
    %115 = vector.shape_cast %114 : vector<1x256x96xf32> to vector<256x96xf32>
    %116 = vector.shape_cast %113 : vector<256x96xf32> to vector<1x256x96xf32>
    tpu.vector_store %arg11[%c0_38, %c0_39, %c0_40], %116 {strides = array<i32>} : memref<1x256x96xf32, #tpu.memory_space<vmem>>, vector<1x256x96xf32>,
    return
  }
  func.func @transform_0(%arg0: i32) -> (i32, i32, i32) {
    %c0_i32 = arith.constant 0 : i32
    %c0_i32_0 = arith.constant 0 : i32
    %c0_i32_1 = arith.constant 0 : i32
    return %arg0, %c0_i32, %c0_i32_0 : i32, i32, i32
  }
  func.func @transform_1(%arg0: i32) -> (i32, i32) {
    %c0_i32 = arith.constant 0 : i32
    %c0_i32_0 = arith.constant 0 : i32
    %c0_i32_1 = arith.constant 0 : i32
    return %c0_i32, %c0_i32_0 : i32, i32
  }
  func.func @transform_2(%arg0: i32) -> (i32, i32) {
    %c0_i32 = arith.constant 0 : i32
    %c0_i32_0 = arith.constant 0 : i32
    %c0_i32_1 = arith.constant 0 : i32
    return %c0_i32, %c0_i32_0 : i32, i32
  }
  func.func @transform_3(%arg0: i32) -> (i32, i32, i32) {
    %c0_i32 = arith.constant 0 : i32
    %c0_i32_0 = arith.constant 0 : i32
    %c0_i32_1 = arith.constant 0 : i32
    return %arg0, %c0_i32, %c0_i32_0 : i32, i32, i32
  }
  func.func @transform_4(%arg0: i32) -> (i32, i32) {
    %c0_i32 = arith.constant 0 : i32
    %c0_i32_0 = arith.constant 0 : i32
    %c0_i32_1 = arith.constant 0 : i32
    return %c0_i32, %c0_i32_0 : i32, i32
  }
  func.func @transform_5(%arg0: i32) -> (i32, i32) {
    %c0_i32 = arith.constant 0 : i32
    %c0_i32_0 = arith.constant 0 : i32
    %c0_i32_1 = arith.constant 0 : i32
    return %c0_i32, %c0_i32_0 : i32, i32
  }
  func.func @transform_6(%arg0: i32) -> (i32, i32) {
    %c0_i32 = arith.constant 0 : i32
    %c0_i32_0 = arith.constant 0 : i32
    %c0_i32_1 = arith.constant 0 : i32
    return %c0_i32, %c0_i32_0 : i32, i32
  }
  func.func @transform_7(%arg0: i32) -> (i32, i32) {
    %c0_i32 = arith.constant 0 : i32
    %c0_i32_0 = arith.constant 0 : i32
    %c0_i32_1 = arith.constant 0 : i32
    return %c0_i32, %c0_i32_0 : i32, i32
  }
  func.func @transform_8(%arg0: i32) -> (i32, i32) {
    %c0_i32 = arith.constant 0 : i32
    %c0_i32_0 = arith.constant 0 : i32
    %c0_i32_1 = arith.constant 0 : i32
    return %c0_i32, %c0_i32_0 : i32, i32
  }
  func.func @transform_9(%arg0: i32) -> (i32, i32) {
    %c0_i32 = arith.constant 0 : i32
    %c0_i32_0 = arith.constant 0 : i32
    %c0_i32_1 = arith.constant 0 : i32
    return %c0_i32, %c0_i32_0 : i32, i32
  }
  func.func @transform_10(%arg0: i32) -> (i32, i32, i32) {
    %c0_i32 = arith.constant 0 : i32
    %c0_i32_0 = arith.constant 0 : i32
    %c0_i32_1 = arith.constant 0 : i32
    return %arg0, %c0_i32, %c0_i32_0 : i32, i32, i32
  }
  func.func @transform_11(%arg0: i32) -> (i32, i32, i32) {
    %c0_i32 = arith.constant 0 : i32
    %c0_i32_0 = arith.constant 0 : i32
    %c0_i32_1 = arith.constant 0 : i32
    return %arg0, %c0_i32, %c0_i32_0 : i32, i32, i32
  }
}

</mosaic_0001>

<bundles_post_ra>
// kernel: sam_convlstm_forward.1
= control target key start
LH: loop header
LB: loop body
LE: loop exit
PB: predicated region body
PF: predicated region fallthrough
CT: control target
= control target key end

     0   :  { %17 = vsyncpa [#allocation3], 0  ;;  %s13248_s0 = inlined_call_operand.vmem [shape: bf16[2,256,324], index: 0, kind: input, shape index: {}]   ;;  %s13249_s1 = inlined_call_operand.vmem [shape: bf16[324,128], index: 1, kind: input, shape index: {}]   ;;  %s13250_s2 = inlined_call_operand.vmem [shape: f32[1,128], index: 2, kind: input, shape index: {}]   ;;  %s13251_s3 = inlined_call_operand.vmem [shape: f32[2,256,64], index: 3, kind: input, shape index: {}]   ;;  %s13252_s4 = inlined_call_operand.vmem [shape: f32[256,96], index: 4, kind: input, shape index: {}]   ;;  %s13253_s5 = inlined_call_operand.vmem [shape: bf16[32,224], index: 5, kind: input, shape index: {}]   ;;  %s13254_s6 = inlined_call_operand.vmem [shape: f32[1,224], index: 6, kind: input, shape index: {}]   ;;  %s13255_s7 = inlined_call_operand.vmem [shape: bf16[32,112], index: 7, kind: input, shape index: {}]   ;;  %s13256_s8 = inlined_call_operand.vmem [shape: f32[1,112], index: 8, kind: input, shape index: {}]   ;;  %s13257_s9 = inlined_call_operand.vmem [shape: f32[1,96], index: 9, kind: input, shape index: {}]   ;;  %s13258_s10 = inlined_call_operand.vmem [shape: f32[2,256,96], index: 10, kind: output, shape index: {0}]   ;;  %s13259_s11 = inlined_call_operand.hbm [shape: bf16[2,256,256], index: 11, kind: output, shape index: {1}]  }
   0x1   :  { %19 = vsyncpa [#allocation3 + $0x1], 0  ;;  %s9190_s17 = smov 0   ;;  %s9192_s18 = smov 0  }
   0x2   :  { %s9194_s19 = smov 0   ;;  %s9196_s20 = smov 0  }
   0x3 LB: > { %13527 = sst [smem:[#allocation5_spill]] %s9116_s19  ;;  %s9211_s21 = sadd.s32 4294967295, %s9120_s20   ;;  %s9120_s20 = sphi %s9196_s20, %s14106_s20   ;;  %s9116_s19 = sphi %s9194_s19, %s14103_s19   ;;  %s9112_s18 = sphi %s9192_s18, %s14105_s18   ;;  %s9108_s17 = sphi %s9190_s17, %s14104_s17  }
   0x4   : > { %s6954_s22 = sadd.s32 4294967294, %s9120_s20   ;;  %s9215_s23 = sadd.s32 1, %s9120_s20  }
   0x5   : > { %s278_s24 = sadd.s32 1, %s9116_s19  ;;  %s275_s25 = ssub.s32 %s9120_s20, %s9215_s23 }
   0x6   : > { %p288_p0 = scmp.ne.s32.totalorder %s9116_s19, %s9112_s18  ;;  %p276_p1 = scmp.eq.s32.totalorder %s275_s25, 0 }
   0x7   : > { %p289_p2 = scmp.eq.s32.totalorder %s9211_s21, 1  ;;  %p294_p3 = scmp.ne.s32.totalorder %s9112_s18, %s9108_s17 }
   0x8   : > { %p295_p4 = scmp.eq.s32.totalorder %s6954_s22, 1  ;;  %p6957_p7 = scmp.ge.s32.totalorder %s9120_s20, 1 }
   0x9   : > { %s9226_s26 = scalar_select %p276_p1, %s9116_s19, %s278_s24  }
   0xa   : > { %p9228_p5 = por %p289_p2, %p288_p0  ;;  %p9232_p6 = por %p295_p4, %p294_p3 }
   0xb   : > { %13528 = sst [smem:[#allocation6_spill]] %s9226_s26  ;;  %p353_p8 = scmp.lt.s32.totalorder %s9120_s20, 3 }
   0xd   : > { %p354_p9 = pnand %p6957_p7, %p353_p8 }
   0xf   : > { %357 = sbr.rel (%p354_p9) target bundleno = 2733 (0xaad), region = 60 }
  0x16   : > { %v7903_v0 = vld [vmem:[%s13249_s1 + $0x40] sm:$0xff]   ;;  %v7905_v2 = vld [vmem:[%s13249_s1 + $0x48] sm:$0xff]   ;;  %v7907_v4 = vld [vmem:[%s13249_s1 + $0x50] sm:$0xff]   ;;  %p403_p10 = scmp.lt.s32.totalorder %s9211_s21, 1  ;;  %vm943_vm0 = vcmask 1041408   ;;  %vm894_vm1 = vcmask 556032  }
  0x17   : > { %v7904_v1 = vld [vmem:[%s13249_s1] sm:$0xff]   ;;  %7290 = vmatprep.subr.bf16.mxu0 %v7903_v0  ;;  %v7906_v3 = vld [vmem:[%s13249_s1 + $0x8] sm:$0xff]   ;;  %v7908_v5 = vld [vmem:[%s13249_s1 + $0x10] sm:$0xff]   ;;  %s9122_s26 = smov 32   ;;  %vm1461_vm2 = vcmask 261120   ;;  %s9125_s19 = smov 96  }
  0x18   : > { %7291 = vmatpush3.bf16.msra.mxu0 %v7904_v1  ;;  %v7909_v6 = vld [vmem:[%s13249_s1 + $0x58] sm:$0xff]   ;;  %v7911_v7 = vld [vmem:[%s13249_s1 + $0x80] sm:$0xff]   ;;  %s9267_s24 = scalar_select %p403_p10, %s9211_s21, 1  ;;  %v7914_v9 = vld [vmem:[%s13249_s1 + $0x88] sm:$0xff]   ;;  %vm3555_vm3 = vcmask 130048   ;;  %vm6767_vm4 = vcmask 523264  }
  0x19   : > { %7292 = vmatprep.subr.bf16.mxu0 %v7905_v2  ;;  %v7910_v8 = vld [vmem:[%s13249_s1 + $0x18] sm:$0xff]   ;;  %7761 = vmatprep.subr.bf16.mxu1 %v7911_v7  ;;  %v7912_v10 = vld [vmem:[%s13249_s1 + $0x60] sm:$0xff]   ;;  %v7917_v11 = vld [vmem:[%s13249_s1 + $0x90] sm:$0xff]   ;;  %s9126_s14 = smov 112   ;;  %s400_s29 = sand.u32 1, %s9112_s18   ;;  %vm6800_vm5 = vcmask 785408  }
  0x1a   : > { %7762 = vmatpush3.bf16.msra.mxu1 %v7911_v7  ;;  %s7856_s15 = smul.u32 384, %s9267_s24  ;;  %v7913_v12 = vld [vmem:[%s13249_s1 + $0x20] sm:$0xff]   ;;  %v7915_v13 = vld [vmem:[%s13249_s1 + $0x68] sm:$0xff]   ;;  %v7920_v14 = vld [vmem:[%s13249_s1 + $0x98] sm:$0xff]   ;;  %s13325_s22 = sshll.u32 %s9267_s24, 8 }
  0x1b   : > { %7763 = vmatprep.subr.bf16.mxu1 %v7914_v9  ;;  %v7916_v15 = vld [vmem:[%s13249_s1 + $0x28] sm:$0xff]   ;;  %v7918_v16 = vld [vmem:[%s13249_s1 + $0x70] sm:$0xff]   ;;  %v7923_v17 = vld [vmem:[%s13249_s1 + $0xa0] ss:$0 sps:$4 sm:$0x33]   ;;  %s9338_s30 = scalar_lea.vmem %s13251_s3, %s13325_s22  ;;  %s6958_s12 = sshll.u32 %s400_s29, 8 }
  0x1c   : > { %7293 = vmatpush3.bf16.msra.mxu0 %v7906_v3  ;;  %s9294_s16 = scalar_lea.vmem %s13248_s0, %s7856_s15  ;;  %v7919_v18 = vld [vmem:[%s13249_s1 + $0x30] sm:$0xff]   ;;  %v7921_v21 = vld [vmem:[%s13249_s1 + $0x78] sm:$0xff]   ;;  %v945_v22 = vsel %vm943_vm0, %v7923_v17, 0  ;;  %v9342_v37 = vld [vmem:[%s9338_s30] sm:$0xff]  ;;  %s11977_s15 = scalar_lea.vmem [#allocation2], %s6958_s12 }
  0x1d   : > { %7294 = vmatprep.subr.bf16.mxu0 %v7907_v4  ;;  %v7926_v19 = vld [vmem:[%s9294_s16 + $0x4] ss:$12 sps:$4 sm:$0xff]   ;;  %v7927_v20 = vld [vmem:[%s9294_s16 + $0x8] ss:$12 sps:$4 sm:$0xff]   ;;  %v7922_v23 = vld [vmem:[%s13249_s1 + $0x38] sm:$0xff]   ;;  %1365 = vrot.lane.b32.xlu0 %v9342_v37, %s9122_s26  ;;  %s9127_s25 = smov [#allocation2]  }
  0x1e   : > { %7764 = vmatpush3.bf16.msra.mxu1 %v7914_v9  ;;  %979 = vmatprep.mubr.bf16.mxu0 %v7926_v19  ;;  %v7928_v24 = vld [vmem:[%s9294_s16 + $0x20] ss:$12 sps:$4 sm:$0xff]   ;;  %v7935_v25 = vld [vmem:[%s9294_s16 + $0x38] ss:$12 sps:$4 sm:$0xff]   ;;  %v7929_v27 = vld [vmem:[%s9294_s16 + $0x1c] ss:$12 sps:$4 sm:$0xff]  }
  0x1f   : > { %7765 = vmatprep.subr.bf16.mxu1 %v7917_v11  ;;  %7771 = vmatprep.mubr.msk.bf16.mxu1 %vm894_vm1, %v7927_v20  ;;  %v7924_v26 = vld [vmem:[%s9294_s16] ss:$12 sps:$4 sm:$0xff]   ;;  %v7936_v28 = vld [vmem:[%s9294_s16 + $0x50] ss:$12 sps:$4 sm:$0xff]   ;;  %v7943_v29 = vld [vmem:[%s9294_s16 + $0x68] ss:$12 sps:$4 sm:$0xff]  }
  0x20   : > { %7295 = vmatpush3.bf16.msra.mxu0 %v7908_v5  ;;  %v7931_v30 = vld [vmem:[%s9294_s16 + $0x18] ss:$12 sps:$4 sm:$0xff]   ;;  %v7932_v31 = vld [vmem:[%s9294_s16 + $0x34] ss:$12 sps:$4 sm:$0xff]   ;;  %v7934_v34 = vld [vmem:[%s9294_s16 + $0x30] ss:$12 sps:$4 sm:$0xff]  }
  0x21   : > { %7296 = vmatprep.subr.bf16.mxu0 %v7909_v6  ;;  %v7944_v32 = vld [vmem:[%s9294_s16 + $0x80] ss:$12 sps:$4 sm:$0xff]   ;;  %v7951_v33 = vld [vmem:[%s9294_s16 + $0x98] ss:$12 sps:$4 sm:$0xff]   ;;  %v7952_v36 = vld [vmem:[%s9294_s16 + $0xb0] ss:$12 sps:$4 sm:$0xff]  }
  0x22   : > { %7766 = vmatpush3.bf16.msra.mxu1 %v7917_v11  ;;  %v7937_v35 = vld [vmem:[%s9294_s16 + $0x4c] ss:$12 sps:$4 sm:$0xff]   ;;  %v7959_v38 = vld [vmem:[%s9294_s16 + $0xc8] ss:$12 sps:$4 sm:$0xff]   ;;  %v7940_v42 = vld [vmem:[%s9294_s16 + $0x64] ss:$12 sps:$4 sm:$0xff]  }
  0x23   : > { %7767 = vmatprep.subr.bf16.mxu1 %v7920_v14  ;;  %v9348_v39 = vld [vmem:[%s9338_s30 + $0x8] sm:$0xff]  ;;  %v9353_v41 = vld [vmem:[%s9338_s30 + $0x10] sm:$0xff]  ;;  %v9362_v43 = vld [vmem:[%s9338_s30 + $0x18] sm:$0xff]  ;;  %s9062_s12 = sshll.u32 %s9127_s25, 4  ;;  %s9063_s12 = int_to_ptr.vmem [resolvable:$false] %s9062_s12 }
  0x24   : > { %7297 = vmatpush3.bf16.msra.mxu0 %v7910_v8  ;;  %v7939_v40 = vld [vmem:[%s9294_s16 + $0x48] ss:$12 sps:$4 sm:$0xff]   ;;  %1367 = vrot.lane.b32.xlu0 %v9348_v39, %s9122_s26  ;;  %v7960_v44 = vld [vmem:[%s9294_s16 + $0xe0] ss:$12 sps:$4 sm:$0xff]   ;;  %v7967_v46 = vld [vmem:[%s9294_s16 + $0xf8] ss:$12 sps:$4 sm:$0xff]  }
  0x25   : > { %7298 = vmatprep.subr.bf16.mxu0 %v7912_v10  ;;  %1369 = vrot.lane.b32.xlu1 %v9353_v41, %s9122_s26  ;;  %v9366_v45 = vld [vmem:[%s9338_s30 + $0x20] sm:$0xff]  ;;  %v9374_v47 = vld [vmem:[%s9338_s30 + $0x30] sm:$0xff]  ;;  %v9377_v48 = vld [vmem:[%s9338_s30 + $0x28] sm:$0xff] }
  0x26   : > { %7768 = vmatpush3.bf16.msra.mxu1 %v7920_v14  ;;  %v7942_v49 = vld [vmem:[%s9294_s16 + $0x60] ss:$12 sps:$4 sm:$0xff]   ;;  %v7945_v50 = vld [vmem:[%s9294_s16 + $0x7c] ss:$12 sps:$4 sm:$0xff]   ;;  %v9401_v56 = vld [vmem:[%s9338_s30 + $0x50] sm:$0xff] }
  0x27   : > { %7839 = vmatprep.subr.msk.bf16.mxu1 %vm943_vm0, %v7923_v17  ;;  %v9388_v51 = vld [vmem:[%s9338_s30 + $0x40] sm:$0xff]  ;;  %v9391_v52 = vld [vmem:[%s9338_s30 + $0x38] sm:$0xff]  ;;  %v7975_v54 = vld [vmem:[%s9294_s16 + $0x128] ss:$12 sps:$4 sm:$0xff]  }
  0x28   : > { %7299 = vmatpush3.bf16.msra.mxu0 %v7913_v12  ;;  %1373 = vrot.lane.b32.xlu0 %v9366_v45, %s9122_s26  ;;  %v7968_v53 = vld [vmem:[%s9294_s16 + $0x110] ss:$12 sps:$4 sm:$0xff]   ;;  %v9398_v55 = vld [vmem:[%s9338_s30 + $0x48] sm:$0xff]  ;;  %v7947_v57 = vld [vmem:[%s9294_s16 + $0x78] ss:$12 sps:$4 sm:$0xff]  }
  0x29   : > { %7300 = vmatprep.subr.bf16.mxu0 %v7915_v13  ;;  %1371 = vrot.lane.b32.xlu1 %v9362_v43, %s9122_s26  ;;  %v7948_v58 = vld [vmem:[%s9294_s16 + $0x94] ss:$12 sps:$4 sm:$0xff]   ;;  %v9417_v60 = vld [vmem:[%s9338_s30 + $0x58] sm:$0xff]  ;;  %v9427_v0 = vld [vmem:[%s9338_s30 + $0x68] sm:$0xff] }
  0x2a   : > { %7770 = vmatpush3.bf16.msra.mxu1 %v945_v22  ;;  %v9414_v59 = vld [vmem:[%s9338_s30 + $0x60] sm:$0xff]  ;;  %v1283_v63 = vld [vmem:[%s9338_s30 + $0x70] sm:$0xff]  ;;  %v7953_v2 = vld [vmem:[%s9294_s16 + $0xac] ss:$12 sps:$4 sm:$0xff]  }
  0x2b   : > { %v7976_v61 = vld [vmem:[%s9294_s16 + $0x140] ss:$12 sps:$4 sm:$0xff]   ;;  %v7983_v62 = vld [vmem:[%s9294_s16 + $0x158] ss:$12 sps:$4 sm:$0xff]   ;;  %v7950_v1 = vld [vmem:[%s9294_s16 + $0x90] ss:$12 sps:$4 sm:$0xff]  }
  0x2c   : > { %7301 = vmatpush3.bf16.msra.mxu0 %v7916_v15  ;;  %1377 = vrot.lane.b32.xlu0 %v9374_v47, %s9122_s26  ;;  %v1285_v3 = vld [vmem:[%s9338_s30 + $0x80] sm:$0xff]  ;;  %v1284_v4 = vld [vmem:[%s9338_s30 + $0x78] sm:$0xff]  ;;  %v1287_v6 = vld [vmem:[%s9338_s30 + $0x90] sm:$0xff] }
  0x2d   : > { %7302 = vmatprep.subr.bf16.mxu0 %v7918_v16  ;;  %7772 = vmatmul.mubr.msk.bf16.vlgmr.msra.gmra.mrb[0].mxu1 %vm894_vm1, %v7928_v24  ;;  %v7984_v5 = vld [vmem:[%s9294_s16 + $0x170] ss:$12 sps:$4 sm:$0xff]   ;;  %v1286_v7 = vld [vmem:[%s9338_s30 + $0x88] sm:$0xff]  ;;  %v1289_v10 = vld [vmem:[%s9338_s30 + $0xa0] sm:$0xff] }
  0x2e   : > { %7775 = vmatprep.mubr.msk.bf16.mxu1 %vm894_vm1, %v7935_v25  ;;  %1375 = vrot.lane.b32.xlu1 %v9377_v48, %s9122_s26  ;;  %v7955_v8 = vld [vmem:[%s9294_s16 + $0xa8] ss:$12 sps:$4 sm:$0xff]   ;;  %v7956_v9 = vld [vmem:[%s9294_s16 + $0xc4] ss:$12 sps:$4 sm:$0xff]   ;;  %v1288_v11 = vld [vmem:[%s9338_s30 + $0x98] sm:$0xff] }
  0x2f   : > { %v1291_v12 = vld [vmem:[%s9338_s30 + $0xb0] sm:$0xff]  ;;  %v1290_v13 = vld [vmem:[%s9338_s30 + $0xa8] sm:$0xff]  ;;  %v1293_v16 = vld [vmem:[%s9338_s30 + $0xc0] sm:$0xff] }
  0x30   : > { %7303 = vmatpush3.bf16.msra.mxu0 %v7919_v18  ;;  %1381 = vrot.lane.b32.xlu0 %v9388_v51, %s9122_s26  ;;  %v7958_v14 = vld [vmem:[%s9294_s16 + $0xc0] ss:$12 sps:$4 sm:$0xff]   ;;  %v7961_v15 = vld [vmem:[%s9294_s16 + $0xdc] ss:$12 sps:$4 sm:$0xff]   ;;  %v1295_v18 = vld [vmem:[%s9338_s30 + $0xd0] sm:$0xff] }
  0x31   : > { %7304 = vmatprep.subr.bf16.mxu0 %v7921_v21  ;;  %v1292_v17 = vld [vmem:[%s9338_s30 + $0xb8] sm:$0xff]  ;;  %v1294_v19 = vld [vmem:[%s9338_s30 + $0xc8] sm:$0xff]  ;;  %v7964_v21 = vld [vmem:[%s9294_s16 + $0xf4] ss:$12 sps:$4 sm:$0xff]  }
  0x32   : > { %1379 = vrot.lane.b32.xlu1 %v9391_v52, %s9122_s26  ;;  %v7963_v20 = vld [vmem:[%s9294_s16 + $0xd8] ss:$12 sps:$4 sm:$0xff]   ;;  %v7971_v25 = vld [vmem:[%s9294_s16 + $0x108] ss:$12 sps:$4 sm:$0xff]  }
  0x33   : > { %v1296_v22 = vld [vmem:[%s9338_s30 + $0xd8] sm:$0xff] }
  0x34   : > { %7305 = vmatpush3.bf16.msra.mxu0 %v7922_v23  ;;  %1385 = vrot.lane.b32.xlu0 %v9401_v56, %s9122_s26  ;;  %v7966_v23 = vld [vmem:[%s9294_s16 + $0xf0] ss:$12 sps:$4 sm:$0xff]   ;;  %v7969_v24 = vld [vmem:[%s9294_s16 + $0x10c] ss:$12 sps:$4 sm:$0xff]  }
  0x35   : > { %7776 = vmatmul.mubr.msk.bf16.gmra.mrb[4].mxu1 %vm894_vm1, %v7936_v28  ;;  %v1298_v28 = vld [vmem:[%s9338_s30 + $0xe8] sm:$0xff] }
  0x36   : > { %7779 = vmatprep.mubr.msk.bf16.mxu1 %vm894_vm1, %v7943_v29  ;;  %1383 = vrot.lane.b32.xlu1 %v9398_v55, %s9122_s26  ;;  %v7974_v29 = vld [vmem:[%s9294_s16 + $0x120] ss:$12 sps:$4 sm:$0xff]  }
  0x37   : > { %980 = vmatmul.mubr.bf16.vlgmr.msra.gmra.mrb[0].mxu0 %v7924_v26  ;;  %v1297_v26 = vld [vmem:[%s9338_s30 + $0xe0] sm:$0xff] }
  0x38   : > { %987 = vmatprep.mubr.bf16.mxu0 %v7929_v27  ;;  %1389 = vrot.lane.b32.xlu0 %v9414_v59, %s9122_s26  ;;  %v7972_v27 = vld [vmem:[%s9294_s16 + $0x124] ss:$12 sps:$4 sm:$0xff]  }
  0x3a   : > { %1387 = vrot.lane.b32.xlu1 %v9417_v60, %s9122_s26 }
  0x3c   : > { %1393 = vrot.lane.b32.xlu0 %v1283_v63, %s9122_s26 }
  0x3d   : > { %7780 = vmatmul.mubr.msk.bf16.gmra.mrb[8].mxu1 %vm894_vm1, %v7944_v32  ;;  %v1300_v32 = vld [vmem:[%s9338_s30 + $0xf8] sm:$0xff] }
  0x3e   : > { %7783 = vmatprep.mubr.msk.bf16.mxu1 %vm894_vm1, %v7951_v33  ;;  %1391 = vrot.lane.b32.xlu1 %v9427_v0, %s9122_s26  ;;  %v7979_v33 = vld [vmem:[%s9294_s16 + $0x138] ss:$12 sps:$4 sm:$0xff]  }
  0x3f   : > { %988 = vmatmul.mubr.bf16.gmra.mrb[4].mxu0 %v7931_v30  ;;  %v1299_v30 = vld [vmem:[%s9338_s30 + $0xf0] sm:$0xff] }
  0x40   : > { %995 = vmatprep.mubr.bf16.mxu0 %v7932_v31  ;;  %1397 = vrot.lane.b32.xlu0 %v1285_v3, %s9122_s26  ;;  %v7977_v31 = vld [vmem:[%s9294_s16 + $0x13c] ss:$12 sps:$4 sm:$0xff]  }
  0x42   : > { %1395 = vrot.lane.b32.xlu1 %v1284_v4, %s9122_s26 }
  0x44   : > { %1401 = vrot.lane.b32.xlu0 %v1287_v6, %s9122_s26 }
  0x45   : > { %7784 = vmatmul.mubr.msk.bf16.gmra.mrb[12].mxu1 %vm894_vm1, %v7952_v36  ;;  %v7985_v36 = vld [vmem:[%s9294_s16 + $0x16c] ss:$12 sps:$4 sm:$0xff]  }
  0x46   : > { %7787 = vmatprep.mubr.msk.bf16.mxu1 %vm894_vm1, %v7959_v38  ;;  %1399 = vrot.lane.b32.xlu1 %v1286_v7, %s9122_s26  ;;  %v7987_v38 = vld [vmem:[%s9294_s16 + $0x168] ss:$12 sps:$4 sm:$0xff]  }
  0x47   : > { %996 = vmatmul.mubr.bf16.gmra.mrb[8].mxu0 %v7934_v34  ;;  %v7980_v34 = vld [vmem:[%s9294_s16 + $0x154] ss:$12 sps:$4 sm:$0xff]  }
  0x48   : > { %1003 = vmatprep.mubr.bf16.mxu0 %v7937_v35  ;;  %1405 = vrot.lane.b32.xlu0 %v1289_v10, %s9122_s26  ;;  %v7982_v35 = vld [vmem:[%s9294_s16 + $0x150] ss:$12 sps:$4 sm:$0xff]   ;;  %s13525_s16 = smov 64  }
  0x4a   : > { %1403 = vrot.lane.b32.xlu1 %v1288_v11, %s9122_s26 }
  0x4c   : > { %1409 = vrot.lane.b32.xlu0 %v1291_v12, %s9122_s26 }
  0x4d   : > { %7788 = vmatmul.mubr.msk.bf16.gmra.mrb[16].mxu1 %vm894_vm1, %v7960_v44 }
  0x4e   : > { %7791 = vmatprep.mubr.msk.bf16.mxu1 %vm894_vm1, %v7967_v46  ;;  %1407 = vrot.lane.b32.xlu1 %v1290_v13, %s9122_s26 }
  0x4f   : > { %1004 = vmatmul.mubr.bf16.gmra.mrb[12].mxu0 %v7939_v40 }
  0x50   : > { %1011 = vmatprep.mubr.bf16.mxu0 %v7940_v42  ;;  %1413 = vrot.lane.b32.xlu0 %v1293_v16, %s9122_s26 }
  0x52   : > { %1411 = vrot.lane.b32.xlu1 %v1292_v17, %s9122_s26 }
  0x54   : > { %1417 = vrot.lane.b32.xlu0 %v1295_v18, %s9122_s26 }
  0x55   : > { %7792 = vmatmul.mubr.msk.bf16.gmra.mrb[20].mxu1 %vm894_vm1, %v7968_v53  ;;  %v9492_v53 = vld [vmem:[%s13250_s2] ss:$0 sm:$0xff] }
  0x56   : > { %7795 = vmatprep.mubr.msk.bf16.mxu1 %vm894_vm1, %v7975_v54  ;;  %1415 = vrot.lane.b32.xlu1 %v1294_v19, %s9122_s26 }
  0x57   : > { %1012 = vmatmul.mubr.bf16.gmra.mrb[16].mxu0 %v7942_v49 }
  0x58   : > { %1019 = vmatprep.mubr.bf16.mxu0 %v7945_v50  ;;  %1421 = vrot.lane.b32.xlu0 %v1297_v26, %s9122_s26 }
  0x5a   : > { %1419 = vrot.lane.b32.xlu1 %v1296_v22, %s9122_s26 }
  0x5c   : > { %1425 = vrot.lane.b32.xlu0 %v1299_v30, %s9122_s26 }
  0x5d   : > { %7796 = vmatmul.mubr.msk.bf16.gmra.mrb[24].mxu1 %vm894_vm1, %v7976_v61 }
  0x5e   : > { %7799 = vmatprep.mubr.msk.bf16.mxu1 %vm894_vm1, %v7983_v62  ;;  %1423 = vrot.lane.b32.xlu1 %v1298_v28, %s9122_s26 }
  0x5f   : > { %1020 = vmatmul.mubr.bf16.gmra.mrb[20].mxu0 %v7947_v57 }
  0x60   : > { %1027 = vmatprep.mubr.bf16.mxu0 %v7948_v58 }
  0x62   : > { %1427 = vrot.lane.b32.xlu1 %v1300_v32, %s9122_s26 }
  0x65   : > { %7800 = vmatmul.mubr.msk.bf16.gmra.mrb[28].mxu1 %vm894_vm1, %v7984_v5 }
  0x67   : > { %1028 = vmatmul.mubr.bf16.gmra.mrb[24].mxu0 %v7950_v1 }
  0x68   : > { %1035 = vmatprep.mubr.bf16.mxu0 %v7953_v2 }
  0x6f   : > { %1036 = vmatmul.mubr.bf16.gmra.mrb[28].mxu0 %v7955_v8 }
  0x70   : > { %1043 = vmatprep.mubr.bf16.mxu0 %v7956_v9 }
  0x77   : > { %1044 = vmatmul.mubr.bf16.gmra.mrb[32].mxu0 %v7958_v14 }
  0x78   : > { %1051 = vmatprep.mubr.bf16.mxu0 %v7961_v15 }
  0x7f   : > { %1052 = vmatmul.mubr.bf16.gmra.mrb[36].mxu0 %v7963_v20 }
  0x80   : > { %1059 = vmatprep.mubr.bf16.mxu0 %v7964_v21 }
  0x87   : > { %1060 = vmatmul.mubr.bf16.gmra.mrb[40].mxu0 %v7966_v23 }
  0x88   : > { %1067 = vmatprep.mubr.bf16.mxu0 %v7969_v24 }
  0x8f   : > { %1068 = vmatmul.mubr.bf16.gmra.mrb[44].mxu0 %v7971_v25 }
  0x90   : > { %1075 = vmatprep.mubr.bf16.mxu0 %v7972_v27 }
  0x97   : > { %1076 = vmatmul.mubr.bf16.gmra.mrb[48].mxu0 %v7974_v29 }
  0x98   : > { %1083 = vmatprep.mubr.bf16.mxu0 %v7977_v31 }
  0x9f   : > { %1084 = vmatmul.mubr.bf16.gmra.mrb[52].mxu0 %v7979_v33 }
  0xa0   : > { %1091 = vmatprep.mubr.bf16.mxu0 %v7980_v34 }
  0xa7   : > { %1092 = vmatmul.mubr.bf16.gmra.mrb[56].mxu0 %v7982_v35 }
  0xa8   : > { %1099 = vmatprep.mubr.bf16.mxu0 %v7985_v36 }
  0xaf   : > { %1100 = vmatmul.mubr.bf16.gmra.mrb[60].mxu0 %v7987_v38 }
 0x100   : > { %v7773_v40 = vpop.f32.mrb[0].mxu1 }
 0x101   : > { %v1142_v42 = vpop.f32.mrb[1].mxu1 }
 0x102   : > { %v7774_v44 = vpop.f32.mrb[2].mxu1 }
 0x103   : > { %v1145_v46 = vpop.f32.mrb[3].mxu1 }
 0x108   : > { %v7777_v63 = vpop.f32.mrb[4].mxu1 }
 0x109   : > { %v1158_v1 = vpop.f32.mrb[5].mxu1 }
 0x10a   : > { %v7306_v49 = vpop.f32.mrb[0].mxu0  ;;  %v7778_v4 = vpop.f32.mrb[6].mxu1 }
 0x10b   : > { %v7307_v50 = vpop.f32.mrb[1].mxu0  ;;  %v1161_v5 = vpop.f32.mrb[7].mxu1 }
 0x10c   : > { %v7308_v54 = vadd.f32 %v7307_v50, %v7306_v49  ;;  %v7309_v57 = vpop.f32.mrb[2].mxu0 }
 0x10d   : > { %v7310_v58 = vpop.f32.mrb[3].mxu0 }
 0x10e   : > { %v982_v61 = vadd.f32 %v7308_v54, %v9492_v53  ;;  %v7311_v62 = vadd.f32 %v7310_v58, %v7309_v57 }
 0x110   : > { %v9495_v2 = vadd.f32 %v1142_v42, %v982_v61  ;;  %v985_v3 = vadd.f32 %v7311_v62, %v9492_v53  ;;  %v9503_v14 = vpop.f32.mrb[8].mxu1 }
 0x111   : > { %v1174_v15 = vpop.f32.mrb[9].mxu1 }
 0x112   : > { %13531 = vst [vmem:[#allocation7_spill] sm:$0xff] %v9495_v2  ;;  %7996 = vtanh.f32 %v9495_v2  ;;  %v9499_v6 = vadd.f32 %v1145_v46, %v985_v3  ;;  %v7312_v7 = vpop.f32.mrb[4].mxu0  ;;  %v9508_v18 = vpop.f32.mrb[10].mxu1 }
 0x113   : > { %v7313_v8 = vpop.f32.mrb[5].mxu0  ;;  %v9510_v19 = vpop.f32.mrb[11].mxu1 }
 0x114   : > { %13532 = vst [vmem:[#allocation8_spill] sm:$0xff] %v9499_v6  ;;  %7998 = vtanh.f32 %v9499_v6  ;;  %v7314_v9 = vadd.f32 %v7313_v8, %v7312_v7  ;;  %v7315_v10 = vpop.f32.mrb[6].mxu0 }
 0x115   : > { %v7316_v11 = vpop.f32.mrb[7].mxu0 }
 0x116   : > { %v990_v12 = vadd.f32 %v7314_v9, %v9492_v53  ;;  %v7317_v13 = vadd.f32 %v7316_v11, %v7315_v10 }
 0x118   : > { %v9505_v16 = vadd.f32 %v7773_v40, %v990_v12  ;;  %v993_v17 = vadd.f32 %v7317_v13, %v9492_v53  ;;  %v9518_v30 = vpop.f32.mrb[12].mxu1 }
 0x119   : > { %v9521_v31 = vpop.f32.mrb[13].mxu1 }
 0x11a   : > { %13533 = vst [vmem:[#allocation9_spill] sm:$0xff] %v9505_v16  ;;  %8000 = vtanh.f32 %v9505_v16  ;;  %v9513_v20 = vadd.f32 %v7774_v44, %v993_v17  ;;  %v7318_v21 = vpop.f32.mrb[8].mxu0  ;;  %v9526_v34 = vpop.f32.mrb[14].mxu1 }
 0x11b   : > { %v7319_v22 = vpop.f32.mrb[9].mxu0  ;;  %v9528_v35 = vpop.f32.mrb[15].mxu1 }
 0x11c   : > { %13534 = vst [vmem:[#allocation10_spill] sm:$0xff] %v9513_v20  ;;  %v7997_v23 = vpop.eup %7996  ;;  %8002 = vtanh.f32 %v9513_v20  ;;  %v7320_v24 = vadd.f32 %v7319_v22, %v7318_v21  ;;  %v7321_v25 = vpop.f32.mrb[10].mxu0 }
 0x11d   : > { %v7322_v26 = vpop.f32.mrb[11].mxu0  ;;  %1846 = vrot.lane.b32.xlu0 %v7997_v23, %s13525_s16 }
 0x11e   : > { %v7999_v27 = vpop.eup %7998  ;;  %v7323_v28 = vadd.f32 %v7322_v26, %v7321_v25  ;;  %v998_v29 = vadd.f32 %v7320_v24, %v9492_v53 }
 0x11f   : > { %1848 = vrot.lane.b32.xlu1 %v7999_v27, %s13525_s16 }
 0x120   : > { %v9523_v32 = vadd.f32 %v1158_v1, %v998_v29  ;;  %v1001_v33 = vadd.f32 %v7323_v28, %v9492_v53  ;;  %v9536_v58 = vpop.f32.mrb[16].mxu1 }
 0x121   : > { %v9539_v61 = vpop.f32.mrb[17].mxu1 }
 0x122   : > { %13535 = vst [vmem:[#allocation11_spill] sm:$0xff] %v9523_v32  ;;  %8004 = vtanh.f32 %v9523_v32  ;;  %v9531_v36 = vadd.f32 %v1161_v5, %v1001_v33  ;;  %v7324_v38 = vpop.f32.mrb[12].mxu0  ;;  %v9544_v3 = vpop.f32.mrb[18].mxu1 }
 0x123   : > { %v7325_v40 = vpop.f32.mrb[13].mxu0  ;;  %v9546_v5 = vpop.f32.mrb[19].mxu1 }
 0x124   : > { %13536 = vst [vmem:[#allocation12_spill] sm:$0xff] %v9531_v36  ;;  %v8001_v42 = vpop.eup %8000  ;;  %8006 = vtanh.f32 %v9531_v36  ;;  %v7326_v44 = vadd.f32 %v7325_v40, %v7324_v38  ;;  %v7327_v46 = vpop.f32.mrb[14].mxu0 }
 0x125   : > { %v7328_v49 = vpop.f32.mrb[15].mxu0  ;;  %1850 = vrot.lane.b32.xlu0 %v8001_v42, %s13525_s16 }
 0x126   : > { %v8003_v50 = vpop.eup %8002  ;;  %v1006_v54 = vadd.f32 %v7326_v44, %v9492_v53  ;;  %v7329_v57 = vadd.f32 %v7328_v49, %v7327_v46 }
 0x127   : > { %1852 = vrot.lane.b32.xlu1 %v8003_v50, %s13525_s16 }
 0x128   : > { %v9541_v62 = vadd.f32 %v7777_v63, %v1006_v54  ;;  %v1009_v1 = vadd.f32 %v7329_v57, %v9492_v53  ;;  %v9554_v22 = vpop.f32.mrb[20].mxu1 }
 0x12a   : > { %13537 = vst [vmem:[#allocation13_spill] sm:$0xff] %v9541_v62  ;;  %8008 = vtanh.f32 %v9541_v62  ;;  %v9549_v7 = vadd.f32 %v7778_v4, %v1009_v1  ;;  %v7330_v8 = vpop.f32.mrb[16].mxu0  ;;  %v9557_v4 = vpop.f32.mrb[21].mxu1 }
 0x12b   : > { %v7331_v9 = vpop.f32.mrb[17].mxu0  ;;  %v9562_v25 = vpop.f32.mrb[22].mxu1 }
 0x12c   : > { %13538 = vst [vmem:[#allocation14_spill] sm:$0xff] %v9549_v7  ;;  %v8005_v10 = vpop.eup %8004  ;;  %8010 = vtanh.f32 %v9549_v7  ;;  %v7332_v11 = vadd.f32 %v7331_v9, %v7330_v8  ;;  %v7333_v12 = vpop.f32.mrb[18].mxu0 }
 0x12d   : > { %v7334_v13 = vpop.f32.mrb[19].mxu0  ;;  %1854 = vrot.lane.b32.xlu0 %v8005_v10, %s13525_s16  ;;  %v9564_v26 = vpop.f32.mrb[23].mxu1 }
 0x12e   : > { %v8007_v63 = vpop.eup %8006  ;;  %v7335_v17 = vadd.f32 %v7334_v13, %v7333_v12  ;;  %v1014_v21 = vadd.f32 %v7332_v11, %v9492_v53 }
 0x12f   : > { %1856 = vrot.lane.b32.xlu1 %v8007_v63, %s13525_s16 }
 0x130   : > { %v9559_v23 = vadd.f32 %v1174_v15, %v1014_v21  ;;  %v1017_v24 = vadd.f32 %v7335_v17, %v9492_v53  ;;  %v9573_v46 = vpop.f32.mrb[24].mxu1 }
 0x132   : > { %13539 = vst [vmem:[#allocation15_spill] sm:$0xff] %v9559_v23  ;;  %8012 = vtanh.f32 %v9559_v23  ;;  %v9568_v27 = vadd.f32 %v9510_v19, %v1017_v24  ;;  %v7336_v28 = vpop.f32.mrb[20].mxu0  ;;  %v9576_v19 = vpop.f32.mrb[25].mxu1 }
 0x133   : > { %v7337_v29 = vpop.f32.mrb[21].mxu0  ;;  %v9581_v54 = vpop.f32.mrb[26].mxu1 }
 0x134   : > { %13540 = vst [vmem:[#allocation16_spill] sm:$0xff] %v9568_v27  ;;  %v8009_v33 = vpop.eup %8008  ;;  %8014 = vtanh.f32 %v9568_v27  ;;  %v7338_v38 = vadd.f32 %v7337_v29, %v7336_v28  ;;  %v7339_v40 = vpop.f32.mrb[22].mxu0 }
 0x135   : > { %v7340_v15 = vpop.f32.mrb[23].mxu0  ;;  %1858 = vrot.lane.b32.xlu0 %v8009_v33, %s13525_s16  ;;  %v9584_v1 = vpop.f32.mrb[27].mxu1 }
 0x136   : > { %v8011_v42 = vpop.eup %8010  ;;  %v1022_v44 = vadd.f32 %v7338_v38, %v9492_v53  ;;  %v7341_v49 = vadd.f32 %v7340_v15, %v7339_v40 }
 0x137   : > { %1860 = vrot.lane.b32.xlu1 %v8011_v42, %s13525_s16 }
 0x138   : > { %v9579_v50 = vadd.f32 %v9503_v14, %v1022_v44  ;;  %v1025_v57 = vadd.f32 %v7341_v49, %v9492_v53  ;;  %v9593_v24 = vpop.f32.mrb[28].mxu1 }
 0x139   : > { %v9596_v28 = vpop.f32.mrb[29].mxu1 }
 0x13a   : > { %13541 = vst [vmem:[#allocation17_spill] sm:$0xff] %v9579_v50  ;;  %8016 = vtanh.f32 %v9579_v50  ;;  %v7342_v8 = vpop.f32.mrb[24].mxu0  ;;  %v9588_v9 = vadd.f32 %v9508_v18, %v1025_v57  ;;  %v9602_v33 = vpop.f32.mrb[30].mxu1 }
 0x13b   : > { %v7343_v10 = vpop.f32.mrb[25].mxu0  ;;  %v9604_v38 = vpop.f32.mrb[31].mxu1 }
 0x13c   : > { %13542 = vst [vmem:[#allocation18_spill] sm:$0xff] %v9588_v9  ;;  %v8013_v11 = vpop.eup %8012  ;;  %v7344_v12 = vadd.f32 %v7343_v10, %v7342_v8  ;;  %v7345_v13 = vpop.f32.mrb[26].mxu0  ;;  %8018 = vtanh.f32 %v9588_v9 }
 0x13d   : > { %v7346_v63 = vpop.f32.mrb[27].mxu0  ;;  %1862 = vrot.lane.b32.xlu0 %v8013_v11, %s13525_s16 }
 0x13e   : > { %v8015_v14 = vpop.eup %8014  ;;  %v7347_v17 = vadd.f32 %v7346_v63, %v7345_v13  ;;  %v1030_v21 = vadd.f32 %v7344_v12, %v9492_v53 }
 0x13f   : > { %1864 = vrot.lane.b32.xlu1 %v8015_v14, %s13525_s16 }
 0x140   : > { %v9599_v18 = vadd.f32 %v9521_v31, %v1030_v21  ;;  %v1033_v29 = vadd.f32 %v7347_v17, %v9492_v53 }
 0x142   : > { %13543 = vst [vmem:[#allocation19_spill] sm:$0xff] %v9599_v18  ;;  %8020 = vtanh.f32 %v9599_v18  ;;  %v9608_v40 = vadd.f32 %v9528_v35, %v1033_v29  ;;  %v7348_v15 = vpop.f32.mrb[28].mxu0 }
 0x143   : > { %v7349_v42 = vpop.f32.mrb[29].mxu0 }
 0x144   : > { %13544 = vst [vmem:[#allocation20_spill] sm:$0xff] %v9608_v40  ;;  %v8017_v44 = vpop.eup %8016  ;;  %8022 = vtanh.f32 %v9608_v40  ;;  %v7350_v49 = vadd.f32 %v7349_v42, %v7348_v15  ;;  %v7351_v57 = vpop.f32.mrb[30].mxu0 }
 0x145   : > { %v7352_v31 = vpop.f32.mrb[31].mxu0  ;;  %1866 = vrot.lane.b32.xlu0 %v8017_v44, %s13525_s16  ;;  %v9622_v15 = vpop.permute.xlu0 %1365 }
 0x146   : > { %v1038_v8 = vadd.f32 %v7350_v49, %v9492_v53  ;;  %v7353_v10 = vadd.f32 %v7352_v31, %v7351_v57  ;;  %v8019_v11 = vpop.eup %8018  ;;  %13547 = vst [vmem:[#allocation23_spill] sm:$0xff] %v9622_v15  ;;  %v9627_v57 = vpop.permute.xlu1 %1369 }
 0x147   : > { %1868 = vrot.lane.b32.xlu1 %v8019_v11, %s13525_s16  ;;  %13548 = vst [vmem:[#allocation24_spill] sm:$0xff] %v9627_v57 }
 0x148   : > { %v9614_v12 = vadd.f32 %v9518_v30, %v1038_v8  ;;  %v1041_v35 = vadd.f32 %v7353_v10, %v9492_v53 }
 0x149   : > { %v9638_v11 = vpop.permute.xlu0 %1367 }
 0x14a   : > { %13545 = vst [vmem:[#allocation21_spill] sm:$0xff] %v9614_v12  ;;  %8024 = vtanh.f32 %v9614_v12  ;;  %v7354_v13 = vpop.f32.mrb[32].mxu0  ;;  %v9620_v63 = vadd.f32 %v9526_v34, %v1041_v35  ;;  %13551 = vst [vmem:[#allocation27_spill] sm:$0xff] %v9638_v11 }
 0x14b   : > { %v7355_v14 = vpop.f32.mrb[33].mxu0 }
 0x14c   : > { %13546 = vst [vmem:[#allocation22_spill] sm:$0xff] %v9620_v63  ;;  %v8021_v17 = vpop.eup %8020  ;;  %v7356_v21 = vadd.f32 %v7355_v14, %v7354_v13  ;;  %v7357_v29 = vpop.f32.mrb[34].mxu0  ;;  %8026 = vtanh.f32 %v9620_v63 }
 0x14d   : > { %v7358_v30 = vpop.f32.mrb[35].mxu0  ;;  %1870 = vrot.lane.b32.xlu0 %v8021_v17, %s13525_s16 }
 0x14e   : > { %v8023_v42 = vpop.eup %8022  ;;  %v7359_v44 = vadd.f32 %v7358_v30, %v7357_v29  ;;  %v1046_v49 = vadd.f32 %v7356_v21, %v9492_v53  ;;  %v9641_v21 = vpop.permute.xlu1 %1371 }
 0x14f   : > { %1872 = vrot.lane.b32.xlu1 %v8023_v42, %s13525_s16  ;;  %13552 = vst [vmem:[#allocation28_spill] sm:$0xff] %v9641_v21 }
 0x150   : > { %v9631_v34 = vadd.f32 %v9539_v61, %v1046_v49  ;;  %v1049_v31 = vadd.f32 %v7359_v44, %v9492_v53 }
 0x152   : > { %13549 = vst [vmem:[#allocation25_spill] sm:$0xff] %v9631_v34  ;;  %8028 = vtanh.f32 %v9631_v34  ;;  %v9636_v8 = vadd.f32 %v9546_v5, %v1049_v31  ;;  %v7360_v10 = vpop.f32.mrb[36].mxu0  ;;  %v9645_v5 = vpop.permute.xlu0 %1373 }
 0x153   : > { %v7361_v35 = vpop.f32.mrb[37].mxu0  ;;  %v9652_v31 = vpop.permute.xlu1 %1375 }
 0x154   : > { %13550 = vst [vmem:[#allocation26_spill] sm:$0xff] %v9636_v8  ;;  %v8025_v13 = vpop.eup %8024  ;;  %8030 = vtanh.f32 %v9636_v8  ;;  %v7362_v14 = vadd.f32 %v7361_v35, %v7360_v10  ;;  %v7363_v17 = vpop.f32.mrb[38].mxu0  ;;  %13554 = vst [vmem:[#allocation30_spill] sm:$0xff] %v9652_v31 }
 0x155   : > { %v7364_v61 = vpop.f32.mrb[39].mxu0  ;;  %1874 = vrot.lane.b32.xlu0 %v8025_v13, %s13525_s16 }
 0x156   : > { %v1054_v29 = vadd.f32 %v7362_v14, %v9492_v53  ;;  %v7365_v30 = vadd.f32 %v7364_v61, %v7363_v17  ;;  %v8027_v42 = vpop.eup %8026  ;;  %v9658_v13 = vpop.permute.xlu0 %1377 }
 0x157   : > { %1876 = vrot.lane.b32.xlu1 %v8027_v42, %s13525_s16  ;;  %13556 = vst [vmem:[#allocation32_spill] sm:$0xff] %v9658_v13  ;;  %v9660_v8 = vpop.permute.xlu1 %1379 }
 0x158   : > { %v9648_v44 = vadd.f32 %v9536_v58, %v1054_v29  ;;  %v1057_v49 = vadd.f32 %v7365_v30, %v9492_v53  ;;  %13557 = vst [vmem:[#allocation33_spill] sm:$0xff] %v9660_v8 }
 0x15a   : > { %13553 = vst [vmem:[#allocation29_spill] sm:$0xff] %v9648_v44  ;;  %8032 = vtanh.f32 %v9648_v44  ;;  %v9656_v10 = vadd.f32 %v9544_v3, %v1057_v49  ;;  %v7366_v35 = vpop.f32.mrb[40].mxu0  ;;  %v9664_v44 = vpop.permute.xlu0 %1381 }
 0x15b   : > { %v7367_v14 = vpop.f32.mrb[41].mxu0  ;;  %v9669_v34 = vpop.permute.xlu1 %1383 }
 0x15c   : > { %13555 = vst [vmem:[#allocation31_spill] sm:$0xff] %v9656_v10  ;;  %v8029_v17 = vpop.eup %8028  ;;  %v7369_v61 = vpop.f32.mrb[42].mxu0  ;;  %8034 = vtanh.f32 %v9656_v10  ;;  %v7368_v58 = vadd.f32 %v7367_v14, %v7366_v35  ;;  %v1463_v10 = vsel %vm1461_vm2, %v9348_v39, %v9638_v11  ;;  %v1464_v39 = vsel %vm1461_vm2, %v9353_v41, %v9627_v57 }
 0x15d   : > { %v7370_v29 = vpop.f32.mrb[43].mxu0  ;;  %1878 = vrot.lane.b32.xlu0 %v8029_v17, %s13525_s16  ;;  %v1465_v11 = vsel %vm1461_vm2, %v9362_v43, %v9641_v21 }
 0x15e   : > { %v8031_v30 = vpop.eup %8030  ;;  %v7371_v42 = vadd.f32 %v7370_v29, %v7369_v61  ;;  %v1062_v3 = vadd.f32 %v7368_v58, %v9492_v53  ;;  %v9677_v17 = vpop.permute.xlu0 %1385 }
 0x15f   : > { %1880 = vrot.lane.b32.xlu1 %v8031_v30, %s13525_s16 }
 0x160   : > { %v1065_v49 = vadd.f32 %v7371_v42, %v9492_v53  ;;  %v9672_v63 = vadd.f32 %v9557_v4, %v1062_v3  ;;  %v1301_v42 = vld [vmem:[%s13252_s4] sm:$0xff]  ;;  %v1462_v4 = vsel %vm1461_vm2, %v9342_v37, %v9622_v15  ;;  %v9686_v3 = vpop.permute.xlu1 %1387 }
 0x161   : > { %v1494_v15 = vmul.f32 %v1462_v4, %v1301_v42 }
 0x162   : > { %13558 = vst [vmem:[#allocation34_spill] sm:$0xff] %v9672_v63  ;;  %v9675_v35 = vadd.f32 %v9564_v26, %v1065_v49  ;;  %v7372_v14 = vpop.f32.mrb[44].mxu0  ;;  %8036 = vtanh.f32 %v9672_v63  ;;  %v9697_v37 = vpop.permute.xlu0 %1389 }
 0x163   : > { %v7373_v61 = vpop.f32.mrb[45].mxu0 }
 0x164   : > { %13559 = vst [vmem:[#allocation35_spill] sm:$0xff] %v9675_v35  ;;  %v8033_v29 = vpop.eup %8032  ;;  %v7374_v58 = vadd.f32 %v7373_v61, %v7372_v14  ;;  %v7375_v30 = vpop.f32.mrb[46].mxu0  ;;  %8038 = vtanh.f32 %v9675_v35  ;;  %v1302_v61 = vld [vmem:[%s13252_s4 + $0x8] sm:$0xff] }
 0x165   : > { %v7376_v26 = vpop.f32.mrb[47].mxu0  ;;  %1882 = vrot.lane.b32.xlu0 %v8033_v29, %s13525_s16 }
 0x166   : > { %v1070_v49 = vadd.f32 %v7374_v58, %v9492_v53  ;;  %v7377_v63 = vadd.f32 %v7376_v26, %v7375_v30  ;;  %v8035_v14 = vpop.eup %8034  ;;  %v9704_v58 = vpop.permute.xlu1 %1391  ;;  %v1495_v30 = vmul.f32 %v1463_v10, %v1302_v61  ;;  %v1303_v26 = vld [vmem:[%s13252_s4 + $0x10] sm:$0xff] }
 0x167   : > { %1884 = vrot.lane.b32.xlu1 %v8035_v14, %s13525_s16  ;;  %v1496_v61 = vmul.f32 %v1464_v39, %v1303_v26 }
 0x168   : > { %v9700_v12 = vadd.f32 %v9554_v22, %v1070_v49  ;;  %v1073_v29 = vadd.f32 %v7377_v63, %v9492_v53  ;;  %v9716_v63 = vpop.permute.xlu0 %1393  ;;  %v1526_v49 = vadd.f32 %v1494_v15, %v9495_v2 }
 0x16a   : > { %13560 = vst [vmem:[#allocation36_spill] sm:$0xff] %v9700_v12  ;;  %8040 = vtanh.f32 %v9700_v12  ;;  %v9714_v22 = vadd.f32 %v9562_v25, %v1073_v29  ;;  %v7378_v42 = vpop.f32.mrb[48].mxu0  ;;  %v9722_v35 = vpop.permute.xlu1 %1395  ;;  %v1527_v25 = vadd.f32 %v1495_v30, %v9499_v6  ;;  %v1304_v29 = vld [vmem:[%s13252_s4 + $0x18] sm:$0xff]  ;;  %v7050_v39 = vmul.f32 -1.442695, %v1526_v49 }
 0x16b   : > { %v7379_v4 = vpop.f32.mrb[49].mxu0  ;;  %v1528_v6 = vadd.f32 %v1496_v61, %v9505_v16  ;;  %v1497_v2 = vmul.f32 %v1465_v11, %v1304_v29  ;;  %v1305_v11 = vld [vmem:[%s13252_s4 + $0x20] sm:$0xff]  ;;  %v1466_v61 = vsel %vm1461_vm2, %v9366_v45, %v9645_v5  ;;  %v1467_v45 = vsel %vm1461_vm2, %v9377_v48, %v9652_v31 }
 0x16c   : > { %13561 = vst [vmem:[#allocation37_spill] sm:$0xff] %v9714_v22  ;;  %v7380_v10 = vadd.f32 %v7379_v4, %v7378_v42  ;;  %v7381_v14 = vpop.f32.mrb[50].mxu0  ;;  %v8037_v57 = vpop.eup %8036  ;;  %8042 = vtanh.f32 %v9714_v22  ;;  %v1498_v16 = vmul.f32 %v1466_v61, %v1305_v11 }
 0x16d   : > { %v7382_v41 = vpop.f32.mrb[51].mxu0  ;;  %v9730_v26 = vpop.permute.xlu0 %1397  ;;  %1886 = vrot.lane.b32.xlu0 %v8037_v57, %s13525_s16 }
 0x16e   : > { %v7383_v15 = vadd.f32 %v7382_v41, %v7381_v14  ;;  %v1078_v42 = vadd.f32 %v7380_v10, %v9492_v53  ;;  %v8039_v43 = vpop.eup %8038  ;;  %v9738_v21 = vpop.permute.xlu1 %1399  ;;  %v7051_v14 = vmul.f32 -1.442695, %v1527_v25 }
 0x16f   : > { %1888 = vrot.lane.b32.xlu1 %v8039_v43, %s13525_s16 }
 0x170   : > { %v9734_v4 = vadd.f32 %v9576_v19, %v1078_v42  ;;  %v1081_v30 = vadd.f32 %v7383_v15, %v9492_v53  ;;  %v7052_v15 = vmul.f32 -1.442695, %v1528_v6 }
 0x171   : > { %v9745_v49 = vpop.permute.xlu0 %1401 }
 0x172   : > { %13562 = vst [vmem:[#allocation38_spill] sm:$0xff] %v9734_v4  ;;  %8044 = vtanh.f32 %v9734_v4  ;;  %v9743_v10 = vadd.f32 %v9584_v1, %v1081_v30  ;;  %v7384_v57 = vpop.f32.mrb[52].mxu0  ;;  %v1529_v1 = vadd.f32 %v1497_v2, %v9513_v20  ;;  %v9754_v42 = vpop.permute.xlu1 %1403  ;;  %v1306_v4 = vld [vmem:[%s13252_s4 + $0x28] sm:$0xff] }
 0x173   : > { %v7385_v19 = vpop.f32.mrb[53].mxu0  ;;  %8046 = vpow2.f32 %v7050_v39  ;;  %v1499_v11 = vmul.f32 %v1467_v45, %v1306_v4  ;;  %v1468_v4 = vsel %vm1461_vm2, %v9374_v47, %v9658_v13 }
 0x174   : > { %13563 = vst [vmem:[#allocation39_spill] sm:$0xff] %v9743_v10  ;;  %v8041_v41 = vpop.eup %8040  ;;  %v7386_v25 = vadd.f32 %v7385_v19, %v7384_v57  ;;  %v7387_v29 = vpop.f32.mrb[54].mxu0  ;;  %8048 = vpow2.f32 %v7051_v14  ;;  %v7053_v19 = vmul.f32 -1.442695, %v1529_v1  ;;  %v1307_v1 = vld [vmem:[%s13252_s4 + $0x30] sm:$0xff] }
 0x175   : > { %v7388_v43 = vpop.f32.mrb[55].mxu0  ;;  %1890 = vrot.lane.b32.xlu0 %v8041_v41, %s13525_s16  ;;  %v9764_v6 = vpop.permute.xlu0 %1405  ;;  %8050 = vtanh.f32 %v9743_v10 }
 0x176   : > { %v1086_v39 = vadd.f32 %v7386_v25, %v9492_v53  ;;  %v7389_v30 = vadd.f32 %v7388_v43, %v7387_v29  ;;  %13564 = vst [vmem:[#allocation40_spill] sm:$0xff] %v9764_v6  ;;  %v8043_v2 = vpop.eup %8042  ;;  %8052 = vpow2.f32 %v7052_v15  ;;  %v9771_v41 = vpop.permute.xlu1 %1407  ;;  %v1530_v25 = vadd.f32 %v1498_v16, %v9523_v32 }
 0x177   : > { %13566 = vst [vmem:[#allocation42_spill] sm:$0xff] %v9771_v41  ;;  %1892 = vrot.lane.b32.xlu1 %v8043_v2, %s13525_s16  ;;  %v1531_v2 = vadd.f32 %v1499_v11, %v9531_v36  ;;  %v1500_v32 = vmul.f32 %v1468_v4, %v1307_v1 }
 0x178   : > { %v9768_v57 = vadd.f32 %v9573_v46, %v1086_v39  ;;  %v1089_v14 = vadd.f32 %v7389_v30, %v9492_v53 }
 0x179   : > { %v9779_v29 = vpop.permute.xlu0 %1409  ;;  %v7055_v31 = vmul.f32 -1.442695, %v1531_v2 }
 0x17a   : > { %13565 = vst [vmem:[#allocation41_spill] sm:$0xff] %v9768_v57  ;;  %8054 = vtanh.f32 %v9768_v57  ;;  %v9776_v48 = vadd.f32 %v9581_v54, %v1089_v14  ;;  %v7390_v61 = vpop.f32.mrb[56].mxu0  ;;  %v1469_v54 = vsel %vm1461_vm2, %v9391_v52, %v9660_v8  ;;  %v9790_v16 = vpop.permute.xlu1 %1411  ;;  %v1308_v14 = vld [vmem:[%s13252_s4 + $0x38] sm:$0xff] }
 0x17b   : > { %v7391_v46 = vpop.f32.mrb[57].mxu0  ;;  %8056 = vpow2.f32 %v7053_v19  ;;  %v1501_v8 = vmul.f32 %v1469_v54, %v1308_v14  ;;  %v1532_v54 = vadd.f32 %v1500_v32, %v9541_v62  ;;  %v1309_v14 = vld [vmem:[%s13252_s4 + $0x40] sm:$0xff] }
 0x17c   : > { %v8045_v43 = vpop.eup %8044  ;;  %v7392_v39 = vadd.f32 %v7391_v46, %v7390_v61  ;;  %v7393_v15 = vpop.f32.mrb[58].mxu0  ;;  %8058 = vtanh.f32 %v9776_v48  ;;  %v7054_v61 = vmul.f32 -1.442695, %v1530_v25 }
 0x17d   : > { %v7394_v30 = vpop.f32.mrb[59].mxu0  ;;  %1894 = vrot.lane.b32.xlu0 %v8045_v43, %s13525_s16  ;;  %v8047_v45 = vpop.eup %8046 }
 0x17e   : > { %v7395_v19 = vadd.f32 %v7394_v30, %v7393_v15  ;;  %v1094_v47 = vadd.f32 %v7392_v39, %v9492_v53  ;;  %v9799_v46 = vpop.permute.xlu0 %1413  ;;  %v8049_v52 = vpop.eup %8048  ;;  %v1654_v36 = vadd.f32 1.0, %v8047_v45 }
 0x17f   : > { %v8051_v11 = vpop.eup %8050  ;;  %v9805_v13 = vpop.permute.xlu1 %1415  ;;  %v1655_v1 = vadd.f32 1.0, %v8049_v52 }
 0x180   : > { %v9802_v20 = vadd.f32 %v9596_v28, %v1094_v47  ;;  %v1097_v43 = vadd.f32 %v7395_v19, %v9492_v53  ;;  %1896 = vrot.lane.b32.xlu1 %v8051_v11, %s13525_s16  ;;  %v8053_v15 = vpop.eup %8052  ;;  %v1470_v19 = vsel %vm1461_vm2, %v9388_v51, %v9664_v44  ;;  %v1471_v51 = vsel %vm1461_vm2, %v9398_v55, %v9669_v34 }
 0x182   : > { %8060 = vtanh.f32 %v9802_v20  ;;  %v9809_v39 = vadd.f32 %v9604_v38, %v1097_v43  ;;  %v7396_v25 = vpop.f32.mrb[60].mxu0  ;;  %v9812_v28 = vpop.permute.xlu0 %1417  ;;  %v1533_v38 = vadd.f32 %v1501_v8, %v9549_v7  ;;  %v1656_v8 = vadd.f32 1.0, %v8053_v15  ;;  %v1310_v43 = vld [vmem:[%s13252_s4 + $0x48] sm:$0xff] }
 0x183   : > { %8062 = vpow2.f32 %v7054_v61  ;;  %v7397_v4 = vpop.f32.mrb[61].mxu0  ;;  %v9823_v47 = vpop.permute.xlu1 %1419 }
 0x184   : > { %13567 = vst [vmem:[#allocation43_spill] sm:$0xff] %v9809_v39  ;;  %v8055_v30 = vpop.eup %8054  ;;  %8064 = vtanh.f32 %v9809_v39  ;;  %v7398_v45 = vadd.f32 %v7397_v4, %v7396_v25  ;;  %v7399_v2 = vpop.f32.mrb[62].mxu0  ;;  %13568 = vst [vmem:[#allocation44_spill] sm:$0xff] %v9823_v47  ;;  %v7056_v4 = vmul.f32 -1.442695, %v1532_v54 }
 0x185   : > { %8066 = vrcp.f32 %v1654_v36  ;;  %v7400_v61 = vpop.f32.mrb[63].mxu0  ;;  %1898 = vrot.lane.b32.xlu0 %v8055_v30, %s13525_s16  ;;  %v8057_v36 = vpop.eup %8056  ;;  %v1502_v30 = vmul.f32 %v1470_v19, %v1309_v14  ;;  %v1472_v19 = vsel %vm1461_vm2, %v9401_v56, %v9677_v17 }
 0x186   : > { %8068 = vpow2.f32 %v7055_v31  ;;  %v1102_v32 = vadd.f32 %v7398_v45, %v9492_v53  ;;  %v7401_v52 = vadd.f32 %v7400_v61, %v7399_v2  ;;  %v9833_v11 = vpop.permute.xlu0 %1421  ;;  %v8059_v25 = vpop.eup %8058  ;;  %v1503_v2 = vmul.f32 %v1471_v51, %v1310_v43 }
 0x187   : > { %8070 = vrcp.f32 %v1655_v1  ;;  %13569 = vst [vmem:[#allocation45_spill] sm:$0xff] %v9833_v11  ;;  %v7057_v1 = vmul.f32 -1.442695, %v1533_v38  ;;  %v9839_v15 = vpop.permute.xlu1 %1423  ;;  %1900 = vrot.lane.b32.xlu1 %v8059_v25, %s13525_s16  ;;  %v1657_v61 = vadd.f32 1.0, %v8057_v36  ;;  %v1311_v38 = vld [vmem:[%s13252_s4 + $0x50] sm:$0xff] }
 0x188   : > { %v9836_v31 = vadd.f32 %v9593_v24, %v1102_v32  ;;  %v1105_v45 = vadd.f32 %v7401_v52, %v9492_v53  ;;  %13570 = vst [vmem:[#allocation46_spill] sm:$0xff] %v9839_v15  ;;  %v1534_v24 = vadd.f32 %v1502_v30, %v9559_v23  ;;  %v1535_v52 = vadd.f32 %v1503_v2, %v9568_v27 }
 0x189   : > { %v1504_v25 = vmul.f32 %v1472_v19, %v1311_v38 }
 0x18a   : > { %8072 = vtanh.f32 %v9836_v31  ;;  %v9844_v55 = vadd.f32 %v9602_v33, %v1105_v45  ;;  %v9846_v54 = vpop.permute.xlu0 %1425  ;;  %v7058_v51 = vmul.f32 -1.442695, %v1534_v24  ;;  %v1312_v45 = vld [vmem:[%s13252_s4 + $0x58] sm:$0xff] }
 0x18b   : > { %8074 = vrcp.f32 %v1656_v8  ;;  %v9855_v33 = vpop.permute.xlu1 %1427  ;;  %v1536_v19 = vadd.f32 %v1504_v25, %v9579_v50  ;;  %v1475_v25 = vsel %vm1461_vm2, %v9427_v0, %v9704_v58 }
 0x18c   : > { %13571 = vst [vmem:[#allocation47_spill] sm:$0xff] %v9844_v55  ;;  %v8061_v14 = vpop.eup %8060  ;;  %8076 = vpow2.f32 %v7056_v4 }
 0x18d   : > { %v8063_v53 = vpop.eup %8062  ;;  %8078 = vpow2.f32 %v7057_v1  ;;  %1902 = vrot.lane.b32.xlu0 %v8061_v14, %s13525_s16  ;;  %v1473_v1 = vsel %vm1461_vm2, %v9417_v60, %v9686_v3  ;;  %v1313_v60 = vld [vmem:[%s13252_s4 + $0x60] sm:$0xff] }
 0x18e   : > { %v8065_v32 = vpop.eup %8064  ;;  %8080 = vtanh.f32 %v9844_v55  ;;  %v1658_v30 = vadd.f32 1.0, %v8063_v53  ;;  %v1505_v53 = vmul.f32 %v1473_v1, %v1312_v45  ;;  %v7060_v45 = vmul.f32 -1.442695, %v1536_v19 }
 0x18f   : > { %v9860_v36 = vpop.eup %8066  ;;  %8082 = vrcp.f32 %v1657_v61  ;;  %1904 = vrot.lane.b32.xlu1 %v8065_v32, %s13525_s16  ;;  %v1847_v8 = vpop.permute.xlu0 %1846  ;;  %v7059_v61 = vmul.f32 -1.442695, %v1535_v52  ;;  %v1474_v52 = vsel %vm1461_vm2, %v9414_v59, %v9697_v37 }
 0x190   : > { %v8069_v43 = vpop.eup %8068  ;;  %v1942_v56 = vmul.f32 %v9860_v36, %v1847_v8  ;;  %8084 = vpow2.f32 %v7058_v51  ;;  %v1314_v51 = vld [vmem:[%s13252_s4 + $0x68] sm:$0xff]  ;;  %v1537_v59 = vadd.f32 %v1505_v53, %v9588_v9  ;;  %v1506_v1 = vmul.f32 %v1474_v52, %v1313_v60  ;;  %v1315_v53 = vld [vmem:[%s13252_s4 + $0x70] sm:$0xff] }
 0x191   : > { %v9864_v4 = vpop.eup %8070  ;;  %v1849_v2 = vpop.permute.xlu1 %1848  ;;  %v1659_v24 = vadd.f32 1.0, %v8069_v43  ;;  %8086 = vrcp.f32 %v1658_v30  ;;  %v8956_v60 = vld [vmem:[%s9338_s30 + $0x70] sm:$0xff] }
 0x192   : > { %v1943_v14 = vmul.f32 %v9864_v4, %v1849_v2  ;;  %2006 = vrot.lane.b32.xlu0 %v1942_v56, %s9122_s26  ;;  %8088 = vpow2.f32 %v7059_v61  ;;  %v7061_v19 = vmul.f32 -1.442695, %v1537_v59  ;;  %v1538_v27 = vadd.f32 %v1506_v1, %v9599_v18  ;;  %v9912_v59 = vld [vmem:[%s13252_s4 + $0x78] sm:$0xff] }
 0x193   : > { %8090 = vrcp.f32 %v1659_v24  ;;  %v1476_v52 = vsel %vm1461_vm2, %v8956_v60, %v9716_v63  ;;  %13572 = vst [vmem:[#allocation48_spill] sm:$0xff] %v9912_v59  ;;  %v8957_v1 = vld [vmem:[%s9338_s30 + $0x78] sm:$0xff]  ;;  %v13573_v60 = vld [vmem:[#allocation21_spill] sm:$0xff] }
 0x194   : > { %v8073_v38 = vpop.eup %8072  ;;  %2008 = vrot.lane.b32.xlu1 %v1943_v14, %s9122_s26  ;;  %8092 = vpow2.f32 %v7060_v45  ;;  %v7062_v45 = vmul.f32 -1.442695, %v1538_v27 }
 0x195   : > { %v9876_v32 = vpop.eup %8074 }
 0x196   : > { %v8077_v8 = vpop.eup %8076  ;;  %1906 = vrot.lane.b32.xlu0 %v8073_v38, %s13525_s16  ;;  %v1507_v38 = vmul.f32 %v1475_v25, %v1314_v51  ;;  %v1508_v25 = vmul.f32 %v1476_v52, %v1315_v53 }
 0x197   : > { %v8079_v43 = vpop.eup %8078  ;;  %v1851_v56 = vpop.permute.xlu0 %1850  ;;  %v1660_v14 = vadd.f32 1.0, %v8077_v8 }
 0x198   : > { %v8081_v30 = vpop.eup %8080  ;;  %v1944_v2 = vmul.f32 %v9876_v32, %v1851_v56  ;;  %v1661_v0 = vadd.f32 1.0, %v8079_v43  ;;  %v1539_v51 = vadd.f32 %v1507_v38, %v9608_v40  ;;  %v1540_v52 = vadd.f32 %v1508_v25, %v13573_v60 }
 0x199   : > { %v9893_v61 = vpop.eup %8082  ;;  %1908 = vrot.lane.b32.xlu1 %v8081_v30, %s13525_s16  ;;  %v1853_v24 = vpop.permute.xlu1 %1852  ;;  %8094 = vrcp.f32 %v1660_v14 }
 0x19a   : > { %v1945_v50 = vmul.f32 %v9893_v61, %v1853_v24  ;;  %2010 = vrot.lane.b32.xlu0 %v1944_v2, %s9122_s26  ;;  %v8085_v8 = vpop.eup %8084  ;;  %8096 = vrcp.f32 %v1661_v0  ;;  %v7063_v0 = vmul.f32 -1.442695, %v1539_v51  ;;  %v9936_v51 = vld [vmem:[%s13252_s4 + $0x88] sm:$0xff] }
 0x19b   : > { %v9907_v43 = vpop.eup %8086  ;;  %8098 = vpow2.f32 %v7061_v19  ;;  %v1662_v24 = vadd.f32 1.0, %v8085_v8  ;;  %13575 = vst [vmem:[#allocation50_spill] sm:$0xff] %v9936_v51 }
 0x19c   : > { %v8089_v30 = vpop.eup %8088  ;;  %8100 = vpow2.f32 %v7062_v45 }
 0x19d   : > { %2012 = vrot.lane.b32.xlu1 %v1945_v50, %s9122_s26  ;;  %v1477_v50 = vsel %vm1461_vm2, %v8957_v1, %v9722_v35  ;;  %v9918_v14 = vpop.eup %8090  ;;  %v1663_v19 = vadd.f32 1.0, %v8089_v30  ;;  %v8958_v1 = vld [vmem:[%s9338_s30 + $0x80] sm:$0xff]  ;;  %8102 = vrcp.f32 %v1662_v24  ;;  %v8959_v30 = vld [vmem:[%s9338_s30 + $0x88] sm:$0xff]  ;;  %v7064_v24 = vmul.f32 -1.442695, %v1540_v52  ;;  %v13578_v52 = vld [vmem:[#allocation26_spill] sm:$0xff] }
 0x19e   : > { %v1509_v53 = vmul.f32 %v1477_v50, %v9912_v59  ;;  %v1478_v8 = vsel %vm1461_vm2, %v8958_v1, %v9730_v26  ;;  %v1479_v25 = vsel %vm1461_vm2, %v8959_v30, %v9738_v21  ;;  %v8093_v45 = vpop.eup %8092  ;;  %8104 = vpow2.f32 %v7063_v0 }
 0x19f   : > { %v1855_v56 = vpop.permute.xlu0 %1854  ;;  %8106 = vrcp.f32 %v1663_v19  ;;  %v1511_v60 = vmul.f32 %v1479_v25, %v9936_v51  ;;  %v1664_v9 = vadd.f32 1.0, %v8093_v45  ;;  %v9957_v45 = vld [vmem:[%s13252_s4 + $0x90] sm:$0xff] }
 0x1a0   : > { %v1946_v2 = vmul.f32 %v9907_v43, %v1855_v56  ;;  %v9927_v56 = vld [vmem:[%s13252_s4 + $0x80] sm:$0xff]  ;;  %8108 = vpow2.f32 %v7064_v24  ;;  %13579 = vst [vmem:[#allocation51_spill] sm:$0xff] %v9957_v45 }
 0x1a1   : > { %v1857_v38 = vpop.permute.xlu1 %1856  ;;  %13574 = vst [vmem:[#allocation49_spill] sm:$0xff] %v9927_v56  ;;  %v1510_v1 = vmul.f32 %v1478_v8, %v9927_v56  ;;  %8110 = vrcp.f32 %v1664_v9 }
 0x1a2   : > { %v1947_v27 = vmul.f32 %v9918_v14, %v1857_v38  ;;  %2014 = vrot.lane.b32.xlu0 %v1946_v2, %s9122_s26  ;;  %v13576_v2 = vld [vmem:[#allocation22_spill] sm:$0xff] }
 0x1a3   : > { %v9941_v50 = vpop.eup %8094  ;;  %v1541_v38 = vadd.f32 %v1509_v53, %v13576_v2  ;;  %v13577_v53 = vld [vmem:[#allocation25_spill] sm:$0xff]  ;;  %v1543_v2 = vadd.f32 %v1511_v60, %v13578_v52  ;;  %v9967_v60 = vld [vmem:[%s13252_s4 + $0x98] sm:$0xff] }
 0x1a4   : > { %2016 = vrot.lane.b32.xlu1 %v1947_v27, %s9122_s26  ;;  %v9947_v18 = vpop.eup %8096  ;;  %v1542_v8 = vadd.f32 %v1510_v1, %v13577_v53  ;;  %13580 = vst [vmem:[#allocation52_spill] sm:$0xff] %v9967_v60 }
 0x1a5   : > { %v8099_v23 = vpop.eup %8098  ;;  %v7065_v19 = vmul.f32 -1.442695, %v1541_v38  ;;  %v7067_v52 = vmul.f32 -1.442695, %v1543_v2  ;;  %v13581_v2 = vld [vmem:[#allocation29_spill] sm:$0xff] }
 0x1a6   : > { %v1665_v25 = vadd.f32 1.0, %v8099_v23  ;;  %v7066_v1 = vmul.f32 -1.442695, %v1542_v8  ;;  %v8961_v23 = vld [vmem:[%s9338_s30 + $0x98] sm:$0xff] }
 0x1a7   : > { %v1859_v27 = vpop.permute.xlu0 %1858  ;;  %8112 = vpow2.f32 %v7065_v19  ;;  %v1481_v9 = vsel %vm1461_vm2, %v8961_v23, %v9754_v42 }
 0x1a8   : > { %v1948_v40 = vmul.f32 %v9941_v50, %v1859_v27  ;;  %v8960_v27 = vld [vmem:[%s9338_s30 + $0x90] sm:$0xff]  ;;  %8114 = vrcp.f32 %v1665_v25  ;;  %v1513_v62 = vmul.f32 %v1481_v9, %v9967_v60  ;;  %v13582_v25 = vld [vmem:[#allocation31_spill] sm:$0xff] }
 0x1a9   : > { %v1861_v30 = vpop.permute.xlu1 %1860  ;;  %8116 = vpow2.f32 %v7066_v1  ;;  %v9987_v9 = vld [vmem:[%s13252_s4 + $0xa0] sm:$0xff] }
 0x1aa   : > { %v1949_v0 = vmul.f32 %v9947_v18, %v1861_v30  ;;  %2018 = vrot.lane.b32.xlu0 %v1948_v40, %s9122_s26  ;;  %v1480_v40 = vsel %vm1461_vm2, %v8960_v27, %v9745_v49  ;;  %v8101_v30 = vpop.eup %8100  ;;  %8118 = vpow2.f32 %v7067_v52  ;;  %13583 = vst [vmem:[#allocation53_spill] sm:$0xff] %v9987_v9 }
 0x1ab   : > { %v9962_v38 = vpop.eup %8102  ;;  %v1512_v53 = vmul.f32 %v1480_v40, %v9957_v45  ;;  %v1666_v19 = vadd.f32 1.0, %v8101_v30  ;;  %v1545_v30 = vadd.f32 %v1513_v62, %v13582_v25  ;;  %v8963_v62 = vld [vmem:[%s9338_s30 + $0xa8] sm:$0xff] }
 0x1ac   : > { %2020 = vrot.lane.b32.xlu1 %v1949_v0, %s9122_s26  ;;  %v8105_v0 = vpop.eup %8104 }
 0x1ad   : > { %v9974_v7 = vpop.eup %8106  ;;  %v1667_v23 = vadd.f32 1.0, %v8105_v0  ;;  %v1544_v40 = vadd.f32 %v1512_v53, %v13581_v2  ;;  %8120 = vrcp.f32 %v1666_v19  ;;  %v8962_v0 = vld [vmem:[%s9338_s30 + $0xa0] sm:$0xff]  ;;  %v7069_v2 = vmul.f32 -1.442695, %v1545_v30  ;;  %v8964_v30 = vld [vmem:[%s9338_s30 + $0xb0] sm:$0xff] }
 0x1ae   : > { %v1482_v52 = vsel %vm1461_vm2, %v8962_v0, %v9764_v6 }
 0x1af   : > { %v1863_v24 = vpop.permute.xlu0 %1862  ;;  %8122 = vrcp.f32 %v1667_v23  ;;  %v7068_v53 = vmul.f32 -1.442695, %v1544_v40  ;;  %v1514_v25 = vmul.f32 %v1482_v52, %v9987_v9  ;;  %v1484_v52 = vsel %vm1461_vm2, %v8964_v30, %v9779_v29 }
 0x1b0   : > { %v1950_v27 = vmul.f32 %v9962_v38, %v1863_v24  ;;  %v8109_v24 = vpop.eup %8108 }
 0x1b1   : > { %v1865_v8 = vpop.permute.xlu1 %1864  ;;  %v9982_v45 = vpop.eup %8110  ;;  %v1668_v23 = vadd.f32 1.0, %v8109_v24  ;;  %8124 = vpow2.f32 %v7068_v53  ;;  %v10010_v24 = vld [vmem:[%s13252_s4 + $0xb0] sm:$0xff] }
 0x1b2   : > { %v1951_v51 = vmul.f32 %v9974_v7, %v1865_v8  ;;  %2022 = vrot.lane.b32.xlu0 %v1950_v27, %s9122_s26  ;;  %v1483_v27 = vsel %vm1461_vm2, %v8963_v62, %v9771_v41  ;;  %v8113_v8 = vpop.eup %8112  ;;  %13585 = vst [vmem:[#allocation55_spill] sm:$0xff] %v10010_v24  ;;  %v1516_v9 = vmul.f32 %v1484_v52, %v10010_v24 }
 0x1b3   : > { %v10003_v40 = vpop.eup %8114  ;;  %v1669_v56 = vadd.f32 1.0, %v8113_v8  ;;  %8126 = vrcp.f32 %v1668_v23 }
 0x1b4   : > { %2024 = vrot.lane.b32.xlu1 %v1951_v51, %s9122_s26  ;;  %v9995_v51 = vld [vmem:[%s13252_s4 + $0xa8] sm:$0xff]  ;;  %v8117_v62 = vpop.eup %8116  ;;  %8128 = vpow2.f32 %v7069_v2  ;;  %v10027_v2 = vld [vmem:[%s13252_s4 + $0xb8] sm:$0xff] }
 0x1b5   : > { %13584 = vst [vmem:[#allocation54_spill] sm:$0xff] %v9995_v51  ;;  %v1515_v0 = vmul.f32 %v1483_v27, %v9995_v51  ;;  %v13586_v27 = vld [vmem:[#allocation34_spill] sm:$0xff]  ;;  %8130 = vrcp.f32 %v1669_v56  ;;  %v1670_v51 = vadd.f32 1.0, %v8117_v62  ;;  %13588 = vst [vmem:[#allocation56_spill] sm:$0xff] %v10027_v2 }
 0x1b7   : > { %v1867_v1 = vpop.permute.xlu0 %1866  ;;  %8132 = vrcp.f32 %v1670_v51 }
 0x1b8   : > { %v1952_v19 = vmul.f32 %v9982_v45, %v1867_v1  ;;  %v8119_v1 = vpop.eup %8118 }
 0x1b9   : > { %v1869_v60 = vpop.permute.xlu1 %1868  ;;  %v10017_v53 = vpop.eup %8120  ;;  %v1671_v30 = vadd.f32 1.0, %v8119_v1 }
 0x1ba   : > { %2026 = vrot.lane.b32.xlu0 %v1952_v19, %s9122_s26  ;;  %v1953_v59 = vmul.f32 %v10003_v40, %v1869_v60  ;;  %v1546_v19 = vadd.f32 %v1514_v25, %v13586_v27  ;;  %v13587_v60 = vld [vmem:[#allocation35_spill] sm:$0xff]  ;;  %v10022_v6 = vpop.eup %8122 }
 0x1bb   : > { %v1547_v8 = vadd.f32 %v1515_v0, %v13587_v60  ;;  %8134 = vrcp.f32 %v1671_v30  ;;  %v10040_v60 = vld [vmem:[%s13252_s4 + $0xc0] sm:$0xff] }
 0x1bc   : > { %2028 = vrot.lane.b32.xlu1 %v1953_v59, %s9122_s26  ;;  %v8965_v59 = vld [vmem:[%s9338_s30 + $0xb8] sm:$0xff]  ;;  %v7070_v56 = vmul.f32 -1.442695, %v1546_v19  ;;  %13589 = vst [vmem:[#allocation57_spill] sm:$0xff] %v10040_v60  ;;  %v8966_v19 = vld [vmem:[%s9338_s30 + $0xc0] sm:$0xff] }
 0x1bd   : > { %v1485_v25 = vsel %vm1461_vm2, %v8965_v59, %v9790_v16  ;;  %v7071_v52 = vmul.f32 -1.442695, %v1547_v8  ;;  %v1486_v59 = vsel %vm1461_vm2, %v8966_v19, %v9799_v46  ;;  %v8967_v19 = vld [vmem:[%s9338_s30 + $0xc8] sm:$0xff] }
 0x1be   : > { %v1517_v1 = vmul.f32 %v1485_v25, %v10027_v2  ;;  %8136 = vpow2.f32 %v7070_v56  ;;  %v10055_v56 = vld [vmem:[%s13252_s4 + $0xc8] sm:$0xff]  ;;  %v8968_v2 = vld [vmem:[%s9338_s30 + $0xd0] sm:$0xff] }
 0x1bf   : > { %v1871_v23 = vpop.permute.xlu0 %1870  ;;  %8138 = vpow2.f32 %v7071_v52  ;;  %13590 = vst [vmem:[#allocation58_spill] sm:$0xff] %v10055_v56  ;;  %v1487_v52 = vsel %vm1461_vm2, %v8967_v19, %v9805_v13  ;;  %v1488_v24 = vsel %vm1461_vm2, %v8968_v2, %v9812_v28 }
 0x1c0   : > { %v1954_v41 = vmul.f32 %v10017_v53, %v1871_v23  ;;  %v1548_v23 = vadd.f32 %v1516_v9, %v9700_v12  ;;  %v1549_v30 = vadd.f32 %v1517_v1, %v9714_v22 }
 0x1c1   : > { %v1873_v0 = vpop.permute.xlu1 %1872 }
 0x1c2   : > { %v1955_v62 = vmul.f32 %v10022_v6, %v1873_v0  ;;  %2030 = vrot.lane.b32.xlu0 %v1954_v41, %s9122_s26  ;;  %v8125_v41 = vpop.eup %8124  ;;  %v7072_v25 = vmul.f32 -1.442695, %v1548_v23  ;;  %v1518_v0 = vmul.f32 %v1486_v59, %v10040_v60  ;;  %v10066_v60 = vld [vmem:[%s13252_s4 + $0xd0] sm:$0xff] }
 0x1c3   : > { %v10045_v51 = vpop.eup %8126  ;;  %v1672_v12 = vadd.f32 1.0, %v8125_v41  ;;  %v13591_v41 = vld [vmem:[#allocation38_spill] sm:$0xff]  ;;  %13592 = vst [vmem:[#allocation59_spill] sm:$0xff] %v10066_v60 }
 0x1c4   : > { %2032 = vrot.lane.b32.xlu1 %v1955_v62, %s9122_s26  ;;  %v8129_v8 = vpop.eup %8128  ;;  %8140 = vpow2.f32 %v7072_v25  ;;  %v1550_v22 = vadd.f32 %v1518_v0, %v13591_v41 }
 0x1c5   : > { %v10050_v27 = vpop.eup %8130  ;;  %v1673_v1 = vadd.f32 1.0, %v8129_v8  ;;  %8142 = vrcp.f32 %v1672_v12 }
 0x1c6   : > { %v10073_v8 = vpop.eup %8132 }
 0x1c7   : > { %v1875_v9 = vpop.permute.xlu0 %1874  ;;  %v10075_v25 = vpop.eup %8134  ;;  %8144 = vrcp.f32 %v1673_v1 }
 0x1c8   : > { %v1956_v62 = vmul.f32 %v10045_v51, %v1875_v9  ;;  %v7073_v9 = vmul.f32 -1.442695, %v1549_v30  ;;  %v1520_v30 = vmul.f32 %v1488_v24, %v10066_v60  ;;  %v8137_v19 = vpop.eup %8136 }
 0x1c9   : > { %v1877_v23 = vpop.permute.xlu1 %1876  ;;  %v8139_v2 = vpop.eup %8138 }
 0x1ca   : > { %2034 = vrot.lane.b32.xlu0 %v1956_v62, %s9122_s26  ;;  %v1957_v59 = vmul.f32 %v10050_v27, %v1877_v23  ;;  %v1519_v62 = vmul.f32 %v1487_v52, %v10055_v56  ;;  %8146 = vpow2.f32 %v7073_v9  ;;  %v7074_v23 = vmul.f32 -1.442695, %v1550_v22  ;;  %v10083_v52 = vld [vmem:[%s13252_s4 + $0xd8] sm:$0xff]  ;;  %v8970_v56 = vld [vmem:[%s9338_s30 + $0xe0] sm:$0xff] }
 0x1cb   : > { %13593 = vst [vmem:[#allocation60_spill] sm:$0xff] %v10083_v52  ;;  %v1674_v22 = vadd.f32 1.0, %v8137_v19  ;;  %v1552_v9 = vadd.f32 %v1520_v30, %v9768_v57  ;;  %v1330_v19 = vld [vmem:[%s13252_s4 + $0xe8] sm:$0xff] }
 0x1cc   : > { %2036 = vrot.lane.b32.xlu1 %v1957_v59, %s9122_s26  ;;  %v1551_v12 = vadd.f32 %v1519_v62, %v9743_v10  ;;  %v8969_v59 = vld [vmem:[%s9338_s30 + $0xd8] sm:$0xff]  ;;  %8148 = vpow2.f32 %v7074_v23  ;;  %v8971_v23 = vld [vmem:[%s9338_s30 + $0xe8] sm:$0xff] }
 0x1cd   : > { %v1489_v1 = vsel %vm1461_vm2, %v8969_v59, %v9823_v47  ;;  %v1329_v59 = vld [vmem:[%s13252_s4 + $0xe0] sm:$0xff]  ;;  %8150 = vrcp.f32 %v1674_v22  ;;  %v7076_v30 = vmul.f32 -1.442695, %v1552_v9 }
 0x1ce   : > { %v1521_v62 = vmul.f32 %v1489_v1, %v10083_v52  ;;  %v7075_v10 = vmul.f32 -1.442695, %v1551_v12 }
 0x1cf   : > { %v1879_v0 = vpop.permute.xlu0 %1878 }
 0x1d0   : > { %v1958_v41 = vmul.f32 %v10073_v8, %v1879_v0  ;;  %v1675_v0 = vadd.f32 1.0, %v8139_v2  ;;  %v1553_v12 = vadd.f32 %v1521_v62, %v9776_v48 }
 0x1d1   : > { %v1881_v24 = vpop.permute.xlu1 %1880 }
 0x1d2   : > { %v1959_v60 = vmul.f32 %v10075_v25, %v1881_v24  ;;  %2038 = vrot.lane.b32.xlu0 %v1958_v41, %s9122_s26  ;;  %v1490_v24 = vsel %vm1461_vm2, %v8970_v56, %v9833_v11  ;;  %v8141_v41 = vpop.eup %8140  ;;  %8152 = vrcp.f32 %v1675_v0 }
 0x1d3   : > { %v10099_v47 = vpop.eup %8142  ;;  %v1522_v1 = vmul.f32 %v1490_v24, %v1329_v59  ;;  %v1676_v52 = vadd.f32 1.0, %v8141_v41  ;;  %8154 = vpow2.f32 %v7075_v10  ;;  %v1331_v10 = vld [vmem:[%s13252_s4 + $0xf0] sm:$0xff] }
 0x1d4   : > { %2040 = vrot.lane.b32.xlu1 %v1959_v60, %s9122_s26  ;;  %v1491_v60 = vsel %vm1461_vm2, %v8971_v23, %v9839_v15  ;;  %v10109_v57 = vpop.eup %8144  ;;  %8156 = vpow2.f32 %v7076_v30  ;;  %v7077_v15 = vmul.f32 -1.442695, %v1553_v12  ;;  %v8972_v41 = vld [vmem:[%s9338_s30 + $0xf0] sm:$0xff]  ;;  %v8973_v12 = vld [vmem:[%s9338_s30 + $0xf8] sm:$0xff] }
 0x1d5   : > { %v8147_v22 = vpop.eup %8146  ;;  %v1523_v9 = vmul.f32 %v1491_v60, %v1330_v19  ;;  %v1554_v0 = vadd.f32 %v1522_v1, %v9802_v20  ;;  %8158 = vrcp.f32 %v1676_v52  ;;  %v1492_v30 = vsel %vm1461_vm2, %v8972_v41, %v9846_v54 }
 0x1d6   : > { %v1677_v62 = vadd.f32 1.0, %v8147_v22  ;;  %v8149_v59 = vpop.eup %8148  ;;  %8160 = vpow2.f32 %v7077_v15  ;;  %v1524_v60 = vmul.f32 %v1492_v30, %v1331_v10  ;;  %v1493_v1 = vsel %vm1461_vm2, %v8973_v12, %v9855_v33 }
 0x1d7   : > { %v1883_v2 = vpop.permute.xlu0 %1882  ;;  %v1555_v24 = vadd.f32 %v1523_v9, %v9809_v39  ;;  %v10122_v19 = vpop.eup %8150  ;;  %v1678_v52 = vadd.f32 1.0, %v8149_v59 }
 0x1d8   : > { %v1960_v56 = vmul.f32 %v10099_v47, %v1883_v2  ;;  %8162 = vrcp.f32 %v1677_v62  ;;  %v1332_v2 = vld [vmem:[%s13252_s4 + $0xf8] sm:$0xff]  ;;  %v1556_v41 = vadd.f32 %v1524_v60, %v9836_v31 }
 0x1d9   : > { %v1885_v11 = vpop.permute.xlu1 %1884  ;;  %v7079_v9 = vmul.f32 -1.442695, %v1555_v24  ;;  %v1525_v62 = vmul.f32 %v1493_v1, %v1332_v2 }
 0x1da   : > { %2042 = vrot.lane.b32.xlu0 %v1960_v56, %s9122_s26  ;;  %v1961_v23 = vmul.f32 %v10109_v57, %v1885_v11  ;;  %v7078_v11 = vmul.f32 -1.442695, %v1554_v0  ;;  %v7080_v2 = vmul.f32 -1.442695, %v1556_v41 }
 0x1db   : > { %v1557_v39 = vadd.f32 %v1525_v62, %v9844_v55 }
 0x1dc   : > { %2044 = vrot.lane.b32.xlu1 %v1961_v23, %s9122_s26  ;;  %v10130_v22 = vpop.eup %8152  ;;  %8164 = vpow2.f32 %v7078_v11 }
 0x1dd   : > { %v8155_v23 = vpop.eup %8154  ;;  %8166 = vrcp.f32 %v1678_v52 }
 0x1de   : > { %v8157_v10 = vpop.eup %8156  ;;  %v1679_v30 = vadd.f32 1.0, %v8155_v23  ;;  %8168 = vpow2.f32 %v7079_v9  ;;  %v7081_v9 = vmul.f32 -1.442695, %v1557_v39 }
 0x1df   : > { %v1887_v56 = vpop.permute.xlu0 %1886  ;;  %v10137_v12 = vpop.eup %8158 }
 0x1e0   : > { %v1962_v15 = vmul.f32 %v10122_v19, %v1887_v56  ;;  %v1680_v56 = vadd.f32 1.0, %v8157_v10  ;;  %v8161_v1 = vpop.eup %8160  ;;  %8170 = vrcp.f32 %v1679_v30 }
 0x1e1   : > { %v1889_v0 = vpop.permute.xlu1 %1888  ;;  %v1681_v23 = vadd.f32 1.0, %v8161_v1 }
 0x1e2   : > { %v1963_v59 = vmul.f32 %v10130_v22, %v1889_v0  ;;  %2046 = vrot.lane.b32.xlu0 %v1962_v15, %s9122_s26  ;;  %v10142_v52 = vpop.eup %8162  ;;  %8172 = vrcp.f32 %v1680_v56 }
 0x1e3   : > { %8174 = vpow2.f32 %v7080_v2 }
 0x1e4   : > { %2048 = vrot.lane.b32.xlu1 %v1963_v59, %s9122_s26  ;;  %8176 = vpow2.f32 %v7081_v9 }
 0x1e5   : > { %8178 = vrcp.f32 %v1681_v23 }
 0x1e6   : > { %v8165_v0 = vpop.eup %8164 }
 0x1e7   : > { %v1891_v24 = vpop.permute.xlu0 %1890  ;;  %v10146_v62 = vpop.eup %8166  ;;  %v1682_v30 = vadd.f32 1.0, %v8165_v0 }
 0x1e8   : > { %v1964_v11 = vmul.f32 %v10137_v12, %v1891_v24  ;;  %v8169_v10 = vpop.eup %8168 }
 0x1e9   : > { %v1893_v60 = vpop.permute.xlu1 %1892  ;;  %v1683_v24 = vadd.f32 1.0, %v8169_v10  ;;  %8180 = vrcp.f32 %v1682_v30 }
 0x1ea   : > { %2050 = vrot.lane.b32.xlu0 %v1964_v11, %s9122_s26  ;;  %v1965_v15 = vmul.f32 %v10142_v52, %v1893_v60  ;;  %v10150_v39 = vpop.eup %8170 }
 0x1eb   : > { %8182 = vrcp.f32 %v1683_v24 }
 0x1ec   : > { %2052 = vrot.lane.b32.xlu1 %v1965_v15, %s9122_s26  ;;  %v10153_v2 = vpop.eup %8172 }
 0x1ed   : > { %v8175_v1 = vpop.eup %8174 }
 0x1ee   : > { %v8177_v15 = vpop.eup %8176  ;;  %v1684_v23 = vadd.f32 1.0, %v8175_v1 }
 0x1ef   : > { %v1895_v59 = vpop.permute.xlu0 %1894  ;;  %v10158_v0 = vpop.eup %8178 }
 0x1f0   : > { %v1966_v41 = vmul.f32 %v10146_v62, %v1895_v59  ;;  %8184 = vrcp.f32 %v1684_v23  ;;  %v13595_v23 = vld [vmem:[#allocation27_spill] sm:$0xff] }
 0x1f2   : > { %2054 = vrot.lane.b32.xlu0 %v1966_v41, %s9122_s26  ;;  %v1897_v56 = vpop.permute.xlu1 %1896  ;;  %v1685_v41 = vadd.f32 1.0, %v8177_v15 }
 0x1f3   : > { %v1967_v11 = vmul.f32 %v10150_v39, %v1897_v56  ;;  %v10162_v30 = vpop.eup %8180 }
 0x1f4   : > { %8186 = vrcp.f32 %v1685_v41 }
 0x1f5   : > { %2056 = vrot.lane.b32.xlu1 %v1967_v11, %s9122_s26  ;;  %v10165_v11 = vpop.eup %8182 }
 0x1f7   : > { %v1899_v60 = vpop.permute.xlu0 %1898 }
 0x1f8   : > { %v1968_v9 = vmul.f32 %v10153_v2, %v1899_v60 }
 0x1f9   : > { %v1901_v59 = vpop.permute.xlu1 %1900 }
 0x1fa   : > { %2058 = vrot.lane.b32.xlu0 %v1968_v9, %s9122_s26  ;;  %v1969_v10 = vmul.f32 %v10158_v0, %v1901_v59  ;;  %v13594_v9 = vld [vmem:[#allocation23_spill] sm:$0xff] }
 0x1fb   : > { %v1750_v59 = vmul.f32 %v9860_v36, %v13594_v9 }
 0x1fc   : > { %2060 = vrot.lane.b32.xlu1 %v1969_v10, %s9122_s26  ;;  %v1751_v10 = vmul.f32 %v9864_v4, %v13595_v23 }
 0x1ff   : > { %v1903_v24 = vpop.permute.xlu0 %1902 }
 0x200   : > { %v1970_v56 = vmul.f32 %v10162_v30, %v1903_v24 }
 0x201   : > { %v1905_v1 = vpop.permute.xlu1 %1904 }
 0x202   : > { %v1971_v60 = vmul.f32 %v10165_v11, %v1905_v1  ;;  %2062 = vrot.lane.b32.xlu0 %v1970_v56, %s9122_s26  ;;  %v10181_v56 = vpop.eup %8184 }
 0x203   : > { %v10187_v4 = vpop.eup %8186 }
 0x204   : > { %2064 = vrot.lane.b32.xlu1 %v1971_v60, %s9122_s26  ;;  %v2007_v15 = vpop.permute.xlu0 %2006  ;;  %v13598_v60 = vld [vmem:[#allocation24_spill] sm:$0xff] }
 0x205   : > { %v10174_v55 = vadd.f32 %v2007_v15, %v1750_v59  ;;  %v1752_v9 = vmul.f32 %v9876_v32, %v13598_v60 }
 0x206   : > { %v2009_v24 = vpop.permute.xlu1 %2008 }
 0x207   : > { %13596 = vst [vmem:[#allocation23_spill] sm:$0xff] %v10174_v55  ;;  %8188 = vtanh.f32 %v10174_v55  ;;  %v10177_v41 = vadd.f32 %v2009_v24, %v1751_v10  ;;  %2166 = vrot.lane.b32.xlu0 %v10174_v55, %s9122_s26  ;;  %v13600_v24 = vld [vmem:[#allocation28_spill] sm:$0xff] }
 0x208   : > { %v1907_v1 = vpop.permute.xlu0 %1906  ;;  %v1753_v55 = vmul.f32 %v9893_v61, %v13600_v24  ;;  %v1754_v61 = vmul.f32 %v9907_v43, %v9645_v5 }
 0x209   : > { %13597 = vst [vmem:[#allocation27_spill] sm:$0xff] %v10177_v41  ;;  %8190 = vtanh.f32 %v10177_v41  ;;  %v1972_v36 = vmul.f32 %v10181_v56, %v1907_v1  ;;  %2168 = vrot.lane.b32.xlu1 %v10177_v41, %s9122_s26 }
 0x20b   : > { %v1909_v59 = vpop.permute.xlu1 %1908  ;;  %2066 = vrot.lane.b32.xlu0 %v1972_v36, %s9122_s26 }
 0x20c   : > { %v1973_v15 = vmul.f32 %v10187_v4, %v1909_v59  ;;  %v2011_v23 = vpop.permute.xlu0 %2010 }
 0x20d   : > { %v10193_v10 = vadd.f32 %v2011_v23, %v1752_v9 }
 0x20e   : > { %2068 = vrot.lane.b32.xlu1 %v1973_v15, %s9122_s26  ;;  %v13603_v15 = vld [vmem:[#allocation30_spill] sm:$0xff] }
 0x20f   : > { %13599 = vst [vmem:[#allocation24_spill] sm:$0xff] %v10193_v10  ;;  %8192 = vtanh.f32 %v10193_v10  ;;  %v2013_v1 = vpop.permute.xlu1 %2012  ;;  %2170 = vrot.lane.b32.xlu0 %v10193_v10, %s9122_s26  ;;  %v1755_v23 = vmul.f32 %v9918_v14, %v13603_v15  ;;  %v13606_v14 = vld [vmem:[#allocation33_spill] sm:$0xff] }
 0x210   : > { %v10201_v32 = vadd.f32 %v2013_v1, %v1753_v55 }
 0x211   : > { %v8189_v60 = vpop.eup %8188 }
 0x212   : > { %13601 = vst [vmem:[#allocation28_spill] sm:$0xff] %v10201_v32  ;;  %8194 = vtanh.f32 %v10201_v32  ;;  %2172 = vrot.lane.b32.xlu1 %v10201_v32, %s9122_s26 }
 0x213   : > { %v8191_v36 = vpop.eup %8190  ;;  %2710 = vrot.lane.b32.xlu0 %v8189_v60, %s13525_s16  ;;  %v13605_v60 = vld [vmem:[#allocation32_spill] sm:$0xff] }
 0x214   : > { %v2015_v9 = vpop.permute.xlu0 %2014  ;;  %v1756_v5 = vmul.f32 %v9941_v50, %v13605_v60  ;;  %v1758_v50 = vmul.f32 %v9962_v38, %v9664_v44  ;;  %v1761_v38 = vmul.f32 %v10003_v40, %v9686_v3  ;;  %v1764_v40 = vmul.f32 %v10045_v51, %v9716_v63 }
 0x215   : > { %v10209_v59 = vadd.f32 %v2015_v9, %v1754_v61  ;;  %v1767_v51 = vmul.f32 %v10075_v25, %v9738_v21  ;;  %v13621_v25 = vld [vmem:[#allocation40_spill] sm:$0xff] }
 0x216   : > { %2712 = vrot.lane.b32.xlu1 %v8191_v36, %s13525_s16  ;;  %v2017_v55 = vpop.permute.xlu1 %2016  ;;  %v1757_v36 = vmul.f32 %v9947_v18, %v13606_v14  ;;  %v1759_v18 = vmul.f32 %v9974_v7, %v9669_v34  ;;  %v1762_v14 = vmul.f32 %v10017_v53, %v9697_v37  ;;  %v1765_v53 = vmul.f32 %v10050_v27, %v9722_v35 }
 0x217   : > { %13602 = vst [vmem:[#allocation61_spill] sm:$0xff] %v10209_v59  ;;  %v10214_v24 = vadd.f32 %v2017_v55, %v1755_v23  ;;  %2174 = vrot.lane.b32.xlu0 %v10209_v59, %s9122_s26  ;;  %v1768_v27 = vmul.f32 %v10099_v47, %v9745_v49  ;;  %v13623_v47 = vld [vmem:[#allocation42_spill] sm:$0xff]  ;;  %8196 = vtanh.f32 %v10209_v59 }
 0x219   : > { %13604 = vst [vmem:[#allocation30_spill] sm:$0xff] %v10214_v24  ;;  %v8193_v1 = vpop.eup %8192  ;;  %8198 = vtanh.f32 %v10214_v24 }
 0x21a   : > { %2176 = vrot.lane.b32.xlu1 %v10214_v24, %s9122_s26 }
 0x21b   : > { %2714 = vrot.lane.b32.xlu0 %v8193_v1, %s13525_s16 }
 0x21c   : > { %v8195_v43 = vpop.eup %8194  ;;  %v2019_v61 = vpop.permute.xlu0 %2018 }
 0x21d   : > { %v10225_v9 = vadd.f32 %v2019_v61, %v1756_v5 }
 0x21e   : > { %2716 = vrot.lane.b32.xlu1 %v8195_v43, %s13525_s16  ;;  %v2021_v15 = vpop.permute.xlu1 %2020  ;;  %v1760_v43 = vmul.f32 %v9982_v45, %v9677_v17  ;;  %v1763_v45 = vmul.f32 %v10022_v6, %v9704_v58  ;;  %v1766_v6 = vmul.f32 %v10073_v8, %v9730_v26  ;;  %v1769_v8 = vmul.f32 %v10109_v57, %v9754_v42 }
 0x21f   : > { %13607 = vst [vmem:[#allocation32_spill] sm:$0xff] %v10225_v9  ;;  %v10228_v23 = vadd.f32 %v2021_v15, %v1757_v36  ;;  %2178 = vrot.lane.b32.xlu0 %v10225_v9, %s9122_s26  ;;  %v1772_v57 = vmul.f32 %v10137_v12, %v9779_v29  ;;  %v1774_v29 = vmul.f32 %v10146_v62, %v9799_v46  ;;  %8200 = vtanh.f32 %v10225_v9 }
 0x221   : > { %13608 = vst [vmem:[#allocation33_spill] sm:$0xff] %v10228_v23  ;;  %8202 = vtanh.f32 %v10228_v23 }
 0x222   : > { %2180 = vrot.lane.b32.xlu1 %v10228_v23, %s9122_s26 }
 0x224   : > { %v2023_v55 = vpop.permute.xlu0 %2022 }
 0x225   : > { %v10236_v1 = vadd.f32 %v2023_v55, %v1758_v50 }
 0x226   : > { %v2025_v60 = vpop.permute.xlu1 %2024 }
 0x227   : > { %13609 = vst [vmem:[#allocation62_spill] sm:$0xff] %v10236_v1  ;;  %v10240_v5 = vadd.f32 %v2025_v60, %v1759_v18  ;;  %2182 = vrot.lane.b32.xlu0 %v10236_v1, %s9122_s26  ;;  %8204 = vtanh.f32 %v10236_v1 }
 0x229   : > { %13610 = vst [vmem:[#allocation63_spill] sm:$0xff] %v10240_v5  ;;  %2184 = vrot.lane.b32.xlu1 %v10240_v5, %s9122_s26 }
 0x22c   : > { %v2027_v61 = vpop.permute.xlu0 %2026 }
 0x22d   : > { %v10248_v44 = vadd.f32 %v2027_v61, %v1760_v43 }
 0x22e   : > { %v2029_v7 = vpop.permute.xlu1 %2028 }
 0x22f   : > { %13611 = vst [vmem:[#allocation64_spill] sm:$0xff] %v10248_v44  ;;  %2186 = vrot.lane.b32.xlu0 %v10248_v44, %s9122_s26  ;;  %v10254_v34 = vadd.f32 %v2029_v7, %v1761_v38  ;;  %v1770_v38 = vmul.f32 %v10122_v19, %v13621_v25  ;;  %v8197_v25 = vpop.eup %8196  ;;  %8206 = vtanh.f32 %v10248_v44 }
 0x230   : > { %8208 = vtanh.f32 %v10240_v5 }
 0x231   : > { %13612 = vst [vmem:[#allocation65_spill] sm:$0xff] %v10254_v34  ;;  %2188 = vrot.lane.b32.xlu1 %v10254_v34, %s9122_s26 }
 0x234   : > { %v2031_v36 = vpop.permute.xlu0 %2030 }
 0x235   : > { %v10260_v17 = vadd.f32 %v2031_v36, %v1762_v14  ;;  %v1771_v14 = vmul.f32 %v10130_v22, %v13623_v47 }
 0x236   : > { %v2033_v15 = vpop.permute.xlu1 %2032 }
 0x237   : > { %13613 = vst [vmem:[#allocation66_spill] sm:$0xff] %v10260_v17  ;;  %v10264_v3 = vadd.f32 %v2033_v15, %v1763_v45  ;;  %2190 = vrot.lane.b32.xlu0 %v10260_v17, %s9122_s26  ;;  %v1773_v15 = vmul.f32 %v10142_v52, %v9790_v16  ;;  %v1775_v16 = vmul.f32 %v10150_v39, %v9805_v13  ;;  %8210 = vtanh.f32 %v10260_v17 }
 0x238   : > { %8212 = vtanh.f32 %v10254_v34 }
 0x239   : > { %13614 = vst [vmem:[#allocation67_spill] sm:$0xff] %v10264_v3  ;;  %2192 = vrot.lane.b32.xlu1 %v10264_v3, %s9122_s26 }
 0x23c   : > { %v2035_v50 = vpop.permute.xlu0 %2034 }
 0x23d   : > { %v10272_v37 = vadd.f32 %v2035_v50, %v1764_v40 }
 0x23e   : > { %v2037_v55 = vpop.permute.xlu1 %2036 }
 0x23f   : > { %13615 = vst [vmem:[#allocation68_spill] sm:$0xff] %v10272_v37  ;;  %2194 = vrot.lane.b32.xlu0 %v10272_v37, %s9122_s26  ;;  %v10278_v58 = vadd.f32 %v2037_v55, %v1765_v53  ;;  %v1776_v55 = vmul.f32 %v10153_v2, %v9812_v28  ;;  %8214 = vtanh.f32 %v10272_v37 }
 0x240   : > { %8216 = vtanh.f32 %v10264_v3 }
 0x241   : > { %13616 = vst [vmem:[#allocation69_spill] sm:$0xff] %v10278_v58  ;;  %2196 = vrot.lane.b32.xlu1 %v10278_v58, %s9122_s26  ;;  %8218 = vtanh.f32 %v10278_v58 }
 0x244   : > { %v2039_v18 = vpop.permute.xlu0 %2038 }
 0x245   : > { %v10284_v63 = vadd.f32 %v2039_v18, %v1766_v6 }
 0x246   : > { %v2041_v60 = vpop.permute.xlu1 %2040 }
 0x247   : > { %13617 = vst [vmem:[#allocation70_spill] sm:$0xff] %v10284_v63  ;;  %v10288_v35 = vadd.f32 %v2041_v60, %v1767_v51  ;;  %2198 = vrot.lane.b32.xlu0 %v10284_v63, %s9122_s26  ;;  %v8974_v51 = vld [vmem:[%s13252_s4] sm:$0xff]  ;;  %v8975_v60 = vld [vmem:[%s13252_s4 + $0x8] sm:$0xff] }
 0x249   : > { %13618 = vst [vmem:[#allocation71_spill] sm:$0xff] %v10288_v35  ;;  %2200 = vrot.lane.b32.xlu1 %v10288_v35, %s9122_s26  ;;  %8220 = vtanh.f32 %v10288_v35 }
 0x24a   : > { %8222 = vtanh.f32 %v10284_v63 }
 0x24c   : > { %v2043_v43 = vpop.permute.xlu0 %2042 }
 0x24d   : > { %v10296_v26 = vadd.f32 %v2043_v43, %v1768_v27 }
 0x24e   : > { %v2045_v61 = vpop.permute.xlu1 %2044 }
 0x24f   : > { %13619 = vst [vmem:[#allocation72_spill] sm:$0xff] %v10296_v26  ;;  %2202 = vrot.lane.b32.xlu0 %v10296_v26, %s9122_s26  ;;  %v10302_v21 = vadd.f32 %v2045_v61, %v1769_v8  ;;  %v13630_v8 = vld [vmem:[#allocation44_spill] sm:$0xff] }
 0x250   : > { %v1777_v61 = vmul.f32 %v10158_v0, %v13630_v8  ;;  %v13632_v0 = vld [vmem:[#allocation45_spill] sm:$0xff] }
 0x251   : > { %13620 = vst [vmem:[#allocation73_spill] sm:$0xff] %v10302_v21  ;;  %2204 = vrot.lane.b32.xlu1 %v10302_v21, %s9122_s26  ;;  %8224 = vtanh.f32 %v10302_v21 }
 0x254   : > { %v2047_v7 = vpop.permute.xlu0 %2046 }
 0x255   : > { %v10308_v49 = vadd.f32 %v2047_v7, %v1770_v38 }
 0x256   : > { %v2049_v36 = vpop.permute.xlu1 %2048 }
 0x257   : > { %13622 = vst [vmem:[#allocation40_spill] sm:$0xff] %v10308_v49  ;;  %v10312_v42 = vadd.f32 %v2049_v36, %v1771_v14  ;;  %2206 = vrot.lane.b32.xlu0 %v10308_v49, %s9122_s26  ;;  %v8976_v14 = vld [vmem:[%s13252_s4 + $0x10] sm:$0xff] }
 0x259   : > { %13624 = vst [vmem:[#allocation42_spill] sm:$0xff] %v10312_v42  ;;  %2208 = vrot.lane.b32.xlu1 %v10312_v42, %s9122_s26 }
 0x25c   : > { %v2051_v45 = vpop.permute.xlu0 %2050 }
 0x25d   : > { %v10320_v19 = vadd.f32 %v2051_v45, %v1772_v57  ;;  %v1778_v57 = vmul.f32 %v10162_v30, %v13632_v0 }
 0x25e   : > { %v2053_v22 = vpop.permute.xlu1 %2052 }
 0x25f   : > { %13625 = vst [vmem:[#allocation74_spill] sm:$0xff] %v10320_v19  ;;  %2210 = vrot.lane.b32.xlu0 %v10320_v19, %s9122_s26  ;;  %v10326_v40 = vadd.f32 %v2053_v22, %v1773_v15  ;;  %v8977_v15 = vld [vmem:[%s13252_s4 + $0x18] sm:$0xff] }
 0x261   : > { %13626 = vst [vmem:[#allocation75_spill] sm:$0xff] %v10326_v40  ;;  %2212 = vrot.lane.b32.xlu1 %v10326_v40, %s9122_s26 }
 0x264   : > { %v2055_v12 = vpop.permute.xlu0 %2054 }
 0x265   : > { %v10332_v50 = vadd.f32 %v2055_v12, %v1774_v29 }
 0x267   : > { %13627 = vst [vmem:[#allocation76_spill] sm:$0xff] %v10332_v50  ;;  %2214 = vrot.lane.b32.xlu0 %v10332_v50, %s9122_s26  ;;  %v2057_v52 = vpop.permute.xlu1 %2056 }
 0x268   : > { %v10338_v53 = vadd.f32 %v2057_v52, %v1775_v16  ;;  %v8199_v52 = vpop.eup %8198 }
 0x26a   : > { %13628 = vst [vmem:[#allocation77_spill] sm:$0xff] %v10338_v53  ;;  %2216 = vrot.lane.b32.xlu1 %v10338_v53, %s9122_s26 }
 0x26c   : > { %v2059_v6 = vpop.permute.xlu0 %2058 }
 0x26d   : > { %v10344_v46 = vadd.f32 %v2059_v6, %v1776_v55  ;;  %v8978_v55 = vld [vmem:[%s13252_s4 + $0x20] sm:$0xff] }
 0x26e   : > { %v2061_v62 = vpop.permute.xlu1 %2060 }
 0x26f   : > { %13629 = vst [vmem:[#allocation78_spill] sm:$0xff] %v10344_v46  ;;  %2218 = vrot.lane.b32.xlu0 %v10344_v46, %s9122_s26  ;;  %v10360_v38 = vadd.f32 %v2061_v62, %v1777_v61 }
 0x271   : > { %13631 = vst [vmem:[#allocation44_spill] sm:$0xff] %v10360_v38 }
 0x274   : > { %v2063_v18 = vpop.permute.xlu0 %2062 }
 0x275   : > { %v10377_v12 = vadd.f32 %v2063_v18, %v1778_v57  ;;  %v8979_v18 = vld [vmem:[%s13252_s4 + $0x28] sm:$0xff] }
 0x276   : > { %v2065_v13 = vpop.permute.xlu1 %2064 }
 0x277   : > { %13633 = vst [vmem:[#allocation45_spill] sm:$0xff] %v10377_v12 }
 0x279   : > { %v2167_v39 = vpop.permute.xlu0 %2166 }
 0x27a   : > { %v2262_v28 = vmul.f32 %v8974_v51, %v2167_v39 }
 0x27b   : > { %v2169_v2 = vpop.permute.xlu1 %2168 }
 0x27c   : > { %v2263_v27 = vmul.f32 %v8975_v60, %v2169_v2  ;;  %2326 = vrot.lane.b32.xlu0 %v2262_v28, %s9122_s26  ;;  %v8201_v28 = vpop.eup %8200  ;;  %v13634_v2 = vld [vmem:[#allocation46_spill] sm:$0xff] }
 0x27d   : > { %v2067_v43 = vpop.permute.xlu0 %2066  ;;  %v1779_v60 = vmul.f32 %v10165_v11, %v13634_v2  ;;  %v1780_v11 = vmul.f32 %v10181_v56, %v9846_v54  ;;  %v8982_v54 = vld [vmem:[%s13252_s4 + $0x40] sm:$0xff] }
 0x27e   : > { %2328 = vrot.lane.b32.xlu1 %v2263_v27, %s9122_s26  ;;  %v8986_v2 = vld [vmem:[%s13252_s4 + $0x60] sm:$0xff] }
 0x27f   : > { %v10401_v8 = vadd.f32 %v2065_v13, %v1779_v60  ;;  %v8981_v13 = vld [vmem:[%s13252_s4 + $0x38] sm:$0xff]  ;;  %v10415_v0 = vadd.f32 %v2067_v43, %v1780_v11  ;;  %v8983_v43 = vld [vmem:[%s13252_s4 + $0x48] sm:$0xff] }
 0x280   : > { %v2069_v7 = vpop.permute.xlu1 %2068  ;;  %2718 = vrot.lane.b32.xlu0 %v8197_v25, %s13525_s16  ;;  %v8980_v25 = vld [vmem:[%s13252_s4 + $0x30] sm:$0xff] }
 0x281   : > { %v2171_v47 = vpop.permute.xlu0 %2170  ;;  %13635 = vst [vmem:[#allocation46_spill] sm:$0xff] %v10401_v8  ;;  %13636 = vst [vmem:[#allocation79_spill] sm:$0xff] %v10415_v0 }
 0x282   : > { %v2264_v36 = vmul.f32 %v8976_v14, %v2171_v47  ;;  %2220 = vrot.lane.b32.xlu1 %v10360_v38, %s9122_s26 }
 0x284   : > { %v2173_v45 = vpop.permute.xlu1 %2172  ;;  %2330 = vrot.lane.b32.xlu0 %v2264_v36, %s9122_s26 }
 0x285   : > { %v2265_v22 = vmul.f32 %v8977_v15, %v2173_v45  ;;  %v10375_v29 = vpop.permute.xlu0 %2710  ;;  %v8203_v45 = vpop.eup %8202 }
 0x287   : > { %2332 = vrot.lane.b32.xlu1 %v2265_v22, %s9122_s26 }
 0x288   : > { %v10380_v16 = vpop.permute.xlu1 %2712  ;;  %2222 = vrot.lane.b32.xlu0 %v10377_v12, %s9122_s26 }
 0x289   : > { %v2175_v30 = vpop.permute.xlu0 %2174 }
 0x28a   : > { %v2266_v6 = vmul.f32 %v8978_v55, %v2175_v30  ;;  %v8205_v30 = vpop.eup %8204 }
 0x28b   : > { %2720 = vrot.lane.b32.xlu1 %v8199_v52, %s13525_s16  ;;  %v1781_v52 = vmul.f32 %v10187_v4, %v9855_v33  ;;  %v8985_v4 = vld [vmem:[%s13252_s4 + $0x58] sm:$0xff] }
 0x28c   : > { %v2177_v62 = vpop.permute.xlu1 %2176  ;;  %2334 = vrot.lane.b32.xlu0 %v2266_v6, %s9122_s26 }
 0x28d   : > { %v2267_v39 = vmul.f32 %v8979_v18, %v2177_v62  ;;  %v10392_v51 = vpop.permute.xlu0 %2714  ;;  %v10434_v55 = vadd.f32 %v2069_v7, %v1781_v52  ;;  %v8984_v62 = vld [vmem:[%s13252_s4 + $0x50] sm:$0xff] }
 0x28f   : > { %2336 = vrot.lane.b32.xlu1 %v2267_v39, %s9122_s26  ;;  %13637 = vst [vmem:[#allocation80_spill] sm:$0xff] %v10434_v55  ;;  %v8207_v39 = vpop.eup %8206 }
 0x290   : > { %v10398_v27 = vpop.permute.xlu1 %2716  ;;  %2722 = vrot.lane.b32.xlu0 %v8201_v28, %s13525_s16 }
 0x291   : > { %v2179_v61 = vpop.permute.xlu0 %2178 }
 0x292   : > { %v2268_v47 = vmul.f32 %v8980_v25, %v2179_v61  ;;  %v8209_v61 = vpop.eup %8208 }
 0x293   : > { %2224 = vrot.lane.b32.xlu1 %v10401_v8, %s9122_s26 }
 0x294   : > { %v2181_v14 = vpop.permute.xlu1 %2180  ;;  %2338 = vrot.lane.b32.xlu0 %v2268_v47, %s9122_s26  ;;  %v8987_v47 = vld [vmem:[%s13252_s4 + $0x68] sm:$0xff] }
 0x295   : > { %v2269_v36 = vmul.f32 %v8981_v13, %v2181_v14  ;;  %v8211_v14 = vpop.eup %8210 }
 0x297   : > { %2340 = vrot.lane.b32.xlu1 %v2269_v36, %s9122_s26  ;;  %v8988_v36 = vld [vmem:[%s13252_s4 + $0x70] sm:$0xff] }
 0x298   : > { %2226 = vrot.lane.b32.xlu0 %v10415_v0, %s9122_s26 }
 0x299   : > { %v2183_v57 = vpop.permute.xlu0 %2182 }
 0x29a   : > { %v2270_v56 = vmul.f32 %v8982_v54, %v2183_v57 }
 0x29b   : > { %2724 = vrot.lane.b32.xlu1 %v8203_v45, %s13525_s16  ;;  %v2185_v15 = vpop.permute.xlu1 %2184  ;;  %v8213_v45 = vpop.eup %8212 }
 0x29c   : > { %v2271_v22 = vmul.f32 %v8983_v43, %v2185_v15  ;;  %2342 = vrot.lane.b32.xlu0 %v2270_v56, %s9122_s26  ;;  %v13638_v56 = vld [vmem:[#allocation48_spill] sm:$0xff]  ;;  %v8215_v43 = vpop.eup %8214 }
 0x29f   : > { %2344 = vrot.lane.b32.xlu1 %v2271_v22, %s9122_s26 }
 0x2a0   : > { %2726 = vrot.lane.b32.xlu0 %v8205_v30, %s13525_s16  ;;  %v13639_v30 = vld [vmem:[#allocation49_spill] sm:$0xff] }
 0x2a1   : > { %v2187_v6 = vpop.permute.xlu0 %2186 }
 0x2a2   : > { %v2272_v18 = vmul.f32 %v8984_v62, %v2187_v6  ;;  %v8217_v6 = vpop.eup %8216 }
 0x2a3   : > { %2228 = vrot.lane.b32.xlu1 %v10434_v55, %s9122_s26  ;;  %v2189_v33 = vpop.permute.xlu1 %2188 }
 0x2a4   : > { %2346 = vrot.lane.b32.xlu0 %v2272_v18, %s9122_s26  ;;  %v2273_v7 = vmul.f32 %v8985_v4, %v2189_v33  ;;  %v13640_v18 = vld [vmem:[#allocation50_spill] sm:$0xff] }
 0x2a7   : > { %2348 = vrot.lane.b32.xlu1 %v2273_v7, %s9122_s26  ;;  %v13641_v7 = vld [vmem:[#allocation51_spill] sm:$0xff] }
 0x2a8   : > { %2730 = vrot.lane.b32.xlu0 %v8207_v39, %s13525_s16 }
 0x2a9   : > { %v2191_v28 = vpop.permute.xlu0 %2190 }
 0x2aa   : > { %v2274_v60 = vmul.f32 %v8986_v2, %v2191_v28  ;;  %v8219_v28 = vpop.eup %8218 }
 0x2ab   : > { %v2193_v25 = vpop.permute.xlu1 %2192  ;;  %2728 = vrot.lane.b32.xlu1 %v8209_v61, %s13525_s16 }
 0x2ac   : > { %v2275_v11 = vmul.f32 %v8987_v47, %v2193_v25  ;;  %2350 = vrot.lane.b32.xlu0 %v2274_v60, %s9122_s26  ;;  %v13642_v60 = vld [vmem:[#allocation52_spill] sm:$0xff]  ;;  %v8221_v25 = vpop.eup %8220 }
 0x2ad   : > { %v8223_v47 = vpop.eup %8222 }
 0x2af   : > { %2352 = vrot.lane.b32.xlu1 %v2275_v11, %s9122_s26 }
 0x2b0   : > { %2734 = vrot.lane.b32.xlu0 %v8211_v14, %s13525_s16  ;;  %v13643_v14 = vld [vmem:[#allocation53_spill] sm:$0xff] }
 0x2b1   : > { %v2195_v13 = vpop.permute.xlu0 %2194 }
 0x2b2   : > { %v2276_v57 = vmul.f32 %v8988_v36, %v2195_v13 }
 0x2b3   : > { %2732 = vrot.lane.b32.xlu1 %v8213_v45, %s13525_s16  ;;  %v2197_v54 = vpop.permute.xlu1 %2196 }
 0x2b4   : > { %2354 = vrot.lane.b32.xlu0 %v2276_v57, %s9122_s26  ;;  %v2277_v15 = vmul.f32 %v2197_v54, %v13638_v56  ;;  %v13644_v57 = vld [vmem:[#allocation54_spill] sm:$0xff]  ;;  %v13645_v56 = vld [vmem:[#allocation55_spill] sm:$0xff] }
 0x2b7   : > { %2356 = vrot.lane.b32.xlu1 %v2277_v15, %s9122_s26 }
 0x2b8   : > { %2738 = vrot.lane.b32.xlu0 %v8215_v43, %s13525_s16 }
 0x2b9   : > { %v2199_v22 = vpop.permute.xlu0 %2198 }
 0x2ba   : > { %v2278_v52 = vmul.f32 %v2199_v22, %v13639_v30  ;;  %v13646_v22 = vld [vmem:[#allocation56_spill] sm:$0xff] }
 0x2bb   : > { %v2201_v62 = vpop.permute.xlu1 %2200  ;;  %2736 = vrot.lane.b32.xlu1 %v8217_v6, %s13525_s16  ;;  %v13647_v6 = vld [vmem:[#allocation57_spill] sm:$0xff] }
 0x2bc   : > { %v2279_v33 = vmul.f32 %v2201_v62, %v13640_v18  ;;  %2358 = vrot.lane.b32.xlu0 %v2278_v52, %s9122_s26 }
 0x2bf   : > { %2360 = vrot.lane.b32.xlu1 %v2279_v33, %s9122_s26  ;;  %v8225_v33 = vpop.eup %8224 }
 0x2c1   : > { %v2203_v4 = vpop.permute.xlu0 %2202 }
 0x2c2   : > { %v2280_v39 = vmul.f32 %v2203_v4, %v13641_v7  ;;  %v13648_v4 = vld [vmem:[#allocation58_spill] sm:$0xff] }
 0x2c3   : > { %2740 = vrot.lane.b32.xlu1 %v8219_v28, %s13525_s16  ;;  %v2205_v2 = vpop.permute.xlu1 %2204  ;;  %v7990_v28 = vld [vmem:[%s13253_s5 + $0x4] ss:$8 sps:$4 sm:$0xff]  }
 0x2c4   : > { %2362 = vrot.lane.b32.xlu0 %v2280_v39, %s9122_s26  ;;  %v2281_v61 = vmul.f32 %v2205_v2, %v13642_v60  ;;  %v7988_v39 = vld [vmem:[%s13253_s5] ss:$8 sps:$4 sm:$0xff]   ;;  %v7993_v2 = vld [vmem:[%s13253_s5 + $0x14] ss:$8 sps:$4 sm:$0xff]   ;;  %3002 = vmatprep.subr.bf16.mxu1 %v7990_v28  ;;  %v13326_v60 = vmov 0  }
 0x2c5   : > { %3034 = vmatprep.mubr.bf16.mxu1 %v13326_v60  ;;  %3003 = vmatpush1.bf16.msra.mxu1 %v7988_v39 }
 0x2c6   : > { %3004 = vmatprep.subr.bf16.mxu1 %v7993_v2 }
 0x2c7   : > { %2364 = vrot.lane.b32.xlu1 %v2281_v61, %s9122_s26  ;;  %v7991_v61 = vld [vmem:[%s13253_s5 + $0x10] ss:$8 sps:$4 sm:$0xff]  }
 0x2c8   : > { %2744 = vrot.lane.b32.xlu0 %v8221_v25, %s13525_s16 }
 0x2c9   : > { %v2207_v11 = vpop.permute.xlu0 %2206  ;;  %3005 = vmatpush1.bf16.msra.mxu1 %v7991_v61 }
 0x2ca   : > { %v2282_v13 = vmul.f32 %v2207_v11, %v13643_v14  ;;  %v13649_v11 = vld [vmem:[#allocation7_spill] sm:$0xff] }
 0x2cb   : > { %2742 = vrot.lane.b32.xlu1 %v8223_v47, %s13525_s16  ;;  %v2209_v36 = vpop.permute.xlu1 %2208 }
 0x2cc   : > { %v2283_v45 = vmul.f32 %v2209_v36, %v13644_v57  ;;  %2366 = vrot.lane.b32.xlu0 %v2282_v13, %s9122_s26  ;;  %v13650_v57 = vld [vmem:[#allocation8_spill] sm:$0xff] }
 0x2cf   : > { %2368 = vrot.lane.b32.xlu1 %v2283_v45, %s9122_s26 }
 0x2d1   : > { %v2211_v54 = vpop.permute.xlu0 %2210 }
 0x2d2   : > { %v2284_v15 = vmul.f32 %v2211_v54, %v13645_v56 }
 0x2d3   : > { %v2213_v43 = vpop.permute.xlu1 %2212 }
 0x2d4   : > { %2370 = vrot.lane.b32.xlu0 %v2284_v15, %s9122_s26  ;;  %v2285_v30 = vmul.f32 %v2213_v43, %v13646_v22  ;;  %v13651_v22 = vld [vmem:[#allocation9_spill] sm:$0xff] }
 0x2d6   : > { %2372 = vrot.lane.b32.xlu1 %v2285_v30, %s9122_s26 }
 0x2d9   : > { %v2215_v52 = vpop.permute.xlu0 %2214 }
 0x2da   : > { %v2286_v62 = vmul.f32 %v2215_v52, %v13647_v6 }
 0x2dc   : > { %2374 = vrot.lane.b32.xlu1 %v2286_v62, %s9122_s26  ;;  %v2217_v18 = vpop.permute.xlu1 %2216  ;;  %v13652_v62 = vld [vmem:[#allocation10_spill] sm:$0xff] }
 0x2dd   : > { %v2287_v7 = vmul.f32 %v2217_v18, %v13648_v4 }
 0x2df   : > { %2376 = vrot.lane.b32.xlu0 %v2287_v7, %s9122_s26 }
 0x2e0   : > { %2748 = vrot.lane.b32.xlu1 %v8225_v33, %s13525_s16 }
 0x2e1   : > { %v10511_v25 = vpop.permute.xlu0 %2218 }
 0x2ee   : > { %v2327_v47 = vpop.permute.xlu0 %2326 }
 0x2ef   : > { %v2422_v14 = vadd.f32 %v2327_v47, %v13649_v11  ;;  %v13653_v47 = vld [vmem:[#allocation11_spill] sm:$0xff] }
 0x2f0   : > { %v2329_v13 = vpop.permute.xlu1 %2328 }
 0x2f1   : > { %v7082_v36 = vmul.f32 -1.442695, %v2422_v14  ;;  %v2423_v45 = vadd.f32 %v2329_v13, %v13650_v57  ;;  %v13654_v57 = vld [vmem:[#allocation12_spill] sm:$0xff] }
 0x2f2   : > { %v10515_v54 = vpop.permute.xlu0 %2718 }
 0x2f3   : > { %8226 = vpow2.f32 %v7082_v36  ;;  %v7083_v56 = vmul.f32 -1.442695, %v2423_v45 }
 0x2f4   : > { %v10517_v15 = vpop.permute.xlu1 %2220 }
 0x2f5   : > { %8228 = vpow2.f32 %v7083_v56 }
 0x2f6   : > { %v2331_v43 = vpop.permute.xlu0 %2330 }
 0x2f7   : > { %v2424_v30 = vadd.f32 %v2331_v43, %v13651_v22 }
 0x2f9   : > { %v7084_v52 = vmul.f32 -1.442695, %v2424_v30  ;;  %v2333_v6 = vpop.permute.xlu1 %2332 }
 0x2fa   : > { %v2425_v18 = vadd.f32 %v2333_v6, %v13652_v62  ;;  %v10521_v33 = vpop.permute.xlu0 %2222  ;;  %v13655_v62 = vld [vmem:[#allocation13_spill] sm:$0xff] }
 0x2fb   : > { %8230 = vpow2.f32 %v7084_v52 }
 0x2fc   : > { %v7085_v4 = vmul.f32 -1.442695, %v2425_v18 }
 0x2fd   : > { %v8227_v7 = vpop.eup %8226  ;;  %v10523_v39 = vpop.permute.xlu1 %2720 }
 0x2fe   : > { %v2550_v28 = vadd.f32 1.0, %v8227_v7  ;;  %8232 = vpow2.f32 %v7085_v4  ;;  %v2335_v2 = vpop.permute.xlu0 %2334 }
 0x2ff   : > { %v8229_v61 = vpop.eup %8228  ;;  %v2426_v11 = vadd.f32 %v2335_v2, %v13653_v47  ;;  %v13656_v47 = vld [vmem:[#allocation14_spill] sm:$0xff] }
 0x300   : > { %8234 = vrcp.f32 %v2550_v28  ;;  %v2551_v14 = vadd.f32 1.0, %v8229_v61 }
 0x301   : > { %v7086_v13 = vmul.f32 -1.442695, %v2426_v11  ;;  %v2337_v36 = vpop.permute.xlu1 %2336 }
 0x302   : > { %8236 = vrcp.f32 %v2551_v14  ;;  %v2427_v45 = vadd.f32 %v2337_v36, %v13654_v57  ;;  %v10527_v56 = vpop.permute.xlu0 %2722 }
 0x303   : > { %8238 = vpow2.f32 %v7086_v13 }
 0x304   : > { %v7087_v43 = vmul.f32 -1.442695, %v2427_v45 }
 0x305   : > { %v8231_v22 = vpop.eup %8230  ;;  %v10529_v30 = vpop.permute.xlu1 %2224 }
 0x306   : > { %v2552_v52 = vadd.f32 1.0, %v8231_v22  ;;  %8240 = vpow2.f32 %v7087_v43  ;;  %v2339_v6 = vpop.permute.xlu0 %2338 }
 0x307   : > { %v2428_v18 = vadd.f32 %v2339_v6, %v13655_v62  ;;  %v13657_v62 = vld [vmem:[#allocation15_spill] sm:$0xff] }
 0x308   : > { %v8233_v4 = vpop.eup %8232  ;;  %8242 = vrcp.f32 %v2552_v52 }
 0x309   : > { %v2553_v7 = vadd.f32 1.0, %v8233_v4  ;;  %v7088_v28 = vmul.f32 -1.442695, %v2428_v18  ;;  %v2341_v2 = vpop.permute.xlu1 %2340  ;;  %8244 = vtanh.f32 %v10296_v26 }
 0x30a   : > { %v8235_v61 = vpop.eup %8234  ;;  %v2429_v11 = vadd.f32 %v2341_v2, %v13656_v47  ;;  %v10534_v14 = vpop.permute.xlu0 %2226 }
 0x30b   : > { %8246 = vrcp.f32 %v2553_v7  ;;  %v2806_v43 = vmul.f32 %v8235_v61, %v10375_v29 }
 0x30c   : > { %v8237_v13 = vpop.eup %8236  ;;  %8248 = vpow2.f32 %v7088_v28  ;;  %v7089_v36 = vmul.f32 -1.442695, %v2429_v11  ;;  %v13658_v28 = vld [vmem:[#allocation16_spill] sm:$0xff] }
 0x30d   : > { %v8239_v57 = vpop.eup %8238  ;;  %v10536_v45 = vpop.permute.xlu1 %2724  ;;  %v2807_v22 = vmul.f32 %v8237_v13, %v10380_v16 }
 0x30e   : > { %v2554_v52 = vadd.f32 1.0, %v8239_v57  ;;  %8250 = vpow2.f32 %v7089_v36  ;;  %v2343_v6 = vpop.permute.xlu0 %2342 }
 0x30f   : > { %v2430_v18 = vadd.f32 %v2343_v6, %v13657_v62  ;;  %v2838_v4 = vpack.c.bf16 %v2807_v22, %v2806_v43 }
 0x310   : > { %v8241_v2 = vpop.eup %8240  ;;  %8252 = vrcp.f32 %v2554_v52 }
 0x311   : > { %v2555_v47 = vadd.f32 1.0, %v8241_v2  ;;  %v7090_v7 = vmul.f32 -1.442695, %v2430_v18  ;;  %v2345_v60 = vpop.permute.xlu1 %2344  ;;  %2902 = vrot.lane.b32.xlu0 %v2838_v4, %s9122_s26  ;;  %8254 = vtanh.f32 %v10312_v42  ;;  %v13660_v4 = vld [vmem:[#allocation17_spill] sm:$0xff] }
 0x312   : > { %v2431_v11 = vadd.f32 %v2345_v60, %v13658_v28  ;;  %v10544_v29 = vpop.permute.xlu0 %2726  ;;  %v8243_v16 = vpop.eup %8242  ;;  %v13659_v60 = vld [vmem:[#allocation59_spill] sm:$0xff] }
 0x313   : > { %8256 = vrcp.f32 %v2555_v47  ;;  %v8245_v61 = vpop.eup %8244  ;;  %v2808_v52 = vmul.f32 %v8243_v16, %v10392_v51  ;;  %v2288_v62 = vmul.f32 %v10511_v25, %v13659_v60  ;;  %v13661_v16 = vld [vmem:[#allocation18_spill] sm:$0xff] }
 0x314   : > { %8258 = vpow2.f32 %v7090_v7  ;;  %v7091_v13 = vmul.f32 -1.442695, %v2431_v11 }
 0x315   : > { %v8247_v36 = vpop.eup %8246  ;;  %v10546_v57 = vpop.permute.xlu1 %2228  ;;  %2746 = vrot.lane.b32.xlu0 %v8245_v61, %s13525_s16 }
 0x316   : > { %v8249_v43 = vpop.eup %8248  ;;  %8260 = vpow2.f32 %v7091_v13  ;;  %v2347_v22 = vpop.permute.xlu0 %2346  ;;  %v2809_v6 = vmul.f32 %v8247_v36, %v10398_v27  ;;  %v13662_v36 = vld [vmem:[#allocation60_spill] sm:$0xff] }
 0x317   : > { %8262 = vtanh.f32 %v10308_v49  ;;  %v2556_v18 = vadd.f32 1.0, %v8249_v43  ;;  %v2432_v2 = vadd.f32 %v2347_v22, %v13660_v4  ;;  %v2289_v43 = vmul.f32 %v10517_v15, %v13662_v36  ;;  %v13663_v15 = vld [vmem:[#allocation19_spill] sm:$0xff] }
 0x318   : > { %v8251_v47 = vpop.eup %8250  ;;  %v2839_v7 = vpack.c.bf16 %v2809_v6, %v2808_v52  ;;  %v8989_v36 = vld [vmem:[%s13252_s4 + $0xe0] sm:$0xff] }
 0x319   : > { %8264 = vrcp.f32 %v2556_v18  ;;  %v2557_v28 = vadd.f32 1.0, %v8251_v47  ;;  %v7092_v11 = vmul.f32 -1.442695, %v2432_v2  ;;  %2378 = vrot.lane.b32.xlu0 %v2288_v62, %s9122_s26  ;;  %v2349_v61 = vpop.permute.xlu1 %2348 }
 0x31a   : > { %2904 = vrot.lane.b32.xlu1 %v2839_v7, %s9122_s26  ;;  %v10557_v51 = vpop.permute.xlu0 %2730  ;;  %v8253_v27 = vpop.eup %8252  ;;  %v2433_v13 = vadd.f32 %v2349_v61, %v13661_v16 }
 0x31b   : > { %8266 = vrcp.f32 %v2557_v28  ;;  %v8255_v25 = vpop.eup %8254  ;;  %v2810_v18 = vmul.f32 %v8253_v27, %v10515_v54  ;;  %v13664_v27 = vld [vmem:[#allocation20_spill] sm:$0xff] }
 0x31c   : > { %8268 = vpow2.f32 %v7092_v11  ;;  %v7093_v52 = vmul.f32 -1.442695, %v2433_v13 }
 0x31d   : > { %v8257_v22 = vpop.eup %8256  ;;  %2752 = vrot.lane.b32.xlu0 %v8255_v25, %s13525_s16  ;;  %8270 = vtanh.f32 %v10320_v19  ;;  %v10564_v60 = vpop.permute.xlu1 %2728 }
 0x31e   : > { %v8259_v6 = vpop.eup %8258  ;;  %2380 = vrot.lane.b32.xlu1 %v2289_v43, %s9122_s26  ;;  %v2351_v62 = vpop.permute.xlu0 %2350  ;;  %v2811_v4 = vmul.f32 %v8257_v22, %v10523_v39  ;;  %8272 = vpow2.f32 %v7093_v52  ;;  %v2290_v43 = vmul.f32 %v8989_v36, %v10521_v33  ;;  %v8990_v22 = vld [vmem:[%s13252_s4 + $0xe8] sm:$0xff] }
 0x31f   : > { %v2558_v2 = vadd.f32 1.0, %v8259_v6  ;;  %v2434_v47 = vadd.f32 %v2351_v62, %v13663_v15  ;;  %v2291_v52 = vmul.f32 %v8990_v22, %v10529_v30 }
 0x320   : > { %v8261_v7 = vpop.eup %8260  ;;  %v2840_v28 = vpack.c.bf16 %v2811_v4, %v2810_v18 }
 0x321   : > { %v8263_v11 = vpop.eup %8262  ;;  %8274 = vrcp.f32 %v2558_v2  ;;  %v2559_v61 = vadd.f32 1.0, %v8261_v7  ;;  %v7094_v16 = vmul.f32 -1.442695, %v2434_v47  ;;  %v2353_v13 = vpop.permute.xlu1 %2352  ;;  %v13665_v7 = vld [vmem:[#allocation21_spill] sm:$0xff] }
 0x322   : > { %8276 = vtanh.f32 %v10326_v40  ;;  %2750 = vrot.lane.b32.xlu1 %v8263_v11, %s13525_s16  ;;  %2906 = vrot.lane.b32.xlu0 %v2840_v28, %s9122_s26  ;;  %v10573_v54 = vpop.permute.xlu0 %2734  ;;  %v2435_v25 = vadd.f32 %v2353_v13, %v13664_v27  ;;  %v13666_v27 = vld [vmem:[#allocation22_spill] sm:$0xff] }
 0x323   : > { %v8265_v39 = vpop.eup %8264  ;;  %8278 = vrcp.f32 %v2559_v61 }
 0x324   : > { %8280 = vpow2.f32 %v7094_v16  ;;  %v7095_v62 = vmul.f32 -1.442695, %v2435_v25  ;;  %v2812_v4 = vmul.f32 %v8265_v39, %v10527_v56 }
 0x325   : > { %v8267_v6 = vpop.eup %8266  ;;  %v10586_v15 = vpop.permute.xlu1 %2732 }
 0x326   : > { %v8269_v18 = vpop.eup %8268  ;;  %v2813_v2 = vmul.f32 %v8267_v6, %v10536_v45  ;;  %2382 = vrot.lane.b32.xlu1 %v2290_v43, %s9122_s26  ;;  %2384 = vrot.lane.b32.xlu0 %v2291_v52, %s9122_s26  ;;  %v2355_v33 = vpop.permute.xlu0 %2354  ;;  %8282 = vpow2.f32 %v7095_v62  ;;  %v8991_v43 = vld [vmem:[%s13252_s4 + $0xf0] sm:$0xff] }
 0x327   : > { %v2560_v47 = vadd.f32 1.0, %v8269_v18  ;;  %v2436_v28 = vadd.f32 %v2355_v33, %v13665_v7  ;;  %v8271_v30 = vpop.eup %8270  ;;  %8284 = vtanh.f32 %v10332_v50  ;;  %v2292_v22 = vmul.f32 %v8991_v43, %v10534_v14  ;;  %v13667_v7 = vld [vmem:[#allocation25_spill] sm:$0xff] }
 0x328   : > { %v2841_v11 = vpack.c.bf16 %v2813_v2, %v2812_v4  ;;  %v8273_v61 = vpop.eup %8272  ;;  %8286 = vtanh.f32 %v10338_v53 }
 0x329   : > { %v7096_v56 = vmul.f32 -1.442695, %v2436_v28  ;;  %8288 = vrcp.f32 %v2560_v47  ;;  %v2561_v45 = vadd.f32 1.0, %v8273_v61  ;;  %v2357_v16 = vpop.permute.xlu1 %2356  ;;  %v8992_v28 = vld [vmem:[%s13252_s4 + $0xf8] sm:$0xff] }
 0x32a   : > { %2754 = vrot.lane.b32.xlu0 %v8271_v30, %s13525_s16  ;;  %2908 = vrot.lane.b32.xlu1 %v2841_v11, %s9122_s26  ;;  %v10595_v13 = vpop.permute.xlu0 %2738  ;;  %v2437_v25 = vadd.f32 %v2357_v16, %v13666_v27  ;;  %v2293_v30 = vmul.f32 %v8992_v28, %v10546_v57 }
 0x32b   : > { %v8275_v39 = vpop.eup %8274  ;;  %8290 = vpow2.f32 %v7096_v56 }
 0x32c   : > { %v8277_v36 = vpop.eup %8276  ;;  %8292 = vrcp.f32 %v2561_v45  ;;  %v7097_v6 = vmul.f32 -1.442695, %v2437_v25  ;;  %v2814_v18 = vmul.f32 %v8275_v39, %v10544_v29  ;;  %v13668_v39 = vld [vmem:[#allocation26_spill] sm:$0xff] }
 0x32d   : > { %v8279_v52 = vpop.eup %8278  ;;  %8294 = vtanh.f32 %v10344_v46  ;;  %v2737_v2 = vpop.permute.xlu1 %2736 }
 0x32e   : > { %v8281_v62 = vpop.eup %8280  ;;  %v2815_v4 = vmul.f32 %v8279_v52, %v10564_v60  ;;  %2756 = vrot.lane.b32.xlu1 %v8277_v36, %s13525_s16  ;;  %2386 = vrot.lane.b32.xlu0 %v2292_v22, %s9122_s26  ;;  %v2359_v33 = vpop.permute.xlu0 %2358  ;;  %8296 = vpow2.f32 %v7097_v6 }
 0x32f   : > { %v2562_v47 = vadd.f32 1.0, %v8281_v62  ;;  %v2438_v14 = vadd.f32 %v2359_v33, %v13667_v7  ;;  %8298 = vtanh.f32 %v10360_v38 }
 0x330   : > { %v2842_v11 = vpack.c.bf16 %v2815_v4, %v2814_v18  ;;  %v8283_v29 = vpop.eup %8282 }
 0x331   : > { %v7098_v60 = vmul.f32 -1.442695, %v2438_v14  ;;  %v8285_v61 = vpop.eup %8284  ;;  %8300 = vrcp.f32 %v2562_v47  ;;  %v2563_v56 = vadd.f32 1.0, %v8283_v29  ;;  %v2361_v45 = vpop.permute.xlu1 %2360 }
 0x332   : > { %2388 = vrot.lane.b32.xlu1 %v2293_v30, %s9122_s26  ;;  %2910 = vrot.lane.b32.xlu0 %v2842_v11, %s9122_s26  ;;  %v8287_v16 = vpop.eup %8286  ;;  %v2439_v27 = vadd.f32 %v2361_v45, %v13668_v39 }
 0x333   : > { %8302 = vpow2.f32 %v7098_v60  ;;  %v8289_v25 = vpop.eup %8288 }
 0x334   : > { %8304 = vrcp.f32 %v2563_v56  ;;  %v7099_v36 = vmul.f32 -1.442695, %v2439_v27  ;;  %v2816_v52 = vmul.f32 %v8289_v25, %v10557_v51 }
 0x335   : > { %v8291_v57 = vpop.eup %8290  ;;  %v2741_v56 = vpop.permute.xlu1 %2740 }
 0x336   : > { %v8293_v43 = vpop.eup %8292  ;;  %v2564_v22 = vadd.f32 1.0, %v8291_v57  ;;  %2758 = vrot.lane.b32.xlu1 %v8285_v61, %s13525_s16  ;;  %2760 = vrot.lane.b32.xlu0 %v8287_v16, %s13525_s16  ;;  %8306 = vpow2.f32 %v7099_v36  ;;  %v2363_v27 = vpop.permute.xlu0 %2362 }
 0x337   : > { %v2817_v6 = vmul.f32 %v8293_v43, %v10586_v15  ;;  %v8295_v62 = vpop.eup %8294  ;;  %8308 = vtanh.f32 %v10377_v12 }
 0x338   : > { %v8297_v18 = vpop.eup %8296  ;;  %8310 = vrcp.f32 %v2564_v22 }
 0x339   : > { %v2843_v4 = vpack.c.bf16 %v2817_v6, %v2816_v52  ;;  %v2565_v33 = vadd.f32 1.0, %v8297_v18  ;;  %v8299_v47 = vpop.eup %8298  ;;  %8312 = vtanh.f32 %v10401_v8  ;;  %v2365_v25 = vpop.permute.xlu1 %2364 }
 0x33a   : > { %2762 = vrot.lane.b32.xlu0 %v8295_v62, %s13525_s16  ;;  %v2745_v6 = vpop.permute.xlu0 %2744 }
 0x33b   : > { %2912 = vrot.lane.b32.xlu1 %v2843_v4, %s9122_s26  ;;  %v8301_v7 = vpop.eup %8300  ;;  %8314 = vrcp.f32 %v2565_v33  ;;  %v13669_v33 = vld [vmem:[#allocation31_spill] sm:$0xff] }
 0x33c   : > { %v2818_v28 = vmul.f32 %v8301_v7, %v10573_v54  ;;  %8316 = vtanh.f32 %v10415_v0  ;;  %v13670_v7 = vld [vmem:[#allocation29_spill] sm:$0xff] }
 0x33d   : > { %v8303_v51 = vpop.eup %8302  ;;  %v2743_v62 = vpop.permute.xlu1 %2742 }
 0x33e   : > { %v8305_v14 = vpop.eup %8304  ;;  %v2566_v15 = vadd.f32 1.0, %v8303_v51  ;;  %v2440_v51 = vadd.f32 %v2363_v27, %v13670_v7  ;;  %v13673_v27 = vld [vmem:[#allocation36_spill] sm:$0xff] }
 0x33f   : > { %v2819_v30 = vmul.f32 %v8305_v14, %v2737_v2  ;;  %2764 = vrot.lane.b32.xlu1 %v8299_v47, %s13525_s16  ;;  %v2441_v47 = vadd.f32 %v2365_v25, %v13669_v33  ;;  %v13675_v33 = vld [vmem:[#allocation38_spill] sm:$0xff] }
 0x340   : > { %v8307_v11 = vpop.eup %8306  ;;  %8318 = vrcp.f32 %v2566_v15  ;;  %v7100_v15 = vmul.f32 -1.442695, %v2440_v51  ;;  %v13676_v51 = vld [vmem:[#allocation39_spill] sm:$0xff] }
 0x341   : > { %v2844_v29 = vpack.c.bf16 %v2819_v30, %v2818_v28  ;;  %v8309_v60 = vpop.eup %8308  ;;  %v2567_v61 = vadd.f32 1.0, %v8307_v11  ;;  %8320 = vtanh.f32 %v10434_v55  ;;  %v7101_v14 = vmul.f32 -1.442695, %v2441_v47  ;;  %v2367_v28 = vpop.permute.xlu0 %2366  ;;  %v13671_v11 = vld [vmem:[#allocation34_spill] sm:$0xff] }
 0x342   : > { %v8311_v45 = vpop.eup %8310  ;;  %v2369_v30 = vpop.permute.xlu1 %2368 }
 0x343   : > { %2766 = vrot.lane.b32.xlu1 %v8309_v60, %s13525_s16  ;;  %2914 = vrot.lane.b32.xlu0 %v2844_v29, %s9122_s26  ;;  %8322 = vrcp.f32 %v2567_v61  ;;  %v8313_v54 = vpop.eup %8312  ;;  %v2820_v16 = vmul.f32 %v8311_v45, %v10595_v13  ;;  %v2442_v29 = vadd.f32 %v2367_v28, %v13671_v11  ;;  %v13672_v60 = vld [vmem:[#allocation35_spill] sm:$0xff] }
 0x344   : > { %8324 = vpow2.f32 %v7101_v14  ;;  %v2443_v61 = vadd.f32 %v2369_v30, %v13672_v60  ;;  %v13677_v30 = vmov 0  }
 0x345   : > { %v8315_v2 = vpop.eup %8314  ;;  %8326 = vpow2.f32 %v7100_v15  ;;  %v7102_v45 = vmul.f32 -1.442695, %v2442_v29 }
 0x346   : > { %v2821_v39 = vmul.f32 %v8315_v2, %v2741_v56  ;;  %v8317_v36 = vpop.eup %8316 }
 0x347   : > { %2768 = vrot.lane.b32.xlu0 %v8313_v54, %s13525_s16  ;;  %v7103_v54 = vmul.f32 -1.442695, %v2443_v61  ;;  %8328 = vpow2.f32 %v7102_v45 }
 0x348   : > { %v2845_v57 = vpack.c.bf16 %v2821_v39, %v2820_v16  ;;  %v2371_v39 = vpop.permute.xlu0 %2370  ;;  %v2373_v25 = vpop.permute.xlu1 %2372 }
 0x349   : > { %8330 = vpow2.f32 %v7103_v54 }
 0x34a   : > { %2916 = vrot.lane.b32.xlu1 %v2845_v57, %s9122_s26  ;;  %v8319_v43 = vpop.eup %8318 }
 0x34b   : > { %2770 = vrot.lane.b32.xlu0 %v8317_v36, %s13525_s16  ;;  %v8321_v22 = vpop.eup %8320  ;;  %v2822_v4 = vmul.f32 %v8319_v43, %v2743_v62  ;;  %v2444_v36 = vadd.f32 %v2371_v39, %v13673_v27  ;;  %v13674_v43 = vld [vmem:[#allocation37_spill] sm:$0xff]  ;;  %v7994_v27 = vld [vmem:[%s13255_s7] sm:$0xff]  }
 0x34c   : > { %7803 = vmatprep.subr.bf16.mxu0 %v7994_v27 }
 0x34d   : > { %v8323_v52 = vpop.eup %8322  ;;  %7804 = vmatpush3.bf16.msra.mxu0 %v7994_v27 }
 0x34e   : > { %v2823_v18 = vmul.f32 %v8323_v52, %v2745_v6  ;;  %2772 = vrot.lane.b32.xlu1 %v8321_v22, %s13525_s16  ;;  %v8325_v56 = vpop.eup %8324  ;;  %v2445_v22 = vadd.f32 %v2373_v25, %v13674_v43  ;;  %v7104_v52 = vmul.f32 -1.442695, %v2444_v36  ;;  %v13678_v43 = vld [vmem:[#allocation41_spill] sm:$0xff] }
 0x34f   : > { %v8327_v2 = vpop.eup %8326  ;;  %v2569_v16 = vadd.f32 1.0, %v8325_v56 }
 0x350   : > { %v2846_v13 = vpack.c.bf16 %v2823_v18, %v2822_v4  ;;  %v2568_v57 = vadd.f32 1.0, %v8327_v2  ;;  %v7105_v6 = vmul.f32 -1.442695, %v2445_v22  ;;  %v2375_v18 = vpop.permute.xlu1 %2374 }
 0x351   : > { %8332 = vrcp.f32 %v2569_v16  ;;  %v2377_v62 = vpop.permute.xlu0 %2376  ;;  %v8329_v4 = vpop.eup %8328  ;;  %v2446_v47 = vadd.f32 %v2375_v18, %v13675_v33 }
 0x352   : > { %2918 = vrot.lane.b32.xlu0 %v2846_v13, %s9122_s26  ;;  %8334 = vrcp.f32 %v2568_v57  ;;  %v2447_v14 = vadd.f32 %v2377_v62, %v13676_v51  ;;  %v2570_v28 = vadd.f32 1.0, %v8329_v4 }
 0x353   : > { %8336 = vpow2.f32 %v7104_v52  ;;  %v8331_v13 = vpop.eup %8330  ;;  %v7106_v60 = vmul.f32 -1.442695, %v2446_v47 }
 0x354   : > { %8338 = vpow2.f32 %v7105_v6  ;;  %v2571_v11 = vadd.f32 1.0, %v8331_v13  ;;  %v2749_v61 = vpop.permute.xlu1 %2748  ;;  %v7107_v45 = vmul.f32 -1.442695, %v2447_v14 }
 0x355   : > { %8340 = vrcp.f32 %v2570_v28 }
 0x356   : > { %8342 = vrcp.f32 %v2571_v11 }
 0x357   : > { %8344 = vpow2.f32 %v7106_v60 }
 0x358   : > { %8346 = vpow2.f32 %v7107_v45 }
 0x35b   : > { %v8333_v15 = vpop.eup %8332 }
 0x35c   : > { %v8335_v29 = vpop.eup %8334  ;;  %v2825_v54 = vmul.f32 %v8333_v15, %v2749_v61 }
 0x35d   : > { %v8337_v25 = vpop.eup %8336 }
 0x35e   : > { %v8339_v36 = vpop.eup %8338  ;;  %v2572_v52 = vadd.f32 1.0, %v8337_v25 }
 0x35f   : > { %v2573_v62 = vadd.f32 1.0, %v8339_v36  ;;  %v8341_v33 = vpop.eup %8340 }
 0x360   : > { %8348 = vrcp.f32 %v2572_v52 }
 0x361   : > { %8350 = vrcp.f32 %v2573_v62 }
 0x383   : > { %v2903_v7 = vpop.permute.xlu0 %2902 }
 0x384   : > { %7118 = vmatmul.mubr.msk.bf16.vlgmr.msra.gmra.mrb[32].mxu1 %vm1461_vm2, %v2903_v7  ;;  %v8343_v7 = vpop.eup %8342 }
 0x385   : > { %3044 = vmatprep.mubr.bf16.mxu1 %v13677_v30  ;;  %v8345_v15 = vpop.eup %8344 }
 0x386   : > { %v2574_v61 = vadd.f32 1.0, %v8345_v15  ;;  %v13680_v15 = vld [vmem:[#allocation47_spill] sm:$0xff] }
 0x387   : > { %v2747_v56 = vpop.permute.xlu0 %2746 }
 0x388   : > { %v2824_v2 = vmul.f32 %v8335_v29, %v2747_v56  ;;  %v8347_v29 = vpop.eup %8346 }
 0x389   : > { %v2575_v45 = vadd.f32 1.0, %v8347_v29  ;;  %v8349_v36 = vpop.eup %8348 }
 0x38a   : > { %v2847_v16 = vpack.c.bf16 %v2825_v54, %v2824_v2  ;;  %v13679_v2 = vld [vmem:[#allocation43_spill] sm:$0xff] }
 0x38b   : > { %v2379_v39 = vpop.permute.xlu0 %2378 }
 0x38c   : > { %v2905_v57 = vpop.permute.xlu1 %2904  ;;  %2920 = vrot.lane.b32.xlu1 %v2847_v16, %s9122_s26  ;;  %v2448_v22 = vadd.f32 %v2379_v39, %v13678_v43  ;;  %v8351_v43 = vpop.eup %8350 }
 0x38d   : > { %7119 = vmatmul.mubr.msk.bf16.gmra.mrb[36].mxu1 %vm1461_vm2, %v2905_v57 }
 0x38e   : > { %3054 = vmatprep.mubr.bf16.mxu1 %v13677_v30  ;;  %v7108_v4 = vmul.f32 -1.442695, %v2448_v22 }
 0x38f   : > { %v2753_v6 = vpop.permute.xlu0 %2752 }
 0x390   : > { %v2381_v18 = vpop.permute.xlu1 %2380  ;;  %8352 = vpow2.f32 %v7108_v4  ;;  %v2827_v28 = vmul.f32 %v8343_v7, %v2753_v6 }
 0x391   : > { %v2449_v13 = vadd.f32 %v2381_v18, %v9776_v48 }
 0x393   : > { %v7109_v47 = vmul.f32 -1.442695, %v2449_v13 }
 0x394   : > { %v2751_v51 = vpop.permute.xlu1 %2750  ;;  %v2907_v14 = vpop.permute.xlu0 %2906 }
 0x395   : > { %v2826_v11 = vmul.f32 %v8341_v33, %v2751_v51  ;;  %7120 = vmatmul.mubr.msk.bf16.gmra.mrb[40].mxu1 %vm1461_vm2, %v2907_v14  ;;  %8354 = vpow2.f32 %v7109_v47 }
 0x396   : > { %3064 = vmatprep.mubr.bf16.mxu1 %v13677_v30  ;;  %8356 = vrcp.f32 %v2574_v61 }
 0x397   : > { %v2848_v60 = vpack.c.bf16 %v2827_v28, %v2826_v11  ;;  %8358 = vrcp.f32 %v2575_v45 }
 0x398   : > { %v2383_v48 = vpop.permute.xlu1 %2382  ;;  %v2385_v56 = vpop.permute.xlu0 %2384 }
 0x399   : > { %v2450_v54 = vadd.f32 %v2383_v48, %v9802_v20  ;;  %v2451_v16 = vadd.f32 %v2385_v56, %v13679_v2  ;;  %2922 = vrot.lane.b32.xlu0 %v2848_v60, %s9122_s26 }
 0x39a   : > { %v8353_v22 = vpop.eup %8352 }
 0x39b   : > { %v7110_v39 = vmul.f32 -1.442695, %v2450_v54  ;;  %v7111_v25 = vmul.f32 -1.442695, %v2451_v16  ;;  %v2576_v13 = vadd.f32 1.0, %v8353_v22 }
 0x39c   : > { %v2909_v57 = vpop.permute.xlu1 %2908  ;;  %v2755_v27 = vpop.permute.xlu0 %2754 }
 0x39d   : > { %7121 = vmatmul.mubr.msk.bf16.gmra.mrb[44].mxu1 %vm1461_vm2, %v2909_v57  ;;  %8360 = vpow2.f32 %v7110_v39  ;;  %v2828_v62 = vmul.f32 %v8349_v36, %v2755_v27 }
 0x39e   : > { %3074 = vmatprep.mubr.bf16.mxu1 %v13677_v30  ;;  %8362 = vpow2.f32 %v7111_v25 }
 0x39f   : > { %v8355_v20 = vpop.eup %8354 }
 0x3a0   : > { %v2757_v52 = vpop.permute.xlu1 %2756  ;;  %v2387_v6 = vpop.permute.xlu0 %2386  ;;  %v2577_v33 = vadd.f32 1.0, %v8355_v20 }
 0x3a1   : > { %v2829_v18 = vmul.f32 %v8351_v43, %v2757_v52  ;;  %v2452_v4 = vadd.f32 %v2387_v6, %v9836_v31  ;;  %v8357_v11 = vpop.eup %8356 }
 0x3a2   : > { %v8359_v29 = vpop.eup %8358 }
 0x3a3   : > { %v2849_v47 = vpack.c.bf16 %v2829_v18, %v2828_v62  ;;  %v7112_v7 = vmul.f32 -1.442695, %v2452_v4 }
 0x3a4   : > { %v2389_v51 = vpop.permute.xlu1 %2388  ;;  %v2911_v14 = vpop.permute.xlu0 %2910 }
 0x3a5   : > { %8364 = vpow2.f32 %v7112_v7  ;;  %v2453_v28 = vadd.f32 %v2389_v51, %v13680_v15  ;;  %2924 = vrot.lane.b32.xlu1 %v2849_v47, %s9122_s26  ;;  %7122 = vmatmul.mubr.msk.bf16.gmra.mrb[48].mxu1 %vm1461_vm2, %v2911_v14  ;;  %v7995_v14 = vld [vmem:[%s13255_s7 + $0x8] sm:$0xff]  }
 0x3a6   : > { %8366 = vrcp.f32 %v2576_v13  ;;  %3084 = vmatprep.mubr.bf16.mxu1 %v13677_v30  ;;  %7805 = vmatprep.subr.bf16.mxu0 %v7995_v14 }
 0x3a7   : > { %8368 = vrcp.f32 %v2577_v33  ;;  %v7113_v31 = vmul.f32 -1.442695, %v2453_v28  ;;  %v8361_v60 = vpop.eup %8360  ;;  %7806 = vmatpush3.bf16.msra.mxu0 %v7995_v14  ;;  %v9006_v14 = vld [vmem:[%s9338_s30 + $0x58] sm:$0xff] }
 0x3a8   : > { %v2759_v61 = vpop.permute.xlu1 %2758  ;;  %v2761_v48 = vpop.permute.xlu0 %2760  ;;  %v2578_v45 = vadd.f32 1.0, %v8361_v60  ;;  %v8994_v60 = vld [vmem:[%s9338_s30 + $0x8] sm:$0xff] }
 0x3a9   : > { %v8363_v56 = vpop.eup %8362  ;;  %8370 = vpow2.f32 %v7113_v31  ;;  %v2830_v54 = vmul.f32 %v8357_v11, %v2759_v61  ;;  %v2831_v2 = vmul.f32 %v8359_v29, %v2761_v48  ;;  %v8993_v31 = vld [vmem:[%s9338_s30] sm:$0xff] }
 0x3aa   : > { %v2579_v16 = vadd.f32 1.0, %v8363_v56  ;;  %8372 = vrcp.f32 %v2578_v45  ;;  %v2854_v61 = vpack.c.bf16 %v8994_v60, %v8993_v31  ;;  %v9009_v31 = vld [vmem:[%s9338_s30 + $0x70] sm:$0xff]  ;;  %v9010_v60 = vld [vmem:[%s9338_s30 + $0x78] sm:$0xff] }
 0x3ab   : > { %v2850_v39 = vpack.c.bf16 %v2831_v2, %v2830_v54 }
 0x3ac   : > { %8374 = vrcp.f32 %v2579_v16  ;;  %v2763_v27 = vpop.permute.xlu0 %2762 }
 0x3ad   : > { %v2913_v25 = vpop.permute.xlu1 %2912  ;;  %2926 = vrot.lane.b32.xlu0 %v2850_v39, %s9122_s26  ;;  %v8995_v39 = vld [vmem:[%s9338_s30 + $0x20] sm:$0xff] }
 0x3ae   : > { %7123 = vmatmul.mubr.msk.bf16.gmra.mrb[52].mxu1 %vm1461_vm2, %v2913_v25  ;;  %v8996_v25 = vld [vmem:[%s9338_s30 + $0x28] sm:$0xff] }
 0x3af   : > { %v8365_v57 = vpop.eup %8364  ;;  %3094 = vmatprep.mubr.bf16.mxu1 %v13677_v30 }
 0x3b0   : > { %v8367_v36 = vpop.eup %8366  ;;  %v2580_v22 = vadd.f32 1.0, %v8365_v57  ;;  %v2856_v57 = vpack.c.bf16 %v8996_v25, %v8995_v39 }
 0x3b1   : > { %v8369_v43 = vpop.eup %8368  ;;  %v2765_v20 = vpop.permute.xlu1 %2764  ;;  %v2832_v52 = vmul.f32 %v8367_v36, %v2763_v27 }
 0x3b2   : > { %v2833_v6 = vmul.f32 %v8369_v43, %v2765_v20  ;;  %8376 = vrcp.f32 %v2580_v22  ;;  %v8997_v43 = vld [vmem:[%s9338_s30 + $0x10] sm:$0xff]  ;;  %v8998_v22 = vld [vmem:[%s9338_s30 + $0x18] sm:$0xff] }
 0x3b3   : > { %v8371_v62 = vpop.eup %8370  ;;  %v2855_v20 = vpack.c.bf16 %v8998_v22, %v8997_v43  ;;  %v2874_v43 = vld [vmem:[%s13254_s6] sm:$0x3] }
 0x3b4   : > { %v2581_v18 = vadd.f32 1.0, %v8371_v62  ;;  %v2851_v4 = vpack.c.bf16 %v2833_v6, %v2832_v52  ;;  %v8373_v33 = vpop.eup %8372  ;;  %v8999_v52 = vld [vmem:[%s9338_s30 + $0x40] sm:$0xff]  ;;  %v9000_v6 = vld [vmem:[%s9338_s30 + $0x48] sm:$0xff] }
 0x3b5   : > { %v2915_v13 = vpop.permute.xlu0 %2914  ;;  %v2767_v47 = vpop.permute.xlu1 %2766  ;;  %v2858_v62 = vpack.c.bf16 %v9000_v6, %v8999_v52  ;;  %v9018_v52 = vld [vmem:[%s9338_s30 + $0xb8] sm:$0xff] }
 0x3b6   : > { %8378 = vrcp.f32 %v2581_v18  ;;  %2928 = vrot.lane.b32.xlu1 %v2851_v4, %s9122_s26  ;;  %7124 = vmatmul.mubr.msk.bf16.gmra.mrb[56].mxu1 %vm1461_vm2, %v2915_v13  ;;  %v8375_v7 = vpop.eup %8374  ;;  %v2834_v15 = vmul.f32 %v8373_v33, %v2767_v47  ;;  %v9001_v18 = vld [vmem:[%s9338_s30 + $0x30] sm:$0xff]  ;;  %v9002_v4 = vld [vmem:[%s9338_s30 + $0x38] sm:$0xff]  ;;  %v9003_v33 = vld [vmem:[%s9338_s30 + $0x60] sm:$0xff] }
 0x3b7   : > { %3104 = vmatprep.mubr.bf16.mxu1 %v13677_v30  ;;  %v2857_v13 = vpack.c.bf16 %v9002_v4, %v9001_v18  ;;  %v9004_v47 = vld [vmem:[%s9338_s30 + $0x68] sm:$0xff]  ;;  %v9019_v18 = vld [vmem:[%s9338_s30 + $0xe0] sm:$0xff] }
 0x3b8   : > { %v9020_v4 = vld [vmem:[%s9338_s30 + $0xe8] sm:$0xff] }
 0x3b9   : > { %v2769_v51 = vpop.permute.xlu0 %2768 }
 0x3ba   : > { %v2835_v28 = vmul.f32 %v8375_v7, %v2769_v51  ;;  %v2860_v7 = vpack.c.bf16 %v9004_v47, %v9003_v33  ;;  %v9005_v51 = vld [vmem:[%s9338_s30 + $0x50] sm:$0xff]  ;;  %v9022_v47 = vld [vmem:[%s9338_s30 + $0xd8] sm:$0xff] }
 0x3bb   : > { %v9021_v33 = vld [vmem:[%s9338_s30 + $0xd0] sm:$0xff] }
 0x3bc   : > { %v2852_v11 = vpack.c.bf16 %v2835_v28, %v2834_v15  ;;  %v2917_v29 = vpop.permute.xlu1 %2916  ;;  %v8377_v48 = vpop.eup %8376  ;;  %v2859_v15 = vpack.c.bf16 %v9006_v14, %v9005_v51  ;;  %v9007_v28 = vld [vmem:[%s9338_s30 + $0x80] sm:$0xff]  ;;  %v9023_v51 = vld [vmem:[%s9338_s30 + $0xf0] sm:$0xff]  ;;  %v9024_v14 = vld [vmem:[%s9338_s30 + $0xf8] sm:$0xff] }
 0x3bd   : > { %v2771_v56 = vpop.permute.xlu0 %2770 }
 0x3be   : > { %7125 = vmatmul.mubr.msk.bf16.gmra.mrb[60].mxu1 %vm1461_vm2, %v2917_v29  ;;  %2930 = vrot.lane.b32.xlu0 %v2852_v11, %s9122_s26  ;;  %v2836_v2 = vmul.f32 %v8377_v48, %v2771_v56  ;;  %v9008_v11 = vld [vmem:[%s9338_s30 + $0x88] sm:$0xff]  ;;  %v9011_v48 = vld [vmem:[%s9338_s30 + $0xa0] sm:$0xff] }
 0x3bf   : > { %3114 = vmatprep.mubr.bf16.mxu1 %v13677_v30  ;;  %v2862_v29 = vpack.c.bf16 %v9008_v11, %v9007_v28  ;;  %v9012_v56 = vld [vmem:[%s9338_s30 + $0xa8] sm:$0xff] }
 0x3c0   : > { %v8379_v45 = vpop.eup %8378  ;;  %v2773_v54 = vpop.permute.xlu1 %2772 }
 0x3c1   : > { %v2837_v16 = vmul.f32 %v8379_v45, %v2773_v54  ;;  %v2864_v45 = vpack.c.bf16 %v9012_v56, %v9011_v48  ;;  %v2876_v54 = vlaneseq }
 0x3c2   : > { %3222 = vrot.lane.b32.xlu0 %v2854_v61, %s9125_s19  ;;  %v2861_v61 = vpack.c.bf16 %v9010_v60, %v9009_v31 }
 0x3c3   : > { %v2853_v27 = vpack.c.bf16 %v2837_v16, %v2836_v2  ;;  %v9013_v2 = vld [vmem:[%s9338_s30 + $0x90] sm:$0xff]  ;;  %v9014_v16 = vld [vmem:[%s9338_s30 + $0x98] sm:$0xff]  ;;  %v10712_v25 = vshrl.u32 %v2876_v54, 7 }
 0x3c4   : > { %v2919_v36 = vpop.permute.xlu0 %2918  ;;  %v2863_v39 = vpack.c.bf16 %v9014_v16, %v9013_v2 }
 0x3c5   : > { %2932 = vrot.lane.b32.xlu1 %v2853_v27, %s9122_s26  ;;  %v9016_v27 = vld [vmem:[%s9338_s30 + $0xc8] sm:$0xff]  ;;  %v2882_v22 = vsub.s32 1, %v10712_v25 }
 0x3c6   : > { %7126 = vmatmul.mubr.msk.bf16.gmra.mrb[64].mxu1 %vm1461_vm2, %v2919_v36  ;;  %3226 = vrot.lane.b32.xlu0 %v2856_v57, %s9125_s19  ;;  %v9015_v57 = vld [vmem:[%s9338_s30 + $0xc0] sm:$0xff] }
 0x3c7   : > { %3124 = vmatprep.mubr.bf16.mxu1 %v13677_v30  ;;  %v2866_v36 = vpack.c.bf16 %v9016_v27, %v9015_v57  ;;  %v2878_v27 = vsub.s32 0, %v10712_v25 }
 0x3c9   : > { %3224 = vrot.lane.b32.xlu1 %v2855_v20, %s9125_s19  ;;  %v9017_v20 = vld [vmem:[%s9338_s30 + $0xb0] sm:$0xff] }
 0x3ca   : > { %3230 = vrot.lane.b32.xlu0 %v2858_v62, %s9125_s19  ;;  %v2865_v6 = vpack.c.bf16 %v9018_v52, %v9017_v20  ;;  %v10724_v62 = vrot.slane %v2874_v43, %v2882_v22  ;;  %v10759_v22 = vrot.slane %v2874_v43, %v2878_v27 }
 0x3cc   : > { %13681 = vst [vmem:[#allocation48_spill] sm:$0xff] %v10724_v62 }
 0x3cd   : > { %3228 = vrot.lane.b32.xlu1 %v2857_v13, %s9125_s19  ;;  %v2868_v13 = vpack.c.bf16 %v9020_v4, %v9019_v18 }
 0x3ce   : > { %3234 = vrot.lane.b32.xlu0 %v2860_v7, %s9125_s19  ;;  %v2867_v7 = vpack.c.bf16 %v9022_v47, %v9021_v33 }
 0x3d1   : > { %3232 = vrot.lane.b32.xlu1 %v2859_v15, %s9125_s19  ;;  %v2869_v15 = vpack.c.bf16 %v9024_v14, %v9023_v51 }
 0x3d2   : > { %3238 = vrot.lane.b32.xlu0 %v2862_v29, %s9125_s19 }
 0x3d5   : > { %3236 = vrot.lane.b32.xlu1 %v2861_v61, %s9125_s19 }
 0x3d6   : > { %3242 = vrot.lane.b32.xlu0 %v2864_v45, %s9125_s19 }
 0x3d9   : > { %3240 = vrot.lane.b32.xlu1 %v2863_v39, %s9125_s19 }
 0x3da   : > { %3246 = vrot.lane.b32.xlu0 %v2866_v36, %s9125_s19 }
 0x3dd   : > { %3244 = vrot.lane.b32.xlu1 %v2865_v6, %s9125_s19 }
 0x3de   : > { %3250 = vrot.lane.b32.xlu0 %v2868_v13, %s9125_s19 }
 0x3e1   : > { %3248 = vrot.lane.b32.xlu1 %v2867_v7, %s9125_s19 }
 0x3e5   : > { %3252 = vrot.lane.b32.xlu1 %v2869_v15, %s9125_s19 }
 0x3fe   : > { %v2921_v28 = vpop.permute.xlu1 %2920 }
 0x3ff   : > { %7127 = vmatmul.mubr.msk.bf16.gmra.mrb[68].mxu1 %vm1461_vm2, %v2921_v28 }
 0x400   : > { %3134 = vmatprep.mubr.bf16.mxu1 %v13677_v30 }
 0x40b   : > { %v2923_v11 = vpop.permute.xlu0 %2922 }
 0x40c   : > { %7128 = vmatmul.mubr.msk.bf16.gmra.mrb[72].mxu1 %vm1461_vm2, %v2923_v11 }
 0x40d   : > { %3144 = vmatprep.mubr.bf16.mxu1 %v13677_v30 }
 0x417   : > { %v2925_v29 = vpop.permute.xlu1 %2924 }
 0x418   : > { %7129 = vmatmul.mubr.msk.bf16.gmra.mrb[76].mxu1 %vm1461_vm2, %v2925_v29 }
 0x419   : > { %3154 = vmatprep.mubr.bf16.mxu1 %v13677_v30 }
 0x41f   : > { %v2927_v31 = vpop.permute.xlu0 %2926 }
 0x420   : > { %7130 = vmatmul.mubr.msk.bf16.gmra.mrb[80].mxu1 %vm1461_vm2, %v2927_v31 }
 0x421   : > { %3164 = vmatprep.mubr.bf16.mxu1 %v13677_v30 }
 0x428   : > { %v2929_v60 = vpop.permute.xlu1 %2928 }
 0x429   : > { %7131 = vmatmul.mubr.msk.bf16.gmra.mrb[84].mxu1 %vm1461_vm2, %v2929_v60 }
 0x42a   : > { %3174 = vmatprep.mubr.bf16.mxu1 %v13677_v30 }
 0x430   : > { %v2931_v61 = vpop.permute.xlu0 %2930 }
 0x431   : > { %7132 = vmatmul.mubr.msk.bf16.gmra.mrb[88].mxu1 %vm1461_vm2, %v2931_v61 }
 0x432   : > { %3184 = vmatprep.mubr.bf16.mxu1 %v13677_v30 }
 0x434   : > { %v3223_v48 = vpop.permute.xlu0 %3222 }
 0x435   : > { %7807 = vmatprep.mubr.msk.bf16.mxu0 %vm1461_vm2, %v3223_v48 }
 0x437   : > { %v2933_v56 = vpop.permute.xlu1 %2932 }
 0x438   : > { %v3227_v45 = vpop.permute.xlu0 %3226 }
 0x439   : > { %7133 = vmatmul.mubr.msk.bf16.gmra.mrb[92].mxu1 %vm1461_vm2, %v2933_v56 }
 0x43b   : > { %v3225_v54 = vpop.permute.xlu1 %3224 }
 0x43c   : > { %7808 = vmatmul.mubr.msk.bf16.vlgmr.msra.gmra.mrb[64].mxu0 %vm1461_vm2, %v3225_v54  ;;  %v3231_v16 = vpop.permute.xlu0 %3230 }
 0x43d   : > { %7811 = vmatprep.mubr.msk.bf16.mxu0 %vm1461_vm2, %v3227_v45 }
 0x43f   : > { %v3229_v2 = vpop.permute.xlu1 %3228 }
 0x440   : > { %v3235_v30 = vpop.permute.xlu0 %3234 }
 0x443   : > { %v3233_v39 = vpop.permute.xlu1 %3232 }
 0x444   : > { %7812 = vmatmul.mubr.msk.bf16.gmra.mrb[68].mxu0 %vm1461_vm2, %v3229_v2  ;;  %v3239_v36 = vpop.permute.xlu0 %3238 }
 0x445   : > { %7815 = vmatprep.mubr.msk.bf16.mxu0 %vm1461_vm2, %v3231_v16 }
 0x447   : > { %v3237_v57 = vpop.permute.xlu1 %3236 }
 0x448   : > { %v3243_v47 = vpop.permute.xlu0 %3242 }
 0x44b   : > { %v3241_v33 = vpop.permute.xlu1 %3240 }
 0x44c   : > { %7816 = vmatmul.mubr.msk.bf16.gmra.mrb[72].mxu0 %vm1461_vm2, %v3233_v39  ;;  %v3247_v29 = vpop.permute.xlu0 %3246 }
 0x44d   : > { %7819 = vmatprep.mubr.msk.bf16.mxu0 %vm1461_vm2, %v3235_v30 }
 0x44f   : > { %v3245_v14 = vpop.permute.xlu1 %3244 }
 0x450   : > { %v3251_v16 = vpop.permute.xlu0 %3250 }
 0x453   : > { %v3249_v56 = vpop.permute.xlu1 %3248 }
 0x454   : > { %7820 = vmatmul.mubr.msk.bf16.gmra.mrb[76].mxu0 %vm1461_vm2, %v3237_v57 }
 0x455   : > { %7823 = vmatprep.mubr.msk.bf16.mxu0 %vm1461_vm2, %v3239_v36 }
 0x457   : > { %v3036_v20 = vpop.f32.mrb[32].mxu1  ;;  %v3253_v36 = vpop.permute.xlu1 %3252 }
 0x458   : > { %v10762_v52 = vpop.f32.mrb[33].mxu1  ;;  %v3037_v18 = vadd.f32 %v3036_v20, %v10759_v22 }
 0x459   : > { %13682 = vst [vmem:[#allocation49_spill] sm:$0xff] %v10762_v52  ;;  %v3040_v6 = vpop.f32.mrb[34].mxu1 }
 0x45a   : > { %v3041_v4 = vadd.f32 %v3040_v6, %v10759_v22  ;;  %v10766_v13 = vpop.f32.mrb[35].mxu1 }
 0x45b   : > { %13683 = vst [vmem:[#allocation50_spill] sm:$0xff] %v10766_v13 }
 0x45c   : > { %v10768_v25 = vpack.c.bf16 %v3041_v4, %v3037_v18  ;;  %7824 = vmatmul.mubr.msk.bf16.gmra.mrb[80].mxu0 %vm1461_vm2, %v3241_v33 }
 0x45d   : > { %7827 = vmatprep.mubr.msk.bf16.mxu0 %vm1461_vm2, %v3243_v47 }
 0x45e   : > { %3523 = vrot.lane.b32.xlu0 %v10768_v25, %s9126_s14  ;;  %7457 = vmatprep.mubr.msk.bf16.mxu1 %vm3555_vm3, %v10768_v25 }
 0x460   : > { %v3046_v43 = vpop.f32.mrb[36].mxu1 }
 0x461   : > { %v10776_v7 = vpop.f32.mrb[37].mxu1  ;;  %v3047_v15 = vadd.f32 %v3046_v43, %v10759_v22 }
 0x462   : > { %13684 = vst [vmem:[#allocation51_spill] sm:$0xff] %v10776_v7  ;;  %v3050_v51 = vpop.f32.mrb[38].mxu1 }
 0x463   : > { %v3051_v28 = vadd.f32 %v3050_v51, %v10759_v22  ;;  %v10780_v11 = vpop.f32.mrb[39].mxu1 }
 0x464   : > { %13685 = vst [vmem:[#allocation52_spill] sm:$0xff] %v10780_v11  ;;  %7828 = vmatmul.mubr.msk.bf16.gmra.mrb[84].mxu0 %vm1461_vm2, %v3245_v14 }
 0x465   : > { %v10782_v31 = vpack.c.bf16 %v3051_v28, %v3047_v15  ;;  %7831 = vmatprep.mubr.msk.bf16.mxu0 %vm1461_vm2, %v3247_v29 }
 0x467   : > { %3525 = vrot.lane.b32.xlu0 %v10782_v31, %s9126_s14 }
 0x468   : > { %v3056_v60 = vpop.f32.mrb[40].mxu1 }
 0x469   : > { %v10788_v61 = vpop.f32.mrb[41].mxu1  ;;  %v3057_v45 = vadd.f32 %v3056_v60, %v10759_v22 }
 0x46a   : > { %13686 = vst [vmem:[#allocation53_spill] sm:$0xff] %v10788_v61  ;;  %v3060_v48 = vpop.f32.mrb[42].mxu1 }
 0x46b   : > { %v3061_v54 = vadd.f32 %v3060_v48, %v10759_v22  ;;  %v10792_v2 = vpop.f32.mrb[43].mxu1 }
 0x46c   : > { %13687 = vst [vmem:[#allocation54_spill] sm:$0xff] %v10792_v2  ;;  %7832 = vmatmul.mubr.msk.bf16.gmra.mrb[88].mxu0 %vm1461_vm2, %v3249_v56 }
 0x46d   : > { %v10794_v39 = vpack.c.bf16 %v3061_v54, %v3057_v45  ;;  %7835 = vmatprep.mubr.msk.bf16.mxu0 %vm1461_vm2, %v3251_v16 }
 0x46f   : > { %3527 = vrot.lane.b32.xlu0 %v10794_v39, %s9126_s14 }
 0x470   : > { %v3066_v30 = vpop.f32.mrb[44].mxu1 }
 0x471   : > { %v10800_v57 = vpop.f32.mrb[45].mxu1  ;;  %v3067_v20 = vadd.f32 %v3066_v30, %v10759_v22 }
 0x472   : > { %13688 = vst [vmem:[#allocation55_spill] sm:$0xff] %v10800_v57  ;;  %v3070_v27 = vpop.f32.mrb[46].mxu1 }
 0x473   : > { %v3071_v6 = vadd.f32 %v3070_v27, %v10759_v22  ;;  %v10804_v18 = vpop.f32.mrb[47].mxu1 }
 0x474   : > { %13689 = vst [vmem:[#allocation56_spill] sm:$0xff] %v10804_v18  ;;  %7836 = vmatmul.mubr.msk.bf16.gmra.mrb[92].mxu0 %vm1461_vm2, %v3253_v36 }
 0x475   : > { %v10806_v4 = vpack.c.bf16 %v3071_v6, %v3067_v20  ;;  %7505 = vmatprep.mubr.msk.bf16.mxu0 %vm3555_vm3, %v10768_v25 }
 0x477   : > { %3529 = vrot.lane.b32.xlu0 %v10806_v4, %s9126_s14 }
 0x478   : > { %v3076_v33 = vpop.f32.mrb[48].mxu1 }
 0x479   : > { %v10813_v47 = vpop.f32.mrb[49].mxu1  ;;  %v3077_v51 = vadd.f32 %v3076_v33, %v10759_v22 }
 0x47a   : > { %13690 = vst [vmem:[#allocation57_spill] sm:$0xff] %v10813_v47  ;;  %v3080_v43 = vpop.f32.mrb[50].mxu1 }
 0x47b   : > { %v3081_v14 = vadd.f32 %v3080_v43, %v10759_v22  ;;  %v10817_v15 = vpop.f32.mrb[51].mxu1 }
 0x47c   : > { %13691 = vst [vmem:[#allocation58_spill] sm:$0xff] %v10817_v15 }
 0x47d   : > { %v10819_v28 = vpack.c.bf16 %v3081_v14, %v3077_v51 }
 0x47f   : > { %3531 = vrot.lane.b32.xlu0 %v10819_v28, %s9126_s14 }
 0x481   : > { %v3086_v29 = vpop.f32.mrb[52].mxu1 }
 0x482   : > { %v10823_v60 = vpop.f32.mrb[53].mxu1  ;;  %v3087_v56 = vadd.f32 %v3086_v29, %v10759_v22 }
 0x483   : > { %13692 = vst [vmem:[#allocation7_spill] sm:$0xff] %v10823_v60  ;;  %v3090_v48 = vpop.f32.mrb[54].mxu1 }
 0x484   : > { %v3091_v45 = vadd.f32 %v3090_v48, %v10759_v22  ;;  %v10827_v54 = vpop.f32.mrb[55].mxu1 }
 0x485   : > { %13693 = vst [vmem:[#allocation8_spill] sm:$0xff] %v10827_v54 }
 0x486   : > { %v10829_v16 = vpack.c.bf16 %v3091_v45, %v3087_v56 }
 0x488   : > { %3533 = vrot.lane.b32.xlu0 %v10829_v16, %s9126_s14 }
 0x489   : > { %v3096_v30 = vpop.f32.mrb[56].mxu1 }
 0x48a   : > { %v10833_v27 = vpop.f32.mrb[57].mxu1  ;;  %v3097_v20 = vadd.f32 %v3096_v30, %v10759_v22 }
 0x48b   : > { %13694 = vst [vmem:[#allocation9_spill] sm:$0xff] %v10833_v27  ;;  %v3100_v36 = vpop.f32.mrb[58].mxu1 }
 0x48c   : > { %v3101_v6 = vadd.f32 %v3100_v36, %v10759_v22  ;;  %v10837_v33 = vpop.f32.mrb[59].mxu1 }
 0x48d   : > { %13695 = vst [vmem:[#allocation10_spill] sm:$0xff] %v10837_v33 }
 0x48e   : > { %v10839_v43 = vpack.c.bf16 %v3101_v6, %v3097_v20 }
 0x490   : > { %3535 = vrot.lane.b32.xlu0 %v10839_v43, %s9126_s14 }
 0x491   : > { %v3106_v51 = vpop.f32.mrb[60].mxu1 }
 0x492   : > { %v10843_v14 = vpop.f32.mrb[61].mxu1  ;;  %v3107_v48 = vadd.f32 %v3106_v51, %v10759_v22 }
 0x493   : > { %13696 = vst [vmem:[#allocation11_spill] sm:$0xff] %v10843_v14  ;;  %v3110_v29 = vpop.f32.mrb[62].mxu1 }
 0x494   : > { %v3111_v56 = vadd.f32 %v3110_v29, %v10759_v22  ;;  %v10847_v45 = vpop.f32.mrb[63].mxu1 }
 0x495   : > { %13697 = vst [vmem:[#allocation12_spill] sm:$0xff] %v10847_v45 }
 0x496   : > { %v10849_v30 = vpack.c.bf16 %v3111_v56, %v3107_v48 }
 0x498   : > { %3537 = vrot.lane.b32.xlu0 %v10849_v30, %s9126_s14 }
 0x499   : > { %v3116_v36 = vpop.f32.mrb[64].mxu1 }
 0x49a   : > { %v10853_v20 = vpop.f32.mrb[65].mxu1  ;;  %v3117_v55 = vadd.f32 %v3116_v36, %v10759_v22 }
 0x49b   : > { %13698 = vst [vmem:[#allocation13_spill] sm:$0xff] %v10853_v20  ;;  %v3120_v6 = vpop.f32.mrb[66].mxu1 }
 0x49c   : > { %v3121_v0 = vadd.f32 %v3120_v6, %v10759_v22  ;;  %v10857_v8 = vpop.f32.mrb[67].mxu1 }
 0x49d   : > { %13699 = vst [vmem:[#allocation14_spill] sm:$0xff] %v10857_v8 }
 0x49e   : > { %v10859_v51 = vpack.c.bf16 %v3121_v0, %v3117_v55 }
 0x4a0   : > { %3539 = vrot.lane.b32.xlu1 %v10859_v51, %s9126_s14 }
 0x4d2   : > { %v3126_v29 = vpop.f32.mrb[68].mxu1 }
 0x4d3   : > { %v10863_v48 = vpop.f32.mrb[69].mxu1  ;;  %v3127_v12 = vadd.f32 %v3126_v29, %v10759_v22 }
 0x4d4   : > { %13700 = vst [vmem:[#allocation15_spill] sm:$0xff] %v10863_v48  ;;  %v3130_v56 = vpop.f32.mrb[70].mxu1 }
 0x4d5   : > { %v3131_v38 = vadd.f32 %v3130_v56, %v10759_v22  ;;  %v10867_v46 = vpop.f32.mrb[71].mxu1 }
 0x4d6   : > { %13701 = vst [vmem:[#allocation16_spill] sm:$0xff] %v10867_v46 }
 0x4d7   : > { %v10869_v36 = vpack.c.bf16 %v3131_v38, %v3127_v12 }
 0x4d9   : > { %3541 = vrot.lane.b32.xlu1 %v10869_v36, %s9126_s14 }
 0x4df   : > { %v3136_v0 = vpop.f32.mrb[72].mxu1 }
 0x4e0   : > { %v10873_v55 = vpop.f32.mrb[73].mxu1  ;;  %v3137_v53 = vadd.f32 %v3136_v0, %v10759_v22 }
 0x4e1   : > { %13702 = vst [vmem:[#allocation59_spill] sm:$0xff] %v10873_v55  ;;  %v3140_v6 = vpop.f32.mrb[74].mxu1 }
 0x4e2   : > { %v3141_v50 = vadd.f32 %v3140_v6, %v10759_v22  ;;  %v10877_v40 = vpop.f32.mrb[75].mxu1 }
 0x4e3   : > { %13703 = vst [vmem:[#allocation17_spill] sm:$0xff] %v10877_v40 }
 0x4e4   : > { %v10879_v29 = vpack.c.bf16 %v3141_v50, %v3137_v53 }
 0x4e6   : > { %3543 = vrot.lane.b32.xlu1 %v10879_v29, %s9126_s14 }
 0x4eb   : > { %v3146_v38 = vpop.f32.mrb[76].mxu1 }
 0x4ec   : > { %v10883_v12 = vpop.f32.mrb[77].mxu1  ;;  %v3147_v19 = vadd.f32 %v3146_v38, %v10759_v22 }
 0x4ed   : > { %13704 = vst [vmem:[#allocation18_spill] sm:$0xff] %v10883_v12  ;;  %v3150_v56 = vpop.f32.mrb[78].mxu1 }
 0x4ee   : > { %v3151_v42 = vadd.f32 %v3150_v56, %v10759_v22  ;;  %v10887_v49 = vpop.f32.mrb[79].mxu1 }
 0x4ef   : > { %13705 = vst [vmem:[#allocation60_spill] sm:$0xff] %v10887_v49 }
 0x4f0   : > { %v10889_v0 = vpack.c.bf16 %v3151_v42, %v3147_v19 }
 0x4f2   : > { %3545 = vrot.lane.b32.xlu1 %v10889_v0, %s9126_s14 }
 0x4f3   : > { %v3156_v50 = vpop.f32.mrb[80].mxu1 }
 0x4f4   : > { %v10893_v53 = vpop.f32.mrb[81].mxu1  ;;  %v3157_v21 = vadd.f32 %v3156_v50, %v10759_v22 }
 0x4f5   : > { %13706 = vst [vmem:[#allocation19_spill] sm:$0xff] %v10893_v53  ;;  %v3160_v6 = vpop.f32.mrb[82].mxu1 }
 0x4f6   : > { %v3161_v26 = vadd.f32 %v3160_v6, %v10759_v22  ;;  %v10897_v35 = vpop.f32.mrb[83].mxu1 }
 0x4f7   : > { %13707 = vst [vmem:[#allocation20_spill] sm:$0xff] %v10897_v35 }
 0x4f8   : > { %v10899_v38 = vpack.c.bf16 %v3161_v26, %v3157_v21 }
 0x4fa   : > { %3547 = vrot.lane.b32.xlu1 %v10899_v38, %s9126_s14 }
 0x4fc   : > { %v3166_v42 = vpop.f32.mrb[84].mxu1 }
 0x4fd   : > { %v10903_v19 = vpop.f32.mrb[85].mxu1  ;;  %v3167_v63 = vadd.f32 %v3166_v42, %v10759_v22 }
 0x4fe   : > { %13708 = vst [vmem:[#allocation21_spill] sm:$0xff] %v10903_v19  ;;  %v3170_v56 = vpop.f32.mrb[86].mxu1 }
 0x4ff   : > { %v3171_v58 = vadd.f32 %v3170_v56, %v10759_v22  ;;  %v10907_v37 = vpop.f32.mrb[87].mxu1 }
 0x500   : > { %13709 = vst [vmem:[#allocation22_spill] sm:$0xff] %v10907_v37 }
 0x501   : > { %v10909_v50 = vpack.c.bf16 %v3171_v58, %v3167_v63 }
 0x503   : > { %3549 = vrot.lane.b32.xlu1 %v10909_v50, %s9126_s14 }
 0x504   : > { %v3176_v26 = vpop.f32.mrb[88].mxu1 }
 0x505   : > { %v10913_v21 = vpop.f32.mrb[89].mxu1  ;;  %v3177_v3 = vadd.f32 %v3176_v26, %v10759_v22  ;;  %v10932_v26 = vld [vmem:[%s13256_s8] ss:$0 sm:$0xff] }
 0x506   : > { %13710 = vst [vmem:[#allocation25_spill] sm:$0xff] %v10913_v21  ;;  %v3180_v6 = vpop.f32.mrb[90].mxu1 }
 0x507   : > { %v3181_v17 = vadd.f32 %v3180_v6, %v10759_v22  ;;  %v10917_v34 = vpop.f32.mrb[91].mxu1 }
 0x508   : > { %13711 = vst [vmem:[#allocation26_spill] sm:$0xff] %v10917_v34 }
 0x509   : > { %v10919_v42 = vpack.c.bf16 %v3181_v17, %v3177_v3  ;;  %v3524_v17 = vpop.permute.xlu0 %3523 }
 0x50b   : > { %3551 = vrot.lane.b32.xlu1 %v10919_v42, %s9126_s14 }
 0x50c   : > { %v3186_v58 = vpop.f32.mrb[92].mxu1 }
 0x50d   : > { %v10923_v63 = vpop.f32.mrb[93].mxu1  ;;  %v3187_v44 = vadd.f32 %v3186_v58, %v10759_v22 }
 0x50e   : > { %13712 = vst [vmem:[#allocation31_spill] sm:$0xff] %v10923_v63  ;;  %v3190_v56 = vpop.f32.mrb[94].mxu1 }
 0x50f   : > { %v3191_v5 = vadd.f32 %v3190_v56, %v10759_v22  ;;  %v10927_v1 = vpop.f32.mrb[95].mxu1  ;;  %v7809_v3 = vpop.f32.mrb[64].mxu0  ;;  %v3605_v22 = vsel %vm3555_vm3, %v3524_v17, 0 }
 0x510   : > { %13713 = vst [vmem:[#allocation29_spill] sm:$0xff] %v10927_v1  ;;  %v3357_v23 = vadd.f32 %v7809_v3, %v10932_v26  ;;  %v3348_v9 = vpop.f32.mrb[65].mxu0 }
 0x511   : > { %v10934_v6 = vpack.c.bf16 %v3191_v5, %v3187_v44  ;;  %v3349_v24 = vadd.f32 %v10932_v26, %v3348_v9  ;;  %v7810_v58 = vpop.f32.mrb[66].mxu0 }
 0x512   : > { %v3540_v59 = vpop.permute.xlu1 %3539  ;;  %v3360_v56 = vadd.f32 %v7810_v58, %v10932_v26  ;;  %v3351_v32 = vpop.f32.mrb[67].mxu0 }
 0x513   : > { %7840 = vmatprep.subr.msk.bf16.mxu1 %vm3555_vm3, %v3540_v59  ;;  %3553 = vrot.lane.b32.xlu1 %v10934_v6, %s9126_s14  ;;  %v3352_v5 = vadd.f32 %v10932_v26, %v3351_v32 }
 0x514   : > { %7442 = vmatpush3.bf16.xpose.msra.mxu1 %v3605_v22  ;;  %v10944_v44 = vpack.c.bf16 %v3360_v56, %v3357_v23 }
 0x515   : > { %v3491_v3 = vpack.c.bf16 %v3352_v5, %v3349_v24 }
 0x517   : > { %5254 = vrot.lane.b32.xlu0 %v3491_v3, %s9126_s14  ;;  %v7813_v9 = vpop.f32.mrb[68].mxu0 }
 0x518   : > { %v3373_v10 = vadd.f32 %v7813_v9, %v10932_v26  ;;  %v3364_v17 = vpop.f32.mrb[69].mxu0 }
 0x519   : > { %v3365_v58 = vadd.f32 %v10932_v26, %v3364_v17  ;;  %v7814_v41 = vpop.f32.mrb[70].mxu0 }
 0x51a   : > { %v3376_v59 = vadd.f32 %v7814_v41, %v10932_v26  ;;  %v3367_v1 = vpop.f32.mrb[71].mxu0 }
 0x51b   : > { %5495 = vrot.lane.b32.xlu0 %v10768_v25, %s9125_s19  ;;  %v3368_v32 = vadd.f32 %v10932_v26, %v3367_v1 }
 0x51c   : > { %v10953_v23 = vpack.c.bf16 %v3376_v59, %v3373_v10 }
 0x51d   : > { %v10955_v24 = vpack.c.bf16 %v3368_v32, %v3365_v58 }
 0x51f   : > { %5256 = vrot.lane.b32.xlu0 %v10944_v44, %s9126_s14  ;;  %v7817_v22 = vpop.f32.mrb[72].mxu0 }
 0x520   : > { %v3389_v56 = vadd.f32 %v7817_v22, %v10932_v26  ;;  %v3380_v5 = vpop.f32.mrb[73].mxu0 }
 0x521   : > { %v3381_v9 = vadd.f32 %v10932_v26, %v3380_v5  ;;  %v7818_v41 = vpop.f32.mrb[74].mxu0 }
 0x522   : > { %v3392_v17 = vadd.f32 %v7818_v41, %v10932_v26  ;;  %v3383_v63 = vpop.f32.mrb[75].mxu0 }
 0x523   : > { %5513 = vrot.lane.b32.xlu0 %v10869_v36, %s9125_s19  ;;  %v3384_v10 = vadd.f32 %v10932_v26, %v3383_v63 }
 0x524   : > { %v10965_v1 = vpack.c.bf16 %v3392_v17, %v3389_v56 }
 0x525   : > { %v10967_v58 = vpack.c.bf16 %v3384_v10, %v3381_v9 }
 0x527   : > { %v7821_v59 = vpop.f32.mrb[76].mxu0 }
 0x528   : > { %v3405_v32 = vadd.f32 %v7821_v59, %v10932_v26  ;;  %v3396_v22 = vpop.f32.mrb[77].mxu0 }
 0x529   : > { %v3397_v34 = vadd.f32 %v10932_v26, %v3396_v22  ;;  %v7822_v5 = vpop.f32.mrb[78].mxu0 }
 0x52a   : > { %v3408_v21 = vadd.f32 %v7822_v5, %v10932_v26  ;;  %v3399_v41 = vpop.f32.mrb[79].mxu0 }
 0x52b   : > { %v3400_v37 = vadd.f32 %v10932_v26, %v3399_v41  ;;  %v4550_v41 = vsel %vm3555_vm3, %v3491_v3, 0 }
 0x52c   : > { %v10973_v19 = vpack.c.bf16 %v3408_v21, %v3405_v32 }
 0x52d   : > { %v10975_v35 = vpack.c.bf16 %v3400_v37, %v3397_v34 }
 0x52f   : > { %v7825_v63 = vpop.f32.mrb[80].mxu0 }
 0x530   : > { %v3421_v56 = vadd.f32 %v7825_v63, %v10932_v26  ;;  %v3412_v9 = vpop.f32.mrb[81].mxu0 }
 0x531   : > { %v3413_v17 = vadd.f32 %v10932_v26, %v3412_v9  ;;  %v7826_v10 = vpop.f32.mrb[82].mxu0 }
 0x532   : > { %v3424_v59 = vadd.f32 %v7826_v10, %v10932_v26  ;;  %v3415_v22 = vpop.f32.mrb[83].mxu0 }
 0x533   : > { %v3416_v53 = vadd.f32 %v10932_v26, %v3415_v22 }
 0x534   : > { %v3500_v5 = vpack.c.bf16 %v3424_v59, %v3421_v56 }
 0x535   : > { %v3499_v49 = vpack.c.bf16 %v3416_v53, %v3413_v17 }
 0x537   : > { %5270 = vrot.lane.b32.xlu1 %v3499_v49, %s9126_s14  ;;  %v7829_v34 = vpop.f32.mrb[84].mxu0  ;;  %7848 = vmatprep.subr.msk.bf16.mxu0 %vm3555_vm3, %v3499_v49  ;;  %v4553_v49 = vsel %vm3555_vm3, %v10944_v44, 0 }
 0x538   : > { %v3437_v37 = vadd.f32 %v7829_v34, %v10932_v26  ;;  %v3428_v21 = vpop.f32.mrb[85].mxu0  ;;  %7490 = vmatpush3.bf16.xpose.msra.mxu0 %v4550_v41 }
 0x539   : > { %v3429_v32 = vadd.f32 %v10932_v26, %v3428_v21  ;;  %v7830_v63 = vpop.f32.mrb[86].mxu0  ;;  %7849 = vmatprep.subr.msk.bf16.mxu0 %vm3555_vm3, %v3500_v5 }
 0x53a   : > { %v3440_v9 = vadd.f32 %v7830_v63, %v10932_v26  ;;  %v3431_v56 = vpop.f32.mrb[87].mxu0  ;;  %v4556_v63 = vsel %vm3555_vm3, %v10955_v24, 0 }
 0x53b   : > { %v3432_v53 = vadd.f32 %v10932_v26, %v3431_v56  ;;  %5511 = vrot.lane.b32.xlu1 %v10859_v51, %s9125_s19 }
 0x53c   : > { %v3502_v3 = vpack.c.bf16 %v3440_v9, %v3437_v37 }
 0x53d   : > { %v3501_v17 = vpack.c.bf16 %v3432_v53, %v3429_v32 }
 0x53f   : > { %5272 = vrot.lane.b32.xlu1 %v3500_v5, %s9126_s14  ;;  %5274 = vrot.lane.b32.xlu0 %v3501_v17, %s9126_s14  ;;  %v7833_v10 = vpop.f32.mrb[88].mxu0 }
 0x540   : > { %7492 = vmatpush3.bf16.xpose.msra.mxu0 %v4553_v49  ;;  %v3453_v59 = vadd.f32 %v7833_v10, %v10932_v26  ;;  %v3444_v22 = vpop.f32.mrb[89].mxu0 }
 0x541   : > { %7850 = vmatprep.subr.msk.bf16.mxu0 %vm3555_vm3, %v3501_v17  ;;  %v3445_v41 = vadd.f32 %v10932_v26, %v3444_v22  ;;  %v7834_v34 = vpop.f32.mrb[90].mxu0  ;;  %v3526_v17 = vpop.permute.xlu0 %3525 }
 0x542   : > { %v3456_v37 = vadd.f32 %v7834_v34, %v10932_v26  ;;  %v3447_v21 = vpop.f32.mrb[91].mxu0  ;;  %v3608_v34 = vsel %vm3555_vm3, %v3526_v17, 0 }
 0x543   : > { %5497 = vrot.lane.b32.xlu1 %v10782_v31, %s9125_s19  ;;  %5515 = vrot.lane.b32.xlu0 %v10879_v29, %s9125_s19  ;;  %v3448_v44 = vadd.f32 %v10932_v26, %v3447_v21 }
 0x544   : > { %v3504_v5 = vpack.c.bf16 %v3456_v37, %v3453_v59 }
 0x545   : > { %v3503_v32 = vpack.c.bf16 %v3448_v44, %v3445_v41 }
 0x547   : > { %5258 = vrot.lane.b32.xlu1 %v10955_v24, %s9126_s14  ;;  %5499 = vrot.lane.b32.xlu0 %v10794_v39, %s9125_s19  ;;  %v7837_v9 = vpop.f32.mrb[92].mxu0 }
 0x548   : > { %7494 = vmatpush3.bf16.xpose.msra.mxu0 %v4556_v63  ;;  %v3469_v56 = vadd.f32 %v7837_v9, %v10932_v26  ;;  %v3460_v53 = vpop.f32.mrb[93].mxu0  ;;  %v4562_v63 = vsel %vm3555_vm3, %v10967_v58, 0 }
 0x549   : > { %7851 = vmatprep.subr.msk.bf16.mxu0 %vm3555_vm3, %v3502_v3  ;;  %v3461_v49 = vadd.f32 %v10932_v26, %v3460_v53  ;;  %v7838_v10 = vpop.f32.mrb[94].mxu0 }
 0x54a   : > { %v3472_v22 = vadd.f32 %v7838_v10, %v10932_v26  ;;  %v3463_v41 = vpop.f32.mrb[95].mxu0 }
 0x54b   : > { %v3542_v59 = vpop.permute.xlu1 %3541  ;;  %5276 = vrot.lane.b32.xlu1 %v3502_v3, %s9126_s14  ;;  %5260 = vrot.lane.b32.xlu0 %v10953_v23, %s9126_s14  ;;  %v3464_v24 = vadd.f32 %v10932_v26, %v3463_v41  ;;  %v4559_v3 = vsel %vm3555_vm3, %v10953_v23, 0  ;;  %v3528_v26 = vpop.permute.xlu0 %3527 }
 0x54c   : > { %7841 = vmatprep.subr.msk.bf16.mxu1 %vm3555_vm3, %v3542_v59  ;;  %v3506_v37 = vpack.c.bf16 %v3472_v22, %v3469_v56  ;;  %v3611_v23 = vsel %vm3555_vm3, %v3528_v26, 0 }
 0x54d   : > { %7444 = vmatpush3.bf16.xpose.msra.mxu1 %v3608_v34  ;;  %v3505_v21 = vpack.c.bf16 %v3464_v24, %v3461_v49  ;;  %v4571_v49 = vsel %vm3555_vm3, %v10973_v19, 0 }
 0x54f   : > { %5501 = vrot.lane.b32.xlu1 %v10806_v4, %s9125_s19  ;;  %5517 = vrot.lane.b32.xlu0 %v10889_v0, %s9125_s19 }
 0x550   : > { %7496 = vmatpush3.bf16.xpose.msra.mxu0 %v4559_v3 }
 0x551   : > { %7852 = vmatprep.subr.msk.bf16.mxu0 %vm3555_vm3, %v3503_v32 }
 0x553   : > { %5262 = vrot.lane.b32.xlu1 %v10967_v58, %s9126_s14  ;;  %5278 = vrot.lane.b32.xlu0 %v3503_v32, %s9126_s14  ;;  %v4565_v58 = vsel %vm3555_vm3, %v10965_v1, 0  ;;  %v3530_v32 = vpop.permute.xlu0 %3529 }
 0x554   : > { %v3614_v9 = vsel %vm3555_vm3, %v3530_v32, 0 }
 0x557   : > { %5280 = vrot.lane.b32.xlu1 %v3504_v5, %s9126_s14  ;;  %5519 = vrot.lane.b32.xlu0 %v10899_v38, %s9125_s19  ;;  %v3532_v56 = vpop.permute.xlu0 %3531 }
 0x558   : > { %v3544_v44 = vpop.permute.xlu1 %3543  ;;  %7498 = vmatpush3.bf16.xpose.msra.mxu0 %v4562_v63  ;;  %v3617_v17 = vsel %vm3555_vm3, %v3532_v56, 0 }
 0x559   : > { %7842 = vmatprep.subr.msk.bf16.mxu1 %vm3555_vm3, %v3544_v44  ;;  %7853 = vmatprep.subr.msk.bf16.mxu0 %vm3555_vm3, %v3504_v5 }
 0x55a   : > { %7446 = vmatpush3.bf16.xpose.msra.mxu1 %v3611_v23 }
 0x55b   : > { %5505 = vrot.lane.b32.xlu1 %v10829_v16, %s9125_s19  ;;  %5503 = vrot.lane.b32.xlu0 %v10819_v28, %s9125_s19 }
 0x55f   : > { %5264 = vrot.lane.b32.xlu0 %v10965_v1, %s9126_s14  ;;  %5266 = vrot.lane.b32.xlu1 %v10975_v35, %s9126_s14  ;;  %v4568_v1 = vsel %vm3555_vm3, %v10975_v35, 0  ;;  %v3534_v35 = vpop.permute.xlu0 %3533 }
 0x560   : > { %7500 = vmatpush3.bf16.xpose.msra.mxu0 %v4565_v58  ;;  %v3620_v59 = vsel %vm3555_vm3, %v3534_v35, 0 }
 0x561   : > { %7854 = vmatprep.subr.msk.bf16.mxu0 %vm3555_vm3, %v3505_v21 }
 0x563   : > { %5521 = vrot.lane.b32.xlu0 %v10909_v50, %s9125_s19  ;;  %5284 = vrot.lane.b32.xlu1 %v3506_v37, %s9126_s14  ;;  %v3536_v22 = vpop.permute.xlu0 %3535 }
 0x564   : > { %v3546_v5 = vpop.permute.xlu1 %3545  ;;  %v3623_v24 = vsel %vm3555_vm3, %v3536_v22, 0 }
 0x565   : > { %7843 = vmatprep.subr.msk.bf16.mxu1 %vm3555_vm3, %v3546_v5 }
 0x566   : > { %7448 = vmatpush3.bf16.xpose.msra.mxu1 %v3614_v9 }
 0x567   : > { %5282 = vrot.lane.b32.xlu0 %v3505_v21, %s9126_s14 }
 0x568   : > { %7502 = vmatpush3.bf16.xpose.msra.mxu0 %v4568_v1 }
 0x569   : > { %7855 = vmatprep.subr.msk.bf16.mxu0 %vm3555_vm3, %v3506_v37 }
 0x56b   : > { %5523 = vrot.lane.b32.xlu0 %v10919_v42, %s9125_s19 }
 0x56c   : > { %v3548_v53 = vpop.permute.xlu1 %3547 }
 0x56d   : > { %7844 = vmatprep.subr.msk.bf16.mxu1 %vm3555_vm3, %v3548_v53 }
 0x56e   : > { %7450 = vmatpush3.bf16.xpose.msra.mxu1 %v3617_v17 }
 0x56f   : > { %5507 = vrot.lane.b32.xlu0 %v10839_v43, %s9125_s19 }
 0x570   : > { %7504 = vmatpush3.bf16.xpose.msra.mxu0 %v4571_v49 }
 0x573   : > { %5268 = vrot.lane.b32.xlu0 %v10973_v19, %s9126_s14  ;;  %v3538_v19 = vpop.permute.xlu0 %3537  ;;  %s7289_s14 = sshll.u32 %s9211_s21, 12  ;;  %s13022_s21 = scalar_lea.sflag [#allocation3], %s400_s29 }
 0x574   : > { %v3626_v37 = vsel %vm3555_vm3, %v3538_v19, 0  ;;  %s13008_s22 = scalar_lea.hbm %s13259_s11, %s7289_s14  ;;  %s9064_s14 = scalar_lea.vmem %s9063_s12, 8192 }
 0x575   : > { %v3550_v10 = vpop.permute.xlu1 %3549 }
 0x576   : > { %7845 = vmatprep.subr.msk.bf16.mxu1 %vm3555_vm3, %v3550_v10 }
 0x577   : > { %7452 = vmatpush3.bf16.xpose.msra.mxu1 %v3620_v59  ;;  %7506 = vmatmul.mubr.msk.bf16.vlgmr.msra.gmra.mrb[96].mxu0 %vm3555_vm3, %v10768_v25 }
 0x578   : > { %7507 = vmatprep.mubr.msk.bf16.mxu0 %vm3555_vm3, %v10782_v31 }
 0x57d   : > { %v3552_v41 = vpop.permute.xlu1 %3551 }
 0x57e   : > { %7846 = vmatprep.subr.msk.bf16.mxu1 %vm3555_vm3, %v3552_v41 }
 0x57f   : > { %7454 = vmatpush3.bf16.xpose.msra.mxu1 %v3623_v24  ;;  %7508 = vmatmul.mubr.msk.bf16.gmra.mrb[100].mxu0 %vm3555_vm3, %v10782_v31 }
 0x580   : > { %7509 = vmatprep.mubr.msk.bf16.mxu0 %vm3555_vm3, %v10794_v39 }
 0x585   : > { %v3554_v34 = vpop.permute.xlu1 %3553 }
 0x586   : > { %7847 = vmatprep.subr.msk.bf16.mxu1 %vm3555_vm3, %v3554_v34 }
 0x587   : > { %7456 = vmatpush3.bf16.xpose.msra.mxu1 %v3626_v37  ;;  %7510 = vmatmul.mubr.msk.bf16.gmra.mrb[104].mxu0 %vm3555_vm3, %v10794_v39 }
 0x588   : > { %7511 = vmatprep.mubr.msk.bf16.mxu0 %vm3555_vm3, %v10806_v4 }
 0x58e   : > { %7458 = vmatmul.mubr.msk.bf16.vlgmr.msra.gmra.mrb[96].mxu1 %vm3555_vm3, %v10768_v25  ;;  %v5255_v25 = vpop.permute.xlu0 %5254 }
 0x58f   : > { %7459 = vmatprep.mubr.msk.bf16.mxu1 %vm3555_vm3, %v10782_v31  ;;  %7512 = vmatmul.mubr.msk.bf16.gmra.mrb[108].mxu0 %vm3555_vm3, %v10806_v4 }
 0x590   : > { %7513 = vmatprep.mubr.msk.bf16.mxu0 %vm3555_vm3, %v10819_v28 }
 0x596   : > { %7460 = vmatmul.mubr.msk.bf16.gmra.mrb[100].mxu1 %vm3555_vm3, %v10782_v31  ;;  %v5496_v31 = vpop.permute.xlu0 %5495 }
 0x597   : > { %7461 = vmatprep.mubr.msk.bf16.mxu1 %vm3555_vm3, %v10794_v39  ;;  %7514 = vmatmul.mubr.msk.bf16.gmra.mrb[112].mxu0 %vm3555_vm3, %v10819_v28 }
 0x598   : > { %7515 = vmatprep.mubr.msk.bf16.mxu0 %vm3555_vm3, %v10829_v16 }
 0x59a   : > { %v5257_v21 = vpop.permute.xlu0 %5256 }
 0x59e   : > { %7462 = vmatmul.mubr.msk.bf16.gmra.mrb[104].mxu1 %vm3555_vm3, %v10794_v39  ;;  %v5514_v3 = vpop.permute.xlu0 %5513 }
 0x59f   : > { %7463 = vmatprep.mubr.msk.bf16.mxu1 %vm3555_vm3, %v10806_v4  ;;  %7516 = vmatmul.mubr.msk.bf16.gmra.mrb[116].mxu0 %vm3555_vm3, %v10829_v16 }
 0x5a0   : > { %7517 = vmatprep.mubr.msk.bf16.mxu0 %vm3555_vm3, %v10839_v43 }
 0x5a6   : > { %7464 = vmatmul.mubr.msk.bf16.gmra.mrb[108].mxu1 %vm3555_vm3, %v10806_v4 }
 0x5a7   : > { %7465 = vmatprep.mubr.msk.bf16.mxu1 %vm3555_vm3, %v10819_v28  ;;  %7518 = vmatmul.mubr.msk.bf16.gmra.mrb[120].mxu0 %vm3555_vm3, %v10839_v43 }
 0x5a8   : > { %7519 = vmatprep.mubr.msk.bf16.mxu0 %vm3555_vm3, %v10849_v30 }
 0x5a9   : > { %v5271_v39 = vpop.permute.xlu1 %5270 }
 0x5aa   : > { %7537 = vmatprep.subr.bf16.mxu1 %v5271_v39 }
 0x5ab   : > { %7538 = vmatpush3.bf16.msra.mxu1 %v5255_v25 }
 0x5ad   : > { %v5512_v26 = vpop.permute.xlu1 %5511 }
 0x5ae   : > { %7466 = vmatmul.mubr.msk.bf16.gmra.mrb[112].mxu1 %vm3555_vm3, %v10819_v28  ;;  %7649 = vmatprep.subr.bf16.mxu0 %v5512_v26 }
 0x5af   : > { %7467 = vmatprep.mubr.msk.bf16.mxu1 %vm3555_vm3, %v10829_v16  ;;  %7520 = vmatmul.mubr.msk.bf16.gmra.mrb[124].mxu0 %vm3555_vm3, %v10849_v30 }
 0x5b0   : > { %7650 = vmatpush3.bf16.msra.mxu0 %v5496_v31  ;;  %7521 = vmatprep.mubr.msk.bf16.mxu0 %vm3555_vm3, %v10859_v51 }
 0x5b1   : > { %7651 = vmatprep.subr.bf16.mxu0 %v5514_v3  ;;  %v5273_v4 = vpop.permute.xlu1 %5272  ;;  %v5275_v44 = vpop.permute.xlu0 %5274 }
 0x5b2   : > { %7539 = vmatprep.subr.bf16.mxu1 %v5273_v4 }
 0x5b3   : > { %7540 = vmatpush3.bf16.msra.mxu1 %v5257_v21 }
 0x5b4   : > { %7541 = vmatprep.subr.bf16.mxu1 %v5275_v44 }
 0x5b5   : > { %v5498_v63 = vpop.permute.xlu1 %5497  ;;  %v5516_v28 = vpop.permute.xlu0 %5515 }
 0x5b6   : > { %7468 = vmatmul.mubr.msk.bf16.gmra.mrb[116].mxu1 %vm3555_vm3, %v10829_v16  ;;  %7652 = vmatpush3.bf16.msra.mxu0 %v5498_v63 }
 0x5b7   : > { %7469 = vmatprep.mubr.msk.bf16.mxu1 %vm3555_vm3, %v10839_v43  ;;  %7522 = vmatmul.mubr.msk.bf16.gmra.mrb[128].mxu0 %vm3555_vm3, %v10859_v51 }
 0x5b8   : > { %7653 = vmatprep.subr.bf16.mxu0 %v5516_v28  ;;  %7523 = vmatprep.mubr.msk.bf16.mxu0 %vm3555_vm3, %v10869_v36 }
 0x5b9   : > { %v5259_v23 = vpop.permute.xlu1 %5258  ;;  %v5500_v58 = vpop.permute.xlu0 %5499 }
 0x5ba   : > { %7654 = vmatpush3.bf16.msra.mxu0 %v5500_v58  ;;  %7542 = vmatpush3.bf16.msra.mxu1 %v5259_v23 }
 0x5bd   : > { %v5277_v32 = vpop.permute.xlu1 %5276  ;;  %v5261_v16 = vpop.permute.xlu0 %5260 }
 0x5be   : > { %7470 = vmatmul.mubr.msk.bf16.gmra.mrb[120].mxu1 %vm3555_vm3, %v10839_v43  ;;  %7543 = vmatprep.subr.bf16.mxu1 %v5277_v32 }
 0x5bf   : > { %7471 = vmatprep.mubr.msk.bf16.mxu1 %vm3555_vm3, %v10849_v30  ;;  %7524 = vmatmul.mubr.msk.bf16.gmra.mrb[132].mxu0 %vm3555_vm3, %v10869_v36 }
 0x5c0   : > { %7544 = vmatpush3.bf16.msra.mxu1 %v5261_v16  ;;  %7525 = vmatprep.mubr.msk.bf16.mxu0 %vm3555_vm3, %v10879_v29 }
 0x5c1   : > { %v5502_v5 = vpop.permute.xlu1 %5501  ;;  %v5518_v9 = vpop.permute.xlu0 %5517 }
 0x5c2   : > { %7655 = vmatprep.subr.bf16.mxu0 %v5518_v9 }
 0x5c3   : > { %7656 = vmatpush3.bf16.msra.mxu0 %v5502_v5 }
 0x5c5   : > { %v5263_v1 = vpop.permute.xlu1 %5262  ;;  %v5279_v43 = vpop.permute.xlu0 %5278 }
 0x5c6   : > { %7472 = vmatmul.mubr.msk.bf16.gmra.mrb[124].mxu1 %vm3555_vm3, %v10849_v30  ;;  %7545 = vmatprep.subr.bf16.mxu1 %v5279_v43 }
 0x5c7   : > { %7473 = vmatprep.mubr.msk.bf16.mxu1 %vm3555_vm3, %v10859_v51  ;;  %7526 = vmatmul.mubr.msk.bf16.gmra.mrb[136].mxu0 %vm3555_vm3, %v10879_v29 }
 0x5c8   : > { %7546 = vmatpush3.bf16.msra.mxu1 %v5263_v1  ;;  %7527 = vmatprep.mubr.msk.bf16.mxu0 %vm3555_vm3, %v10889_v0 }
 0x5c9   : > { %v5281_v56 = vpop.permute.xlu1 %5280  ;;  %v5520_v53 = vpop.permute.xlu0 %5519 }
 0x5ca   : > { %7657 = vmatprep.subr.bf16.mxu0 %v5520_v53  ;;  %7547 = vmatprep.subr.bf16.mxu1 %v5281_v56 }
 0x5cd   : > { %v5504_v17 = vpop.permute.xlu0 %5503  ;;  %v5506_v49 = vpop.permute.xlu1 %5505 }
 0x5ce   : > { %7474 = vmatmul.mubr.msk.bf16.gmra.mrb[128].mxu1 %vm3555_vm3, %v10859_v51  ;;  %7658 = vmatpush3.bf16.msra.mxu0 %v5504_v17 }
 0x5cf   : > { %7475 = vmatprep.mubr.msk.bf16.mxu1 %vm3555_vm3, %v10869_v36  ;;  %7528 = vmatmul.mubr.msk.bf16.gmra.mrb[140].mxu0 %vm3555_vm3, %v10889_v0 }
 0x5d0   : > { %7529 = vmatprep.mubr.msk.bf16.mxu0 %vm3555_vm3, %v10899_v38 }
 0x5d1   : > { %v5265_v35 = vpop.permute.xlu0 %5264  ;;  %v5267_v59 = vpop.permute.xlu1 %5266 }
 0x5d2   : > { %7548 = vmatpush3.bf16.msra.mxu1 %v5265_v35 }
 0x5d5   : > { %v5522_v10 = vpop.permute.xlu0 %5521  ;;  %v5285_v22 = vpop.permute.xlu1 %5284 }
 0x5d6   : > { %7476 = vmatmul.mubr.msk.bf16.gmra.mrb[132].mxu1 %vm3555_vm3, %v10869_v36  ;;  %7659 = vmatprep.subr.bf16.mxu0 %v5522_v10 }
 0x5d7   : > { %7477 = vmatprep.mubr.msk.bf16.mxu1 %vm3555_vm3, %v10879_v29  ;;  %7530 = vmatmul.mubr.msk.bf16.gmra.mrb[144].mxu0 %vm3555_vm3, %v10899_v38 }
 0x5d8   : > { %7660 = vmatpush3.bf16.msra.mxu0 %v5506_v49  ;;  %7531 = vmatprep.mubr.msk.bf16.mxu0 %vm3555_vm3, %v10909_v50 }
 0x5d9   : > { %v5283_v51 = vpop.permute.xlu0 %5282 }
 0x5da   : > { %7549 = vmatprep.subr.bf16.mxu1 %v5283_v51 }
 0x5db   : > { %7550 = vmatpush3.bf16.msra.mxu1 %v5267_v59 }
 0x5dc   : > { %7551 = vmatprep.subr.bf16.mxu1 %v5285_v22 }
 0x5dd   : > { %v5524_v36 = vpop.permute.xlu0 %5523 }
 0x5de   : > { %7478 = vmatmul.mubr.msk.bf16.gmra.mrb[136].mxu1 %vm3555_vm3, %v10879_v29  ;;  %7661 = vmatprep.subr.bf16.mxu0 %v5524_v36 }
 0x5df   : > { %7479 = vmatprep.mubr.msk.bf16.mxu1 %vm3555_vm3, %v10889_v0  ;;  %7532 = vmatmul.mubr.msk.bf16.gmra.mrb[148].mxu0 %vm3555_vm3, %v10909_v50 }
 0x5e0   : > { %7533 = vmatprep.mubr.msk.bf16.mxu0 %vm3555_vm3, %v10919_v42 }
 0x5e1   : > { %v5508_v41 = vpop.permute.xlu0 %5507 }
 0x5e2   : > { %7662 = vmatpush3.bf16.msra.mxu0 %v5508_v41 }
 0x5e5   : > { %v5269_v24 = vpop.permute.xlu0 %5268 }
 0x5e6   : > { %7480 = vmatmul.mubr.msk.bf16.gmra.mrb[140].mxu1 %vm3555_vm3, %v10889_v0 }
 0x5e7   : > { %7481 = vmatprep.mubr.msk.bf16.mxu1 %vm3555_vm3, %v10899_v38  ;;  %7552 = vmatpush3.bf16.msra.mxu1 %v5269_v24 }
 0x5e8   : > { %7534 = vmatmul.mubr.msk.bf16.gmra.mrb[152].mxu0 %vm3555_vm3, %v10919_v42 }
 0x5e9   : > { %7535 = vmatprep.mubr.msk.bf16.mxu0 %vm3555_vm3, %v10934_v6 }
 0x5ee   : > { %7482 = vmatmul.mubr.msk.bf16.gmra.mrb[144].mxu1 %vm3555_vm3, %v10899_v38 }
 0x5ef   : > { %7483 = vmatprep.mubr.msk.bf16.mxu1 %vm3555_vm3, %v10909_v50 }
 0x5f0   : > { %7536 = vmatmul.mubr.msk.bf16.gmra.mrb[156].mxu0 %vm3555_vm3, %v10934_v6 }
 0x5f6   : > { %7484 = vmatmul.mubr.msk.bf16.gmra.mrb[148].mxu1 %vm3555_vm3, %v10909_v50 }
 0x5f7   : > { %7485 = vmatprep.mubr.msk.bf16.mxu1 %vm3555_vm3, %v10919_v42 }
 0x5fe   : > { %7486 = vmatmul.mubr.msk.bf16.gmra.mrb[152].mxu1 %vm3555_vm3, %v10919_v42 }
 0x5ff   : > { %7487 = vmatprep.mubr.msk.bf16.mxu1 %vm3555_vm3, %v10934_v6 }
 0x606   : > { %7488 = vmatmul.mubr.msk.bf16.gmra.mrb[156].mxu1 %vm3555_vm3, %v10934_v6 }
 0x64a   : > { %v11198_v29 = vpop.f32.mrb[96].mxu0 }
 0x64b   : > { %v11200_v0 = vpop.f32.mrb[97].mxu0 }
 0x64c   : > { %v4790_v38 = vmax.f32 %v11198_v29, %v11200_v0  ;;  %v11204_v50 = vpop.f32.mrb[98].mxu0 }
 0x64d   : > { %v11206_v19 = vpop.f32.mrb[99].mxu0 }
 0x64e   : > { %v4793_v42 = vmax.f32 %v11204_v50, %v11206_v19  ;;  %4791 = vmax.xlane.f32.xlu1 %v4790_v38 }
 0x650   : > { %4794 = vmax.xlane.f32.xlu0 %v4793_v42 }
 0x652   : > { %v11210_v34 = vpop.f32.mrb[100].mxu0 }
 0x653   : > { %v11212_v37 = vpop.f32.mrb[101].mxu0 }
 0x654   : > { %v4796_v25 = vmax.f32 %v11210_v34, %v11212_v37  ;;  %v11216_v31 = vpop.f32.mrb[102].mxu0 }
 0x655   : > { %v11218_v21 = vpop.f32.mrb[103].mxu0 }
 0x656   : > { %v4799_v39 = vmax.f32 %v11216_v31, %v11218_v21  ;;  %4797 = vmax.xlane.f32.xlu0 %v4796_v25 }
 0x658   : > { %4800 = vmax.xlane.f32.xlu1 %v4799_v39 }
 0x65a   : > { %v11222_v3 = vpop.f32.mrb[104].mxu0 }
 0x65b   : > { %v11224_v26 = vpop.f32.mrb[105].mxu0 }
 0x65c   : > { %v4802_v4 = vmax.f32 %v11222_v3, %v11224_v26  ;;  %v11228_v44 = vpop.f32.mrb[106].mxu0 }
 0x65d   : > { %v11230_v63 = vpop.f32.mrb[107].mxu0 }
 0x65e   : > { %v4805_v28 = vmax.f32 %v11228_v44, %v11230_v63  ;;  %4803 = vmax.xlane.f32.xlu0 %v4802_v4 }
 0x660   : > { %4806 = vmax.xlane.f32.xlu1 %v4805_v28 }
 0x661   : > { %v11234_v23 = vpop.f32.mrb[96].mxu1 }
 0x662   : > { %v11236_v58 = vpop.f32.mrb[97].mxu1  ;;  %v11242_v5 = vpop.f32.mrb[108].mxu0 }
 0x663   : > { %v3845_v32 = vmax.f32 %v11234_v23, %v11236_v58  ;;  %v11240_v16 = vpop.f32.mrb[98].mxu1  ;;  %v11246_v1 = vpop.f32.mrb[109].mxu0 }
 0x664   : > { %v11244_v9 = vpop.f32.mrb[99].mxu1  ;;  %v4808_v56 = vmax.f32 %v11242_v5, %v11246_v1  ;;  %v11252_v53 = vpop.f32.mrb[110].mxu0 }
 0x665   : > { %v3848_v43 = vmax.f32 %v11240_v16, %v11244_v9  ;;  %v11254_v17 = vpop.f32.mrb[111].mxu0 }
 0x666   : > { %v4811_v49 = vmax.f32 %v11252_v53, %v11254_v17  ;;  %4809 = vmax.xlane.f32.xlu0 %v4808_v56 }
 0x668   : > { %4812 = vmax.xlane.f32.xlu1 %v4811_v49 }
 0x669   : > { %v11258_v35 = vpop.f32.mrb[100].mxu1 }
 0x66a   : > { %v11260_v10 = vpop.f32.mrb[101].mxu1  ;;  %v11264_v51 = vpop.f32.mrb[112].mxu0  ;;  %3846 = vmax.xlane.f32.xlu0 %v3845_v32 }
 0x66b   : > { %v3851_v59 = vmax.f32 %v11258_v35, %v11260_v10  ;;  %v11266_v22 = vpop.f32.mrb[102].mxu1  ;;  %v11270_v41 = vpop.f32.mrb[113].mxu0 }
 0x66c   : > { %v11268_v36 = vpop.f32.mrb[103].mxu1  ;;  %v11276_v42 = vpop.f32.mrb[114].mxu0  ;;  %3849 = vmax.xlane.f32.xlu1 %v3848_v43 }
 0x66d   : > { %v3854_v24 = vmax.f32 %v11266_v22, %v11268_v36  ;;  %13714 = vst [vmem:[#allocation34_spill] sm:$0xff] %v11276_v42  ;;  %v11278_v25 = vpop.f32.mrb[115].mxu0 }
 0x66e   : > { %13715 = vst [vmem:[#allocation35_spill] sm:$0xff] %v11278_v25  ;;  %3852 = vmax.xlane.f32.xlu0 %v3851_v59 }
 0x671   : > { %v11282_v4 = vpop.f32.mrb[104].mxu1 }
 0x672   : > { %v11284_v28 = vpop.f32.mrb[105].mxu1  ;;  %v11288_v56 = vpop.f32.mrb[116].mxu0  ;;  %3855 = vmax.xlane.f32.xlu0 %v3854_v24 }
 0x673   : > { %v3857_v32 = vmax.f32 %v11282_v4, %v11284_v28  ;;  %13716 = vst [vmem:[#allocation36_spill] sm:$0xff] %v11288_v56  ;;  %v11290_v49 = vpop.f32.mrb[106].mxu1  ;;  %v11294_v43 = vpop.f32.mrb[117].mxu0 }
 0x674   : > { %v11292_v38 = vpop.f32.mrb[107].mxu1  ;;  %13717 = vst [vmem:[#allocation37_spill] sm:$0xff] %v11294_v43  ;;  %v11300_v12 = vpop.f32.mrb[118].mxu0 }
 0x675   : > { %v3860_v39 = vmax.f32 %v11290_v49, %v11292_v38  ;;  %13718 = vst [vmem:[#allocation38_spill] sm:$0xff] %v11300_v12  ;;  %3858 = vmax.xlane.f32.xlu1 %v3857_v32  ;;  %v11302_v40 = vpop.f32.mrb[119].mxu0 }
 0x676   : > { %13719 = vst [vmem:[#allocation39_spill] sm:$0xff] %v11302_v40 }
 0x677   : > { %3861 = vmax.xlane.f32.xlu0 %v3860_v39 }
 0x679   : > { %v11306_v55 = vpop.f32.mrb[108].mxu1 }
 0x67a   : > { %v11308_v46 = vpop.f32.mrb[109].mxu1  ;;  %v11314_v20 = vpop.f32.mrb[120].mxu0 }
 0x67b   : > { %v3863_v48 = vmax.f32 %v11306_v55, %v11308_v46  ;;  %v11312_v8 = vpop.f32.mrb[110].mxu1  ;;  %13720 = vst [vmem:[#allocation41_spill] sm:$0xff] %v11314_v20  ;;  %v11318_v32 = vpop.f32.mrb[121].mxu0 }
 0x67c   : > { %v11316_v59 = vpop.f32.mrb[111].mxu1  ;;  %13721 = vst [vmem:[#allocation43_spill] sm:$0xff] %v11318_v32  ;;  %v11324_v24 = vpop.f32.mrb[122].mxu0 }
 0x67d   : > { %v3866_v45 = vmax.f32 %v11312_v8, %v11316_v59  ;;  %13722 = vst [vmem:[#allocation47_spill] sm:$0xff] %v11324_v24  ;;  %3864 = vmax.xlane.f32.xlu1 %v3863_v48  ;;  %v11326_v14 = vpop.f32.mrb[123].mxu0 }
 0x67e   : > { %13723 = vst [vmem:[#allocation81_spill] sm:$0xff] %v11326_v14 }
 0x67f   : > { %3867 = vmax.xlane.f32.xlu0 %v3866_v45 }
 0x681   : > { %v11330_v27 = vpop.f32.mrb[112].mxu1 }
 0x682   : > { %v11332_v54 = vpop.f32.mrb[113].mxu1  ;;  %v11338_v47 = vpop.f32.mrb[124].mxu0 }
 0x683   : > { %v3869_v60 = vmax.f32 %v11330_v27, %v11332_v54  ;;  %v11336_v15 = vpop.f32.mrb[114].mxu1  ;;  %13724 = vst [vmem:[#allocation82_spill] sm:$0xff] %v11338_v47  ;;  %v11342_v48 = vpop.f32.mrb[125].mxu0 }
 0x684   : > { %v11340_v39 = vpop.f32.mrb[115].mxu1  ;;  %13725 = vst [vmem:[#allocation83_spill] sm:$0xff] %v11342_v48  ;;  %v11348_v33 = vpop.f32.mrb[126].mxu0 }
 0x685   : > { %v3872_v18 = vmax.f32 %v11336_v15, %v11340_v39  ;;  %13726 = vst [vmem:[#allocation84_spill] sm:$0xff] %v11348_v33  ;;  %3870 = vmax.xlane.f32.xlu1 %v3869_v60  ;;  %v11350_v57 = vpop.f32.mrb[127].mxu0 }
 0x686   : > { %13727 = vst [vmem:[#allocation85_spill] sm:$0xff] %v11350_v57 }
 0x687   : > { %3873 = vmax.xlane.f32.xlu0 %v3872_v18 }
 0x689   : > { %v11354_v61 = vpop.f32.mrb[116].mxu1 }
 0x68a   : > { %13728 = vst [vmem:[#allocation86_spill] sm:$0xff] %v11354_v61  ;;  %v11356_v11 = vpop.f32.mrb[117].mxu1  ;;  %v11362_v52 = vpop.f32.mrb[128].mxu0 }
 0x68b   : > { %13729 = vst [vmem:[#allocation87_spill] sm:$0xff] %v11356_v11  ;;  %v3875_v7 = vmax.f32 %v11354_v61, %v11356_v11  ;;  %v11360_v13 = vpop.f32.mrb[118].mxu1  ;;  %13730 = vst [vmem:[#allocation88_spill] sm:$0xff] %v11362_v52  ;;  %v11366_v60 = vpop.f32.mrb[129].mxu0 }
 0x68c   : > { %v11364_v45 = vpop.f32.mrb[119].mxu1  ;;  %13732 = vst [vmem:[#allocation90_spill] sm:$0xff] %v11366_v60  ;;  %v11372_v2 = vpop.f32.mrb[130].mxu0 }
 0x68d   : > { %13731 = vst [vmem:[#allocation89_spill] sm:$0xff] %v11364_v45  ;;  %v3878_v62 = vmax.f32 %v11360_v13, %v11364_v45  ;;  %13733 = vst [vmem:[#allocation91_spill] sm:$0xff] %v11372_v2  ;;  %3876 = vmax.xlane.f32.xlu1 %v3875_v7  ;;  %v11374_v48 = vpop.f32.mrb[131].mxu0 }
 0x68e   : > { %13734 = vst [vmem:[#allocation92_spill] sm:$0xff] %v11374_v48 }
 0x68f   : > { %3879 = vmax.xlane.f32.xlu0 %v3878_v62 }
 0x691   : > { %v11378_v57 = vpop.f32.mrb[120].mxu1 }
 0x692   : > { %13735 = vst [vmem:[#allocation93_spill] sm:$0xff] %v11378_v57  ;;  %v11380_v33 = vpop.f32.mrb[121].mxu1  ;;  %v11386_v14 = vpop.f32.mrb[132].mxu0 }
 0x693   : > { %13736 = vst [vmem:[#allocation94_spill] sm:$0xff] %v11380_v33  ;;  %v3881_v32 = vmax.f32 %v11378_v57, %v11380_v33  ;;  %v11384_v20 = vpop.f32.mrb[122].mxu1  ;;  %13738 = vst [vmem:[#allocation96_spill] sm:$0xff] %v11386_v14  ;;  %v11390_v7 = vpop.f32.mrb[133].mxu0 }
 0x694   : > { %13737 = vst [vmem:[#allocation95_spill] sm:$0xff] %v11384_v20  ;;  %v11388_v18 = vpop.f32.mrb[123].mxu1  ;;  %13740 = vst [vmem:[#allocation98_spill] sm:$0xff] %v11390_v7  ;;  %v11396_v47 = vpop.f32.mrb[134].mxu0 }
 0x695   : > { %13739 = vst [vmem:[#allocation97_spill] sm:$0xff] %v11388_v18  ;;  %v3884_v60 = vmax.f32 %v11384_v20, %v11388_v18  ;;  %13741 = vst [vmem:[#allocation99_spill] sm:$0xff] %v11396_v47  ;;  %3882 = vmax.xlane.f32.xlu1 %v3881_v32  ;;  %v11398_v52 = vpop.f32.mrb[135].mxu0 }
 0x696   : > { %13742 = vst [vmem:[#allocation100_spill] sm:$0xff] %v11398_v52 }
 0x697   : > { %3885 = vmax.xlane.f32.xlu0 %v3884_v60 }
 0x699   : > { %v11402_v2 = vpop.f32.mrb[124].mxu1 }
 0x69a   : > { %13743 = vst [vmem:[#allocation101_spill] sm:$0xff] %v11402_v2  ;;  %v11404_v24 = vpop.f32.mrb[125].mxu1  ;;  %v11410_v40 = vpop.f32.mrb[136].mxu0 }
 0x69b   : > { %13744 = vst [vmem:[#allocation102_spill] sm:$0xff] %v11404_v24  ;;  %v3887_v43 = vmax.f32 %v11402_v2, %v11404_v24  ;;  %v11408_v56 = vpop.f32.mrb[126].mxu1  ;;  %13746 = vst [vmem:[#allocation104_spill] sm:$0xff] %v11410_v40  ;;  %v11414_v32 = vpop.f32.mrb[137].mxu0 }
 0x69c   : > { %13745 = vst [vmem:[#allocation103_spill] sm:$0xff] %v11408_v56  ;;  %v11412_v62 = vpop.f32.mrb[127].mxu1  ;;  %13748 = vst [vmem:[#allocation106_spill] sm:$0xff] %v11414_v32  ;;  %v11420_v48 = vpop.f32.mrb[138].mxu0 }
 0x69d   : > { %13747 = vst [vmem:[#allocation105_spill] sm:$0xff] %v11412_v62  ;;  %v3890_v7 = vmax.f32 %v11408_v56, %v11412_v62  ;;  %13749 = vst [vmem:[#allocation107_spill] sm:$0xff] %v11420_v48  ;;  %3888 = vmax.xlane.f32.xlu1 %v3887_v43  ;;  %v11422_v14 = vpop.f32.mrb[139].mxu0 }
 0x69e   : > { %13750 = vst [vmem:[#allocation108_spill] sm:$0xff] %v11422_v14 }
 0x69f   : > { %3891 = vmax.xlane.f32.xlu0 %v3890_v7 }
 0x6a1   : > { %v11426_v47 = vpop.f32.mrb[128].mxu1 }
 0x6a2   : > { %13751 = vst [vmem:[#allocation109_spill] sm:$0xff] %v11426_v47  ;;  %v11428_v24 = vpop.f32.mrb[129].mxu1  ;;  %v11434_v56 = vpop.f32.mrb[140].mxu0 }
 0x6a3   : > { %13752 = vst [vmem:[#allocation110_spill] sm:$0xff] %v11428_v24  ;;  %v3893_v2 = vmax.f32 %v11426_v47, %v11428_v24  ;;  %v11432_v62 = vpop.f32.mrb[130].mxu1  ;;  %13754 = vst [vmem:[#allocation112_spill] sm:$0xff] %v11434_v56  ;;  %v11438_v43 = vpop.f32.mrb[141].mxu0 }
 0x6a4   : > { %13753 = vst [vmem:[#allocation111_spill] sm:$0xff] %v11432_v62  ;;  %v11436_v60 = vpop.f32.mrb[131].mxu1  ;;  %13756 = vst [vmem:[#allocation114_spill] sm:$0xff] %v11438_v43  ;;  %v11444_v52 = vpop.f32.mrb[142].mxu0 }
 0x6a5   : > { %13755 = vst [vmem:[#allocation113_spill] sm:$0xff] %v11436_v60  ;;  %v3896_v32 = vmax.f32 %v11432_v62, %v11436_v60  ;;  %13757 = vst [vmem:[#allocation115_spill] sm:$0xff] %v11444_v52  ;;  %3894 = vmax.xlane.f32.xlu1 %v3893_v2  ;;  %v11446_v40 = vpop.f32.mrb[143].mxu0 }
 0x6a6   : > { %13758 = vst [vmem:[#allocation116_spill] sm:$0xff] %v11446_v40 }
 0x6a7   : > { %3897 = vmax.xlane.f32.xlu0 %v3896_v32 }
 0x6a9   : > { %v11450_v48 = vpop.f32.mrb[132].mxu1 }
 0x6aa   : > { %13759 = vst [vmem:[#allocation117_spill] sm:$0xff] %v11450_v48  ;;  %v11452_v24 = vpop.f32.mrb[133].mxu1  ;;  %v11458_v62 = vpop.f32.mrb[144].mxu0 }
 0x6ab   : > { %13760 = vst [vmem:[#allocation118_spill] sm:$0xff] %v11452_v24  ;;  %v3899_v47 = vmax.f32 %v11450_v48, %v11452_v24  ;;  %v11456_v60 = vpop.f32.mrb[134].mxu1  ;;  %13762 = vst [vmem:[#allocation120_spill] sm:$0xff] %v11458_v62  ;;  %v11462_v2 = vpop.f32.mrb[145].mxu0 }
 0x6ac   : > { %13761 = vst [vmem:[#allocation119_spill] sm:$0xff] %v11456_v60  ;;  %v11460_v7 = vpop.f32.mrb[135].mxu1  ;;  %13764 = vst [vmem:[#allocation122_spill] sm:$0xff] %v11462_v2  ;;  %v11468_v14 = vpop.f32.mrb[146].mxu0 }
 0x6ad   : > { %13763 = vst [vmem:[#allocation121_spill] sm:$0xff] %v11460_v7  ;;  %v3902_v43 = vmax.f32 %v11456_v60, %v11460_v7  ;;  %13765 = vst [vmem:[#allocation123_spill] sm:$0xff] %v11468_v14  ;;  %3900 = vmax.xlane.f32.xlu1 %v3899_v47  ;;  %v11470_v56 = vpop.f32.mrb[147].mxu0 }
 0x6ae   : > { %13766 = vst [vmem:[#allocation124_spill] sm:$0xff] %v11470_v56 }
 0x6af   : > { %3903 = vmax.xlane.f32.xlu0 %v3902_v43 }
 0x6b1   : > { %v11474_v52 = vpop.f32.mrb[136].mxu1 }
 0x6b2   : > { %13767 = vst [vmem:[#allocation125_spill] sm:$0xff] %v11474_v52  ;;  %v11476_v24 = vpop.f32.mrb[137].mxu1  ;;  %v11482_v60 = vpop.f32.mrb[148].mxu0 }
 0x6b3   : > { %13768 = vst [vmem:[#allocation126_spill] sm:$0xff] %v11476_v24  ;;  %v3905_v48 = vmax.f32 %v11474_v52, %v11476_v24  ;;  %v11480_v7 = vpop.f32.mrb[138].mxu1  ;;  %13770 = vst [vmem:[#allocation128_spill] sm:$0xff] %v11482_v60  ;;  %v11486_v47 = vpop.f32.mrb[149].mxu0 }
 0x6b4   : > { %13769 = vst [vmem:[#allocation127_spill] sm:$0xff] %v11480_v7  ;;  %v11484_v32 = vpop.f32.mrb[139].mxu1  ;;  %13772 = vst [vmem:[#allocation130_spill] sm:$0xff] %v11486_v47  ;;  %v11492_v40 = vpop.f32.mrb[150].mxu0 }
 0x6b5   : > { %13771 = vst [vmem:[#allocation129_spill] sm:$0xff] %v11484_v32  ;;  %v3908_v2 = vmax.f32 %v11480_v7, %v11484_v32  ;;  %13773 = vst [vmem:[#allocation131_spill] sm:$0xff] %v11492_v40  ;;  %3906 = vmax.xlane.f32.xlu1 %v3905_v48  ;;  %v11494_v62 = vpop.f32.mrb[151].mxu0 }
 0x6b6   : > { %13774 = vst [vmem:[#allocation132_spill] sm:$0xff] %v11494_v62 }
 0x6b7   : > { %3909 = vmax.xlane.f32.xlu0 %v3908_v2 }
 0x6b9   : > { %v11498_v14 = vpop.f32.mrb[140].mxu1 }
 0x6ba   : > { %13775 = vst [vmem:[#allocation133_spill] sm:$0xff] %v11498_v14  ;;  %v11500_v24 = vpop.f32.mrb[141].mxu1 }
 0x6bb   : > { %13776 = vst [vmem:[#allocation134_spill] sm:$0xff] %v11500_v24  ;;  %v3911_v52 = vmax.f32 %v11498_v14, %v11500_v24  ;;  %v11504_v32 = vpop.f32.mrb[142].mxu1  ;;  %v11506_v7 = vpop.f32.mrb[152].mxu0 }
 0x6bc   : > { %13777 = vst [vmem:[#allocation135_spill] sm:$0xff] %v11504_v32  ;;  %13778 = vst [vmem:[#allocation136_spill] sm:$0xff] %v11506_v7  ;;  %v11508_v43 = vpop.f32.mrb[143].mxu1  ;;  %v11510_v48 = vpop.f32.mrb[153].mxu0 }
 0x6bd   : > { %13779 = vst [vmem:[#allocation137_spill] sm:$0xff] %v11508_v43  ;;  %13780 = vst [vmem:[#allocation138_spill] sm:$0xff] %v11510_v48  ;;  %v3914_v47 = vmax.f32 %v11504_v32, %v11508_v43  ;;  %v11516_v56 = vpop.f32.mrb[154].mxu0  ;;  %3912 = vmax.xlane.f32.xlu1 %v3911_v52 }
 0x6be   : > { %13781 = vst [vmem:[#allocation139_spill] sm:$0xff] %v11516_v56  ;;  %v11518_v60 = vpop.f32.mrb[155].mxu0 }
 0x6bf   : > { %13782 = vst [vmem:[#allocation140_spill] sm:$0xff] %v11518_v60  ;;  %3915 = vmax.xlane.f32.xlu0 %v3914_v47 }
 0x6c1   : > { %v11522_v40 = vpop.f32.mrb[144].mxu1 }
 0x6c2   : > { %13783 = vst [vmem:[#allocation141_spill] sm:$0xff] %v11522_v40  ;;  %v11524_v24 = vpop.f32.mrb[145].mxu1 }
 0x6c3   : > { %13784 = vst [vmem:[#allocation142_spill] sm:$0xff] %v11524_v24  ;;  %v3917_v14 = vmax.f32 %v11522_v40, %v11524_v24  ;;  %v11528_v43 = vpop.f32.mrb[146].mxu1  ;;  %v11530_v32 = vpop.f32.mrb[156].mxu0 }
 0x6c4   : > { %13785 = vst [vmem:[#allocation143_spill] sm:$0xff] %v11528_v43  ;;  %13786 = vst [vmem:[#allocation144_spill] sm:$0xff] %v11530_v32  ;;  %v11532_v2 = vpop.f32.mrb[147].mxu1  ;;  %v11534_v52 = vpop.f32.mrb[157].mxu0 }
 0x6c5   : > { %13787 = vst [vmem:[#allocation145_spill] sm:$0xff] %v11532_v2  ;;  %13788 = vst [vmem:[#allocation146_spill] sm:$0xff] %v11534_v52  ;;  %v3920_v48 = vmax.f32 %v11528_v43, %v11532_v2  ;;  %v11540_v62 = vpop.f32.mrb[158].mxu0  ;;  %3918 = vmax.xlane.f32.xlu1 %v3917_v14 }
 0x6c6   : > { %13789 = vst [vmem:[#allocation147_spill] sm:$0xff] %v11540_v62  ;;  %v11542_v60 = vpop.f32.mrb[159].mxu0 }
 0x6c7   : > { %13790 = vst [vmem:[#allocation148_spill] sm:$0xff] %v11542_v60  ;;  %3921 = vmax.xlane.f32.xlu0 %v3920_v48 }
 0x6c9   : > { %v11546_v7 = vpop.f32.mrb[148].mxu1 }
 0x6ca   : > { %v11548_v24 = vpop.f32.mrb[149].mxu1 }
 0x6cb   : > { %v11552_v2 = vpop.f32.mrb[150].mxu1 }
 0x6cc   : > { %v11554_v43 = vpop.f32.mrb[151].mxu1 }
 0x6d1   : > { %v11558_v47 = vpop.f32.mrb[152].mxu1 }
 0x6d2   : > { %v11560_v52 = vpop.f32.mrb[153].mxu1 }
 0x6d3   : > { %v11564_v56 = vpop.f32.mrb[154].mxu1 }
 0x6d4   : > { %v11566_v60 = vpop.f32.mrb[155].mxu1 }
 0x6d6   : > { %5509 = vrot.lane.b32.xlu1 %v10849_v30, %s9125_s19 }
 0x6d9   : > { %v11572_v62 = vpop.f32.mrb[156].mxu1 }
 0x6da   : > { %v11574_v14 = vpop.f32.mrb[157].mxu1 }
 0x6db   : > { %v11578_v12 = vpop.f32.mrb[158].mxu1  ;;  %v4792_v48 = vpop.xlane.xlu1 %4791 }
 0x6dc   : > { %v11580_v25 = vpop.f32.mrb[159].mxu1  ;;  %v4886_v42 = vsub.f32 %v11198_v29, %v4792_v48  ;;  %v4887_v33 = vsub.f32 %v11200_v0, %v4792_v48 }
 0x6dd   : > { %5525 = vrot.lane.b32.xlu0 %v10934_v6, %s9125_s19  ;;  %v4795_v30 = vpop.xlane.xlu0 %4794 }
 0x6de   : > { %v4950_v57 = vmul.f32 1.442695, %v4886_v42  ;;  %v4952_v18 = vmul.f32 1.442695, %v4887_v33  ;;  %v4888_v32 = vsub.f32 %v11204_v50, %v4795_v30  ;;  %v4889_v20 = vsub.f32 %v11206_v19, %v4795_v30 }
 0x6e0   : > { %8380 = vpow2.f32 %v4950_v57  ;;  %v4954_v11 = vmul.f32 1.442695, %v4888_v32  ;;  %v4956_v61 = vmul.f32 1.442695, %v4889_v20 }
 0x6e1   : > { %8382 = vpow2.f32 %v4952_v18 }
 0x6e2   : > { %8384 = vpow2.f32 %v4954_v11 }
 0x6e3   : > { %8386 = vpow2.f32 %v4956_v61  ;;  %v4798_v29 = vpop.xlane.xlu0 %4797 }
 0x6e4   : > { %v4890_v0 = vsub.f32 %v11210_v34, %v4798_v29  ;;  %v4891_v48 = vsub.f32 %v11212_v37, %v4798_v29 }
 0x6e5   : > { %v4801_v40 = vpop.xlane.xlu1 %4800 }
 0x6e6   : > { %v4958_v6 = vmul.f32 1.442695, %v4890_v0  ;;  %v4960_v45 = vmul.f32 1.442695, %v4891_v48  ;;  %v4892_v33 = vsub.f32 %v11216_v31, %v4801_v40  ;;  %v4893_v50 = vsub.f32 %v11218_v21, %v4801_v40 }
 0x6e8   : > { %8388 = vpow2.f32 %v4958_v6  ;;  %v4962_v19 = vmul.f32 1.442695, %v4892_v33  ;;  %v4964_v57 = vmul.f32 1.442695, %v4893_v50 }
 0x6e9   : > { %8390 = vpow2.f32 %v4960_v45 }
 0x6ea   : > { %v8381_v20 = vpop.eup %8380  ;;  %8392 = vpow2.f32 %v4962_v19 }
 0x6eb   : > { %v8383_v11 = vpop.eup %8382  ;;  %8394 = vpow2.f32 %v4964_v57  ;;  %v4804_v61 = vpop.xlane.xlu0 %4803 }
 0x6ec   : > { %v8385_v42 = vpop.eup %8384  ;;  %v4894_v34 = vsub.f32 %v11222_v3, %v4804_v61  ;;  %v4895_v37 = vsub.f32 %v11224_v26, %v4804_v61  ;;  %v11596_v18 = vadd.f32 %v8383_v11, %v8381_v20 }
 0x6ed   : > { %v8387_v32 = vpop.eup %8386  ;;  %v4807_v31 = vpop.xlane.xlu1 %4806  ;;  %v5206_v30 = vpack.c.bf16 %v8385_v42, %v8381_v20 }
 0x6ee   : > { %v4966_v40 = vmul.f32 1.442695, %v4894_v34  ;;  %v4968_v21 = vmul.f32 1.442695, %v4895_v37  ;;  %v4896_v29 = vsub.f32 %v11228_v44, %v4807_v31  ;;  %v4897_v45 = vsub.f32 %v11230_v63, %v4807_v31 }
 0x6ef   : > { %v5207_v0 = vpack.c.bf16 %v8387_v32, %v8383_v11  ;;  %v11600_v48 = vadd.f32 %v8387_v32, %v8385_v42 }
 0x6f0   : > { %8396 = vpow2.f32 %v4966_v40  ;;  %v4970_v6 = vmul.f32 1.442695, %v4896_v29  ;;  %v4972_v33 = vmul.f32 1.442695, %v4897_v45 }
 0x6f1   : > { %8398 = vpow2.f32 %v4968_v21  ;;  %5334 = vmatprep.mubr.bf16.mxu1 %v5207_v0  ;;  %v13791_v0 = vmax.f32 %v11546_v7, %v11548_v24 }
 0x6f2   : > { %v8389_v3 = vpop.eup %8388  ;;  %8400 = vpow2.f32 %v4970_v6  ;;  %5335 = vmatmul.mubr.bf16.vlgmr.msra.gmra.mrb[160].mxu1 %v5206_v30 }
 0x6f3   : > { %v8391_v26 = vpop.eup %8390  ;;  %8402 = vpow2.f32 %v4972_v33  ;;  %v4810_v50 = vpop.xlane.xlu0 %4809 }
 0x6f4   : > { %v8393_v19 = vpop.eup %8392  ;;  %v4898_v57 = vsub.f32 %v11242_v5, %v4810_v50  ;;  %v4899_v44 = vsub.f32 %v11246_v1, %v4810_v50  ;;  %v11604_v63 = vadd.f32 %v8391_v26, %v8389_v3 }
 0x6f5   : > { %v8395_v20 = vpop.eup %8394  ;;  %v4813_v11 = vpop.xlane.xlu1 %4812  ;;  %v5208_v61 = vpack.c.bf16 %v8393_v19, %v8389_v3 }
 0x6f6   : > { %v4974_v42 = vmul.f32 1.442695, %v4898_v57  ;;  %v4976_v34 = vmul.f32 1.442695, %v4899_v44  ;;  %v4900_v37 = vsub.f32 %v11252_v53, %v4813_v11  ;;  %v4901_v32 = vsub.f32 %v11254_v17, %v4813_v11 }
 0x6f7   : > { %v5209_v31 = vpack.c.bf16 %v8395_v20, %v8391_v26  ;;  %v3847_v30 = vpop.xlane.xlu0 %3846  ;;  %v11608_v40 = vadd.f32 %v8395_v20, %v8393_v19  ;;  %v13792_v26 = vmax.f32 %v11552_v2, %v11554_v43 }
 0x6f8   : > { %8404 = vpow2.f32 %v4974_v42  ;;  %v4978_v21 = vmul.f32 1.442695, %v4900_v37  ;;  %v4980_v5 = vmul.f32 1.442695, %v4901_v32  ;;  %v3941_v1 = vsub.f32 %v11234_v23, %v3847_v30 }
 0x6f9   : > { %8406 = vpow2.f32 %v4976_v34  ;;  %5342 = vmatprep.mubr.bf16.mxu1 %v5209_v31  ;;  %v3942_v29 = vsub.f32 %v11236_v58, %v3847_v30  ;;  %v3850_v45 = vpop.xlane.xlu1 %3849 }
 0x6fa   : > { %3924 = vmax.xlane.f32.xlu1 %v13791_v0  ;;  %v8397_v53 = vpop.eup %8396  ;;  %8408 = vpow2.f32 %v4978_v21  ;;  %v4005_v17 = vmul.f32 1.442695, %v3941_v1  ;;  %5343 = vmatmul.mubr.bf16.gmra.mrb[164].mxu1 %v5208_v61  ;;  %v3943_v6 = vsub.f32 %v11240_v16, %v3850_v45  ;;  %v3944_v33 = vsub.f32 %v11244_v9, %v3850_v45 }
 0x6fb   : > { %v8399_v3 = vpop.eup %8398  ;;  %8410 = vpow2.f32 %v4980_v5  ;;  %v4007_v23 = vmul.f32 1.442695, %v3942_v29  ;;  %v3853_v58 = vpop.xlane.xlu0 %3852  ;;  %v13793_v9 = vmax.f32 %v11558_v47, %v11560_v52 }
 0x6fc   : > { %3927 = vmax.xlane.f32.xlu0 %v13792_v26  ;;  %v8401_v50 = vpop.eup %8400  ;;  %8412 = vpow2.f32 %v4005_v17  ;;  %v4009_v19 = vmul.f32 1.442695, %v3943_v6  ;;  %v4011_v57 = vmul.f32 1.442695, %v3944_v33  ;;  %v3945_v44 = vsub.f32 %v11258_v35, %v3853_v58 }
 0x6fd   : > { %v8403_v20 = vpop.eup %8402  ;;  %8414 = vpow2.f32 %v4007_v23  ;;  %v3946_v16 = vsub.f32 %v11260_v10, %v3853_v58  ;;  %v5210_v11 = vpack.c.bf16 %v8401_v50, %v8397_v53  ;;  %v11625_v61 = vadd.f32 %v8399_v3, %v8397_v53 }
 0x6fe   : > { %3930 = vmax.xlane.f32.xlu1 %v13793_v9  ;;  %8416 = vpow2.f32 %v4009_v19  ;;  %v4013_v42 = vmul.f32 1.442695, %v3945_v44  ;;  %v5211_v34 = vpack.c.bf16 %v8403_v20, %v8399_v3  ;;  %v11627_v37 = vadd.f32 %v8403_v20, %v8401_v50 }
 0x6ff   : > { %8418 = vpow2.f32 %v4011_v57  ;;  %v4015_v32 = vmul.f32 1.442695, %v3946_v16  ;;  %v13794_v35 = vmax.f32 %v11264_v51, %v11270_v41  ;;  %v3856_v31 = vpop.xlane.xlu0 %3855  ;;  %v13795_v17 = vmax.f32 %v11564_v56, %v11566_v60 }
 0x700   : > { %5350 = vmatprep.mubr.bf16.mxu1 %v5211_v34  ;;  %v3947_v10 = vsub.f32 %v11266_v22, %v3856_v31  ;;  %v3948_v30 = vsub.f32 %v11268_v36, %v3856_v31  ;;  %8420 = vpow2.f32 %v4013_v42  ;;  %v13796_v44 = vmax.f32 %v11572_v62, %v11574_v14 }
 0x701   : > { %4815 = vmax.xlane.f32.xlu0 %v13794_v35  ;;  %8422 = vpow2.f32 %v4015_v32  ;;  %v13797_v32 = vmax.f32 %v11578_v12, %v11580_v25 }
 0x702   : > { %v3859_v21 = vpop.xlane.xlu1 %3858  ;;  %v8405_v5 = vpop.eup %8404  ;;  %v4017_v1 = vmul.f32 1.442695, %v3947_v10  ;;  %5351 = vmatmul.mubr.bf16.gmra.mrb[168].mxu1 %v5210_v11  ;;  %v4019_v0 = vmul.f32 1.442695, %v3948_v30 }
 0x703   : > { %v3949_v29 = vsub.f32 %v11282_v4, %v3859_v21  ;;  %v8407_v45 = vpop.eup %8406  ;;  %v3950_v53 = vsub.f32 %v11284_v28, %v3859_v21 }
 0x704   : > { %v3862_v6 = vpop.xlane.xlu0 %3861  ;;  %v8409_v22 = vpop.eup %8408  ;;  %8424 = vpow2.f32 %v4017_v1  ;;  %v11639_v3 = vadd.f32 %v8407_v45, %v8405_v5 }
 0x705   : > { %3933 = vmax.xlane.f32.xlu0 %v13795_v17  ;;  %v8411_v33 = vpop.eup %8410  ;;  %v5212_v36 = vpack.c.bf16 %v8409_v22, %v8405_v5  ;;  %v4021_v26 = vmul.f32 1.442695, %v3949_v29  ;;  %v3951_v4 = vsub.f32 %v11290_v49, %v3862_v6  ;;  %8426 = vpow2.f32 %v4019_v0 }
 0x706   : > { %v11641_v23 = vpop.eup %8412  ;;  %v5213_v58 = vpack.c.bf16 %v8411_v33, %v8407_v45  ;;  %v11644_v50 = vadd.f32 %v8411_v33, %v8409_v22  ;;  %v4023_v19 = vmul.f32 1.442695, %v3950_v53  ;;  %v3952_v57 = vsub.f32 %v11292_v38, %v3862_v6 }
 0x707   : > { %v11646_v28 = vpop.eup %8414  ;;  %8428 = vpow2.f32 %v4021_v26  ;;  %v4025_v11 = vmul.f32 1.442695, %v3951_v4 }
 0x708   : > { %v11652_v20 = vpop.eup %8416  ;;  %5358 = vmatprep.mubr.bf16.mxu1 %v5213_v58  ;;  %v4133_v16 = vadd.f32 %v11646_v28, %v11641_v23  ;;  %8430 = vpow2.f32 %v4023_v19  ;;  %v4027_v38 = vmul.f32 1.442695, %v3952_v57 }
 0x709   : > { %3936 = vmax.xlane.f32.xlu0 %v13796_v44  ;;  %v11656_v49 = vpop.eup %8418  ;;  %8432 = vpow2.f32 %v4025_v11 }
 0x70a   : > { %v3865_v9 = vpop.xlane.xlu1 %3864  ;;  %5359 = vmatmul.mubr.bf16.gmra.mrb[172].mxu1 %v5212_v36  ;;  %4134 = vadd.xlane.f32.xlu1 %v4133_v16  ;;  %v11663_v31 = vpop.eup %8420  ;;  %v4136_v10 = vadd.f32 %v11656_v49, %v11652_v20  ;;  %8434 = vpow2.f32 %v4027_v38  ;;  %v13798_v38 = vld [vmem:[#allocation89_spill] sm:$0xff] }
 0x70b   : > { %v3953_v42 = vsub.f32 %v11306_v55, %v3865_v9  ;;  %v3954_v34 = vsub.f32 %v11308_v46, %v3865_v9  ;;  %v11667_v30 = vpop.eup %8422 }
 0x70c   : > { %v3868_v35 = vpop.xlane.xlu0 %3867  ;;  %v4139_v29 = vadd.f32 %v11667_v30, %v11663_v31 }
 0x70d   : > { %3939 = vmax.xlane.f32.xlu0 %v13797_v32  ;;  %v4029_v21 = vmul.f32 1.442695, %v3953_v42  ;;  %v3955_v55 = vsub.f32 %v11312_v8, %v3868_v35  ;;  %v4031_v46 = vmul.f32 1.442695, %v3954_v34  ;;  %v3956_v1 = vsub.f32 %v11316_v59, %v3868_v35  ;;  %v13799_v35 = vld [vmem:[#allocation86_spill] sm:$0xff] }
 0x70e   : > { %4137 = vadd.xlane.f32.xlu1 %v4136_v10  ;;  %v11670_v5 = vpop.eup %8424 }
 0x70f   : > { %v11675_v45 = vpop.eup %8426  ;;  %8436 = vpow2.f32 %v4029_v21  ;;  %v4033_v0 = vmul.f32 1.442695, %v3955_v55  ;;  %v4035_v53 = vmul.f32 1.442695, %v3956_v1 }
 0x710   : > { %8438 = vpow2.f32 %v4031_v46  ;;  %v4142_v59 = vadd.f32 %v11675_v45, %v11670_v5  ;;  %v13800_v46 = vld [vmem:[#allocation87_spill] sm:$0xff] }
 0x711   : > { %v11677_v8 = vpop.eup %8428  ;;  %8440 = vpow2.f32 %v4033_v0 }
 0x712   : > { %4140 = vadd.xlane.f32.xlu1 %v4139_v29  ;;  %v3871_v17 = vpop.xlane.xlu1 %3870  ;;  %v11683_v36 = vpop.eup %8430  ;;  %8442 = vpow2.f32 %v4035_v53 }
 0x713   : > { %v3957_v26 = vsub.f32 %v11330_v27, %v3871_v17  ;;  %v3958_v19 = vsub.f32 %v11332_v54, %v3871_v17  ;;  %v11687_v57 = vpop.eup %8432 }
 0x714   : > { %v3874_v6 = vpop.xlane.xlu0 %3873 }
 0x715   : > { %v3959_v22 = vsub.f32 %v11336_v15, %v3874_v6  ;;  %v3960_v33 = vsub.f32 %v11340_v39, %v3874_v6  ;;  %v4145_v15 = vadd.f32 %v11683_v36, %v11677_v8  ;;  %v11691_v39 = vpop.eup %8434  ;;  %v4037_v44 = vmul.f32 1.442695, %v3957_v26  ;;  %v13803_v26 = vld [vmem:[#allocation95_spill] sm:$0xff] }
 0x716   : > { %4143 = vadd.xlane.f32.xlu1 %v4142_v59  ;;  %v4039_v16 = vmul.f32 1.442695, %v3958_v19  ;;  %v4148_v34 = vadd.f32 %v11691_v39, %v11687_v57 }
 0x717   : > { %v4041_v4 = vmul.f32 1.442695, %v3959_v22  ;;  %v4043_v58 = vmul.f32 1.442695, %v3960_v33 }
 0x719   : > { %8444 = vpow2.f32 %v4041_v4  ;;  %v11693_v11 = vpop.eup %8436 }
 0x71a   : > { %8446 = vpow2.f32 %v4043_v58  ;;  %4146 = vadd.xlane.f32.xlu1 %v4145_v15  ;;  %v3877_v9 = vpop.xlane.xlu1 %3876  ;;  %v11699_v32 = vpop.eup %8438  ;;  %v13804_v58 = vld [vmem:[#allocation97_spill] sm:$0xff] }
 0x71b   : > { %8448 = vpow2.f32 %v4037_v44  ;;  %v3961_v10 = vsub.f32 %v13799_v35, %v3877_v9  ;;  %v3962_v1 = vsub.f32 %v13800_v46, %v3877_v9  ;;  %v11703_v29 = vpop.eup %8440  ;;  %v13811_v46 = vld [vmem:[#allocation35_spill] sm:$0xff] }
 0x71c   : > { %v3880_v27 = vpop.xlane.xlu0 %3879  ;;  %8450 = vpow2.f32 %v4039_v16  ;;  %v11707_v0 = vpop.eup %8442  ;;  %v13805_v16 = vld [vmem:[#allocation93_spill] sm:$0xff] }
 0x71d   : > { %v3963_v42 = vsub.f32 %v11360_v13, %v3880_v27  ;;  %v3964_v54 = vsub.f32 %v13798_v38, %v3880_v27  ;;  %v4151_v13 = vadd.f32 %v11699_v32, %v11693_v11  ;;  %v4045_v17 = vmul.f32 1.442695, %v3961_v10  ;;  %v13806_v38 = vld [vmem:[#allocation94_spill] sm:$0xff] }
 0x71e   : > { %4149 = vadd.xlane.f32.xlu1 %v4148_v34  ;;  %v4047_v22 = vmul.f32 1.442695, %v3962_v1  ;;  %v4154_v15 = vadd.f32 %v11707_v0, %v11703_v29 }
 0x71f   : > { %v4049_v21 = vmul.f32 1.442695, %v3963_v42  ;;  %v4051_v55 = vmul.f32 1.442695, %v3964_v54 }
 0x721   : > { %8452 = vpow2.f32 %v4049_v21 }
 0x722   : > { %8454 = vpow2.f32 %v4051_v55  ;;  %4152 = vadd.xlane.f32.xlu1 %v4151_v13  ;;  %v3883_v33 = vpop.xlane.xlu1 %3882  ;;  %v13810_v55 = vld [vmem:[#allocation34_spill] sm:$0xff] }
 0x723   : > { %v11709_v53 = vpop.eup %8444  ;;  %8456 = vpow2.f32 %v4045_v17  ;;  %v3965_v9 = vsub.f32 %v13805_v16, %v3883_v33  ;;  %v3966_v54 = vsub.f32 %v13806_v38, %v3883_v33  ;;  %v13812_v1 = vmax.f32 %v13810_v55, %v13811_v46  ;;  %v13815_v33 = vld [vmem:[#allocation39_spill] sm:$0xff] }
 0x724   : > { %13801 = vst [vmem:[#allocation89_spill] sm:$0xff] %v11709_v53  ;;  %v11711_v6 = vpop.eup %8446  ;;  %v3886_v59 = vpop.xlane.xlu0 %3885  ;;  %8458 = vpow2.f32 %v4047_v22 }
 0x725   : > { %13802 = vst [vmem:[#allocation86_spill] sm:$0xff] %v11711_v6  ;;  %v3967_v4 = vsub.f32 %v13803_v26, %v3886_v59  ;;  %v3968_v19 = vsub.f32 %v13804_v58, %v3886_v59  ;;  %v4160_v44 = vadd.f32 %v11711_v6, %v11709_v53  ;;  %v11721_v34 = vpop.eup %8448  ;;  %v4053_v21 = vmul.f32 1.442695, %v3965_v9  ;;  %v13814_v59 = vld [vmem:[#allocation38_spill] sm:$0xff]  ;;  %v13817_v58 = vld [vmem:[#allocation103_spill] sm:$0xff] }
 0x726   : > { %4155 = vadd.xlane.f32.xlu1 %v4154_v15  ;;  %13807 = vst [vmem:[#allocation87_spill] sm:$0xff] %v11721_v34  ;;  %v11723_v35 = vpop.eup %8450  ;;  %v4055_v17 = vmul.f32 1.442695, %v3966_v54  ;;  %v13816_v26 = vmax.f32 %v13814_v59, %v13815_v33  ;;  %v13818_v15 = vld [vmem:[#allocation105_spill] sm:$0xff] }
 0x727   : > { %v4057_v27 = vmul.f32 1.442695, %v3967_v4  ;;  %v4059_v42 = vmul.f32 1.442695, %v3968_v19  ;;  %4161 = vadd.xlane.f32.xlu0 %v4160_v44  ;;  %13808 = vst [vmem:[#allocation95_spill] sm:$0xff] %v11723_v35  ;;  %v4157_v16 = vadd.f32 %v11723_v35, %v11721_v34  ;;  %v13832_v34 = vld [vmem:[#allocation113_spill] sm:$0xff] }
 0x729   : > { %8460 = vpow2.f32 %v4057_v27  ;;  %v13819_v27 = vld [vmem:[#allocation101_spill] sm:$0xff] }
 0x72a   : > { %8462 = vpow2.f32 %v4059_v42  ;;  %4818 = vmax.xlane.f32.xlu1 %v13812_v1  ;;  %v3889_v22 = vpop.xlane.xlu1 %3888  ;;  %v13820_v1 = vld [vmem:[#allocation102_spill] sm:$0xff] }
 0x72b   : > { %v11725_v10 = vpop.eup %8452  ;;  %4824 = vmax.xlane.f32.xlu0 %v13816_v26  ;;  %8464 = vpow2.f32 %v4053_v21  ;;  %v3969_v42 = vsub.f32 %v13819_v27, %v3889_v22  ;;  %v3970_v26 = vsub.f32 %v13820_v1, %v3889_v22  ;;  %v13825_v21 = vld [vmem:[#allocation37_spill] sm:$0xff] }
 0x72c   : > { %13809 = vst [vmem:[#allocation97_spill] sm:$0xff] %v11725_v10  ;;  %v11730_v13 = vpop.eup %8454  ;;  %v3892_v4 = vpop.xlane.xlu0 %3891  ;;  %8466 = vpow2.f32 %v4055_v17  ;;  %v13829_v22 = vld [vmem:[#allocation81_spill] sm:$0xff] }
 0x72d   : > { %13813 = vst [vmem:[#allocation93_spill] sm:$0xff] %v11730_v13  ;;  %v3971_v19 = vsub.f32 %v13817_v58, %v3892_v4  ;;  %v3972_v44 = vsub.f32 %v13818_v15, %v3892_v4  ;;  %v4166_v9 = vadd.f32 %v11730_v13, %v11725_v10  ;;  %v11743_v53 = vpop.eup %8456  ;;  %v4061_v15 = vmul.f32 1.442695, %v3969_v42  ;;  %v13824_v10 = vld [vmem:[#allocation36_spill] sm:$0xff] }
 0x72e   : > { %4158 = vadd.xlane.f32.xlu1 %v4157_v16  ;;  %13821 = vst [vmem:[#allocation94_spill] sm:$0xff] %v11743_v53  ;;  %v11745_v4 = vpop.eup %8458  ;;  %v13826_v13 = vmax.f32 %v13824_v10, %v13825_v21  ;;  %v13828_v16 = vld [vmem:[#allocation47_spill] sm:$0xff] }
 0x72f   : > { %v4065_v38 = vmul.f32 1.442695, %v3971_v19  ;;  %v4067_v54 = vmul.f32 1.442695, %v3972_v44  ;;  %4167 = vadd.xlane.f32.xlu0 %v4166_v9  ;;  %13822 = vst [vmem:[#allocation34_spill] sm:$0xff] %v11745_v4  ;;  %v13830_v9 = vmax.f32 %v13828_v16, %v13829_v22  ;;  %v4163_v42 = vadd.f32 %v11745_v4, %v11743_v53  ;;  %v13834_v22 = vld [vmem:[#allocation110_spill] sm:$0xff] }
 0x730   : > { %v4063_v44 = vmul.f32 1.442695, %v3970_v26  ;;  %v13846_v53 = vld [vmem:[#allocation121_spill] sm:$0xff] }
 0x731   : > { %8468 = vpow2.f32 %v4065_v38  ;;  %v13831_v38 = vld [vmem:[#allocation111_spill] sm:$0xff] }
 0x732   : > { %8470 = vpow2.f32 %v4067_v54  ;;  %4821 = vmax.xlane.f32.xlu1 %v13826_v13  ;;  %v3895_v17 = vpop.xlane.xlu1 %3894  ;;  %v13833_v13 = vld [vmem:[#allocation109_spill] sm:$0xff] }
 0x733   : > { %v11747_v58 = vpop.eup %8460  ;;  %4830 = vmax.xlane.f32.xlu0 %v13830_v9  ;;  %8472 = vpow2.f32 %v4061_v15  ;;  %v3973_v6 = vsub.f32 %v13833_v13, %v3895_v17  ;;  %v3974_v9 = vsub.f32 %v13834_v22, %v3895_v17  ;;  %v13839_v15 = vld [vmem:[#allocation43_spill] sm:$0xff]  ;;  %v13843_v17 = vld [vmem:[#allocation85_spill] sm:$0xff] }
 0x734   : > { %13823 = vst [vmem:[#allocation35_spill] sm:$0xff] %v11747_v58  ;;  %v11752_v19 = vpop.eup %8462  ;;  %v3898_v27 = vpop.xlane.xlu0 %3897  ;;  %8474 = vpow2.f32 %v4063_v44  ;;  %v13845_v13 = vld [vmem:[#allocation119_spill] sm:$0xff] }
 0x735   : > { %13827 = vst [vmem:[#allocation38_spill] sm:$0xff] %v11752_v19  ;;  %v3975_v1 = vsub.f32 %v13831_v38, %v3898_v27  ;;  %v3976_v54 = vsub.f32 %v13832_v34, %v3898_v27  ;;  %v4172_v35 = vadd.f32 %v11752_v19, %v11747_v58  ;;  %v11765_v16 = vpop.eup %8464  ;;  %v4069_v38 = vmul.f32 1.442695, %v3973_v6  ;;  %v13838_v58 = vld [vmem:[#allocation41_spill] sm:$0xff] }
 0x736   : > { %4164 = vadd.xlane.f32.xlu1 %v4163_v42  ;;  %13835 = vst [vmem:[#allocation39_spill] sm:$0xff] %v11765_v16  ;;  %v11767_v34 = vpop.eup %8466  ;;  %v13840_v19 = vmax.f32 %v13838_v58, %v13839_v15  ;;  %v13842_v42 = vld [vmem:[#allocation84_spill] sm:$0xff] }
 0x737   : > { %v4073_v26 = vmul.f32 1.442695, %v3975_v1  ;;  %v4075_v21 = vmul.f32 1.442695, %v3976_v54  ;;  %4173 = vadd.xlane.f32.xlu0 %v4172_v35  ;;  %13836 = vst [vmem:[#allocation103_spill] sm:$0xff] %v11767_v34  ;;  %v13844_v35 = vmax.f32 %v13842_v42, %v13843_v17  ;;  %v4169_v6 = vadd.f32 %v11767_v34, %v11765_v16  ;;  %v13848_v17 = vld [vmem:[#allocation118_spill] sm:$0xff] }
 0x738   : > { %v4071_v54 = vmul.f32 1.442695, %v3974_v9  ;;  %v13860_v16 = vld [vmem:[#allocation129_spill] sm:$0xff] }
 0x739   : > { %8476 = vpow2.f32 %v4073_v26 }
 0x73a   : > { %8478 = vpow2.f32 %v4075_v21  ;;  %4827 = vmax.xlane.f32.xlu1 %v13840_v19  ;;  %v3901_v44 = vpop.xlane.xlu1 %3900  ;;  %v13847_v19 = vld [vmem:[#allocation117_spill] sm:$0xff] }
 0x73b   : > { %v11769_v27 = vpop.eup %8468  ;;  %4836 = vmax.xlane.f32.xlu0 %v13844_v35  ;;  %8480 = vpow2.f32 %v4069_v38  ;;  %v3977_v15 = vsub.f32 %v13847_v19, %v3901_v44  ;;  %v3978_v35 = vsub.f32 %v13848_v17, %v3901_v44  ;;  %v13853_v38 = vld [vmem:[#allocation83_spill] sm:$0xff]  ;;  %v13857_v44 = vld [vmem:[#allocation92_spill] sm:$0xff] }
 0x73c   : > { %13837 = vst [vmem:[#allocation105_spill] sm:$0xff] %v11769_v27  ;;  %v11774_v1 = vpop.eup %8470  ;;  %v3904_v22 = vpop.xlane.xlu0 %3903  ;;  %8482 = vpow2.f32 %v4071_v54  ;;  %v13859_v19 = vld [vmem:[#allocation127_spill] sm:$0xff] }
 0x73d   : > { %13841 = vst [vmem:[#allocation101_spill] sm:$0xff] %v11774_v1  ;;  %v3979_v26 = vsub.f32 %v13845_v13, %v3904_v22  ;;  %v3980_v21 = vsub.f32 %v13846_v53, %v3904_v22  ;;  %v4178_v4 = vadd.f32 %v11774_v1, %v11769_v27  ;;  %v11787_v42 = vpop.eup %8472  ;;  %v4077_v13 = vmul.f32 1.442695, %v3977_v15  ;;  %v13852_v27 = vld [vmem:[#allocation82_spill] sm:$0xff] }
 0x73e   : > { %4170 = vadd.xlane.f32.xlu1 %v4169_v6  ;;  %13849 = vst [vmem:[#allocation102_spill] sm:$0xff] %v11787_v42  ;;  %v11789_v53 = vpop.eup %8474  ;;  %v13854_v1 = vmax.f32 %v13852_v27, %v13853_v38  ;;  %v13856_v6 = vld [vmem:[#allocation91_spill] sm:$0xff] }
 0x73f   : > { %v4081_v9 = vmul.f32 1.442695, %v3979_v26  ;;  %v4083_v58 = vmul.f32 1.442695, %v3980_v21  ;;  %4179 = vadd.xlane.f32.xlu0 %v4178_v4  ;;  %13850 = vst [vmem:[#allocation36_spill] sm:$0xff] %v11789_v53  ;;  %v13858_v4 = vmax.f32 %v13856_v6, %v13857_v44  ;;  %v4175_v15 = vadd.f32 %v11789_v53, %v11787_v42  ;;  %v13862_v44 = vld [vmem:[#allocation126_spill] sm:$0xff] }
 0x740   : > { %v4079_v21 = vmul.f32 1.442695, %v3978_v35  ;;  %v13874_v42 = vld [vmem:[#allocation137_spill] sm:$0xff] }
 0x741   : > { %8484 = vpow2.f32 %v4081_v9 }
 0x742   : > { %8486 = vpow2.f32 %v4083_v58  ;;  %4833 = vmax.xlane.f32.xlu1 %v13854_v1  ;;  %v3907_v54 = vpop.xlane.xlu1 %3906  ;;  %v13861_v1 = vld [vmem:[#allocation125_spill] sm:$0xff] }
 0x743   : > { %v11791_v22 = vpop.eup %8476  ;;  %4842 = vmax.xlane.f32.xlu0 %v13858_v4  ;;  %8488 = vpow2.f32 %v4077_v13  ;;  %v3981_v38 = vsub.f32 %v13861_v1, %v3907_v54  ;;  %v3982_v4 = vsub.f32 %v13862_v44, %v3907_v54  ;;  %v13867_v13 = vld [vmem:[#allocation90_spill] sm:$0xff]  ;;  %v13871_v54 = vld [vmem:[#allocation100_spill] sm:$0xff]  ;;  %v13873_v1 = vld [vmem:[#allocation135_spill] sm:$0xff] }
 0x744   : > { %13851 = vst [vmem:[#allocation111_spill] sm:$0xff] %v11791_v22  ;;  %v11796_v26 = vpop.eup %8478  ;;  %v3910_v17 = vpop.xlane.xlu0 %3909  ;;  %8490 = vpow2.f32 %v4079_v21 }
 0x745   : > { %13855 = vst [vmem:[#allocation113_spill] sm:$0xff] %v11796_v26  ;;  %v3983_v9 = vsub.f32 %v13859_v19, %v3910_v17  ;;  %v3984_v58 = vsub.f32 %v13860_v16, %v3910_v17  ;;  %v4184_v34 = vadd.f32 %v11796_v26, %v11791_v22  ;;  %v11809_v6 = vpop.eup %8480  ;;  %v4085_v19 = vmul.f32 1.442695, %v3981_v38  ;;  %v13866_v22 = vld [vmem:[#allocation88_spill] sm:$0xff] }
 0x746   : > { %4176 = vadd.xlane.f32.xlu1 %v4175_v15  ;;  %13863 = vst [vmem:[#allocation109_spill] sm:$0xff] %v11809_v6  ;;  %v11811_v16 = vpop.eup %8482  ;;  %v13868_v26 = vmax.f32 %v13866_v22, %v13867_v13  ;;  %v13870_v15 = vld [vmem:[#allocation99_spill] sm:$0xff] }
 0x747   : > { %v4089_v35 = vmul.f32 1.442695, %v3983_v9  ;;  %v4091_v27 = vmul.f32 1.442695, %v3984_v58  ;;  %4185 = vadd.xlane.f32.xlu0 %v4184_v34  ;;  %13864 = vst [vmem:[#allocation110_spill] sm:$0xff] %v11811_v16  ;;  %v13872_v34 = vmax.f32 %v13870_v15, %v13871_v54  ;;  %v4181_v38 = vadd.f32 %v11811_v16, %v11809_v6  ;;  %v13876_v54 = vld [vmem:[#allocation134_spill] sm:$0xff] }
 0x748   : > { %v4087_v58 = vmul.f32 1.442695, %v3982_v4  ;;  %v13888_v6 = vld [vmem:[#allocation145_spill] sm:$0xff] }
 0x749   : > { %8492 = vpow2.f32 %v4089_v35 }
 0x74a   : > { %8494 = vpow2.f32 %v4091_v27  ;;  %4839 = vmax.xlane.f32.xlu1 %v13868_v26  ;;  %v3913_v21 = vpop.xlane.xlu1 %3912  ;;  %v13875_v26 = vld [vmem:[#allocation133_spill] sm:$0xff] }
 0x74b   : > { %v11813_v17 = vpop.eup %8484  ;;  %4848 = vmax.xlane.f32.xlu0 %v13872_v34  ;;  %8496 = vpow2.f32 %v4085_v19  ;;  %v3985_v13 = vsub.f32 %v13875_v26, %v3913_v21  ;;  %v3986_v34 = vsub.f32 %v13876_v54, %v3913_v21  ;;  %v13880_v19 = vld [vmem:[#allocation96_spill] sm:$0xff] }
 0x74c   : > { %13865 = vst [vmem:[#allocation119_spill] sm:$0xff] %v11813_v17  ;;  %v11818_v9 = vpop.eup %8486  ;;  %v3916_v44 = vpop.xlane.xlu0 %3915  ;;  %8498 = vpow2.f32 %v4087_v58  ;;  %v13885_v21 = vld [vmem:[#allocation108_spill] sm:$0xff] }
 0x74d   : > { %13869 = vst [vmem:[#allocation121_spill] sm:$0xff] %v11818_v9  ;;  %v3987_v35 = vsub.f32 %v13873_v1, %v3916_v44  ;;  %v3988_v27 = vsub.f32 %v13874_v42, %v3916_v44  ;;  %v4190_v53 = vadd.f32 %v11818_v9, %v11813_v17  ;;  %v11831_v15 = vpop.eup %8488  ;;  %v4093_v1 = vmul.f32 1.442695, %v3985_v13  ;;  %v13881_v9 = vld [vmem:[#allocation98_spill] sm:$0xff] }
 0x74e   : > { %4182 = vadd.xlane.f32.xlu1 %v4181_v38  ;;  %13877 = vst [vmem:[#allocation117_spill] sm:$0xff] %v11831_v15  ;;  %v11833_v42 = vpop.eup %8490  ;;  %v13882_v26 = vmax.f32 %v13880_v19, %v13881_v9  ;;  %v4095_v58 = vmul.f32 1.442695, %v3986_v34  ;;  %v13887_v38 = vld [vmem:[#allocation143_spill] sm:$0xff] }
 0x74f   : > { %v4097_v4 = vmul.f32 1.442695, %v3987_v35  ;;  %v4099_v22 = vmul.f32 1.442695, %v3988_v27  ;;  %4191 = vadd.xlane.f32.xlu0 %v4190_v53  ;;  %13878 = vst [vmem:[#allocation118_spill] sm:$0xff] %v11833_v42  ;;  %v13884_v27 = vld [vmem:[#allocation107_spill] sm:$0xff]  ;;  %v4187_v13 = vadd.f32 %v11833_v42, %v11831_v15 }
 0x750   : > { %v13886_v53 = vmax.f32 %v13884_v27, %v13885_v21  ;;  %v13890_v21 = vld [vmem:[#allocation142_spill] sm:$0xff]  ;;  %v13916_v42 = vld [vmem:[#allocation131_spill] sm:$0xff] }
 0x751   : > { %8500 = vpow2.f32 %v4097_v4 }
 0x752   : > { %8502 = vpow2.f32 %v4099_v22  ;;  %v3919_v17 = vpop.xlane.xlu1 %3918  ;;  %4845 = vmax.xlane.f32.xlu1 %v13882_v26  ;;  %v13889_v26 = vld [vmem:[#allocation141_spill] sm:$0xff] }
 0x753   : > { %v11835_v44 = vpop.eup %8492  ;;  %4854 = vmax.xlane.f32.xlu0 %v13886_v53  ;;  %8504 = vpow2.f32 %v4093_v1  ;;  %v3989_v9 = vsub.f32 %v13889_v26, %v3919_v17  ;;  %v3990_v53 = vsub.f32 %v13890_v21, %v3919_v17  ;;  %v13898_v17 = vld [vmem:[#allocation115_spill] sm:$0xff]  ;;  %v13899_v21 = vld [vmem:[#allocation116_spill] sm:$0xff] }
 0x754   : > { %13879 = vst [vmem:[#allocation127_spill] sm:$0xff] %v11835_v44  ;;  %v11840_v35 = vpop.eup %8494  ;;  %v3922_v54 = vpop.xlane.xlu0 %3921  ;;  %8506 = vpow2.f32 %v4095_v58 }
 0x755   : > { %13883 = vst [vmem:[#allocation129_spill] sm:$0xff] %v11840_v35  ;;  %v3991_v4 = vsub.f32 %v13887_v38, %v3922_v54  ;;  %v3992_v22 = vsub.f32 %v13888_v6, %v3922_v54  ;;  %v4196_v16 = vadd.f32 %v11840_v35, %v11835_v44  ;;  %v11853_v38 = vpop.eup %8496  ;;  %v4101_v26 = vmul.f32 1.442695, %v3989_v9 }
 0x756   : > { %4188 = vadd.xlane.f32.xlu1 %v4187_v13  ;;  %13891 = vst [vmem:[#allocation125_spill] sm:$0xff] %v11853_v38  ;;  %v5510_v6 = vpop.permute.xlu1 %5509  ;;  %v11855_v54 = vpop.eup %8498  ;;  %v13900_v44 = vmax.f32 %v13898_v17, %v13899_v21 }
 0x757   : > { %v4105_v19 = vmul.f32 1.442695, %v3991_v4  ;;  %v4107_v34 = vmul.f32 1.442695, %v3992_v22  ;;  %4197 = vadd.xlane.f32.xlu0 %v4196_v16  ;;  %13892 = vst [vmem:[#allocation126_spill] sm:$0xff] %v11855_v54  ;;  %v13894_v4 = vld [vmem:[#allocation104_spill] sm:$0xff] }
 0x758   : > { %v5526_v27 = vpop.permute.xlu0 %5525  ;;  %v13895_v22 = vld [vmem:[#allocation106_spill] sm:$0xff]  ;;  %v4103_v16 = vmul.f32 1.442695, %v3990_v53  ;;  %v13904_v53 = vld [vmem:[#allocation112_spill] sm:$0xff] }
 0x759   : > { %8508 = vpow2.f32 %v4105_v19  ;;  %7663 = vmatprep.subr.bf16.mxu0 %v5526_v27  ;;  %v13896_v13 = vmax.f32 %v13894_v4, %v13895_v22  ;;  %v4193_v19 = vadd.f32 %v11855_v54, %v11853_v38  ;;  %v13908_v38 = vld [vmem:[#allocation123_spill] sm:$0xff]  ;;  %v13909_v54 = vld [vmem:[#allocation124_spill] sm:$0xff] }
 0x75a   : > { %8510 = vpow2.f32 %v4107_v34  ;;  %7664 = vmatpush3.bf16.msra.mxu0 %v5510_v6  ;;  %v13910_v15 = vmax.f32 %v13908_v38, %v13909_v54 }
 0x75b   : > { %v11857_v1 = vpop.eup %8500  ;;  %4851 = vmax.xlane.f32.xlu1 %v13896_v13  ;;  %4860 = vmax.xlane.f32.xlu0 %v13900_v44  ;;  %8512 = vpow2.f32 %v4101_v26  ;;  %v13905_v13 = vld [vmem:[#allocation114_spill] sm:$0xff] }
 0x75c   : > { %13893 = vst [vmem:[#allocation135_spill] sm:$0xff] %v11857_v1  ;;  %v11862_v58 = vpop.eup %8502  ;;  %8514 = vpow2.f32 %v4103_v16  ;;  %v13906_v35 = vmax.f32 %v13904_v53, %v13905_v13  ;;  %v13917_v13 = vld [vmem:[#allocation132_spill] sm:$0xff] }
 0x75d   : > { %13897 = vst [vmem:[#allocation137_spill] sm:$0xff] %v11862_v58  ;;  %v4202_v27 = vadd.f32 %v11862_v58, %v11857_v1  ;;  %v11871_v9 = vpop.eup %8504  ;;  %v13913_v1 = vld [vmem:[#allocation120_spill] sm:$0xff]  ;;  %v13918_v54 = vmax.f32 %v13916_v42, %v13917_v13 }
 0x75e   : > { %13901 = vst [vmem:[#allocation133_spill] sm:$0xff] %v11871_v9  ;;  %v11873_v34 = vpop.eup %8506 }
 0x75f   : > { %4194 = vadd.xlane.f32.xlu1 %v4193_v19  ;;  %4203 = vadd.xlane.f32.xlu0 %v4202_v27  ;;  %13902 = vst [vmem:[#allocation134_spill] sm:$0xff] %v11873_v34  ;;  %v4199_v26 = vadd.f32 %v11873_v34, %v11871_v9  ;;  %v13919_v9 = vld [vmem:[#allocation128_spill] sm:$0xff] }
 0x763   : > { %v11875_v6 = vpop.eup %8508  ;;  %4857 = vmax.xlane.f32.xlu1 %v13906_v35  ;;  %4866 = vmax.xlane.f32.xlu0 %v13910_v15  ;;  %v13914_v35 = vld [vmem:[#allocation122_spill] sm:$0xff] }
 0x764   : > { %13903 = vst [vmem:[#allocation143_spill] sm:$0xff] %v11875_v6  ;;  %v11880_v44 = vpop.eup %8510  ;;  %v13915_v58 = vmax.f32 %v13913_v1, %v13914_v35 }
 0x765   : > { %13907 = vst [vmem:[#allocation145_spill] sm:$0xff] %v11880_v44  ;;  %v4208_v16 = vadd.f32 %v11880_v44, %v11875_v6  ;;  %v11889_v19 = vpop.eup %8512  ;;  %v13920_v6 = vld [vmem:[#allocation130_spill] sm:$0xff] }
 0x766   : > { %13911 = vst [vmem:[#allocation141_spill] sm:$0xff] %v11889_v19  ;;  %v11891_v27 = vpop.eup %8514 }
 0x767   : > { %4200 = vadd.xlane.f32.xlu1 %v4199_v26  ;;  %4209 = vadd.xlane.f32.xlu0 %v4208_v16  ;;  %13912 = vst [vmem:[#allocation142_spill] sm:$0xff] %v11891_v27  ;;  %v4205_v15 = vadd.f32 %v11891_v27, %v11889_v19  ;;  %v13921_v26 = vmax.f32 %v13919_v9, %v13920_v6 }
 0x76b   : > { %4863 = vmax.xlane.f32.xlu1 %v13915_v58  ;;  %4872 = vmax.xlane.f32.xlu0 %v13918_v54 }
 0x76f   : > { %4206 = vadd.xlane.f32.xlu1 %v4205_v15 }
 0x773   : > { %4869 = vmax.xlane.f32.xlu1 %v13921_v26 }
 0x787   : > { %v3925_v16 = vpop.xlane.xlu1 %3924 }
 0x788   : > { %v3993_v44 = vsub.f32 %v11546_v7, %v3925_v16  ;;  %v3994_v34 = vsub.f32 %v11548_v24, %v3925_v16 }
 0x789   : > { %v3928_v38 = vpop.xlane.xlu0 %3927 }
 0x78a   : > { %v4109_v35 = vmul.f32 1.442695, %v3993_v44  ;;  %v4111_v58 = vmul.f32 1.442695, %v3994_v34  ;;  %v3995_v1 = vsub.f32 %v11552_v2, %v3928_v38  ;;  %v3996_v54 = vsub.f32 %v11554_v43, %v3928_v38 }
 0x78b   : > { %v3931_v13 = vpop.xlane.xlu1 %3930 }
 0x78c   : > { %8516 = vpow2.f32 %v4109_v35  ;;  %v4113_v19 = vmul.f32 1.442695, %v3995_v1  ;;  %v4115_v15 = vmul.f32 1.442695, %v3996_v54  ;;  %v3997_v27 = vsub.f32 %v11558_v47, %v3931_v13 }
 0x78d   : > { %8518 = vpow2.f32 %v4111_v58  ;;  %v3998_v26 = vsub.f32 %v11560_v52, %v3931_v13 }
 0x78e   : > { %v4816_v6 = vpop.xlane.xlu0 %4815  ;;  %8520 = vpow2.f32 %v4113_v19  ;;  %v4117_v7 = vmul.f32 1.442695, %v3997_v27 }
 0x78f   : > { %v4902_v24 = vsub.f32 %v11264_v51, %v4816_v6  ;;  %v4903_v34 = vsub.f32 %v11270_v41, %v4816_v6  ;;  %8522 = vpow2.f32 %v4115_v15  ;;  %v4119_v2 = vmul.f32 1.442695, %v3998_v26 }
 0x790   : > { %8524 = vpow2.f32 %v4117_v7 }
 0x791   : > { %v4982_v43 = vmul.f32 1.442695, %v4902_v24  ;;  %v4984_v38 = vmul.f32 1.442695, %v4903_v34  ;;  %8526 = vpow2.f32 %v4119_v2 }
 0x792   : > { %v3934_v1 = vpop.xlane.xlu0 %3933 }
 0x793   : > { %8528 = vpow2.f32 %v4982_v43  ;;  %v3999_v47 = vsub.f32 %v11564_v56, %v3934_v1  ;;  %v4000_v44 = vsub.f32 %v11566_v60, %v3934_v1 }
 0x794   : > { %8530 = vpow2.f32 %v4984_v38 }
 0x795   : > { %v4121_v52 = vmul.f32 1.442695, %v3999_v47  ;;  %v4123_v13 = vmul.f32 1.442695, %v4000_v44  ;;  %v13925_v47 = vld [vmem:[#allocation138_spill] sm:$0xff] }
 0x796   : > { %v3937_v19 = vpop.xlane.xlu0 %3936  ;;  %v11914_v27 = vpop.eup %8516 }
 0x797   : > { %8532 = vpow2.f32 %v4121_v52  ;;  %v4001_v51 = vsub.f32 %v11572_v62, %v3937_v19  ;;  %v4002_v41 = vsub.f32 %v11574_v14, %v3937_v19  ;;  %v11918_v6 = vpop.eup %8518  ;;  %v4135_v58 = vpop.xlane.xlu1 %4134  ;;  %v13928_v19 = vld [vmem:[#allocation139_spill] sm:$0xff] }
 0x798   : > { %8534 = vpow2.f32 %v4123_v13  ;;  %v11920_v35 = vpop.eup %8520  ;;  %v4211_v60 = vadd.f32 %v11918_v6, %v11914_v27 }
 0x799   : > { %v4125_v16 = vmul.f32 1.442695, %v4001_v51  ;;  %v4127_v56 = vmul.f32 1.442695, %v4002_v41  ;;  %v11924_v54 = vpop.eup %8522  ;;  %8536 = vrcp.f32 %v4135_v58  ;;  %v13929_v51 = vld [vmem:[#allocation140_spill] sm:$0xff] }
 0x79a   : > { %v3940_v15 = vpop.xlane.xlu0 %3939  ;;  %v11926_v26 = vpop.eup %8524  ;;  %4212 = vadd.xlane.f32.xlu1 %v4211_v60  ;;  %v4214_v7 = vadd.f32 %v11924_v54, %v11920_v35  ;;  %v13930_v41 = vmax.f32 %v13928_v19, %v13929_v51 }
 0x79b   : > { %13922 = vst [vmem:[#allocation104_spill] sm:$0xff] %v11926_v26  ;;  %8538 = vpow2.f32 %v4125_v16  ;;  %v4003_v62 = vsub.f32 %v11578_v12, %v3940_v15  ;;  %v4004_v14 = vsub.f32 %v11580_v25, %v3940_v15  ;;  %v11932_v24 = vpop.eup %8526  ;;  %v4138_v38 = vpop.xlane.xlu1 %4137  ;;  %v13924_v12 = vld [vmem:[#allocation136_spill] sm:$0xff] }
 0x79c   : > { %13923 = vst [vmem:[#allocation106_spill] sm:$0xff] %v11932_v24  ;;  %8540 = vpow2.f32 %v4127_v56  ;;  %4215 = vadd.xlane.f32.xlu0 %v4214_v7  ;;  %v13926_v25 = vmax.f32 %v13924_v12, %v13925_v47  ;;  %v4217_v16 = vadd.f32 %v11932_v24, %v11926_v26  ;;  %v13937_v26 = vld [vmem:[#allocation148_spill] sm:$0xff] }
 0x79d   : > { %v11934_v34 = vpop.eup %8528  ;;  %v4129_v2 = vmul.f32 1.442695, %v4003_v62  ;;  %v4131_v43 = vmul.f32 1.442695, %v4004_v14  ;;  %8542 = vrcp.f32 %v4138_v38  ;;  %v13934_v38 = vld [vmem:[#allocation146_spill] sm:$0xff] }
 0x79e   : > { %v11936_v1 = vpop.eup %8530  ;;  %4875 = vmax.xlane.f32.xlu1 %v13926_v25 }
 0x79f   : > { %8544 = vpow2.f32 %v4129_v2  ;;  %v11943_v44 = vadd.f32 %v11936_v1, %v11934_v34  ;;  %v4141_v13 = vpop.xlane.xlu1 %4140 }
 0x7a0   : > { %8546 = vpow2.f32 %v4131_v43  ;;  %4878 = vmax.xlane.f32.xlu0 %v13930_v41  ;;  %v13933_v43 = vld [vmem:[#allocation144_spill] sm:$0xff] }
 0x7a1   : > { %v11946_v52 = vpop.eup %8532  ;;  %8548 = vrcp.f32 %v4141_v13  ;;  %v13935_v25 = vmax.f32 %v13933_v43, %v13934_v38 }
 0x7a2   : > { %13927 = vst [vmem:[#allocation115_spill] sm:$0xff] %v11946_v52  ;;  %v11953_v56 = vpop.eup %8534  ;;  %4218 = vadd.xlane.f32.xlu1 %v4217_v16 }
 0x7a3   : > { %13931 = vst [vmem:[#allocation116_spill] sm:$0xff] %v11953_v56  ;;  %v4220_v58 = vadd.f32 %v11953_v56, %v11946_v52  ;;  %v8537_v60 = vpop.eup %8536  ;;  %v4144_v62 = vpop.xlane.xlu1 %4143  ;;  %v13936_v56 = vld [vmem:[#allocation147_spill] sm:$0xff] }
 0x7a4   : > { %v4261_v14 = vmul.f32 %v8537_v60, %v11641_v23  ;;  %v4262_v7 = vmul.f32 %v8537_v60, %v11646_v28  ;;  %8550 = vrcp.f32 %v4144_v62  ;;  %v13938_v24 = vmax.f32 %v13936_v56, %v13937_v26 }
 0x7a5   : > { %v11959_v15 = vpop.eup %8538  ;;  %4221 = vadd.xlane.f32.xlu0 %v4220_v58 }
 0x7a6   : > { %13932 = vst [vmem:[#allocation112_spill] sm:$0xff] %v11959_v15  ;;  %v11963_v2 = vpop.eup %8540  ;;  %4881 = vmax.xlane.f32.xlu1 %v13935_v25  ;;  %v7257_v13 = vpack.c.bf16 %v4262_v7, %v4261_v14 }
 0x7a7   : > { %v8543_v41 = vpop.eup %8542  ;;  %v4147_v52 = vpop.xlane.xlu1 %4146  ;;  %v4223_v23 = vadd.f32 %v11963_v2, %v11959_v15 }
 0x7a8   : > { %v4263_v28 = vmul.f32 %v8543_v41, %v11652_v20  ;;  %v4264_v58 = vmul.f32 %v8543_v41, %v11656_v49  ;;  %4517 = vst [vmem:[%s11977_s15] sm:$0xff] %v7257_v13  ;;  %8552 = vrcp.f32 %v4147_v52 }
 0x7a9   : > { %v11968_v16 = vpop.eup %8544  ;;  %4884 = vmax.xlane.f32.xlu0 %v13938_v24 }
 0x7aa   : > { %v11980_v60 = vpop.eup %8546  ;;  %4224 = vadd.xlane.f32.xlu1 %v4223_v23  ;;  %v4326_v62 = vpack.c.bf16 %v4264_v58, %v4262_v7  ;;  %v7258_v25 = vpack.c.bf16 %v4264_v58, %v4263_v28  ;;  %v4325_v26 = vpack.c.bf16 %v4263_v28, %v4261_v14 }
 0x7ab   : > { %v4226_v24 = vadd.f32 %v11980_v60, %v11968_v16  ;;  %v8549_v15 = vpop.eup %8548  ;;  %v4150_v20 = vpop.xlane.xlu1 %4149 }
 0x7ac   : > { %4518 = vst [vmem:[%s11977_s15 + $0x8] sm:$0xff] %v7258_v25  ;;  %5575 = vmatprep.mubr.bf16.mxu0 %v4326_v62  ;;  %v4266_v49 = vmul.f32 %v8549_v15, %v11667_v30  ;;  %v4265_v13 = vmul.f32 %v8549_v15, %v11663_v31  ;;  %8554 = vrcp.f32 %v4150_v20 }
 0x7ad   : > { %4227 = vadd.xlane.f32.xlu0 %v4226_v24  ;;  %5576 = vmatmul.mubr.bf16.vlgmr.msra.gmra.mrb[160].mxu0 %v4325_v26 }
 0x7ae   : > { %5079 = vadd.xlane.f32.xlu1 %v11596_v18  ;;  %v7259_v52 = vpack.c.bf16 %v4266_v49, %v4265_v13  ;;  %v8551_v7 = vpop.eup %8550 }
 0x7af   : > { %v4153_v41 = vpop.xlane.xlu1 %4152  ;;  %v4268_v14 = vmul.f32 %v8551_v7, %v11675_v45  ;;  %v4267_v23 = vmul.f32 %v8551_v7, %v11670_v5 }
 0x7b0   : > { %4519 = vst [vmem:[%s11977_s15 + $0x10] sm:$0xff] %v7259_v52  ;;  %8556 = vrcp.f32 %v4153_v41 }
 0x7b1   : > { %5082 = vadd.xlane.f32.xlu0 %v11600_v48  ;;  %v4328_v30 = vpack.c.bf16 %v4268_v14, %v4266_v49  ;;  %v4327_v31 = vpack.c.bf16 %v4267_v23, %v4265_v13  ;;  %v7260_v15 = vpack.c.bf16 %v4268_v14, %v4267_v23 }
 0x7b2   : > { %5085 = vadd.xlane.f32.xlu1 %v11604_v63  ;;  %v8553_v26 = vpop.eup %8552 }
 0x7b3   : > { %v4156_v28 = vpop.xlane.xlu1 %4155  ;;  %5583 = vmatprep.mubr.bf16.mxu0 %v4328_v30  ;;  %4520 = vst [vmem:[%s11977_s15 + $0x18] sm:$0xff] %v7260_v15  ;;  %v4270_v18 = vmul.f32 %v8553_v26, %v11683_v36  ;;  %v4269_v48 = vmul.f32 %v8553_v26, %v11677_v8  ;;  %v13939_v30 = vld [vmem:[#allocation37_spill] sm:$0xff]  ;;  %v13940_v26 = vld [vmem:[#allocation86_spill] sm:$0xff] }
 0x7b4   : > { %8558 = vrcp.f32 %v4156_v28  ;;  %v4162_v5 = vpop.xlane.xlu0 %4161 }
 0x7b5   : > { %5088 = vadd.xlane.f32.xlu0 %v11608_v40  ;;  %5584 = vmatmul.mubr.bf16.gmra.mrb[164].mxu0 %v4327_v31  ;;  %8560 = vrcp.f32 %v4162_v5  ;;  %v7261_v63 = vpack.c.bf16 %v4270_v18, %v4269_v48 }
 0x7b6   : > { %5091 = vadd.xlane.f32.xlu1 %v11625_v61  ;;  %v8555_v45 = vpop.eup %8554 }
 0x7b7   : > { %v4819_v58 = vpop.xlane.xlu1 %4818  ;;  %v4272_v62 = vmul.f32 %v8555_v45, %v11691_v39  ;;  %v4271_v40 = vmul.f32 %v8555_v45, %v11687_v57  ;;  %4521 = vst [vmem:[%s11977_s15 + $0x20] sm:$0xff] %v7261_v63 }
 0x7b8   : > { %v4904_v36 = vsub.f32 %v13810_v55, %v4819_v58  ;;  %v4905_v8 = vsub.f32 %v13811_v46, %v4819_v58  ;;  %v4825_v25 = vpop.xlane.xlu0 %4824 }
 0x7b9   : > { %5094 = vadd.xlane.f32.xlu0 %v11627_v37  ;;  %v4908_v24 = vsub.f32 %v13814_v59, %v4825_v25  ;;  %v4909_v20 = vsub.f32 %v13815_v33, %v4825_v25  ;;  %v4330_v61 = vpack.c.bf16 %v4272_v62, %v4270_v18  ;;  %v4329_v49 = vpack.c.bf16 %v4271_v40, %v4269_v48  ;;  %v13942_v48 = vld [vmem:[#allocation81_spill] sm:$0xff] }
 0x7ba   : > { %5097 = vadd.xlane.f32.xlu1 %v11639_v3  ;;  %v8557_v37 = vpop.eup %8556  ;;  %v4986_v13 = vmul.f32 1.442695, %v4904_v36  ;;  %v4988_v39 = vmul.f32 1.442695, %v4905_v8  ;;  %v7262_v52 = vpack.c.bf16 %v4272_v62, %v4271_v40  ;;  %v13943_v36 = vld [vmem:[#allocation89_spill] sm:$0xff] }
 0x7bb   : > { %v4994_v57 = vmul.f32 1.442695, %v4908_v24  ;;  %v4996_v7 = vmul.f32 1.442695, %v4909_v20  ;;  %v4159_v41 = vpop.xlane.xlu1 %4158  ;;  %5591 = vmatprep.mubr.bf16.mxu0 %v4330_v61  ;;  %v4274_v55 = vmul.f32 %v8557_v37, %v11699_v32  ;;  %v4273_v46 = vmul.f32 %v8557_v37, %v11693_v11 }
 0x7bc   : > { %8562 = vpow2.f32 %v4986_v13  ;;  %v4168_v3 = vpop.xlane.xlu0 %4167  ;;  %4522 = vst [vmem:[%s11977_s15 + $0x28] sm:$0xff] %v7262_v52 }
 0x7bd   : > { %5100 = vadd.xlane.f32.xlu0 %v11644_v50  ;;  %5592 = vmatmul.mubr.bf16.gmra.mrb[168].mxu0 %v4329_v49  ;;  %8564 = vpow2.f32 %v4988_v39  ;;  %v7263_v59 = vpack.c.bf16 %v4274_v55, %v4273_v46 }
 0x7be   : > { %5103 = vadd.xlane.f32.xlu1 %v11943_v44  ;;  %v8559_v33 = vpop.eup %8558  ;;  %8566 = vpow2.f32 %v4994_v57  ;;  %v13941_v44 = vld [vmem:[#allocation47_spill] sm:$0xff] }
 0x7bf   : > { %v8561_v14 = vpop.eup %8560  ;;  %8568 = vpow2.f32 %v4996_v7  ;;  %v4822_v23 = vpop.xlane.xlu1 %4821  ;;  %v4276_v50 = vmul.f32 %v8559_v33, %v11707_v0  ;;  %v4275_v32 = vmul.f32 %v8559_v33, %v11703_v29  ;;  %4523 = vst [vmem:[%s11977_s15 + $0x30] sm:$0xff] %v7263_v59 }
 0x7c0   : > { %8570 = vrcp.f32 %v4159_v41  ;;  %v4906_v11 = vsub.f32 %v13824_v10, %v4822_v23  ;;  %v4907_v31 = vsub.f32 %v13939_v30, %v4822_v23  ;;  %v4831_v15 = vpop.xlane.xlu0 %4830  ;;  %v12018_v28 = vmul.f32 %v8561_v14, %v13940_v26 }
 0x7c1   : > { %8572 = vrcp.f32 %v4168_v3  ;;  %v4912_v18 = vsub.f32 %v13941_v44, %v4831_v15  ;;  %v4913_v5 = vsub.f32 %v13942_v48, %v4831_v15  ;;  %v4332_v63 = vpack.c.bf16 %v4276_v50, %v4274_v55  ;;  %v13944_v55 = vld [vmem:[#allocation41_spill] sm:$0xff]  ;;  %v13945_v3 = vld [vmem:[#allocation43_spill] sm:$0xff] }
 0x7c2   : > { %v4990_v0 = vmul.f32 1.442695, %v4906_v11  ;;  %v4992_v45 = vmul.f32 1.442695, %v4907_v31  ;;  %v4331_v29 = vpack.c.bf16 %v4275_v32, %v4273_v46  ;;  %v7264_v58 = vpack.c.bf16 %v4276_v50, %v4275_v32  ;;  %v13946_v32 = vld [vmem:[#allocation84_spill] sm:$0xff] }
 0x7c3   : > { %v5002_v62 = vmul.f32 1.442695, %v4912_v18  ;;  %v5004_v40 = vmul.f32 1.442695, %v4913_v5  ;;  %v4165_v10 = vpop.xlane.xlu1 %4164  ;;  %5599 = vmatprep.mubr.bf16.mxu0 %v4332_v63  ;;  %v12023_v8 = vmul.f32 %v8561_v14, %v13943_v36  ;;  %v13951_v36 = vld [vmem:[#allocation97_spill] sm:$0xff] }
 0x7c4   : > { %8574 = vpow2.f32 %v4990_v0  ;;  %v4174_v25 = vpop.xlane.xlu0 %4173  ;;  %4524 = vst [vmem:[%s11977_s15 + $0x38] sm:$0xff] %v7264_v58  ;;  %v13948_v0 = vld [vmem:[#allocation95_spill] sm:$0xff] }
 0x7c5   : > { %5600 = vmatmul.mubr.bf16.gmra.mrb[172].mxu0 %v4331_v29  ;;  %8576 = vpow2.f32 %v4992_v45  ;;  %v7553_v24 = vpop.f32.mrb[160].mxu1  ;;  %v7266_v20 = vpack.c.bf16 %v12018_v28, %v12023_v8  ;;  %v13949_v29 = vld [vmem:[#allocation87_spill] sm:$0xff] }
 0x7c6   : > { %v8563_v61 = vpop.eup %8562  ;;  %8578 = vpow2.f32 %v5002_v62  ;;  %v7554_v49 = vpop.f32.mrb[161].mxu1 }
 0x7c7   : > { %v8565_v37 = vpop.eup %8564  ;;  %8580 = vpow2.f32 %v5004_v40  ;;  %v12028_v13 = vadd.f32 %v7554_v49, %v7553_v24  ;;  %v7556_v39 = vpop.f32.mrb[162].mxu1  ;;  %v5214_v57 = vpack.c.bf16 %v8563_v61, %v11934_v34  ;;  %4526 = vst [vmem:[%s11977_s15 + $0x48] sm:$0xff] %v7266_v20  ;;  %v13947_v34 = vld [vmem:[#allocation85_spill] sm:$0xff] }
 0x7c8   : > { %v4828_v52 = vpop.xlane.xlu1 %4827  ;;  %v12032_v7 = vpop.eup %8566  ;;  %8582 = vrcp.f32 %v4165_v10  ;;  %v5215_v14 = vpack.c.bf16 %v8565_v37, %v11936_v1  ;;  %v5105_v44 = vadd.f32 %v8565_v37, %v8563_v61  ;;  %v13950_v40 = vld [vmem:[#allocation93_spill] sm:$0xff] }
 0x7c9   : > { %v7557_v41 = vpop.f32.mrb[163].mxu1  ;;  %v4910_v46 = vsub.f32 %v13944_v55, %v4828_v52  ;;  %v4911_v59 = vsub.f32 %v13945_v3, %v4828_v52  ;;  %v4837_v33 = vpop.xlane.xlu0 %4836  ;;  %8584 = vrcp.f32 %v4174_v25 }
 0x7ca   : > { %v12037_v23 = vpop.eup %8568  ;;  %v12039_v50 = vadd.f32 %v7557_v41, %v7556_v39  ;;  %v4916_v11 = vsub.f32 %v13946_v32, %v4837_v33  ;;  %v4917_v30 = vsub.f32 %v13947_v34, %v4837_v33  ;;  %5366 = vmatprep.mubr.bf16.mxu1 %v5215_v14  ;;  %5106 = vadd.xlane.f32.xlu0 %v5105_v44  ;;  %v13953_v14 = vld [vmem:[#allocation83_spill] sm:$0xff] }
 0x7cb   : > { %v8571_v31 = vpop.eup %8570  ;;  %v4998_v15 = vmul.f32 1.442695, %v4910_v46  ;;  %v5000_v26 = vmul.f32 1.442695, %v4911_v59  ;;  %v5111_v18 = vadd.f32 %v12037_v23, %v12032_v7  ;;  %5367 = vmatmul.mubr.bf16.gmra.mrb[176].mxu1 %v5214_v57  ;;  %v13952_v59 = vld [vmem:[#allocation82_spill] sm:$0xff] }
 0x7cc   : > { %v8573_v48 = vpop.eup %8572  ;;  %v5010_v5 = vmul.f32 1.442695, %v4916_v11  ;;  %v5012_v1 = vmul.f32 1.442695, %v4917_v30  ;;  %v4171_v63 = vpop.xlane.xlu1 %4170  ;;  %v4278_v45 = vmul.f32 %v8571_v31, %v13948_v0  ;;  %v4277_v58 = vmul.f32 %v8571_v31, %v13949_v29 }
 0x7cd   : > { %8586 = vpow2.f32 %v4998_v15  ;;  %v4180_v62 = vpop.xlane.xlu0 %4179  ;;  %v12048_v10 = vmul.f32 %v8573_v48, %v13950_v40  ;;  %v12051_v25 = vmul.f32 %v8573_v48, %v13951_v36  ;;  %v7559_v20 = vpop.f32.mrb[164].mxu1  ;;  %v13954_v15 = vld [vmem:[#allocation91_spill] sm:$0xff]  ;;  %v13957_v36 = vld [vmem:[#allocation94_spill] sm:$0xff] }
 0x7ce   : > { %8588 = vpow2.f32 %v5000_v26  ;;  %v4334_v24 = vpack.c.bf16 %v12018_v28, %v4278_v45  ;;  %v4333_v61 = vpack.c.bf16 %v12023_v8, %v4277_v58  ;;  %v7265_v49 = vpack.c.bf16 %v4278_v45, %v4277_v58  ;;  %v8575_v37 = vpop.eup %8574  ;;  %v7560_v39 = vpop.f32.mrb[165].mxu1  ;;  %5112 = vadd.xlane.f32.xlu0 %v5111_v18  ;;  %v13955_v26 = vld [vmem:[#allocation92_spill] sm:$0xff] }
 0x7cf   : > { %8590 = vpow2.f32 %v5010_v5  ;;  %v7268_v52 = vpack.c.bf16 %v12048_v10, %v12051_v25  ;;  %v8577_v57 = vpop.eup %8576  ;;  %v12058_v41 = vadd.f32 %v7560_v39, %v7559_v20  ;;  %v7562_v55 = vpop.f32.mrb[166].mxu1  ;;  %v5216_v28 = vpack.c.bf16 %v12032_v7, %v8575_v37 }
 0x7d0   : > { %8592 = vpow2.f32 %v5012_v1  ;;  %5607 = vmatprep.mubr.bf16.mxu0 %v4334_v24  ;;  %4525 = vst [vmem:[%s11977_s15 + $0x40] sm:$0xff] %v7265_v49  ;;  %v4834_v46 = vpop.xlane.xlu1 %4833  ;;  %v12061_v3 = vpop.eup %8578  ;;  %v5108_v34 = vadd.f32 %v8577_v57, %v8575_v37  ;;  %v5217_v1 = vpack.c.bf16 %v12037_v23, %v8577_v57  ;;  %v13959_v23 = vld [vmem:[#allocation35_spill] sm:$0xff] }
 0x7d1   : > { %8594 = vrcp.f32 %v4171_v63  ;;  %5608 = vmatmul.mubr.bf16.gmra.mrb[176].mxu0 %v4333_v61  ;;  %v7563_v8 = vpop.f32.mrb[167].mxu1  ;;  %v4914_v33 = vsub.f32 %v13952_v59, %v4834_v46  ;;  %v4915_v32 = vsub.f32 %v13953_v14, %v4834_v46  ;;  %v4843_v11 = vpop.xlane.xlu0 %4842  ;;  %4528 = vst [vmem:[%s11977_s15 + $0x58] sm:$0xff] %v7268_v52  ;;  %v13958_v61 = vld [vmem:[#allocation38_spill] sm:$0xff] }
 0x7d2   : > { %v12066_v30 = vpop.eup %8580  ;;  %8596 = vrcp.f32 %v4180_v62  ;;  %v12068_v31 = vadd.f32 %v7563_v8, %v7562_v55  ;;  %v4920_v7 = vsub.f32 %v13954_v15, %v4843_v11  ;;  %v4921_v44 = vsub.f32 %v13955_v26, %v4843_v11  ;;  %5109 = vadd.xlane.f32.xlu1 %v5108_v34  ;;  %v13956_v62 = vld [vmem:[#allocation34_spill] sm:$0xff]  ;;  %5374 = vmatprep.mubr.bf16.mxu1 %v5217_v1  ;;  %v13960_v34 = vld [vmem:[#allocation88_spill] sm:$0xff]  ;;  %v13962_v1 = vld [vmem:[#allocation99_spill] sm:$0xff] }
 0x7d3   : > { %v8583_v48 = vpop.eup %8582  ;;  %v5006_v5 = vmul.f32 1.442695, %v4914_v33  ;;  %v5008_v18 = vmul.f32 1.442695, %v4915_v32  ;;  %v5117_v63 = vadd.f32 %v12066_v30, %v12061_v3  ;;  %5375 = vmatmul.mubr.bf16.gmra.mrb[180].mxu1 %v5216_v28 }
 0x7d4   : > { %v8585_v0 = vpop.eup %8584  ;;  %v5018_v45 = vmul.f32 1.442695, %v4920_v7  ;;  %v5020_v29 = vmul.f32 1.442695, %v4921_v44  ;;  %v4177_v58 = vpop.xlane.xlu1 %4176  ;;  %v4282_v40 = vmul.f32 %v8583_v48, %v13956_v62  ;;  %v4281_v24 = vmul.f32 %v8583_v48, %v13957_v36  ;;  %v13961_v7 = vld [vmem:[#allocation90_spill] sm:$0xff] }
 0x7d5   : > { %8598 = vpow2.f32 %v5006_v5  ;;  %5118 = vadd.xlane.f32.xlu0 %v5117_v63  ;;  %v4186_v20 = vpop.xlane.xlu0 %4185  ;;  %v12078_v49 = vmul.f32 %v8585_v0, %v13958_v61  ;;  %v12081_v37 = vmul.f32 %v8585_v0, %v13959_v23  ;;  %v7565_v52 = vpop.f32.mrb[168].mxu1 }
 0x7d6   : > { %8600 = vpow2.f32 %v5008_v18  ;;  %v4336_v39 = vpack.c.bf16 %v12048_v10, %v4282_v40  ;;  %v4335_v57 = vpack.c.bf16 %v12051_v25, %v4281_v24  ;;  %v7267_v55 = vpack.c.bf16 %v4282_v40, %v4281_v24  ;;  %v7566_v8 = vpop.f32.mrb[169].mxu1 }
 0x7d7   : > { %v8587_v46 = vpop.eup %8586  ;;  %8602 = vpow2.f32 %v5018_v45  ;;  %v7270_v59 = vpack.c.bf16 %v12078_v49, %v12081_v37  ;;  %v12088_v14 = vadd.f32 %v7566_v8, %v7565_v52  ;;  %v7568_v28 = vpop.f32.mrb[170].mxu1  ;;  %v13965_v52 = vld [vmem:[#allocation39_spill] sm:$0xff] }
 0x7d8   : > { %v8589_v33 = vpop.eup %8588  ;;  %8604 = vpow2.f32 %v5020_v29  ;;  %5615 = vmatprep.mubr.bf16.mxu0 %v4336_v39  ;;  %4527 = vst [vmem:[%s11977_s15 + $0x50] sm:$0xff] %v7267_v55  ;;  %v4840_v32 = vpop.xlane.xlu1 %4839  ;;  %v5218_v10 = vpack.c.bf16 %v12061_v3, %v8587_v46  ;;  %v13963_v3 = vld [vmem:[#allocation100_spill] sm:$0xff] }
 0x7d9   : > { %v12091_v11 = vpop.eup %8590  ;;  %8606 = vrcp.f32 %v4177_v58  ;;  %5616 = vmatmul.mubr.bf16.gmra.mrb[180].mxu0 %v4335_v57  ;;  %v7569_v25 = vpop.f32.mrb[171].mxu1  ;;  %v4918_v15 = vsub.f32 %v13960_v34, %v4840_v32  ;;  %v4919_v26 = vsub.f32 %v13961_v7, %v4840_v32  ;;  %v5114_v48 = vadd.f32 %v8589_v33, %v8587_v46  ;;  %4530 = vst [vmem:[%s11977_s15 + $0x68] sm:$0xff] %v7270_v59  ;;  %v13966_v46 = vld [vmem:[#allocation101_spill] sm:$0xff] }
 0x7da   : > { %v4849_v44 = vpop.xlane.xlu0 %4848  ;;  %v12096_v5 = vpop.eup %8592  ;;  %8608 = vrcp.f32 %v4186_v20  ;;  %v12098_v18 = vadd.f32 %v7569_v25, %v7568_v28  ;;  %v5219_v62 = vpack.c.bf16 %v12066_v30, %v8589_v33  ;;  %v13964_v20 = vld [vmem:[#allocation103_spill] sm:$0xff]  ;;  %v13967_v59 = vld [vmem:[#allocation105_spill] sm:$0xff] }
 0x7db   : > { %v4924_v63 = vsub.f32 %v13962_v1, %v4849_v44  ;;  %v4925_v0 = vsub.f32 %v13963_v3, %v4849_v44  ;;  %v8595_v45 = vpop.eup %8594  ;;  %v5014_v29 = vmul.f32 1.442695, %v4918_v15  ;;  %v5016_v58 = vmul.f32 1.442695, %v4919_v26  ;;  %5115 = vadd.xlane.f32.xlu1 %v5114_v48 }
 0x7dc   : > { %v5123_v40 = vadd.f32 %v12096_v5, %v12091_v11  ;;  %v8597_v36 = vpop.eup %8596  ;;  %v4183_v23 = vpop.xlane.xlu1 %4182  ;;  %v4286_v39 = vmul.f32 %v8595_v45, %v13964_v20  ;;  %v4285_v57 = vmul.f32 %v8595_v45, %v13965_v52  ;;  %5382 = vmatprep.mubr.bf16.mxu1 %v5219_v62 }
 0x7dd   : > { %v5026_v24 = vmul.f32 1.442695, %v4924_v63  ;;  %v5028_v61 = vmul.f32 1.442695, %v4925_v0  ;;  %8610 = vpow2.f32 %v5014_v29  ;;  %v4292_v8 = vmul.f32 %v8597_v36, %v13966_v46  ;;  %5383 = vmatmul.mubr.bf16.gmra.mrb[184].mxu1 %v5218_v10  ;;  %v7571_v28 = vpop.f32.mrb[172].mxu1  ;;  %v13968_v63 = vld [vmem:[#allocation96_spill] sm:$0xff] }
 0x7de   : > { %5124 = vadd.xlane.f32.xlu0 %v5123_v40  ;;  %v4192_v55 = vpop.xlane.xlu0 %4191  ;;  %v12109_v30 = vmul.f32 %v8597_v36, %v13967_v59  ;;  %8612 = vpow2.f32 %v5016_v58  ;;  %v4338_v33 = vpack.c.bf16 %v12078_v49, %v4286_v39  ;;  %v4337_v32 = vpack.c.bf16 %v12081_v37, %v4285_v57  ;;  %v7572_v15 = vpop.f32.mrb[173].mxu1  ;;  %v13969_v0 = vld [vmem:[#allocation98_spill] sm:$0xff]  ;;  %v13970_v36 = vld [vmem:[#allocation107_spill] sm:$0xff] }
 0x7df   : > { %v7269_v25 = vpack.c.bf16 %v4286_v39, %v4285_v57  ;;  %v8599_v34 = vpop.eup %8598  ;;  %8614 = vpow2.f32 %v5026_v24  ;;  %v12115_v44 = vadd.f32 %v7572_v15, %v7571_v28  ;;  %v7574_v48 = vpop.f32.mrb[174].mxu1 }
 0x7e0   : > { %v7272_v7 = vpack.c.bf16 %v4292_v8, %v12109_v30  ;;  %v8601_v26 = vpop.eup %8600  ;;  %8616 = vpow2.f32 %v5028_v61  ;;  %5623 = vmatprep.mubr.bf16.mxu0 %v4338_v33  ;;  %v4846_v10 = vpop.xlane.xlu1 %4845  ;;  %v5220_v49 = vpack.c.bf16 %v12091_v11, %v8599_v34  ;;  %v13971_v61 = vld [vmem:[#allocation108_spill] sm:$0xff] }
 0x7e1   : > { %4529 = vst [vmem:[%s11977_s15 + $0x60] sm:$0xff] %v7269_v25  ;;  %v12118_v1 = vpop.eup %8602  ;;  %8618 = vrcp.f32 %v4183_v23  ;;  %5624 = vmatmul.mubr.bf16.gmra.mrb[184].mxu0 %v4337_v32  ;;  %v7575_v37 = vpop.f32.mrb[175].mxu1  ;;  %v4922_v3 = vsub.f32 %v13968_v63, %v4846_v10  ;;  %v4923_v45 = vsub.f32 %v13969_v0, %v4846_v10  ;;  %v5120_v58 = vadd.f32 %v8601_v26, %v8599_v34  ;;  %v13972_v32 = vld [vmem:[#allocation36_spill] sm:$0xff]  ;;  %v13973_v25 = vld [vmem:[#allocation102_spill] sm:$0xff]  ;;  %v13975_v10 = vld [vmem:[#allocation111_spill] sm:$0xff] }
 0x7e2   : > { %v4855_v29 = vpop.xlane.xlu0 %4854  ;;  %4532 = vst [vmem:[%s11977_s15 + $0x78] sm:$0xff] %v7272_v7  ;;  %v8605_v62 = vpop.eup %8604  ;;  %8620 = vrcp.f32 %v4192_v55  ;;  %v12123_v40 = vadd.f32 %v7575_v37, %v7574_v48  ;;  %v5221_v52 = vpack.c.bf16 %v12096_v5, %v8601_v26  ;;  %v13974_v7 = vld [vmem:[#allocation113_spill] sm:$0xff] }
 0x7e3   : > { %v4928_v24 = vsub.f32 %v13970_v36, %v4855_v29  ;;  %v4929_v11 = vsub.f32 %v13971_v61, %v4855_v29  ;;  %v8607_v20 = vpop.eup %8606  ;;  %v5022_v39 = vmul.f32 1.442695, %v4922_v3  ;;  %v5024_v23 = vmul.f32 1.442695, %v4923_v45  ;;  %5121 = vadd.xlane.f32.xlu1 %v5120_v58 }
 0x7e4   : > { %v5129_v57 = vadd.f32 %v8605_v62, %v12118_v1  ;;  %v8609_v46 = vpop.eup %8608  ;;  %v4189_v28 = vpop.xlane.xlu1 %4188  ;;  %v4290_v55 = vmul.f32 %v8607_v20, %v13972_v32  ;;  %v4289_v34 = vmul.f32 %v8607_v20, %v13973_v25  ;;  %5390 = vmatprep.mubr.bf16.mxu1 %v5221_v52  ;;  %v13977_v32 = vld [vmem:[#allocation109_spill] sm:$0xff]  ;;  %v13979_v25 = vld [vmem:[#allocation119_spill] sm:$0xff] }
 0x7e5   : > { %v5034_v59 = vmul.f32 1.442695, %v4928_v24  ;;  %v5036_v33 = vmul.f32 1.442695, %v4929_v11  ;;  %8622 = vpow2.f32 %v5022_v39  ;;  %v4296_v48 = vmul.f32 %v8609_v46, %v13974_v7  ;;  %5391 = vmatmul.mubr.bf16.gmra.mrb[188].mxu1 %v5220_v49 }
 0x7e6   : > { %5130 = vadd.xlane.f32.xlu0 %v5129_v57  ;;  %v4198_v15 = vpop.xlane.xlu0 %4197  ;;  %v4295_v37 = vmul.f32 %v8609_v46, %v13975_v10  ;;  %8624 = vpow2.f32 %v5024_v23  ;;  %v4340_v5 = vpack.c.bf16 %v4292_v8, %v4290_v55  ;;  %v4339_v26 = vpack.c.bf16 %v12109_v30, %v4289_v34 }
 0x7e7   : > { %v7271_v63 = vpack.c.bf16 %v4290_v55, %v4289_v34  ;;  %v8611_v3 = vpop.eup %8610  ;;  %8626 = vpow2.f32 %v5034_v59 }
 0x7e8   : > { %v7274_v0 = vpack.c.bf16 %v4296_v48, %v4295_v37  ;;  %v8613_v45 = vpop.eup %8612  ;;  %8628 = vpow2.f32 %v5036_v33  ;;  %5631 = vmatprep.mubr.bf16.mxu0 %v4340_v5  ;;  %v4852_v29 = vpop.xlane.xlu1 %4851  ;;  %v5222_v58 = vpack.c.bf16 %v12118_v1, %v8611_v3  ;;  %v13976_v33 = vld [vmem:[#allocation110_spill] sm:$0xff] }
 0x7e9   : > { %4531 = vst [vmem:[%s11977_s15 + $0x70] sm:$0xff] %v7271_v63  ;;  %v12136_v36 = vpop.eup %8614  ;;  %8630 = vrcp.f32 %v4189_v28  ;;  %5632 = vmatmul.mubr.bf16.gmra.mrb[188].mxu0 %v4339_v26  ;;  %v4926_v8 = vsub.f32 %v13894_v4, %v4852_v29  ;;  %v4927_v30 = vsub.f32 %v13895_v22, %v4852_v29  ;;  %v5126_v24 = vadd.f32 %v8613_v45, %v8611_v3 }
 0x7ea   : > { %v4861_v49 = vpop.xlane.xlu0 %4860  ;;  %4534 = vst [vmem:[%s11977_s15 + $0x88] sm:$0xff] %v7274_v0  ;;  %v8617_v61 = vpop.eup %8616  ;;  %8632 = vrcp.f32 %v4198_v15  ;;  %v5223_v39 = vpack.c.bf16 %v8605_v62, %v8613_v45 }
 0x7eb   : > { %v4932_v11 = vsub.f32 %v13898_v17, %v4861_v49  ;;  %v4933_v20 = vsub.f32 %v13899_v21, %v4861_v49  ;;  %v8619_v23 = vpop.eup %8618  ;;  %v5030_v1 = vmul.f32 1.442695, %v4926_v8  ;;  %v5032_v52 = vmul.f32 1.442695, %v4927_v30  ;;  %5127 = vadd.xlane.f32.xlu1 %v5126_v24  ;;  %v13978_v21 = vld [vmem:[#allocation121_spill] sm:$0xff]  ;;  %v13981_v49 = vld [vmem:[#allocation123_spill] sm:$0xff] }
 0x7ec   : > { %v5135_v57 = vadd.f32 %v8617_v61, %v12136_v36  ;;  %v8621_v46 = vpop.eup %8620  ;;  %5398 = vmatprep.mubr.bf16.mxu1 %v5223_v39  ;;  %v4195_v22 = vpop.xlane.xlu1 %4194  ;;  %v4294_v28 = vmul.f32 %v8619_v23, %v13976_v33  ;;  %v4293_v55 = vmul.f32 %v8619_v23, %v13977_v32  ;;  %v13984_v33 = vld [vmem:[#allocation117_spill] sm:$0xff] }
 0x7ed   : > { %v5042_v4 = vmul.f32 1.442695, %v4932_v11  ;;  %v5044_v59 = vmul.f32 1.442695, %v4933_v20  ;;  %8634 = vpow2.f32 %v5030_v1  ;;  %v4300_v62 = vmul.f32 %v8621_v46, %v13978_v21  ;;  %5399 = vmatmul.mubr.bf16.gmra.mrb[192].mxu1 %v5222_v58  ;;  %v13982_v11 = vld [vmem:[#allocation124_spill] sm:$0xff] }
 0x7ee   : > { %5136 = vadd.xlane.f32.xlu0 %v5135_v57  ;;  %v4204_v17 = vpop.xlane.xlu0 %4203  ;;  %v4299_v34 = vmul.f32 %v8621_v46, %v13979_v25  ;;  %8636 = vpow2.f32 %v5032_v52  ;;  %v4342_v15 = vpack.c.bf16 %v4296_v48, %v4294_v28  ;;  %v4341_v7 = vpack.c.bf16 %v4295_v37, %v4293_v55  ;;  %v13980_v48 = vld [vmem:[#allocation114_spill] sm:$0xff] }
 0x7ef   : > { %v7273_v10 = vpack.c.bf16 %v4294_v28, %v4293_v55  ;;  %v8623_v5 = vpop.eup %8622  ;;  %8638 = vpow2.f32 %v5042_v4 }
 0x7f0   : > { %v7276_v26 = vpack.c.bf16 %v4300_v62, %v4299_v34  ;;  %v8625_v63 = vpop.eup %8624  ;;  %8640 = vpow2.f32 %v5044_v59  ;;  %5639 = vmatprep.mubr.bf16.mxu0 %v4342_v15  ;;  %v4858_v3 = vpop.xlane.xlu1 %4857  ;;  %v5224_v0 = vpack.c.bf16 %v12136_v36, %v8623_v5  ;;  %v13983_v59 = vld [vmem:[#allocation118_spill] sm:$0xff] }
 0x7f1   : > { %4533 = vst [vmem:[%s11977_s15 + $0x80] sm:$0xff] %v7273_v10  ;;  %v12150_v45 = vpop.eup %8626  ;;  %8642 = vrcp.f32 %v4195_v22  ;;  %5640 = vmatmul.mubr.bf16.gmra.mrb[192].mxu0 %v4341_v7  ;;  %v4930_v29 = vsub.f32 %v13904_v53, %v4858_v3  ;;  %v4931_v37 = vsub.f32 %v13980_v48, %v4858_v3  ;;  %v5132_v8 = vadd.f32 %v8625_v63, %v8623_v5  ;;  %v13987_v48 = vld [vmem:[#allocation120_spill] sm:$0xff] }
 0x7f2   : > { %v4867_v58 = vpop.xlane.xlu0 %4866  ;;  %4536 = vst [vmem:[%s11977_s15 + $0x98] sm:$0xff] %v7276_v26  ;;  %v8629_v30 = vpop.eup %8628  ;;  %8644 = vrcp.f32 %v4204_v17  ;;  %v5225_v39 = vpack.c.bf16 %v8617_v61, %v8625_v63  ;;  %v13985_v61 = vld [vmem:[#allocation129_spill] sm:$0xff]  ;;  %v13986_v17 = vld [vmem:[#allocation127_spill] sm:$0xff] }
 0x7f3   : > { %v4936_v24 = vsub.f32 %v13981_v49, %v4867_v58  ;;  %v4937_v20 = vsub.f32 %v13982_v11, %v4867_v58  ;;  %v8631_v23 = vpop.eup %8630  ;;  %v5038_v36 = vmul.f32 1.442695, %v4930_v29  ;;  %v5040_v1 = vmul.f32 1.442695, %v4931_v37  ;;  %5133 = vadd.xlane.f32.xlu1 %v5132_v8 }
 0x7f4   : > { %v5141_v52 = vadd.f32 %v8629_v30, %v12150_v45  ;;  %v8633_v57 = vpop.eup %8632  ;;  %5406 = vmatprep.mubr.bf16.mxu1 %v5225_v39  ;;  %v4201_v4 = vpop.xlane.xlu1 %4200  ;;  %v4298_v22 = vmul.f32 %v8631_v23, %v13983_v59  ;;  %v4297_v28 = vmul.f32 %v8631_v23, %v13984_v33  ;;  %v13991_v59 = vld [vmem:[#allocation125_spill] sm:$0xff]  ;;  %v13993_v33 = vld [vmem:[#allocation135_spill] sm:$0xff] }
 0x7f5   : > { %v5050_v53 = vmul.f32 1.442695, %v4936_v24  ;;  %v5052_v46 = vmul.f32 1.442695, %v4937_v20  ;;  %8646 = vpow2.f32 %v5038_v36  ;;  %v4304_v55 = vmul.f32 %v8633_v57, %v13985_v61  ;;  %5407 = vmatmul.mubr.bf16.gmra.mrb[196].mxu1 %v5224_v0  ;;  %v13989_v24 = vld [vmem:[#allocation132_spill] sm:$0xff] }
 0x7f6   : > { %5142 = vadd.xlane.f32.xlu0 %v5141_v52  ;;  %v4210_v32 = vpop.xlane.xlu0 %4209  ;;  %v4303_v21 = vmul.f32 %v8633_v57, %v13986_v17  ;;  %8648 = vpow2.f32 %v5040_v1  ;;  %v4344_v25 = vpack.c.bf16 %v4300_v62, %v4298_v22  ;;  %v4343_v15 = vpack.c.bf16 %v4299_v34, %v4297_v28  ;;  %v13988_v62 = vld [vmem:[#allocation122_spill] sm:$0xff] }
 0x7f7   : > { %v7275_v7 = vpack.c.bf16 %v4298_v22, %v4297_v28  ;;  %v8635_v10 = vpop.eup %8634  ;;  %8650 = vpow2.f32 %v5050_v53 }
 0x7f8   : > { %v7278_v5 = vpack.c.bf16 %v4304_v55, %v4303_v21  ;;  %v8637_v26 = vpop.eup %8636  ;;  %8652 = vpow2.f32 %v5052_v46  ;;  %5647 = vmatprep.mubr.bf16.mxu0 %v4344_v25  ;;  %v4864_v63 = vpop.xlane.xlu1 %4863  ;;  %v5226_v3 = vpack.c.bf16 %v12150_v45, %v8635_v10  ;;  %v13990_v46 = vld [vmem:[#allocation126_spill] sm:$0xff] }
 0x7f9   : > { %4535 = vst [vmem:[%s11977_s15 + $0x90] sm:$0xff] %v7275_v7  ;;  %v12164_v29 = vpop.eup %8638  ;;  %8654 = vrcp.f32 %v4201_v4  ;;  %5648 = vmatmul.mubr.bf16.gmra.mrb[196].mxu0 %v4343_v15  ;;  %v4934_v0 = vsub.f32 %v13987_v48, %v4864_v63  ;;  %v4935_v34 = vsub.f32 %v13988_v62, %v4864_v63  ;;  %v5138_v58 = vadd.f32 %v8637_v26, %v8635_v10 }
 0x7fa   : > { %v4873_v37 = vpop.xlane.xlu0 %4872  ;;  %4538 = vst [vmem:[%s11977_s15 + $0xa8] sm:$0xff] %v7278_v5  ;;  %v8641_v8 = vpop.eup %8640  ;;  %8656 = vrcp.f32 %v4210_v32  ;;  %v5227_v20 = vpack.c.bf16 %v8629_v30, %v8637_v26 }
 0x7fb   : > { %v4940_v49 = vsub.f32 %v13916_v42, %v4873_v37  ;;  %v4941_v11 = vsub.f32 %v13989_v24, %v4873_v37  ;;  %v8643_v39 = vpop.eup %8642  ;;  %v5046_v45 = vmul.f32 1.442695, %v4934_v0  ;;  %v5048_v23 = vmul.f32 1.442695, %v4935_v34  ;;  %5139 = vadd.xlane.f32.xlu1 %v5138_v58  ;;  %v13992_v42 = vld [vmem:[#allocation137_spill] sm:$0xff]  ;;  %v13995_v24 = vld [vmem:[#allocation134_spill] sm:$0xff] }
 0x7fc   : > { %v5147_v36 = vadd.f32 %v8641_v8, %v12164_v29  ;;  %v8645_v1 = vpop.eup %8644  ;;  %5414 = vmatprep.mubr.bf16.mxu1 %v5227_v20  ;;  %v4207_v53 = vpop.xlane.xlu1 %4206  ;;  %v4302_v4 = vmul.f32 %v8643_v39, %v13990_v46  ;;  %v4301_v22 = vmul.f32 %v8643_v39, %v13991_v59 }
 0x7fd   : > { %v5058_v52 = vmul.f32 1.442695, %v4940_v49  ;;  %v5060_v57 = vmul.f32 1.442695, %v4941_v11  ;;  %8658 = vpow2.f32 %v5046_v45  ;;  %v4308_v30 = vmul.f32 %v8645_v1, %v13992_v42  ;;  %5415 = vmatmul.mubr.bf16.gmra.mrb[200].mxu1 %v5226_v3  ;;  %v13994_v3 = vld [vmem:[#allocation130_spill] sm:$0xff]  ;;  %v13996_v11 = vld [vmem:[#allocation133_spill] sm:$0xff] }
 0x7fe   : > { %5148 = vadd.xlane.f32.xlu0 %v5147_v36  ;;  %v4307_v28 = vmul.f32 %v8645_v1, %v13993_v33  ;;  %8660 = vpow2.f32 %v5048_v23  ;;  %v4346_v32 = vpack.c.bf16 %v4304_v55, %v4302_v4  ;;  %v4345_v61 = vpack.c.bf16 %v4303_v21, %v4301_v22  ;;  %v13998_v45 = vld [vmem:[#allocation143_spill] sm:$0xff] }
 0x7ff   : > { %v7277_v17 = vpack.c.bf16 %v4302_v4, %v4301_v22  ;;  %v8647_v25 = vpop.eup %8646  ;;  %8662 = vpow2.f32 %v5058_v52 }
 0x800   : > { %v7280_v15 = vpack.c.bf16 %v4308_v30, %v4307_v28  ;;  %v8649_v7 = vpop.eup %8648  ;;  %8664 = vpow2.f32 %v5060_v57  ;;  %5655 = vmatprep.mubr.bf16.mxu0 %v4346_v32  ;;  %v4870_v10 = vpop.xlane.xlu1 %4869  ;;  %v5228_v5 = vpack.c.bf16 %v12164_v29, %v8647_v25 }
 0x801   : > { %4537 = vst [vmem:[%s11977_s15 + $0xa0] sm:$0xff] %v7277_v17  ;;  %v8651_v26 = vpop.eup %8650  ;;  %8666 = vrcp.f32 %v4207_v53  ;;  %5656 = vmatmul.mubr.bf16.gmra.mrb[200].mxu0 %v4345_v61  ;;  %v4938_v63 = vsub.f32 %v13919_v9, %v4870_v10  ;;  %v4939_v55 = vsub.f32 %v13994_v3, %v4870_v10  ;;  %v5144_v21 = vadd.f32 %v8649_v7, %v8647_v25  ;;  %v13997_v9 = vld [vmem:[#allocation145_spill] sm:$0xff] }
 0x802   : > { %4540 = vst [vmem:[%s11977_s15 + $0xb8] sm:$0xff] %v7280_v15  ;;  %v8653_v48 = vpop.eup %8652  ;;  %v5229_v0 = vpack.c.bf16 %v8641_v8, %v8649_v7  ;;  %v14000_v61 = vld [vmem:[#allocation141_spill] sm:$0xff] }
 0x803   : > { %v8655_v62 = vpop.eup %8654  ;;  %v5054_v34 = vmul.f32 1.442695, %v4938_v63  ;;  %v5056_v37 = vmul.f32 1.442695, %v4939_v55  ;;  %5145 = vadd.xlane.f32.xlu1 %v5144_v21  ;;  %v5153_v58 = vadd.f32 %v8653_v48, %v8651_v26 }
 0x804   : > { %v8657_v49 = vpop.eup %8656  ;;  %5422 = vmatprep.mubr.bf16.mxu1 %v5229_v0  ;;  %v4306_v29 = vmul.f32 %v8655_v62, %v13995_v24  ;;  %v4305_v20 = vmul.f32 %v8655_v62, %v13996_v11 }
 0x805   : > { %8668 = vpow2.f32 %v5054_v34  ;;  %5154 = vadd.xlane.f32.xlu0 %v5153_v58  ;;  %v4312_v39 = vmul.f32 %v8657_v49, %v13997_v9  ;;  %v4311_v23 = vmul.f32 %v8657_v49, %v13998_v45  ;;  %5423 = vmatmul.mubr.bf16.gmra.mrb[204].mxu1 %v5228_v5 }
 0x806   : > { %8670 = vpow2.f32 %v5056_v37  ;;  %v4348_v8 = vpack.c.bf16 %v4308_v30, %v4306_v29  ;;  %v4347_v36 = vpack.c.bf16 %v4307_v28, %v4305_v20  ;;  %v7279_v1 = vpack.c.bf16 %v4306_v29, %v4305_v20  ;;  %v13999_v30 = vld [vmem:[#allocation142_spill] sm:$0xff] }
 0x807   : > { %v8659_v52 = vpop.eup %8658  ;;  %v7282_v57 = vpack.c.bf16 %v4312_v39, %v4311_v23 }
 0x808   : > { %v8661_v53 = vpop.eup %8660  ;;  %5663 = vmatprep.mubr.bf16.mxu0 %v4348_v8  ;;  %4539 = vst [vmem:[%s11977_s15 + $0xb0] sm:$0xff] %v7279_v1  ;;  %v5230_v46 = vpack.c.bf16 %v8651_v26, %v8659_v52 }
 0x809   : > { %v8663_v4 = vpop.eup %8662  ;;  %5664 = vmatmul.mubr.bf16.gmra.mrb[204].mxu0 %v4347_v36  ;;  %v5150_v59 = vadd.f32 %v8661_v53, %v8659_v52  ;;  %v5231_v22 = vpack.c.bf16 %v8653_v48, %v8661_v53  ;;  %4542 = vst [vmem:[%s11977_s15 + $0xc8] sm:$0xff] %v7282_v57 }
 0x80a   : > { %v8665_v42 = vpop.eup %8664 }
 0x80b   : > { %v8667_v33 = vpop.eup %8666  ;;  %5151 = vadd.xlane.f32.xlu1 %v5150_v59  ;;  %5430 = vmatprep.mubr.bf16.mxu1 %v5231_v22  ;;  %v5159_v32 = vadd.f32 %v8665_v42, %v8663_v4 }
 0x80c   : > { %v4310_v28 = vmul.f32 %v8667_v33, %v13999_v30  ;;  %v4309_v17 = vmul.f32 %v8667_v33, %v14000_v61 }
 0x80d   : > { %5160 = vadd.xlane.f32.xlu0 %v5159_v32  ;;  %5431 = vmatmul.mubr.bf16.gmra.mrb[208].mxu1 %v5230_v46 }
 0x80e   : > { %v4350_v25 = vpack.c.bf16 %v4312_v39, %v4310_v28  ;;  %v4349_v15 = vpack.c.bf16 %v4311_v23, %v4309_v17  ;;  %v7281_v7 = vpack.c.bf16 %v4310_v28, %v4309_v17 }
 0x80f   : > { %v8669_v10 = vpop.eup %8668 }
 0x810   : > { %v8671_v5 = vpop.eup %8670  ;;  %5671 = vmatprep.mubr.bf16.mxu0 %v4350_v25  ;;  %4541 = vst [vmem:[%s11977_s15 + $0xc0] sm:$0xff] %v7281_v7  ;;  %v5232_v26 = vpack.c.bf16 %v8663_v4, %v8669_v10  ;;  %v14002_v7 = vld [vmem:[#allocation106_spill] sm:$0xff] }
 0x811   : > { %5672 = vmatmul.mubr.bf16.gmra.mrb[208].mxu0 %v4349_v15  ;;  %v5156_v63 = vadd.f32 %v8671_v5, %v8669_v10  ;;  %v5233_v3 = vpack.c.bf16 %v8665_v42, %v8671_v5  ;;  %v14003_v5 = vld [vmem:[#allocation104_spill] sm:$0xff] }
 0x813   : > { %5157 = vadd.xlane.f32.xlu1 %v5156_v63  ;;  %5438 = vmatprep.mubr.bf16.mxu1 %v5233_v3  ;;  %v14004_v63 = vld [vmem:[#allocation116_spill] sm:$0xff] }
 0x815   : > { %5439 = vmatmul.mubr.bf16.gmra.mrb[212].mxu1 %v5232_v26 }
 0x827   : > { %v4213_v55 = vpop.xlane.xlu1 %4212 }
 0x828   : > { %8672 = vrcp.f32 %v4213_v55  ;;  %v14005_v55 = vld [vmem:[#allocation115_spill] sm:$0xff] }
 0x829   : > { %v4216_v21 = vpop.xlane.xlu0 %4215 }
 0x82a   : > { %8674 = vrcp.f32 %v4216_v21 }
 0x82b   : > { %v4876_v48 = vpop.xlane.xlu1 %4875 }
 0x82c   : > { %v4942_v0 = vsub.f32 %v13924_v12, %v4876_v48  ;;  %v4943_v62 = vsub.f32 %v13925_v47, %v4876_v48 }
 0x82d   : > { %v4879_v34 = vpop.xlane.xlu0 %4878 }
 0x82e   : > { %v5062_v37 = vmul.f32 1.442695, %v4942_v0  ;;  %v5064_v58 = vmul.f32 1.442695, %v4943_v62  ;;  %v4944_v49 = vsub.f32 %v13928_v19, %v4879_v34  ;;  %v4945_v24 = vsub.f32 %v13929_v51, %v4879_v34 }
 0x82f   : > { %v4219_v29 = vpop.xlane.xlu1 %4218 }
 0x830   : > { %8676 = vpow2.f32 %v5062_v37  ;;  %v5066_v11 = vmul.f32 1.442695, %v4944_v49  ;;  %v5068_v20 = vmul.f32 1.442695, %v4945_v24 }
 0x831   : > { %8678 = vpow2.f32 %v5064_v58 }
 0x832   : > { %v4222_v9 = vpop.xlane.xlu0 %4221  ;;  %v8673_v39 = vpop.eup %8672  ;;  %8680 = vpow2.f32 %v5066_v11 }
 0x833   : > { %8682 = vpow2.f32 %v5068_v20  ;;  %v4882_v45 = vpop.xlane.xlu1 %4881  ;;  %v4314_v12 = vmul.f32 %v8673_v39, %v11918_v6  ;;  %v4313_v47 = vmul.f32 %v8673_v39, %v11914_v27  ;;  %v14001_v27 = vld [vmem:[#allocation148_spill] sm:$0xff] }
 0x834   : > { %v8675_v23 = vpop.eup %8674  ;;  %8684 = vrcp.f32 %v4219_v29  ;;  %v4946_v19 = vsub.f32 %v13933_v43, %v4882_v45  ;;  %v4947_v51 = vsub.f32 %v13934_v38, %v4882_v45 }
 0x835   : > { %8686 = vrcp.f32 %v4222_v9  ;;  %v4316_v36 = vmul.f32 %v8675_v23, %v11924_v54  ;;  %v4315_v1 = vmul.f32 %v8675_v23, %v11920_v35  ;;  %v7283_v52 = vpack.c.bf16 %v4314_v12, %v4313_v47 }
 0x836   : > { %v4885_v8 = vpop.xlane.xlu0 %4884  ;;  %v5070_v57 = vmul.f32 1.442695, %v4946_v19  ;;  %v5072_v53 = vmul.f32 1.442695, %v4947_v51 }
 0x837   : > { %v4948_v6 = vsub.f32 %v13936_v56, %v4885_v8  ;;  %v4949_v46 = vsub.f32 %v14001_v27, %v4885_v8  ;;  %v4352_v4 = vpack.c.bf16 %v4316_v36, %v4314_v12  ;;  %v4351_v59 = vpack.c.bf16 %v4315_v1, %v4313_v47  ;;  %4543 = vst [vmem:[%s11977_s15 + $0xd0] sm:$0xff] %v7283_v52  ;;  %v4225_v42 = vpop.xlane.xlu1 %4224  ;;  %v14006_v47 = vld [vmem:[#allocation112_spill] sm:$0xff]  ;;  %v9031_v27 = vld [vmem:[%s9338_s30 + $0x30] sm:$0xff] }
 0x838   : > { %v7284_v22 = vpack.c.bf16 %v4316_v36, %v4315_v1  ;;  %8688 = vpow2.f32 %v5070_v57  ;;  %v9028_v57 = vld [vmem:[%s9338_s30 + $0x18] sm:$0xff] }
 0x839   : > { %v5074_v43 = vmul.f32 1.442695, %v4948_v6  ;;  %v5076_v38 = vmul.f32 1.442695, %v4949_v46  ;;  %8690 = vpow2.f32 %v5072_v53  ;;  %5679 = vmatprep.mubr.bf16.mxu0 %v4352_v4  ;;  %v9029_v53 = vld [vmem:[%s9338_s30 + $0x20] sm:$0xff]  ;;  %v9030_v6 = vld [vmem:[%s9338_s30 + $0x28] sm:$0xff] }
 0x83a   : > { %4544 = vst [vmem:[%s11977_s15 + $0xd8] sm:$0xff] %v7284_v22  ;;  %v8677_v35 = vpop.eup %8676  ;;  %v4228_v54 = vpop.xlane.xlu0 %4227  ;;  %5680 = vmatmul.mubr.bf16.gmra.mrb[212].mxu0 %v4351_v59  ;;  %v9032_v46 = vld [vmem:[%s9338_s30 + $0x38] sm:$0xff]  ;;  %v9033_v4 = vld [vmem:[%s9338_s30 + $0x40] sm:$0xff]  ;;  %v9034_v59 = vld [vmem:[%s9338_s30 + $0x48] sm:$0xff] }
 0x83b   : > { %8692 = vpow2.f32 %v5074_v43  ;;  %v8679_v33 = vpop.eup %8678  ;;  %v9035_v22 = vld [vmem:[%s9338_s30 + $0x50] sm:$0xff]  ;;  %v9036_v43 = vld [vmem:[%s9338_s30 + $0x58] sm:$0xff] }
 0x83c   : > { %8694 = vpow2.f32 %v5076_v38  ;;  %v8681_v56 = vpop.eup %8680  ;;  %v5162_v32 = vadd.f32 %v8679_v33, %v8677_v35  ;;  %v5080_v38 = vpop.xlane.xlu1 %5079 }
 0x83d   : > { %8696 = vrcp.f32 %v4225_v42  ;;  %v8683_v30 = vpop.eup %8682  ;;  %v5234_v28 = vpack.c.bf16 %v8681_v56, %v8677_v35  ;;  %v9037_v42 = vld [vmem:[%s9338_s30 + $0x60] sm:$0xff]  ;;  %v9038_v35 = vld [vmem:[%s9338_s30 + $0x68] sm:$0xff] }
 0x83e   : > { %8698 = vrcp.f32 %v4228_v54  ;;  %v8685_v61 = vpop.eup %8684  ;;  %5163 = vadd.xlane.f32.xlu1 %v5162_v32  ;;  %v5235_v17 = vpack.c.bf16 %v8683_v30, %v8679_v33  ;;  %v5165_v25 = vadd.f32 %v8683_v30, %v8681_v56  ;;  %v5083_v54 = vpop.xlane.xlu0 %5082  ;;  %v9039_v33 = vld [vmem:[%s9338_s30 + $0x70] sm:$0xff]  ;;  %v9040_v56 = vld [vmem:[%s9338_s30 + $0x78] sm:$0xff]  ;;  %v9041_v30 = vld [vmem:[%s9338_s30 + $0x80] sm:$0xff] }
 0x83f   : > { %v8687_v15 = vpop.eup %8686  ;;  %v4318_v10 = vmul.f32 %v8685_v61, %v14002_v7  ;;  %v4317_v26 = vmul.f32 %v8685_v61, %v14003_v5  ;;  %8700 = vrcp.f32 %v5080_v38 }
 0x840   : > { %5446 = vmatprep.mubr.bf16.mxu1 %v5235_v17  ;;  %5166 = vadd.xlane.f32.xlu0 %v5165_v25  ;;  %v4320_v3 = vmul.f32 %v8687_v15, %v14004_v63  ;;  %v4319_v21 = vmul.f32 %v8687_v15, %v14005_v55  ;;  %8702 = vrcp.f32 %v5083_v54  ;;  %v5086_v32 = vpop.xlane.xlu1 %5085  ;;  %v9043_v17 = vld [vmem:[%s9338_s30 + $0x90] sm:$0xff]  ;;  %v9044_v15 = vld [vmem:[%s9338_s30 + $0x98] sm:$0xff]  ;;  %v9045_v55 = vld [vmem:[%s9338_s30 + $0xa0] sm:$0xff] }
 0x841   : > { %5447 = vmatmul.mubr.bf16.gmra.mrb[216].mxu1 %v5234_v28  ;;  %v7285_v48 = vpack.c.bf16 %v4318_v10, %v4317_v26  ;;  %v9042_v28 = vld [vmem:[%s9338_s30 + $0x88] sm:$0xff]  ;;  %8704 = vrcp.f32 %v5086_v32 }
 0x842   : > { %v8689_v0 = vpop.eup %8688  ;;  %v4354_v62 = vpack.c.bf16 %v4320_v3, %v4318_v10  ;;  %v4353_v34 = vpack.c.bf16 %v4319_v21, %v4317_v26  ;;  %v7286_v37 = vpack.c.bf16 %v4320_v3, %v4319_v21  ;;  %v5089_v61 = vpop.xlane.xlu0 %5088 }
 0x843   : > { %v8691_v58 = vpop.eup %8690  ;;  %4545 = vst [vmem:[%s11977_s15 + $0xe0] sm:$0xff] %v7285_v48  ;;  %8706 = vrcp.f32 %v5089_v61  ;;  %v9046_v48 = vld [vmem:[%s9338_s30 + $0xa8] sm:$0xff] }
 0x844   : > { %5687 = vmatprep.mubr.bf16.mxu0 %v4354_v62  ;;  %4546 = vst [vmem:[%s11977_s15 + $0xe8] sm:$0xff] %v7286_v37  ;;  %v5168_v24 = vadd.f32 %v8691_v58, %v8689_v0  ;;  %v5092_v26 = vpop.xlane.xlu1 %5091  ;;  %v14007_v62 = vld [vmem:[#allocation48_spill] sm:$0xff] }
 0x845   : > { %v8693_v49 = vpop.eup %8692  ;;  %5688 = vmatmul.mubr.bf16.gmra.mrb[216].mxu0 %v4353_v34  ;;  %v14008_v34 = vld [vmem:[#allocation49_spill] sm:$0xff]  ;;  %8708 = vrcp.f32 %v5092_v26 }
 0x846   : > { %v8695_v29 = vpop.eup %8694  ;;  %v5236_v11 = vpack.c.bf16 %v8693_v49, %v8689_v0  ;;  %5169 = vadd.xlane.f32.xlu1 %v5168_v24  ;;  %v3039_v37 = vadd.f32 %v14008_v34, %v14007_v62  ;;  %v14012_v26 = vld [vmem:[#allocation53_spill] sm:$0xff] }
 0x847   : > { %v8697_v20 = vpop.eup %8696  ;;  %v5237_v9 = vpack.c.bf16 %v8695_v29, %v8691_v58  ;;  %v5171_v39 = vadd.f32 %v8695_v29, %v8693_v49  ;;  %v5095_v58 = vpop.xlane.xlu0 %5094 }
 0x848   : > { %v8699_v45 = vpop.eup %8698  ;;  %v4322_v12 = vmul.f32 %v8697_v20, %v11963_v2  ;;  %v4321_v23 = vmul.f32 %v8697_v20, %v14006_v47  ;;  %v9025_v2 = vld [vmem:[%s9338_s30] sm:$0xff]  ;;  %8710 = vrcp.f32 %v5095_v58  ;;  %v9055_v58 = vld [vmem:[%s9338_s30 + $0xf0] sm:$0xff] }
 0x849   : > { %5454 = vmatprep.mubr.bf16.mxu1 %v5237_v9  ;;  %5172 = vadd.xlane.f32.xlu0 %v5171_v39  ;;  %v4324_v19 = vmul.f32 %v8699_v45, %v11980_v60  ;;  %v4323_v51 = vmul.f32 %v8699_v45, %v11968_v16  ;;  %v9026_v60 = vld [vmem:[%s9338_s30 + $0x10] sm:$0xff]  ;;  %v9027_v16 = vld [vmem:[%s9338_s30 + $0x8] sm:$0xff]  ;;  %v8701_v25 = vpop.eup %8700 }
 0x84a   : > { %5455 = vmatmul.mubr.bf16.gmra.mrb[220].mxu1 %v5236_v11  ;;  %v7287_v8 = vpack.c.bf16 %v4322_v12, %v4321_v23  ;;  %v8703_v10 = vpop.eup %8702  ;;  %v5463_v63 = vmul.f32 %v8701_v25, %v12028_v13  ;;  %v14009_v13 = vld [vmem:[#allocation50_spill] sm:$0xff]  ;;  %v9047_v39 = vld [vmem:[%s9338_s30 + $0xb0] sm:$0xff] }
 0x84b   : > { %v4356_v36 = vpack.c.bf16 %v4324_v19, %v4322_v12  ;;  %v4355_v1 = vpack.c.bf16 %v4323_v51, %v4321_v23  ;;  %v7288_v52 = vpack.c.bf16 %v4324_v19, %v4323_v51  ;;  %v5464_v24 = vmul.f32 %v8703_v10, %v12039_v50  ;;  %v8705_v45 = vpop.eup %8704  ;;  %v9048_v12 = vld [vmem:[%s9338_s30 + $0xb8] sm:$0xff]  ;;  %v12273_v50 = vld [vmem:[%s13257_s9] ss:$0 sm:$0xff]  ;;  %v9054_v10 = vld [vmem:[%s9338_s30 + $0xe8] sm:$0xff] }
 0x84c   : > { %4547 = vst [vmem:[%s11977_s15 + $0xf0] sm:$0xff] %v7287_v8  ;;  %v3043_v11 = vadd.f32 %v14009_v13, %v14007_v62  ;;  %v5098_v8 = vpop.xlane.xlu1 %5097 }
 0x84d   : > { %5695 = vmatprep.mubr.bf16.mxu0 %v4356_v36  ;;  %4548 = vst [vmem:[%s11977_s15 + $0xf8] sm:$0xff] %v7288_v52  ;;  %v8707_v19 = vpop.eup %8706  ;;  %v5465_v36 = vmul.f32 %v8705_v45, %v12058_v41  ;;  %v9049_v52 = vld [vmem:[%s9338_s30 + $0xc0] sm:$0xff]  ;;  %8712 = vrcp.f32 %v5098_v8 }
 0x84e   : > { %5696 = vmatmul.mubr.bf16.gmra.mrb[220].mxu0 %v4355_v1 }
 0x84f   : > { %v8709_v54 = vpop.eup %8708 }
 0x857   : > { %6031 = vrot.lane.b32.xlu1 %v9025_v2, %s9125_s19 }
 0x85b   : > { %6035 = vrot.lane.b32.xlu1 %v9026_v60, %s9125_s19  ;;  %v14010_v60 = vld [vmem:[#allocation51_spill] sm:$0xff] }
 0x85f   : > { %6033 = vrot.lane.b32.xlu0 %v9027_v16, %s9125_s19  ;;  %6037 = vrot.lane.b32.xlu1 %v9028_v57, %s9125_s19  ;;  %v3049_v16 = vadd.f32 %v14010_v60, %v14007_v62  ;;  %v5101_v57 = vpop.xlane.xlu0 %5100 }
 0x860   : > { %8714 = vrcp.f32 %v5101_v57 }
 0x863   : > { %6039 = vrot.lane.b32.xlu0 %v9029_v53, %s9125_s19  ;;  %6041 = vrot.lane.b32.xlu1 %v9030_v6, %s9125_s19  ;;  %v9050_v6 = vld [vmem:[%s9338_s30 + $0xc8] sm:$0xff]  ;;  %v5107_v13 = vpop.xlane.xlu0 %5106 }
 0x867   : > { %6043 = vrot.lane.b32.xlu0 %v9031_v27, %s9125_s19  ;;  %6045 = vrot.lane.b32.xlu1 %v9032_v46, %s9125_s19 }
 0x86b   : > { %6047 = vrot.lane.b32.xlu0 %v9033_v4, %s9125_s19  ;;  %6049 = vrot.lane.b32.xlu1 %v9034_v59, %s9125_s19  ;;  %v5466_v4 = vmul.f32 %v8707_v19, %v12068_v31 }
 0x86f   : > { %6051 = vrot.lane.b32.xlu0 %v9035_v22, %s9125_s19  ;;  %6053 = vrot.lane.b32.xlu1 %v9036_v43, %s9125_s19  ;;  %v14011_v22 = vld [vmem:[#allocation52_spill] sm:$0xff] }
 0x870   : > { %v3053_v43 = vadd.f32 %v14011_v22, %v14007_v62 }
 0x873   : > { %6055 = vrot.lane.b32.xlu0 %v9037_v42, %s9125_s19  ;;  %6057 = vrot.lane.b32.xlu1 %v9038_v35, %s9125_s19  ;;  %v9051_v35 = vld [vmem:[%s9338_s30 + $0xd0] sm:$0xff] }
 0x877   : > { %6059 = vrot.lane.b32.xlu0 %v9039_v33, %s9125_s19  ;;  %6061 = vrot.lane.b32.xlu1 %v9040_v56, %s9125_s19  ;;  %v9052_v33 = vld [vmem:[%s9338_s30 + $0xd8] sm:$0xff] }
 0x87b   : > { %6063 = vrot.lane.b32.xlu0 %v9041_v30, %s9125_s19  ;;  %6065 = vrot.lane.b32.xlu1 %v9042_v28, %s9125_s19  ;;  %v8711_v30 = vpop.eup %8710 }
 0x87f   : > { %6067 = vrot.lane.b32.xlu0 %v9043_v17, %s9125_s19  ;;  %6069 = vrot.lane.b32.xlu1 %v9044_v15, %s9125_s19  ;;  %v5467_v17 = vmul.f32 %v8709_v54, %v12088_v14  ;;  %v9053_v15 = vld [vmem:[%s9338_s30 + $0xe0] sm:$0xff]  ;;  %v14013_v14 = vld [vmem:[#allocation54_spill] sm:$0xff] }
 0x880   : > { %v7665_v7 = vpop.f32.mrb[160].mxu0 }
 0x881   : > { %v7666_v5 = vpop.f32.mrb[161].mxu0 }
 0x882   : > { %v7667_v3 = vadd.f32 %v7666_v5, %v7665_v7  ;;  %v7668_v21 = vpop.f32.mrb[162].mxu0 }
 0x883   : > { %6071 = vrot.lane.b32.xlu0 %v9045_v55, %s9125_s19  ;;  %6073 = vrot.lane.b32.xlu1 %v9046_v48, %s9125_s19  ;;  %v7669_v0 = vpop.f32.mrb[163].mxu0  ;;  %v5468_v55 = vmul.f32 %v8711_v30, %v12098_v18  ;;  %v3063_v48 = vadd.f32 %v14013_v14, %v14007_v62 }
 0x884   : > { %v5578_v49 = vadd.f32 %v7667_v3, %v5463_v63  ;;  %v7670_v29 = vadd.f32 %v7669_v0, %v7668_v21  ;;  %v3059_v63 = vadd.f32 %v14012_v26, %v14007_v62  ;;  %v5104_v0 = vpop.xlane.xlu1 %5103 }
 0x886   : > { %v5704_v20 = vadd.f32 %v5578_v49, %v3039_v37  ;;  %v5581_v9 = vadd.f32 %v7670_v29, %v5464_v24  ;;  %v8713_v49 = vpop.eup %8712  ;;  %v9056_v24 = vld [vmem:[%s9338_s30 + $0xf8] sm:$0xff] }
 0x887   : > { %6075 = vrot.lane.b32.xlu0 %v9047_v39, %s9125_s19  ;;  %6077 = vrot.lane.b32.xlu1 %v9048_v12, %s9125_s19  ;;  %v8715_v29 = vpop.eup %8714 }
 0x888   : > { %v5705_v47 = vadd.f32 %v5581_v9, %v3043_v11  ;;  %v7671_v23 = vpop.f32.mrb[164].mxu0  ;;  %v12281_v53 = vadd.f32 %v12273_v50, %v5704_v20  ;;  %v5110_v57 = vpop.xlane.xlu1 %5109 }
 0x889   : > { %v7672_v51 = vpop.f32.mrb[165].mxu0 }
 0x88a   : > { %v7673_v1 = vadd.f32 %v7672_v51, %v7671_v23  ;;  %v7674_v2 = vpop.f32.mrb[166].mxu0  ;;  %v12286_v41 = vadd.f32 %v12273_v50, %v5705_v47  ;;  %8716 = vtanh.f32 %v12281_v53  ;;  %v5469_v47 = vmul.f32 %v8713_v49, %v12115_v44  ;;  %v14015_v44 = vld [vmem:[#allocation56_spill] sm:$0xff] }
 0x88b   : > { %6079 = vrot.lane.b32.xlu0 %v9049_v52, %s9125_s19  ;;  %6081 = vrot.lane.b32.xlu1 %v9050_v6, %s9125_s19  ;;  %v7675_v27 = vpop.f32.mrb[167].mxu0 }
 0x88c   : > { %v5586_v46 = vadd.f32 %v7673_v1, %v5465_v36  ;;  %v7676_v59 = vadd.f32 %v7675_v27, %v7674_v2  ;;  %8718 = vtanh.f32 %v12286_v41  ;;  %v14014_v36 = vld [vmem:[#allocation55_spill] sm:$0xff]  ;;  %v5470_v2 = vmul.f32 %v8715_v29, %v12123_v40  ;;  %v5113_v40 = vpop.xlane.xlu0 %5112  ;;  %v5116_v26 = vpop.xlane.xlu1 %5115 }
 0x88d   : > { %v3069_v1 = vadd.f32 %v14014_v36, %v14007_v62 }
 0x88e   : > { %v5706_v38 = vadd.f32 %v5586_v46, %v3049_v16  ;;  %v5589_v42 = vadd.f32 %v7676_v59, %v5466_v4  ;;  %v3073_v16 = vadd.f32 %v14015_v44, %v14007_v62 }
 0x88f   : > { %6083 = vrot.lane.b32.xlu0 %v9051_v35, %s9125_s19  ;;  %6085 = vrot.lane.b32.xlu1 %v9052_v33, %s9125_s19 }
 0x890   : > { %v12298_v31 = vadd.f32 %v12273_v50, %v5706_v38  ;;  %v5707_v56 = vadd.f32 %v5589_v42, %v3053_v43  ;;  %v7677_v32 = vpop.f32.mrb[168].mxu0 }
 0x891   : > { %v7678_v28 = vpop.f32.mrb[169].mxu0 }
 0x892   : > { %8720 = vtanh.f32 %v12298_v31  ;;  %v12302_v61 = vadd.f32 %v12273_v50, %v5707_v56  ;;  %v7679_v25 = vadd.f32 %v7678_v28, %v7677_v32  ;;  %v7680_v7 = vpop.f32.mrb[170].mxu0 }
 0x893   : > { %6087 = vrot.lane.b32.xlu0 %v9053_v15, %s9125_s19  ;;  %6089 = vrot.lane.b32.xlu1 %v9054_v10, %s9125_s19  ;;  %v7681_v5 = vpop.f32.mrb[171].mxu0 }
 0x894   : > { %v5594_v3 = vadd.f32 %v7679_v25, %v5467_v17  ;;  %v7682_v21 = vadd.f32 %v7681_v5, %v7680_v7  ;;  %8722 = vtanh.f32 %v12302_v61  ;;  %v8717_v9 = vpop.eup %8716 }
 0x895   : > { %8724 = vrcp.f32 %v5104_v0 }
 0x896   : > { %v5708_v34 = vadd.f32 %v5594_v3, %v3059_v63  ;;  %v5597_v37 = vadd.f32 %v7682_v21, %v5468_v55  ;;  %v8719_v45 = vpop.eup %8718  ;;  %v14016_v3 = vld [vmem:[#allocation57_spill] sm:$0xff] }
 0x897   : > { %6091 = vrot.lane.b32.xlu0 %v9055_v58, %s9125_s19  ;;  %6093 = vrot.lane.b32.xlu1 %v9056_v24, %s9125_s19  ;;  %v3079_v55 = vadd.f32 %v14016_v3, %v14007_v62 }
 0x898   : > { %v12320_v18 = vadd.f32 %v12273_v50, %v5708_v34  ;;  %v5709_v11 = vadd.f32 %v5597_v37, %v3063_v48  ;;  %v7683_v20 = vpop.f32.mrb[172].mxu0  ;;  %v5119_v48 = vpop.xlane.xlu0 %5118  ;;  %v14017_v34 = vld [vmem:[#allocation58_spill] sm:$0xff] }
 0x899   : > { %v7684_v39 = vpop.f32.mrb[173].mxu0  ;;  %v3083_v37 = vadd.f32 %v14017_v34, %v14007_v62 }
 0x89a   : > { %8726 = vtanh.f32 %v12320_v18  ;;  %v12324_v12 = vadd.f32 %v12273_v50, %v5709_v11  ;;  %v7685_v23 = vadd.f32 %v7684_v39, %v7683_v20  ;;  %v7686_v19 = vpop.f32.mrb[174].mxu0 }
 0x89b   : > { %6191 = vrot.lane.b32.xlu0 %v8717_v9, %s13525_s16  ;;  %8728 = vrcp.f32 %v5107_v13  ;;  %6193 = vrot.lane.b32.xlu1 %v8719_v45, %s13525_s16  ;;  %v7687_v51 = vpop.f32.mrb[175].mxu0 }
 0x89c   : > { %v8721_v8 = vpop.eup %8720  ;;  %v5602_v52 = vadd.f32 %v7685_v23, %v5469_v47  ;;  %v7688_v60 = vadd.f32 %v7687_v51, %v7686_v19  ;;  %8730 = vtanh.f32 %v12324_v12 }
 0x89d   : > { %8732 = vrcp.f32 %v5110_v57 }
 0x89e   : > { %v5710_v6 = vadd.f32 %v5602_v52, %v3069_v1  ;;  %v5605_v27 = vadd.f32 %v7688_v60, %v5470_v2  ;;  %v8723_v46 = vpop.eup %8722  ;;  %v7577_v4 = vpop.f32.mrb[176].mxu1 }
 0x89f   : > { %6195 = vrot.lane.b32.xlu0 %v8721_v8, %s13525_s16  ;;  %v7578_v43 = vpop.f32.mrb[177].mxu1  ;;  %6197 = vrot.lane.b32.xlu1 %v8723_v46, %s13525_s16  ;;  %v8725_v33 = vpop.eup %8724 }
 0x8a0   : > { %v12337_v59 = vadd.f32 %v12273_v50, %v5710_v6  ;;  %v5711_v22 = vadd.f32 %v5605_v27, %v3073_v16  ;;  %v7579_v38 = vadd.f32 %v7578_v43, %v7577_v4  ;;  %v7580_v42 = vpop.f32.mrb[178].mxu1  ;;  %v5122_v2 = vpop.xlane.xlu1 %5121  ;;  %v14018_v16 = vld [vmem:[#allocation7_spill] sm:$0xff]  ;;  %v14019_v43 = vld [vmem:[#allocation8_spill] sm:$0xff] }
 0x8a1   : > { %v7581_v54 = vpop.f32.mrb[179].mxu1  ;;  %v3089_v57 = vadd.f32 %v14018_v16, %v14007_v62  ;;  %v5125_v6 = vpop.xlane.xlu0 %5124 }
 0x8a2   : > { %8734 = vtanh.f32 %v12337_v59  ;;  %v12342_v35 = vadd.f32 %v12273_v50, %v5711_v22  ;;  %v7582_v56 = vadd.f32 %v7581_v54, %v7580_v42  ;;  %v5471_v30 = vmul.f32 %v8725_v33, %v7579_v38 }
 0x8a3   : > { %8736 = vrcp.f32 %v5113_v40  ;;  %v3093_v40 = vadd.f32 %v14019_v43, %v14007_v62 }
 0x8a4   : > { %v8727_v32 = vpop.eup %8726  ;;  %v7689_v28 = vpop.f32.mrb[176].mxu0  ;;  %8738 = vtanh.f32 %v12342_v35 }
 0x8a5   : > { %v8729_v17 = vpop.eup %8728  ;;  %v7690_v25 = vpop.f32.mrb[177].mxu0  ;;  %6199 = vrot.lane.b32.xlu0 %v8727_v32, %s13525_s16  ;;  %8740 = vrcp.f32 %v5116_v26 }
 0x8a6   : > { %v5472_v15 = vmul.f32 %v8729_v17, %v7582_v56  ;;  %v7691_v7 = vadd.f32 %v7690_v25, %v7689_v28  ;;  %v7692_v10 = vpop.f32.mrb[178].mxu0  ;;  %v8731_v5 = vpop.eup %8730  ;;  %8742 = vrcp.f32 %v5119_v48 }
 0x8a7   : > { %v7693_v63 = vpop.f32.mrb[179].mxu0  ;;  %6201 = vrot.lane.b32.xlu1 %v8731_v5, %s13525_s16  ;;  %v7583_v0 = vpop.f32.mrb[180].mxu1 }
 0x8a8   : > { %v5610_v21 = vadd.f32 %v7691_v7, %v5471_v30  ;;  %v7694_v14 = vadd.f32 %v7693_v63, %v7692_v10  ;;  %v7584_v24 = vpop.f32.mrb[181].mxu1  ;;  %v8733_v29 = vpop.eup %8732 }
 0x8a9   : > { %v7585_v13 = vadd.f32 %v7584_v24, %v7583_v0  ;;  %v7586_v11 = vpop.f32.mrb[182].mxu1  ;;  %v14020_v0 = vld [vmem:[#allocation9_spill] sm:$0xff] }
 0x8aa   : > { %v5712_v58 = vadd.f32 %v5610_v21, %v3079_v55  ;;  %v5613_v49 = vadd.f32 %v7694_v14, %v5472_v15  ;;  %v7587_v47 = vpop.f32.mrb[183].mxu1  ;;  %v5128_v55 = vpop.xlane.xlu1 %5127  ;;  %v3099_v34 = vadd.f32 %v14020_v0, %v14007_v62 }
 0x8ab   : > { %v5473_v23 = vmul.f32 %v8733_v29, %v7585_v13  ;;  %v7588_v19 = vadd.f32 %v7587_v47, %v7586_v11  ;;  %v14021_v29 = vld [vmem:[#allocation10_spill] sm:$0xff] }
 0x8ac   : > { %v8735_v20 = vpop.eup %8734  ;;  %v12352_v9 = vadd.f32 %v12273_v50, %v5712_v58  ;;  %v5713_v39 = vadd.f32 %v5613_v49, %v3083_v37  ;;  %v7695_v45 = vpop.f32.mrb[180].mxu0  ;;  %v3103_v13 = vadd.f32 %v14021_v29, %v14007_v62 }
 0x8ad   : > { %v7696_v51 = vpop.f32.mrb[181].mxu0  ;;  %6203 = vrot.lane.b32.xlu0 %v8735_v20, %s13525_s16  ;;  %v8737_v8 = vpop.eup %8736 }
 0x8ae   : > { %8744 = vtanh.f32 %v12352_v9  ;;  %v7697_v36 = vadd.f32 %v7696_v51, %v7695_v45  ;;  %v7698_v1 = vpop.f32.mrb[182].mxu0  ;;  %v8739_v52 = vpop.eup %8738  ;;  %v5474_v60 = vmul.f32 %v8737_v8, %v7588_v19  ;;  %v12359_v27 = vadd.f32 %v12273_v50, %v5713_v39 }
 0x8af   : > { %v7699_v44 = vpop.f32.mrb[183].mxu0  ;;  %6205 = vrot.lane.b32.xlu1 %v8739_v52, %s13525_s16  ;;  %8746 = vrcp.f32 %v5122_v2  ;;  %v8741_v32 = vpop.eup %8740 }
 0x8b0   : > { %v5618_v46 = vadd.f32 %v7697_v36, %v5473_v23  ;;  %v7700_v4 = vadd.f32 %v7699_v44, %v7698_v1  ;;  %v7589_v22 = vpop.f32.mrb[184].mxu1  ;;  %8748 = vrcp.f32 %v5125_v6  ;;  %v8743_v5 = vpop.eup %8742 }
 0x8b1   : > { %v7590_v54 = vpop.f32.mrb[185].mxu1  ;;  %8750 = vtanh.f32 %v12359_v27  ;;  %v5131_v49 = vpop.xlane.xlu0 %5130 }
 0x8b2   : > { %v5714_v38 = vadd.f32 %v5618_v46, %v3089_v57  ;;  %v5621_v42 = vadd.f32 %v7700_v4, %v5474_v60  ;;  %v7591_v33 = vadd.f32 %v7590_v54, %v7589_v22  ;;  %v7592_v56 = vpop.f32.mrb[186].mxu1  ;;  %v5134_v45 = vpop.xlane.xlu1 %5133 }
 0x8b3   : > { %v7593_v25 = vpop.f32.mrb[187].mxu1 }
 0x8b4   : > { %v12366_v30 = vadd.f32 %v12273_v50, %v5714_v38  ;;  %v5715_v28 = vadd.f32 %v5621_v42, %v3093_v40  ;;  %v7701_v17 = vpop.f32.mrb[184].mxu0  ;;  %v5475_v15 = vmul.f32 %v8741_v32, %v7591_v33  ;;  %v7594_v7 = vadd.f32 %v7593_v25, %v7592_v56  ;;  %v14022_v42 = vld [vmem:[#allocation11_spill] sm:$0xff] }
 0x8b5   : > { %v7702_v10 = vpop.f32.mrb[185].mxu0  ;;  %v5137_v2 = vpop.xlane.xlu0 %5136  ;;  %v3109_v54 = vadd.f32 %v14022_v42, %v14007_v62 }
 0x8b6   : > { %8752 = vtanh.f32 %v12366_v30  ;;  %v12370_v26 = vadd.f32 %v12273_v50, %v5715_v28  ;;  %v7703_v63 = vadd.f32 %v7702_v10, %v7701_v17  ;;  %v7704_v3 = vpop.f32.mrb[186].mxu0  ;;  %v5476_v21 = vmul.f32 %v8743_v5, %v7594_v7  ;;  %v5140_v22 = vpop.xlane.xlu1 %5139  ;;  %v14023_v17 = vld [vmem:[#allocation12_spill] sm:$0xff] }
 0x8b7   : > { %v7705_v14 = vpop.f32.mrb[187].mxu0  ;;  %v3113_v25 = vadd.f32 %v14023_v17, %v14007_v62 }
 0x8b8   : > { %v8745_v48 = vpop.eup %8744  ;;  %v5626_v37 = vadd.f32 %v7703_v63, %v5475_v15  ;;  %v7706_v58 = vadd.f32 %v7705_v14, %v7704_v3  ;;  %8754 = vtanh.f32 %v12370_v26  ;;  %v7595_v24 = vpop.f32.mrb[188].mxu1 }
 0x8b9   : > { %6207 = vrot.lane.b32.xlu0 %v8745_v48, %s13525_s16  ;;  %8756 = vrcp.f32 %v5128_v55  ;;  %v7596_v39 = vpop.f32.mrb[189].mxu1  ;;  %v8747_v19 = vpop.eup %8746 }
 0x8ba   : > { %v5716_v11 = vadd.f32 %v5626_v37, %v3099_v34  ;;  %v5629_v20 = vadd.f32 %v7706_v58, %v5476_v21  ;;  %v7597_v47 = vadd.f32 %v7596_v39, %v7595_v24  ;;  %v7598_v23 = vpop.f32.mrb[190].mxu1  ;;  %8758 = vrcp.f32 %v5131_v49  ;;  %v8749_v52 = vpop.eup %8748 }
 0x8bb   : > { %v7599_v1 = vpop.f32.mrb[191].mxu1  ;;  %v8751_v57 = vpop.eup %8750 }
 0x8bc   : > { %v12379_v51 = vadd.f32 %v12273_v50, %v5716_v11  ;;  %v5717_v8 = vadd.f32 %v5629_v20, %v3103_v13  ;;  %v7707_v36 = vpop.f32.mrb[188].mxu0  ;;  %v5477_v60 = vmul.f32 %v8747_v19, %v7597_v47  ;;  %v7600_v44 = vadd.f32 %v7599_v1, %v7598_v23  ;;  %6209 = vrot.lane.b32.xlu1 %v8751_v57, %s13525_s16  ;;  %v5143_v32 = vpop.xlane.xlu0 %5142  ;;  %v14024_v19 = vld [vmem:[#allocation13_spill] sm:$0xff] }
 0x8bd   : > { %v7708_v16 = vpop.f32.mrb[189].mxu0  ;;  %v12392_v63 = vpop.xlane.xlu1 %5145 }
 0x8be   : > { %8760 = vtanh.f32 %v12379_v51  ;;  %v12383_v6 = vadd.f32 %v12273_v50, %v5717_v8  ;;  %v7709_v46 = vadd.f32 %v7708_v16, %v7707_v36  ;;  %v7710_v4 = vpop.f32.mrb[190].mxu0  ;;  %v5478_v43 = vmul.f32 %v8749_v52, %v7600_v44 }
 0x8bf   : > { %v7711_v40 = vpop.f32.mrb[191].mxu0  ;;  %v3119_v8 = vadd.f32 %v14024_v19, %v14007_v62 }
 0x8c0   : > { %v8753_v38 = vpop.eup %8752  ;;  %v5634_v33 = vadd.f32 %v7709_v46, %v5477_v60  ;;  %v7712_v56 = vadd.f32 %v7711_v40, %v7710_v4  ;;  %8762 = vtanh.f32 %v12383_v6  ;;  %v7601_v28 = vpop.f32.mrb[192].mxu1  ;;  %v14025_v60 = vld [vmem:[#allocation14_spill] sm:$0xff] }
 0x8c1   : > { %6211 = vrot.lane.b32.xlu0 %v8753_v38, %s13525_s16  ;;  %8764 = vrcp.f32 %v5134_v45  ;;  %v7602_v10 = vpop.f32.mrb[193].mxu1  ;;  %v12398_v37 = vpop.xlane.xlu0 %5148  ;;  %v3123_v44 = vadd.f32 %v14025_v60, %v14007_v62 }
 0x8c2   : > { %v5718_v15 = vadd.f32 %v5634_v33, %v3109_v54  ;;  %v5637_v7 = vadd.f32 %v7712_v56, %v5478_v43  ;;  %v8755_v5 = vpop.eup %8754  ;;  %v7603_v3 = vadd.f32 %v7602_v10, %v7601_v28  ;;  %v7604_v55 = vpop.f32.mrb[194].mxu1  ;;  %8766 = vrcp.f32 %v5137_v2 }
 0x8c3   : > { %v8757_v21 = vpop.eup %8756  ;;  %6213 = vrot.lane.b32.xlu1 %v8755_v5, %s13525_s16  ;;  %v7605_v34 = vpop.f32.mrb[195].mxu1 }
 0x8c4   : > { %v12395_v14 = vadd.f32 %v12273_v50, %v5718_v15  ;;  %v5719_v48 = vadd.f32 %v5637_v7, %v3113_v25  ;;  %v7713_v0 = vpop.f32.mrb[192].mxu0  ;;  %v5479_v58 = vmul.f32 %v8757_v21, %v7603_v3  ;;  %v7606_v49 = vadd.f32 %v7605_v34, %v7604_v55  ;;  %v8759_v29 = vpop.eup %8758 }
 0x8c5   : > { %v7714_v24 = vpop.f32.mrb[193].mxu0  ;;  %v12404_v39 = vpop.xlane.xlu1 %5151 }
 0x8c6   : > { %8768 = vtanh.f32 %v12395_v14  ;;  %v12402_v13 = vadd.f32 %v12273_v50, %v5719_v48  ;;  %v7715_v11 = vadd.f32 %v7714_v24, %v7713_v0  ;;  %v7716_v20 = vpop.f32.mrb[194].mxu0  ;;  %v5480_v45 = vmul.f32 %v8759_v29, %v7606_v49  ;;  %v12408_v52 = vpop.xlane.xlu0 %5154  ;;  %v14026_v0 = vld [vmem:[#allocation15_spill] sm:$0xff] }
 0x8c7   : > { %v7717_v47 = vpop.f32.mrb[195].mxu0  ;;  %v3129_v34 = vadd.f32 %v14026_v0, %v14007_v62 }
 0x8c8   : > { %v8761_v23 = vpop.eup %8760  ;;  %v5642_v36 = vadd.f32 %v7715_v11, %v5479_v58  ;;  %v7718_v1 = vadd.f32 %v7717_v47, %v7716_v20  ;;  %8770 = vtanh.f32 %v12402_v13  ;;  %v7607_v2 = vpop.f32.mrb[196].mxu1  ;;  %v14027_v11 = vld [vmem:[#allocation16_spill] sm:$0xff] }
 0x8c9   : > { %6215 = vrot.lane.b32.xlu0 %v8761_v23, %s13525_s16  ;;  %8772 = vrcp.f32 %v5140_v22  ;;  %v7608_v46 = vpop.f32.mrb[197].mxu1  ;;  %v12414_v43 = vpop.xlane.xlu1 %5157  ;;  %v3133_v20 = vadd.f32 %v14027_v11, %v14007_v62 }
 0x8ca   : > { %v5720_v16 = vadd.f32 %v5642_v36, %v3119_v8  ;;  %v5645_v57 = vadd.f32 %v7718_v1, %v5480_v45  ;;  %v8763_v4 = vpop.eup %8762  ;;  %v7609_v40 = vadd.f32 %v7608_v46, %v7607_v2  ;;  %v7610_v38 = vpop.f32.mrb[198].mxu1  ;;  %8774 = vrcp.f32 %v5143_v32 }
 0x8cb   : > { %v8765_v42 = vpop.eup %8764  ;;  %6217 = vrot.lane.b32.xlu1 %v8763_v4, %s13525_s16  ;;  %v7611_v28 = vpop.f32.mrb[199].mxu1 }
 0x8cc   : > { %v12417_v54 = vadd.f32 %v12273_v50, %v5720_v16  ;;  %v5721_v33 = vadd.f32 %v5645_v57, %v3123_v44  ;;  %v7719_v56 = vpop.f32.mrb[196].mxu0  ;;  %v12420_v17 = vpop.xlane.xlu0 %5160  ;;  %v5481_v22 = vmul.f32 %v8765_v42, %v7609_v40  ;;  %v7612_v25 = vadd.f32 %v7611_v28, %v7610_v38 }
 0x8cd   : > { %v7720_v15 = vpop.f32.mrb[197].mxu0  ;;  %v8767_v7 = vpop.eup %8766 }
 0x8ce   : > { %8776 = vtanh.f32 %v12417_v54  ;;  %v12424_v10 = vadd.f32 %v12273_v50, %v5721_v33  ;;  %v7721_v32 = vadd.f32 %v7720_v15, %v7719_v56  ;;  %v7722_v5 = vpop.f32.mrb[198].mxu0  ;;  %v5482_v3 = vmul.f32 %v8767_v7, %v7612_v25  ;;  %v12426_v55 = vpop.xlane.xlu1 %5163  ;;  %v14028_v15 = vld [vmem:[#allocation59_spill] sm:$0xff] }
 0x8cf   : > { %v7723_v21 = vpop.f32.mrb[199].mxu0  ;;  %v3139_v7 = vadd.f32 %v14028_v15, %v14007_v62 }
 0x8d0   : > { %v8769_v48 = vpop.eup %8768  ;;  %v5650_v58 = vadd.f32 %v7721_v32, %v5481_v22  ;;  %v7724_v49 = vadd.f32 %v7723_v21, %v7722_v5  ;;  %8778 = vtanh.f32 %v12424_v10  ;;  %v12431_v24 = vpop.xlane.xlu0 %5166 }
 0x8d1   : > { %6219 = vrot.lane.b32.xlu0 %v8769_v48, %s13525_s16  ;;  %v7613_v29 = vpop.f32.mrb[200].mxu1  ;;  %8780 = vrcp.f32 %v12392_v63  ;;  %v14029_v48 = vld [vmem:[#allocation17_spill] sm:$0xff] }
 0x8d2   : > { %v5722_v45 = vadd.f32 %v5650_v58, %v3129_v34  ;;  %v5653_v47 = vadd.f32 %v7724_v49, %v5482_v3  ;;  %v7614_v23 = vpop.f32.mrb[201].mxu1  ;;  %v8771_v19 = vpop.eup %8770  ;;  %8782 = vrcp.f32 %v12398_v37  ;;  %v3143_v0 = vadd.f32 %v14029_v48, %v14007_v62 }
 0x8d3   : > { %v7615_v8 = vadd.f32 %v7614_v23, %v7613_v29  ;;  %v7616_v36 = vpop.f32.mrb[202].mxu1  ;;  %v12437_v1 = vpop.xlane.xlu1 %5169  ;;  %6221 = vrot.lane.b32.xlu1 %v8771_v19, %s13525_s16 }
 0x8d4   : > { %v8773_v2 = vpop.eup %8772  ;;  %v12441_v60 = vadd.f32 %v12273_v50, %v5722_v45  ;;  %v5723_v44 = vadd.f32 %v5653_v47, %v3133_v20  ;;  %v7725_v16 = vpop.f32.mrb[200].mxu0 }
 0x8d5   : > { %v7617_v57 = vpop.f32.mrb[203].mxu1  ;;  %v5483_v63 = vmul.f32 %v8773_v2, %v7615_v8  ;;  %v7726_v4 = vpop.f32.mrb[201].mxu0 }
 0x8d6   : > { %v7618_v46 = vadd.f32 %v7617_v57, %v7616_v36  ;;  %v12444_v40 = vpop.xlane.xlu0 %5172  ;;  %v8775_v38 = vpop.eup %8774  ;;  %8784 = vtanh.f32 %v12441_v60  ;;  %v12448_v42 = vadd.f32 %v12273_v50, %v5723_v44  ;;  %v7727_v37 = vadd.f32 %v7726_v4, %v7725_v16 }
 0x8d7   : > { %v7728_v33 = vpop.f32.mrb[202].mxu0  ;;  %v12450_v22 = vpop.permute.xlu1 %6031 }
 0x8d8   : > { %v5484_v56 = vmul.f32 %v8775_v38, %v7618_v46  ;;  %v7729_v28 = vpop.f32.mrb[203].mxu0  ;;  %v8777_v25 = vpop.eup %8776  ;;  %v5658_v32 = vadd.f32 %v7727_v37, %v5483_v63  ;;  %8786 = vtanh.f32 %v12448_v42 }
 0x8d9   : > { %v7730_v5 = vadd.f32 %v7729_v28, %v7728_v33  ;;  %6223 = vrot.lane.b32.xlu0 %v8777_v25, %s13525_s16  ;;  %v7619_v3 = vpop.f32.mrb[204].mxu1  ;;  %8788 = vrcp.f32 %v12404_v39 }
 0x8da   : > { %v12456_v21 = vpop.permute.xlu0 %6033  ;;  %v5724_v34 = vadd.f32 %v5658_v32, %v3139_v7  ;;  %v7620_v49 = vpop.f32.mrb[205].mxu1  ;;  %8790 = vrcp.f32 %v12408_v52 }
 0x8db   : > { %v5661_v58 = vadd.f32 %v7730_v5, %v5484_v56  ;;  %v8779_v29 = vpop.eup %8778  ;;  %v7621_v11 = vadd.f32 %v7620_v49, %v7619_v3  ;;  %v7622_v20 = vpop.f32.mrb[206].mxu1  ;;  %v14030_v56 = vld [vmem:[#allocation18_spill] sm:$0xff]  ;;  %v14031_v5 = vld [vmem:[#allocation60_spill] sm:$0xff] }
 0x8dc   : > { %v12461_v45 = vpop.permute.xlu1 %6035  ;;  %v8781_v47 = vpop.eup %8780  ;;  %v12465_v23 = vadd.f32 %v12273_v50, %v5724_v34  ;;  %6225 = vrot.lane.b32.xlu1 %v8779_v29, %s13525_s16  ;;  %v3149_v28 = vadd.f32 %v14030_v56, %v14007_v62  ;;  %v3153_v3 = vadd.f32 %v14031_v5, %v14007_v62 }
 0x8dd   : > { %v5725_v19 = vadd.f32 %v5661_v58, %v3143_v0  ;;  %v7731_v8 = vpop.f32.mrb[204].mxu0  ;;  %v7623_v36 = vpop.f32.mrb[207].mxu1  ;;  %v5485_v39 = vmul.f32 %v8781_v47, %v7621_v11 }
 0x8de   : > { %v7624_v2 = vadd.f32 %v7623_v36, %v7622_v20  ;;  %v7732_v44 = vpop.f32.mrb[205].mxu0  ;;  %v12468_v16 = vpop.permute.xlu0 %6039  ;;  %8792 = vtanh.f32 %v12465_v23 }
 0x8df   : > { %v8783_v57 = vpop.eup %8782  ;;  %v12472_v63 = vadd.f32 %v12273_v50, %v5725_v19  ;;  %v7733_v52 = vadd.f32 %v7732_v44, %v7731_v8  ;;  %v7734_v46 = vpop.f32.mrb[206].mxu0 }
 0x8e0   : > { %v5486_v4 = vmul.f32 %v8783_v57, %v7624_v2  ;;  %v7735_v38 = vpop.f32.mrb[207].mxu0  ;;  %v12474_v37 = vpop.permute.xlu1 %6037 }
 0x8e1   : > { %v8785_v33 = vpop.eup %8784  ;;  %v5666_v25 = vadd.f32 %v7733_v52, %v5485_v39  ;;  %v7736_v15 = vadd.f32 %v7735_v38, %v7734_v46  ;;  %8794 = vtanh.f32 %v12472_v63  ;;  %v7625_v7 = vpop.f32.mrb[208].mxu1 }
 0x8e2   : > { %6227 = vrot.lane.b32.xlu0 %v8785_v33, %s13525_s16  ;;  %v12480_v32 = vpop.permute.xlu0 %6043  ;;  %v7626_v34 = vpop.f32.mrb[209].mxu1 }
 0x8e3   : > { %v5726_v48 = vadd.f32 %v5666_v25, %v3149_v28  ;;  %v5669_v0 = vadd.f32 %v7736_v15, %v5486_v4  ;;  %v8787_v58 = vpop.eup %8786  ;;  %v7627_v49 = vadd.f32 %v7626_v34, %v7625_v7  ;;  %v7628_v29 = vpop.f32.mrb[210].mxu1  ;;  %v14032_v15 = vld [vmem:[#allocation19_spill] sm:$0xff]  ;;  %v14033_v34 = vld [vmem:[#allocation20_spill] sm:$0xff] }
 0x8e4   : > { %v12484_v11 = vpop.permute.xlu1 %6041  ;;  %v8789_v20 = vpop.eup %8788  ;;  %6229 = vrot.lane.b32.xlu1 %v8787_v58, %s13525_s16  ;;  %v3159_v7 = vadd.f32 %v14032_v15, %v14007_v62  ;;  %v3163_v58 = vadd.f32 %v14033_v34, %v14007_v62 }
 0x8e5   : > { %v12487_v47 = vadd.f32 %v12273_v50, %v5726_v48  ;;  %v5727_v19 = vadd.f32 %v5669_v0, %v3153_v3  ;;  %v7737_v8 = vpop.f32.mrb[208].mxu0  ;;  %v7629_v36 = vpop.f32.mrb[211].mxu1  ;;  %v5487_v39 = vmul.f32 %v8789_v20, %v7627_v49 }
 0x8e6   : > { %v7630_v2 = vadd.f32 %v7629_v36, %v7628_v29  ;;  %v7738_v44 = vpop.f32.mrb[209].mxu0  ;;  %v12490_v57 = vpop.permute.xlu0 %6047 }
 0x8e7   : > { %v8791_v52 = vpop.eup %8790  ;;  %8796 = vtanh.f32 %v12487_v47  ;;  %v12494_v46 = vadd.f32 %v12273_v50, %v5727_v19  ;;  %v7739_v4 = vadd.f32 %v7738_v44, %v7737_v8  ;;  %v7740_v38 = vpop.f32.mrb[210].mxu0 }
 0x8e8   : > { %v5488_v33 = vmul.f32 %v8791_v52, %v7630_v2  ;;  %v7741_v56 = vpop.f32.mrb[211].mxu0  ;;  %v12496_v28 = vpop.permute.xlu1 %6045 }
 0x8e9   : > { %v8793_v25 = vpop.eup %8792  ;;  %v5674_v5 = vadd.f32 %v7739_v4, %v5487_v39  ;;  %v7742_v3 = vadd.f32 %v7741_v56, %v7740_v38  ;;  %8798 = vtanh.f32 %v12494_v46  ;;  %v7631_v48 = vpop.f32.mrb[212].mxu1 }
 0x8ea   : > { %6231 = vrot.lane.b32.xlu0 %v8793_v25, %s13525_s16  ;;  %v12502_v0 = vpop.permute.xlu0 %6051  ;;  %v7632_v20 = vpop.f32.mrb[213].mxu1 }
 0x8eb   : > { %v5728_v49 = vadd.f32 %v5674_v5, %v3159_v7  ;;  %v5677_v29 = vadd.f32 %v7742_v3, %v5488_v33  ;;  %v8795_v19 = vpop.eup %8794  ;;  %v7633_v8 = vadd.f32 %v7632_v20, %v7631_v48  ;;  %v7634_v36 = vpop.f32.mrb[214].mxu1 }
 0x8ec   : > { %v12506_v2 = vpop.permute.xlu1 %6049  ;;  %6233 = vrot.lane.b32.xlu1 %v8795_v19, %s13525_s16  ;;  %v7635_v52 = vpop.f32.mrb[215].mxu1 }
 0x8ed   : > { %v12509_v39 = vadd.f32 %v12273_v50, %v5728_v49  ;;  %v5729_v44 = vadd.f32 %v5677_v29, %v3163_v58  ;;  %v7636_v4 = vadd.f32 %v7635_v52, %v7634_v36  ;;  %v7219_v52 = vmul.f32 -1.442695, %v12286_v41 }
 0x8ee   : > { %v12512_v38 = vpop.permute.xlu0 %6055 }
 0x8ef   : > { %8800 = vtanh.f32 %v12509_v39  ;;  %v12516_v33 = vadd.f32 %v12273_v50, %v5729_v44  ;;  %v7218_v44 = vmul.f32 -1.442695, %v12281_v53 }
 0x8f0   : > { %v12518_v56 = vpop.permute.xlu1 %6053 }
 0x8f1   : > { %14034 = vst [vmem:[#allocation131_spill] sm:$0xff] %v12516_v33  ;;  %v8797_v25 = vpop.eup %8796  ;;  %8802 = vtanh.f32 %v12516_v33 }
 0x8f2   : > { %6235 = vrot.lane.b32.xlu0 %v8797_v25, %s13525_s16  ;;  %v12522_v15 = vpop.permute.xlu0 %6059  ;;  %8804 = vrcp.f32 %v12414_v43 }
 0x8f3   : > { %v8799_v7 = vpop.eup %8798  ;;  %8806 = vrcp.f32 %v12420_v17 }
 0x8f4   : > { %v12524_v5 = vpop.permute.xlu1 %6057  ;;  %6237 = vrot.lane.b32.xlu1 %v8799_v7, %s13525_s16  ;;  %8808 = vpow2.f32 %v7218_v44 }
 0x8f5   : > { %8810 = vrcp.f32 %v12426_v55 }
 0x8f6   : > { %v12529_v34 = vpop.permute.xlu0 %6063  ;;  %8812 = vpow2.f32 %v7219_v52 }
 0x8f7   : > { %14035 = vst [vmem:[#allocation128_spill] sm:$0xff] %v12529_v34  ;;  %8814 = vrcp.f32 %v12431_v24 }
 0x8f8   : > { %v12527_v3 = vpop.permute.xlu1 %6061  ;;  %8816 = vrcp.f32 %v12437_v1 }
 0x8f9   : > { %v8801_v48 = vpop.eup %8800  ;;  %8818 = vrcp.f32 %v12444_v40 }
 0x8fa   : > { %6239 = vrot.lane.b32.xlu0 %v8801_v48, %s13525_s16  ;;  %v12535_v29 = vpop.permute.xlu0 %6067 }
 0x8fb   : > { %v8803_v58 = vpop.eup %8802  ;;  %14037 = vst [vmem:[#allocation138_spill] sm:$0xff] %v12535_v29 }
 0x8fc   : > { %v12532_v49 = vpop.permute.xlu1 %6065  ;;  %6241 = vrot.lane.b32.xlu1 %v8803_v58, %s13525_s16  ;;  %v8805_v58 = vpop.eup %8804 }
 0x8fd   : > { %14036 = vst [vmem:[#allocation136_spill] sm:$0xff] %v12532_v49  ;;  %v5489_v17 = vmul.f32 %v8805_v58, %v7633_v8 }
 0x8fe   : > { %v12540_v19 = vpop.permute.xlu0 %6071 }
 0x8ff   : > { %14039 = vst [vmem:[#allocation140_spill] sm:$0xff] %v12540_v19 }
 0x900   : > { %v12537_v20 = vpop.permute.xlu1 %6069 }
 0x901   : > { %14038 = vst [vmem:[#allocation139_spill] sm:$0xff] %v12537_v20  ;;  %v8807_v20 = vpop.eup %8806 }
 0x902   : > { %v12547_v25 = vpop.permute.xlu0 %6075  ;;  %v5490_v29 = vmul.f32 %v8807_v20, %v7636_v4  ;;  %v8809_v4 = vpop.eup %8808 }
 0x903   : > { %14041 = vst [vmem:[#allocation146_spill] sm:$0xff] %v12547_v25  ;;  %v14044_v25 = vld [vmem:[#allocation21_spill] sm:$0xff] }
 0x904   : > { %v12543_v36 = vpop.permute.xlu1 %6073  ;;  %v3169_v44 = vadd.f32 %v14044_v25, %v14007_v62 }
 0x905   : > { %14040 = vst [vmem:[#allocation144_spill] sm:$0xff] %v12543_v36 }
 0x906   : > { %v12553_v53 = vpop.permute.xlu0 %6079 }
 0x907   : > { %14043 = vst [vmem:[#allocation37_spill] sm:$0xff] %v12553_v53 }
 0x908   : > { %v12550_v7 = vpop.permute.xlu1 %6077 }
 0x909   : > { %14042 = vst [vmem:[#allocation147_spill] sm:$0xff] %v12550_v7  ;;  %v14045_v7 = vld [vmem:[#allocation22_spill] sm:$0xff] }
 0x90a   : > { %v3173_v34 = vadd.f32 %v14045_v7, %v14007_v62  ;;  %v12567_v20 = vpop.permute.xlu0 %6083  ;;  %v8811_v7 = vpop.eup %8810 }
 0x90b   : > { %14047 = vst [vmem:[#allocation47_spill] sm:$0xff] %v12567_v20  ;;  %v8813_v1 = vpop.eup %8812 }
 0x90c   : > { %v12559_v52 = vpop.permute.xlu1 %6081 }
 0x90d   : > { %v7743_v48 = vpop.f32.mrb[212].mxu0  ;;  %14046 = vst [vmem:[#allocation86_spill] sm:$0xff] %v12559_v52  ;;  %v14049_v52 = vld [vmem:[#allocation25_spill] sm:$0xff] }
 0x90e   : > { %v7744_v43 = vpop.f32.mrb[213].mxu0  ;;  %v3179_v53 = vadd.f32 %v14049_v52, %v14007_v62 }
 0x90f   : > { %v7745_v19 = vadd.f32 %v7744_v43, %v7743_v48  ;;  %v7746_v36 = vpop.f32.mrb[214].mxu0  ;;  %v7220_v48 = vmul.f32 -1.442695, %v12298_v31 }
 0x910   : > { %v7747_v41 = vpop.f32.mrb[215].mxu0  ;;  %v12574_v40 = vpop.permute.xlu1 %6085 }
 0x911   : > { %v5682_v55 = vadd.f32 %v7745_v19, %v5489_v17  ;;  %v7748_v49 = vadd.f32 %v7747_v41, %v7746_v36  ;;  %v8815_v41 = vpop.eup %8814  ;;  %14048 = vst [vmem:[#allocation81_spill] sm:$0xff] %v12574_v40 }
 0x913   : > { %v5730_v33 = vadd.f32 %v5682_v55, %v3169_v44  ;;  %v5685_v24 = vadd.f32 %v7748_v49, %v5490_v29  ;;  %v5871_v55 = vadd.f32 1.0, %v8809_v4  ;;  %v7222_v4 = vmul.f32 -1.442695, %v12320_v18 }
 0x914   : > { %v7637_v8 = vpop.f32.mrb[216].mxu1  ;;  %v12584_v52 = vpop.permute.xlu1 %6089 }
 0x915   : > { %v12564_v58 = vadd.f32 %v12273_v50, %v5730_v33  ;;  %v5731_v43 = vadd.f32 %v5685_v24, %v3173_v34  ;;  %v7638_v25 = vpop.f32.mrb[217].mxu1  ;;  %v7221_v33 = vmul.f32 -1.442695, %v12302_v61  ;;  %v12579_v61 = vpop.permute.xlu0 %6087 }
 0x916   : > { %v7639_v19 = vadd.f32 %v7638_v25, %v7637_v8  ;;  %v7640_v36 = vpop.f32.mrb[218].mxu1  ;;  %14050 = vst [vmem:[#allocation89_spill] sm:$0xff] %v12579_v61 }
 0x917   : > { %8820 = vtanh.f32 %v12564_v58  ;;  %v12571_v49 = vadd.f32 %v12273_v50, %v5731_v43  ;;  %v7641_v31 = vpop.f32.mrb[219].mxu1  ;;  %v5872_v43 = vadd.f32 1.0, %v8813_v1 }
 0x918   : > { %v5491_v29 = vmul.f32 %v8811_v7, %v7639_v19  ;;  %v7749_v34 = vpop.f32.mrb[216].mxu0  ;;  %v7642_v17 = vadd.f32 %v7641_v31, %v7640_v36  ;;  %8822 = vpow2.f32 %v7220_v48  ;;  %v14051_v7 = vld [vmem:[#allocation26_spill] sm:$0xff] }
 0x919   : > { %v7750_v44 = vpop.f32.mrb[217].mxu0  ;;  %8824 = vtanh.f32 %v12571_v49  ;;  %v3183_v31 = vadd.f32 %v14051_v7, %v14007_v62 }
 0x91a   : > { %v5492_v24 = vmul.f32 %v8815_v41, %v7642_v17  ;;  %v7751_v8 = vadd.f32 %v7750_v44, %v7749_v34  ;;  %v7752_v25 = vpop.f32.mrb[218].mxu0  ;;  %8826 = vpow2.f32 %v7221_v33  ;;  %v8817_v44 = vpop.eup %8816 }
 0x91b   : > { %v7753_v20 = vpop.f32.mrb[219].mxu0  ;;  %8828 = vrcp.f32 %v5871_v55  ;;  %v8819_v61 = vpop.eup %8818 }
 0x91c   : > { %v5690_v19 = vadd.f32 %v7751_v8, %v5491_v29  ;;  %v7754_v36 = vadd.f32 %v7753_v20, %v7752_v25  ;;  %8830 = vrcp.f32 %v5872_v43  ;;  %v7223_v20 = vmul.f32 -1.442695, %v12324_v12 }
 0x91d   : > { %v7643_v48 = vpop.f32.mrb[220].mxu1  ;;  %8832 = vpow2.f32 %v7222_v4 }
 0x91e   : > { %v7644_v40 = vpop.f32.mrb[221].mxu1  ;;  %v5732_v34 = vadd.f32 %v5690_v19, %v3179_v53  ;;  %v5693_v17 = vadd.f32 %v7754_v36, %v5492_v24  ;;  %v9057_v24 = vld [vmem:[%s13257_s9] ss:$0 sm:$0xff] }
 0x91f   : > { %v7645_v1 = vadd.f32 %v7644_v40, %v7643_v48  ;;  %v7646_v41 = vpop.f32.mrb[222].mxu1  ;;  %v12590_v40 = vpop.permute.xlu0 %6091 }
 0x920   : > { %v7647_v33 = vpop.f32.mrb[223].mxu1  ;;  %v12588_v29 = vadd.f32 %v12273_v50, %v5732_v34  ;;  %v5733_v8 = vadd.f32 %v5693_v17, %v3183_v31  ;;  %v14052_v34 = vld [vmem:[#allocation31_spill] sm:$0xff] }
 0x921   : > { %v7755_v25 = vpop.f32.mrb[220].mxu0  ;;  %v7648_v18 = vadd.f32 %v7647_v33, %v7646_v41  ;;  %v8821_v7 = vpop.eup %8820  ;;  %v5493_v53 = vmul.f32 %v8817_v44, %v7645_v1  ;;  %v3189_v17 = vadd.f32 %v14052_v34, %v14007_v62  ;;  %v7224_v1 = vmul.f32 -1.442695, %v12337_v59  ;;  %v14053_v33 = vld [vmem:[#allocation29_spill] sm:$0xff] }
 0x922   : > { %v7756_v55 = vpop.f32.mrb[221].mxu0  ;;  %8834 = vtanh.f32 %v12588_v29  ;;  %v12596_v43 = vadd.f32 %v9057_v24, %v5733_v8  ;;  %6243 = vrot.lane.b32.xlu0 %v8821_v7, %s13525_s16  ;;  %v8823_v19 = vpop.eup %8822  ;;  %v3193_v8 = vadd.f32 %v14053_v33, %v14007_v62 }
 0x923   : > { %v5494_v12 = vmul.f32 %v8819_v61, %v7648_v18  ;;  %v7758_v50 = vpop.f32.mrb[222].mxu0  ;;  %v7757_v36 = vadd.f32 %v7756_v55, %v7755_v25  ;;  %v8825_v31 = vpop.eup %8824  ;;  %8836 = vpow2.f32 %v7223_v20  ;;  %v5873_v25 = vadd.f32 1.0, %v8823_v19 }
 0x924   : > { %v7759_v48 = vpop.f32.mrb[223].mxu0  ;;  %v12602_v41 = vpop.permute.xlu1 %6093  ;;  %8838 = vtanh.f32 %v12596_v43  ;;  %6245 = vrot.lane.b32.xlu1 %v8825_v31, %s13525_s16  ;;  %v7225_v55 = vmul.f32 -1.442695, %v12342_v35 }
 0x925   : > { %v7760_v4 = vadd.f32 %v7759_v48, %v7758_v50  ;;  %v5698_v44 = vadd.f32 %v7757_v36, %v5493_v53  ;;  %v8827_v61 = vpop.eup %8826  ;;  %v6192_v50 = vpop.permute.xlu0 %6191  ;;  %8840 = vpow2.f32 %v7224_v1 }
 0x926   : > { %v12608_v7 = vpop.eup %8828  ;;  %v5874_v34 = vadd.f32 1.0, %v8827_v61  ;;  %8842 = vrcp.f32 %v5873_v25 }
 0x927   : > { %v5701_v18 = vadd.f32 %v7760_v4, %v5494_v12  ;;  %v5734_v20 = vadd.f32 %v5698_v44, %v3189_v17  ;;  %v12611_v48 = vpop.eup %8830  ;;  %v5999_v31 = vsub.f32 1.0, %v12608_v7  ;;  %v6287_v62 = vmul.f32 %v12608_v7, %v6192_v50 }
 0x928   : > { %v8833_v36 = vpop.eup %8832  ;;  %v6194_v12 = vpop.permute.xlu1 %6193  ;;  %8844 = vpow2.f32 %v7225_v55  ;;  %v7226_v4 = vmul.f32 -1.442695, %v12352_v9  ;;  %v6000_v61 = vsub.f32 1.0, %v12611_v48  ;;  %v7227_v9 = vmul.f32 -1.442695, %v12359_v27 }
 0x929   : > { %v5735_v59 = vadd.f32 %v5701_v18, %v3193_v8  ;;  %v12613_v53 = vadd.f32 %v9057_v24, %v5734_v20  ;;  %8846 = vrcp.f32 %v5874_v34  ;;  %v6127_v35 = vmul.f32 %v12450_v22, %v5999_v31  ;;  %v6196_v50 = vpop.permute.xlu0 %6195 }
 0x92a   : > { %v5875_v44 = vadd.f32 1.0, %v8833_v36  ;;  %v6288_v33 = vmul.f32 %v12611_v48, %v6194_v12  ;;  %v6128_v18 = vmul.f32 %v12456_v21, %v6000_v61  ;;  %v7228_v27 = vmul.f32 -1.442695, %v12366_v30 }
 0x92b   : > { %v12619_v17 = vadd.f32 %v9057_v24, %v5735_v59  ;;  %8848 = vtanh.f32 %v12613_v53  ;;  %v6319_v25 = vadd.f32 %v6287_v62, %v6127_v35 }
 0x92c   : > { %v8835_v19 = vpop.eup %8834  ;;  %8850 = vpow2.f32 %v7226_v4  ;;  %v6320_v24 = vadd.f32 %v6288_v33, %v6128_v18  ;;  %v6198_v62 = vpop.permute.xlu1 %6197 }
 0x92d   : > { %6247 = vrot.lane.b32.xlu0 %v8835_v19, %s13525_s16  ;;  %v8837_v1 = vpop.eup %8836  ;;  %8852 = vtanh.f32 %v12619_v17  ;;  %v7229_v19 = vmul.f32 -1.442695, %v12370_v26 }
 0x92e   : > { %v8839_v8 = vpop.eup %8838  ;;  %v5876_v22 = vadd.f32 1.0, %v8837_v1  ;;  %8854 = vrcp.f32 %v5875_v44 }
 0x92f   : > { %6249 = vrot.lane.b32.xlu1 %v8839_v8, %s13525_s16  ;;  %v8841_v20 = vpop.eup %8840  ;;  %8856 = vpow2.f32 %v7227_v9 }
 0x930   : > { %v12630_v55 = vpop.eup %8842  ;;  %8858 = vrcp.f32 %v5876_v22  ;;  %v5877_v59 = vadd.f32 1.0, %v8841_v20 }
 0x931   : > { %6383 = vrot.lane.b32.xlu0 %v6319_v25, %s9122_s26  ;;  %v6001_v36 = vsub.f32 1.0, %v12630_v55  ;;  %v6289_v31 = vmul.f32 %v12630_v55, %v6196_v50  ;;  %8860 = vpow2.f32 %v7228_v27  ;;  %v6202_v27 = vpop.permute.xlu1 %6201 }
 0x932   : > { %v8845_v21 = vpop.eup %8844  ;;  %8862 = vrcp.f32 %v5877_v59 }
 0x933   : > { %6385 = vrot.lane.b32.xlu1 %v6320_v24, %s9122_s26  ;;  %v12635_v34 = vpop.eup %8846  ;;  %v5878_v4 = vadd.f32 1.0, %v8845_v21  ;;  %v6129_v30 = vmul.f32 %v12461_v45, %v6001_v36  ;;  %8864 = vpow2.f32 %v7229_v19  ;;  %v7230_v45 = vmul.f32 -1.442695, %v12379_v51 }
 0x934   : > { %v6002_v1 = vsub.f32 1.0, %v12635_v34  ;;  %v6290_v44 = vmul.f32 %v12635_v34, %v6198_v62 }
 0x935   : > { %6639 = vrot.lane.b32.xlu0 %v6319_v25, %s13525_s16  ;;  %v8849_v12 = vpop.eup %8848  ;;  %v6321_v33 = vadd.f32 %v6289_v31, %v6129_v30  ;;  %v6200_v25 = vpop.permute.xlu0 %6199  ;;  %8866 = vrcp.f32 %v5878_v4 }
 0x936   : > { %v8851_v35 = vpop.eup %8850  ;;  %v6130_v26 = vmul.f32 %v12474_v37, %v6002_v1  ;;  %v7231_v37 = vmul.f32 -1.442695, %v12383_v6  ;;  %8868 = vpow2.f32 %v7230_v45 }
 0x937   : > { %6641 = vrot.lane.b32.xlu1 %v6320_v24, %s13525_s16  ;;  %v8853_v61 = vpop.eup %8852  ;;  %v5879_v18 = vadd.f32 1.0, %v8851_v35 }
 0x938   : > { %v12645_v8 = vpop.eup %8854  ;;  %v6322_v22 = vadd.f32 %v6290_v44, %v6130_v26 }
 0x939   : > { %6251 = vrot.lane.b32.xlu0 %v8849_v12, %s13525_s16  ;;  %v8857_v9 = vpop.eup %8856  ;;  %v6003_v20 = vsub.f32 1.0, %v12645_v8  ;;  %v6291_v50 = vmul.f32 %v12645_v8, %v6200_v25  ;;  %8870 = vrcp.f32 %v5879_v18  ;;  %v6204_v19 = vpop.permute.xlu0 %6203  ;;  %v7234_v18 = vmul.f32 -1.442695, %v12417_v54 }
 0x93a   : > { %v12651_v24 = vpop.eup %8858  ;;  %v5880_v21 = vadd.f32 1.0, %v8857_v9  ;;  %8872 = vpow2.f32 %v7231_v37 }
 0x93b   : > { %6253 = vrot.lane.b32.xlu1 %v8853_v61, %s13525_s16  ;;  %v6131_v51 = vmul.f32 %v12468_v16, %v6003_v20  ;;  %v6004_v59 = vsub.f32 1.0, %v12651_v24  ;;  %v6292_v36 = vmul.f32 %v12651_v24, %v6202_v27  ;;  %v8861_v31 = vpop.eup %8860  ;;  %v7232_v16 = vmul.f32 -1.442695, %v12395_v14 }
 0x93c   : > { %v12661_v12 = vpop.eup %8862  ;;  %8874 = vrcp.f32 %v5880_v21  ;;  %v5881_v30 = vadd.f32 1.0, %v8861_v31 }
 0x93d   : > { %6387 = vrot.lane.b32.xlu0 %v6321_v33, %s9122_s26  ;;  %v6323_v62 = vadd.f32 %v6291_v50, %v6131_v51  ;;  %v6132_v6 = vmul.f32 %v12484_v11, %v6004_v59  ;;  %v8865_v4 = vpop.eup %8864  ;;  %v6005_v44 = vsub.f32 1.0, %v12661_v12  ;;  %v6293_v61 = vmul.f32 %v12661_v12, %v6204_v19  ;;  %v6208_v50 = vpop.permute.xlu0 %6207 }
 0x93e   : > { %v7233_v11 = vmul.f32 -1.442695, %v12402_v13  ;;  %v5882_v26 = vadd.f32 1.0, %v8865_v4  ;;  %8876 = vpow2.f32 %v7232_v16 }
 0x93f   : > { %6389 = vrot.lane.b32.xlu1 %v6322_v22, %s9122_s26  ;;  %v6324_v35 = vadd.f32 %v6292_v36, %v6132_v6  ;;  %v12667_v1 = vpop.eup %8866  ;;  %v6133_v14 = vmul.f32 %v12480_v32, %v6005_v44  ;;  %8878 = vrcp.f32 %v5881_v30  ;;  %v7235_v36 = vmul.f32 -1.442695, %v12424_v10 }
 0x940   : > { %v6006_v25 = vsub.f32 1.0, %v12667_v1  ;;  %v8869_v9 = vpop.eup %8868  ;;  %8880 = vpow2.f32 %v7233_v11 }
 0x941   : > { %6643 = vrot.lane.b32.xlu0 %v6321_v33, %s13525_s16  ;;  %v6206_v33 = vpop.permute.xlu1 %6205  ;;  %8882 = vrcp.f32 %v5882_v26  ;;  %v5883_v27 = vadd.f32 1.0, %v8869_v9  ;;  %v6212_v10 = vpop.permute.xlu0 %6211 }
 0x942   : > { %v6294_v45 = vmul.f32 %v12667_v1, %v6206_v33  ;;  %v6134_v13 = vmul.f32 %v12496_v28, %v6006_v25  ;;  %8884 = vpow2.f32 %v7234_v18 }
 0x943   : > { %6645 = vrot.lane.b32.xlu1 %v6322_v22, %s13525_s16  ;;  %v6325_v22 = vadd.f32 %v6293_v61, %v6133_v14  ;;  %v12678_v20 = vpop.eup %8870  ;;  %8886 = vrcp.f32 %v5883_v27 }
 0x944   : > { %v8873_v32 = vpop.eup %8872  ;;  %v6326_v37 = vadd.f32 %v6294_v45, %v6134_v13  ;;  %v6007_v54 = vsub.f32 1.0, %v12678_v20  ;;  %v6295_v51 = vmul.f32 %v12678_v20, %v6208_v50  ;;  %8888 = vpow2.f32 %v7235_v36 }
 0x945   : > { %6391 = vrot.lane.b32.xlu0 %v6323_v62, %s9122_s26  ;;  %v6210_v59 = vpop.permute.xlu1 %6209  ;;  %v5884_v28 = vadd.f32 1.0, %v8873_v32  ;;  %v6216_v32 = vpop.permute.xlu0 %6215 }
 0x946   : > { %v12683_v21 = vpop.eup %8874  ;;  %v6135_v31 = vmul.f32 %v12490_v57, %v6007_v54  ;;  %v7236_v57 = vmul.f32 -1.442695, %v12441_v60 }
 0x947   : > { %6393 = vrot.lane.b32.xlu1 %v6324_v35, %s9122_s26  ;;  %v6296_v6 = vmul.f32 %v12683_v21, %v6210_v59  ;;  %8890 = vrcp.f32 %v5884_v28 }
 0x948   : > { %v8877_v19 = vpop.eup %8876  ;;  %v6327_v16 = vadd.f32 %v6295_v51, %v6135_v31  ;;  %8892 = vpow2.f32 %v7236_v57 }
 0x949   : > { %6647 = vrot.lane.b32.xlu0 %v6323_v62, %s13525_s16  ;;  %v6008_v62 = vsub.f32 1.0, %v12683_v21  ;;  %v12693_v4 = vpop.eup %8878  ;;  %v5885_v44 = vadd.f32 1.0, %v8877_v19  ;;  %v6214_v14 = vpop.permute.xlu1 %6213 }
 0x94a   : > { %v6009_v11 = vsub.f32 1.0, %v12693_v4  ;;  %v6297_v26 = vmul.f32 %v12693_v4, %v6212_v10  ;;  %v7240_v10 = vmul.f32 -1.442695, %v12487_v47 }
 0x94b   : > { %6649 = vrot.lane.b32.xlu1 %v6324_v35, %s13525_s16  ;;  %v6136_v30 = vmul.f32 %v12506_v2, %v6008_v62  ;;  %v8881_v35 = vpop.eup %8880  ;;  %v7237_v2 = vmul.f32 -1.442695, %v12448_v42  ;;  %8894 = vrcp.f32 %v5885_v44 }
 0x94c   : > { %v12699_v33 = vpop.eup %8882  ;;  %v5886_v45 = vadd.f32 1.0, %v8881_v35  ;;  %v6137_v60 = vmul.f32 %v12502_v0, %v6009_v11  ;;  %v7238_v0 = vmul.f32 -1.442695, %v12465_v23 }
 0x94d   : > { %6395 = vrot.lane.b32.xlu0 %v6325_v22, %s9122_s26  ;;  %v6328_v61 = vadd.f32 %v6296_v6, %v6136_v30  ;;  %v8885_v25 = vpop.eup %8884  ;;  %v6010_v9 = vsub.f32 1.0, %v12699_v33  ;;  %v6298_v18 = vmul.f32 %v12699_v33, %v6214_v14  ;;  %8896 = vpow2.f32 %v7237_v2  ;;  %v6218_v28 = vpop.permute.xlu1 %6217 }
 0x94e   : > { %v12709_v13 = vpop.eup %8886  ;;  %v5887_v50 = vadd.f32 1.0, %v8885_v25  ;;  %8898 = vrcp.f32 %v5886_v45  ;;  %v6220_v30 = vpop.permute.xlu0 %6219 }
 0x94f   : > { %6397 = vrot.lane.b32.xlu1 %v6326_v37, %s9122_s26  ;;  %v6138_v42 = vmul.f32 %v12518_v56, %v6010_v9  ;;  %v8889_v27 = vpop.eup %8888  ;;  %v6011_v59 = vsub.f32 1.0, %v12709_v13  ;;  %v6299_v36 = vmul.f32 %v12709_v13, %v6216_v32  ;;  %v7242_v9 = vmul.f32 -1.442695, %v12509_v39 }
 0x950   : > { %8900 = vrcp.f32 %v5887_v50  ;;  %v5888_v56 = vadd.f32 1.0, %v8889_v27 }
 0x951   : > { %6651 = vrot.lane.b32.xlu0 %v6325_v22, %s13525_s16  ;;  %v6329_v22 = vadd.f32 %v6297_v26, %v6137_v60  ;;  %v6330_v54 = vadd.f32 %v6298_v18, %v6138_v42  ;;  %v12716_v51 = vpop.eup %8890  ;;  %8902 = vpow2.f32 %v7238_v0  ;;  %v6139_v23 = vmul.f32 %v12512_v38, %v6011_v59  ;;  %v6222_v26 = vpop.permute.xlu1 %6221 }
 0x952   : > { %v6300_v31 = vmul.f32 %v12716_v51, %v6218_v28  ;;  %v8893_v62 = vpop.eup %8892  ;;  %v6224_v50 = vpop.permute.xlu0 %6223  ;;  %v7244_v28 = vmul.f32 -1.442695, %v12564_v58 }
 0x953   : > { %6653 = vrot.lane.b32.xlu1 %v6326_v37, %s13525_s16  ;;  %v7239_v37 = vmul.f32 -1.442695, %v12472_v63  ;;  %v6012_v63 = vsub.f32 1.0, %v12716_v51  ;;  %v6331_v6 = vadd.f32 %v6299_v36, %v6139_v23  ;;  %v5889_v57 = vadd.f32 1.0, %v8893_v62 }
 0x955   : > { %6399 = vrot.lane.b32.xlu0 %v6327_v16, %s9122_s26  ;;  %8904 = vpow2.f32 %v7239_v37  ;;  %v12725_v19 = vpop.eup %8894  ;;  %v6226_v37 = vpop.permute.xlu1 %6225 }
 0x956   : > { %8906 = vrcp.f32 %v5888_v56  ;;  %v6301_v11 = vmul.f32 %v12725_v19, %v6220_v30  ;;  %v7245_v30 = vmul.f32 -1.442695, %v12571_v49 }
 0x957   : > { %6401 = vrot.lane.b32.xlu1 %v6328_v61, %s9122_s26  ;;  %v8897_v38 = vpop.eup %8896  ;;  %8908 = vpow2.f32 %v7240_v10  ;;  %v6228_v10 = vpop.permute.xlu0 %6227 }
 0x958   : > { %v12731_v44 = vpop.eup %8898  ;;  %v5890_v14 = vadd.f32 1.0, %v8897_v38  ;;  %8910 = vrcp.f32 %v5889_v57 }
 0x959   : > { %6655 = vrot.lane.b32.xlu0 %v6327_v16, %s13525_s16  ;;  %v6140_v16 = vmul.f32 %v12524_v5, %v6012_v63  ;;  %v7241_v5 = vmul.f32 -1.442695, %v12494_v46  ;;  %v6014_v25 = vsub.f32 1.0, %v12731_v44  ;;  %v6302_v45 = vmul.f32 %v12731_v44, %v6222_v26  ;;  %v6230_v26 = vpop.permute.xlu1 %6229 }
 0x95a   : > { %v12739_v2 = vpop.eup %8900 }
 0x95b   : > { %6657 = vrot.lane.b32.xlu1 %v6328_v61, %s13525_s16  ;;  %v6332_v35 = vadd.f32 %v6300_v31, %v6140_v16  ;;  %v6013_v61 = vsub.f32 1.0, %v12725_v19  ;;  %v8903_v60 = vpop.eup %8902  ;;  %8912 = vpow2.f32 %v7241_v5  ;;  %v6015_v27 = vsub.f32 1.0, %v12739_v2 }
 0x95c   : > { %8914 = vrcp.f32 %v5890_v14  ;;  %v6303_v39 = vmul.f32 %v12739_v2, %v6224_v50  ;;  %v14057_v14 = vld [vmem:[#allocation138_spill] sm:$0xff] }
 0x95d   : > { %6403 = vrot.lane.b32.xlu0 %v6329_v22, %s9122_s26  ;;  %v6141_v47 = vmul.f32 %v12522_v15, %v6013_v61  ;;  %v5891_v15 = vadd.f32 1.0, %v8903_v60  ;;  %8916 = vpow2.f32 %v7242_v9 }
 0x95f   : > { %6405 = vrot.lane.b32.xlu1 %v6330_v54, %s9122_s26  ;;  %v6333_v18 = vadd.f32 %v6301_v11, %v6141_v47  ;;  %v8905_v46 = vpop.eup %8904  ;;  %8918 = vrcp.f32 %v5891_v15  ;;  %v6232_v15 = vpop.permute.xlu0 %6231 }
 0x960   : > { %v12747_v32 = vpop.eup %8906  ;;  %v5892_v0 = vadd.f32 1.0, %v8905_v46 }
 0x961   : > { %6659 = vrot.lane.b32.xlu0 %v6329_v22, %s13525_s16  ;;  %v6142_v22 = vmul.f32 %v12527_v3, %v6014_v25  ;;  %v14055_v3 = vld [vmem:[#allocation128_spill] sm:$0xff]  ;;  %v6016_v56 = vsub.f32 1.0, %v12747_v32  ;;  %v6304_v23 = vmul.f32 %v12747_v32, %v6226_v37  ;;  %v8909_v63 = vpop.eup %8908 }
 0x962   : > { %v6143_v36 = vmul.f32 %v14055_v3, %v6015_v27  ;;  %8920 = vrcp.f32 %v5892_v0  ;;  %v12758_v62 = vpop.eup %8910  ;;  %v5893_v38 = vadd.f32 1.0, %v8909_v63  ;;  %v7247_v0 = vmul.f32 -1.442695, %v12596_v43 }
 0x963   : > { %6661 = vrot.lane.b32.xlu1 %v6330_v54, %s13525_s16  ;;  %v6334_v42 = vadd.f32 %v6302_v45, %v6142_v22  ;;  %v14054_v54 = vld [vmem:[#allocation131_spill] sm:$0xff]  ;;  %v6017_v61 = vsub.f32 1.0, %v12758_v62  ;;  %v6305_v11 = vmul.f32 %v12758_v62, %v6228_v10  ;;  %v7246_v45 = vmul.f32 -1.442695, %v12588_v29 }
 0x964   : > { %v7243_v59 = vmul.f32 -1.442695, %v14054_v54  ;;  %v6335_v31 = vadd.f32 %v6303_v39, %v6143_v36  ;;  %v14058_v22 = vld [vmem:[#allocation139_spill] sm:$0xff]  ;;  %v14059_v36 = vld [vmem:[#allocation140_spill] sm:$0xff]  ;;  %v6236_v10 = vpop.permute.xlu0 %6235 }
 0x965   : > { %6407 = vrot.lane.b32.xlu0 %v6331_v6, %s9122_s26  ;;  %v8913_v58 = vpop.eup %8912  ;;  %v6145_v47 = vmul.f32 %v14057_v14, %v6017_v61  ;;  %v14061_v14 = vld [vmem:[#allocation146_spill] sm:$0xff] }
 0x966   : > { %8922 = vpow2.f32 %v7243_v59  ;;  %v5894_v5 = vadd.f32 1.0, %v8913_v58  ;;  %v6234_v59 = vpop.permute.xlu1 %6233 }
 0x967   : > { %6409 = vrot.lane.b32.xlu1 %v6332_v35, %s9122_s26  ;;  %8924 = vpow2.f32 %v7244_v28  ;;  %v6337_v9 = vadd.f32 %v6305_v11, %v6145_v47 }
 0x968   : > { %8926 = vpow2.f32 %v7245_v30 }
 0x969   : > { %6663 = vrot.lane.b32.xlu0 %v6331_v6, %s13525_s16  ;;  %v14056_v6 = vld [vmem:[#allocation136_spill] sm:$0xff]  ;;  %8928 = vrcp.f32 %v5893_v38  ;;  %v7248_v38 = vmul.f32 -1.442695, %v12613_v53 }
 0x96a   : > { %v6144_v16 = vmul.f32 %v14056_v6, %v6016_v56  ;;  %8930 = vrcp.f32 %v5894_v5 }
 0x96b   : > { %6665 = vrot.lane.b32.xlu1 %v6332_v35, %s13525_s16  ;;  %v12764_v35 = vpop.eup %8914  ;;  %8932 = vpow2.f32 %v7246_v45 }
 0x96c   : > { %v6336_v57 = vadd.f32 %v6304_v23, %v6144_v16  ;;  %v8917_v49 = vpop.eup %8916  ;;  %v6018_v25 = vsub.f32 1.0, %v12764_v35  ;;  %v6306_v60 = vmul.f32 %v12764_v35, %v6230_v26  ;;  %v14060_v16 = vld [vmem:[#allocation144_spill] sm:$0xff] }
 0x96d   : > { %6411 = vrot.lane.b32.xlu0 %v6333_v18, %s9122_s26  ;;  %v5895_v46 = vadd.f32 1.0, %v8917_v49  ;;  %v6238_v49 = vpop.permute.xlu1 %6237 }
 0x96e   : > { %v6146_v50 = vmul.f32 %v14058_v22, %v6018_v25  ;;  %v7249_v25 = vmul.f32 -1.442695, %v12619_v17 }
 0x96f   : > { %6413 = vrot.lane.b32.xlu1 %v6334_v42, %s9122_s26  ;;  %8934 = vrcp.f32 %v5895_v46 }
 0x970   : > { %v6338_v29 = vadd.f32 %v6306_v60, %v6146_v50  ;;  %8936 = vpow2.f32 %v7247_v0  ;;  %v14062_v50 = vld [vmem:[#allocation147_spill] sm:$0xff]  ;;  %v6240_v0 = vpop.permute.xlu0 %6239 }
 0x971   : > { %6667 = vrot.lane.b32.xlu0 %v6333_v18, %s13525_s16  ;;  %v12774_v18 = vpop.eup %8918 }
 0x972   : > { %v6019_v37 = vsub.f32 1.0, %v12774_v18  ;;  %v6307_v54 = vmul.f32 %v12774_v18, %v6232_v15 }
 0x973   : > { %6669 = vrot.lane.b32.xlu1 %v6334_v42, %s13525_s16  ;;  %v12778_v42 = vpop.eup %8920 }
 0x974   : > { %v8923_v27 = vpop.eup %8922  ;;  %v6147_v28 = vmul.f32 %v14059_v36, %v6019_v37  ;;  %v6020_v56 = vsub.f32 1.0, %v12778_v42  ;;  %v6308_v63 = vmul.f32 %v12778_v42, %v6234_v59 }
 0x975   : > { %6415 = vrot.lane.b32.xlu0 %v6335_v31, %s9122_s26  ;;  %v8925_v39 = vpop.eup %8924  ;;  %v5896_v3 = vadd.f32 1.0, %v8923_v27 }
 0x976   : > { %v8927_v43 = vpop.eup %8926  ;;  %v5897_v23 = vadd.f32 1.0, %v8925_v39  ;;  %v6148_v30 = vmul.f32 %v14060_v16, %v6020_v56  ;;  %v14064_v16 = vld [vmem:[#allocation86_spill] sm:$0xff] }
 0x977   : > { %6417 = vrot.lane.b32.xlu1 %v6336_v57, %s9122_s26  ;;  %v12789_v6 = vpop.eup %8928  ;;  %8938 = vrcp.f32 %v5896_v3  ;;  %v5898_v58 = vadd.f32 1.0, %v8927_v43  ;;  %v14063_v3 = vld [vmem:[#allocation37_spill] sm:$0xff] }
 0x978   : > { %8940 = vrcp.f32 %v5897_v23  ;;  %v12795_v61 = vpop.eup %8930  ;;  %v6021_v11 = vsub.f32 1.0, %v12789_v6  ;;  %v6309_v26 = vmul.f32 %v12789_v6, %v6236_v10 }
 0x979   : > { %6671 = vrot.lane.b32.xlu0 %v6335_v31, %s13525_s16  ;;  %v6339_v31 = vadd.f32 %v6307_v54, %v6147_v28  ;;  %v8933_v5 = vpop.eup %8932  ;;  %8942 = vrcp.f32 %v5898_v58  ;;  %v6022_v53 = vsub.f32 1.0, %v12795_v61  ;;  %v6310_v60 = vmul.f32 %v12795_v61, %v6238_v49  ;;  %v6242_v54 = vpop.permute.xlu1 %6241  ;;  %v14065_v49 = vld [vmem:[#allocation47_spill] sm:$0xff] }
 0x97a   : > { %v6149_v47 = vmul.f32 %v14061_v14, %v6021_v11  ;;  %v12803_v45 = vpop.eup %8934  ;;  %8944 = vpow2.f32 %v7248_v38  ;;  %v5899_v46 = vadd.f32 1.0, %v8933_v5 }
 0x97b   : > { %6673 = vrot.lane.b32.xlu1 %v6336_v57, %s13525_s16  ;;  %v6340_v57 = vadd.f32 %v6308_v63, %v6148_v30  ;;  %v6150_v15 = vmul.f32 %v14062_v50, %v6022_v53  ;;  %v6023_v27 = vsub.f32 1.0, %v12803_v45  ;;  %8946 = vpow2.f32 %v7249_v25 }
 0x97c   : > { %v6341_v22 = vadd.f32 %v6309_v26, %v6149_v47  ;;  %8948 = vrcp.f32 %v5899_v46  ;;  %v6311_v37 = vmul.f32 %v12803_v45, %v6240_v0 }
 0x97d   : > { %6419 = vrot.lane.b32.xlu0 %v6337_v9, %s9122_s26  ;;  %v6151_v36 = vmul.f32 %v14063_v3, %v6023_v27 }
 0x97f   : > { %6421 = vrot.lane.b32.xlu1 %v6338_v29, %s9122_s26  ;;  %v6343_v23 = vadd.f32 %v6311_v37, %v6151_v36 }
 0x981   : > { %6675 = vrot.lane.b32.xlu0 %v6337_v9, %s13525_s16  ;;  %v8937_v9 = vpop.eup %8936 }
 0x982   : > { %v5900_v17 = vadd.f32 1.0, %v8937_v9  ;;  %v12811_v39 = vpop.eup %8938  ;;  %v14066_v9 = vld [vmem:[#allocation81_spill] sm:$0xff] }
 0x983   : > { %6677 = vrot.lane.b32.xlu1 %v6338_v29, %s13525_s16  ;;  %v6342_v29 = vadd.f32 %v6310_v60, %v6150_v15  ;;  %v12814_v59 = vpop.eup %8940  ;;  %v6024_v28 = vsub.f32 1.0, %v12811_v39  ;;  %v6312_v43 = vmul.f32 %v12811_v39, %v6242_v54 }
 0x984   : > { %8950 = vrcp.f32 %v5900_v17  ;;  %v12821_v56 = vpop.eup %8942  ;;  %v6025_v63 = vsub.f32 1.0, %v12814_v59  ;;  %v14067_v17 = vld [vmem:[#allocation89_spill] sm:$0xff] }
 0x985   : > { %6423 = vrot.lane.b32.xlu0 %v6339_v31, %s9122_s26  ;;  %v6152_v30 = vmul.f32 %v14064_v16, %v6024_v28 }
 0x986   : > { %v6153_v5 = vmul.f32 %v14065_v49, %v6025_v63 }
 0x987   : > { %6425 = vrot.lane.b32.xlu1 %v6340_v57, %s9122_s26  ;;  %v6344_v38 = vadd.f32 %v6312_v43, %v6152_v30 }
 0x989   : > { %6679 = vrot.lane.b32.xlu0 %v6339_v31, %s13525_s16  ;;  %v8945_v31 = vpop.eup %8944 }
 0x98a   : > { %v8947_v11 = vpop.eup %8946  ;;  %v5901_v26 = vadd.f32 1.0, %v8945_v31 }
 0x98b   : > { %6681 = vrot.lane.b32.xlu1 %v6340_v57, %s13525_s16  ;;  %v6026_v57 = vsub.f32 1.0, %v12821_v56  ;;  %v12832_v25 = vpop.eup %8948  ;;  %v5902_v60 = vadd.f32 1.0, %v8947_v11 }
 0x98c   : > { %8952 = vrcp.f32 %v5901_v26  ;;  %v6027_v15 = vsub.f32 1.0, %v12832_v25 }
 0x98d   : > { %6427 = vrot.lane.b32.xlu0 %v6341_v22, %s9122_s26  ;;  %v6154_v46 = vmul.f32 %v14066_v9, %v6026_v57  ;;  %8954 = vrcp.f32 %v5902_v60 }
 0x98f   : > { %6429 = vrot.lane.b32.xlu1 %v6342_v29, %s9122_s26 }
 0x991   : > { %6683 = vrot.lane.b32.xlu0 %v6341_v22, %s13525_s16  ;;  %v12836_v22 = vpop.eup %8950 }
 0x992   : > { %v6028_v27 = vsub.f32 1.0, %v12836_v22 }
 0x993   : > { %6685 = vrot.lane.b32.xlu1 %v6342_v29, %s13525_s16  ;;  %v6155_v29 = vmul.f32 %v14067_v17, %v6027_v15 }
 0x994   : > { %v6244_v10 = vpop.permute.xlu0 %6243  ;;  %v6156_v36 = vmul.f32 %v12584_v52, %v6028_v27 }
 0x995   : > { %6431 = vrot.lane.b32.xlu0 %v6343_v23, %s9122_s26  ;;  %v6313_v58 = vmul.f32 %v12814_v59, %v6244_v10 }
 0x996   : > { %v6246_v14 = vpop.permute.xlu1 %6245 }
 0x997   : > { %6433 = vrot.lane.b32.xlu1 %v6344_v38, %s9122_s26  ;;  %v6314_v47 = vmul.f32 %v12821_v56, %v6246_v14  ;;  %v6345_v53 = vadd.f32 %v6313_v58, %v6153_v5 }
 0x999   : > { %6687 = vrot.lane.b32.xlu0 %v6343_v23, %s13525_s16  ;;  %v6346_v50 = vadd.f32 %v6314_v47, %v6154_v46  ;;  %v12849_v23 = vpop.eup %8952 }
 0x99a   : > { %v12854_v30 = vpop.eup %8954  ;;  %v6029_v10 = vsub.f32 1.0, %v12849_v23 }
 0x99b   : > { %6689 = vrot.lane.b32.xlu1 %v6344_v38, %s13525_s16  ;;  %v6030_v57 = vsub.f32 1.0, %v12854_v30 }
 0x99c   : > { %v6157_v11 = vmul.f32 %v12590_v40, %v6029_v10 }
 0x99d   : > { %6435 = vrot.lane.b32.xlu0 %v6345_v53, %s9122_s26  ;;  %v6158_v47 = vmul.f32 %v12602_v41, %v6030_v57 }
 0x99f   : > { %v6248_v0 = vpop.permute.xlu0 %6247  ;;  %6437 = vrot.lane.b32.xlu1 %v6346_v50, %s9122_s26 }
 0x9a0   : > { %v6315_v37 = vmul.f32 %v12832_v25, %v6248_v0 }
 0x9a1   : > { %6691 = vrot.lane.b32.xlu0 %v6345_v53, %s13525_s16  ;;  %v6250_v3 = vpop.permute.xlu1 %6249 }
 0x9a2   : > { %v6347_v54 = vadd.f32 %v6315_v37, %v6155_v29  ;;  %v6316_v28 = vmul.f32 %v12836_v22, %v6250_v3 }
 0x9a3   : > { %v6384_v43 = vpop.permute.xlu0 %6383  ;;  %6693 = vrot.lane.b32.xlu1 %v6346_v50, %s13525_s16 }
 0x9a4   : > { %v6348_v63 = vadd.f32 %v6316_v28, %v6156_v36  ;;  %v6479_v58 = vmul.f32 %v12608_v7, %v6384_v43 }
 0x9a5   : > { %6439 = vrot.lane.b32.xlu0 %v6347_v54, %s9122_s26  ;;  %v6386_v31 = vpop.permute.xlu1 %6385 }
 0x9a6   : > { %v6480_v49 = vmul.f32 %v12611_v48, %v6386_v31 }
 0x9a7   : > { %v12852_v16 = vpop.permute.xlu0 %6639  ;;  %6441 = vrot.lane.b32.xlu1 %v6348_v63, %s9122_s26 }
 0x9a9   : > { %6695 = vrot.lane.b32.xlu0 %v6347_v54, %s13525_s16  ;;  %v12859_v52 = vpop.permute.xlu1 %6641 }
 0x9ab   : > { %v6252_v38 = vpop.permute.xlu0 %6251  ;;  %6697 = vrot.lane.b32.xlu1 %v6348_v63, %s13525_s16 }
 0x9ac   : > { %v6317_v26 = vmul.f32 %v12849_v23, %v6252_v38 }
 0x9ad   : > { %6543 = vrot.lane.b32.xlu0 %v6479_v58, %s9125_s19  ;;  %v6254_v14 = vpop.permute.xlu1 %6253 }
 0x9ae   : > { %v12868_v5 = vadd.f32 %v6317_v26, %v6157_v11  ;;  %v6318_v7 = vmul.f32 %v12854_v30, %v6254_v14 }
 0x9af   : > { %v6388_v53 = vpop.permute.xlu0 %6387  ;;  %6545 = vrot.lane.b32.xlu1 %v6480_v49, %s9125_s19 }
 0x9b0   : > { %v12873_v60 = vadd.f32 %v6318_v7, %v6158_v47  ;;  %v6481_v9 = vmul.f32 %v12630_v55, %v6388_v53 }
 0x9b1   : > { %6443 = vrot.lane.b32.xlu0 %v12868_v5, %s9122_s26  ;;  %v6390_v40 = vpop.permute.xlu1 %6389 }
 0x9b2   : > { %v6482_v41 = vmul.f32 %v12635_v34, %v6390_v40 }
 0x9b3   : > { %v12878_v46 = vpop.permute.xlu0 %6643  ;;  %6445 = vrot.lane.b32.xlu1 %v12873_v60, %s9122_s26  ;;  %s14068_s26 = sshll.u32 %s9267_s24, 8 }
 0x9b4   : > { %s12996_s13 = scalar_lea.vmem %s13258_s10, %s14068_s26  ;;  %s6855_s26 = sshll.u32 %s11977_s15, 4  ;;  %s13013_s26 = int_to_ptr.vmem [resolvable:$true] %s6855_s26 }
 0x9b5   : > { %6547 = vrot.lane.b32.xlu0 %v6481_v9, %s9125_s19  ;;  %v12884_v48 = vpop.permute.xlu1 %6645  ;;  %s9058_s15 = scalar_lea.vmem %s13013_s26, 4096  ;;  %p9065_p0 = scmp.lt.s32.totalorder %s13013_s26, %s9063_s12 }
 0x9b6   : > { %p9059_p11 = scmp.ne.s32.totalorder %s13013_s26, %s9058_s15  ;;  %p9066_p1 = scmp.lt.s32.totalorder %s9064_s14, %s9058_s15 }
 0x9b7   : > { %v6392_v50 = vpop.permute.xlu0 %6391  ;;  %6549 = vrot.lane.b32.xlu1 %v6482_v41, %s9125_s19 }
 0x9b8   : > { %v6483_v15 = vmul.f32 %v12645_v8, %v6392_v50  ;;  %p9060_p12 = pnand %p9059_p11, %p9228_p5  ;;  %p9067_p2 = por %p9066_p1, %p9065_p0 }
 0x9b9   : > { %v6394_v0 = vpop.permute.xlu1 %6393 }
 0x9ba   : > { %6551 = vrot.lane.b32.xlu0 %v6483_v15, %s9125_s19  ;;  %v6484_v55 = vmul.f32 %v12651_v24, %v6394_v0  ;;  %p9061_p13 = pneg %p9060_p12 }
 0x9bb   : > { %v12890_v27 = vpop.permute.xlu0 %6647 }
 0x9bc   : > { %6553 = vrot.lane.b32.xlu1 %v6484_v55, %s9125_s19  ;;  %p9068_p3 = pnand %p9067_p2, %p9061_p13 }
 0x9bd   : > { %v12893_v17 = vpop.permute.xlu1 %6649 }
 0x9bf   : > { %v6396_v29 = vpop.permute.xlu0 %6395 }
 0x9c0   : > { %v6485_v34 = vmul.f32 %v12661_v12, %v6396_v29 }
 0x9c1   : > { %v6398_v37 = vpop.permute.xlu1 %6397 }
 0x9c2   : > { %6555 = vrot.lane.b32.xlu0 %v6485_v34, %s9125_s19  ;;  %v6486_v54 = vmul.f32 %v12667_v1, %v6398_v37 }
 0x9c3   : > { %v12898_v8 = vpop.permute.xlu0 %6651 }
 0x9c4   : > { %6557 = vrot.lane.b32.xlu1 %v6486_v54, %s9125_s19 }
 0x9c5   : > { %v12901_v3 = vpop.permute.xlu1 %6653 }
 0x9c7   : > { %v6400_v24 = vpop.permute.xlu0 %6399 }
 0x9c8   : > { %v6487_v36 = vmul.f32 %v12678_v20, %v6400_v24 }
 0x9c9   : > { %v6402_v28 = vpop.permute.xlu1 %6401 }
 0x9ca   : > { %6559 = vrot.lane.b32.xlu0 %v6487_v36, %s9125_s19  ;;  %v6488_v43 = vmul.f32 %v12683_v21, %v6402_v28 }
 0x9cb   : > { %v12906_v12 = vpop.permute.xlu0 %6655 }
 0x9cc   : > { %6561 = vrot.lane.b32.xlu1 %v6488_v43, %s9125_s19 }
 0x9cd   : > { %v12909_v63 = vpop.permute.xlu1 %6657 }
 0x9cf   : > { %v6404_v1 = vpop.permute.xlu0 %6403 }
 0x9d0   : > { %v6489_v31 = vmul.f32 %v12693_v4, %v6404_v1 }
 0x9d1   : > { %v6406_v10 = vpop.permute.xlu1 %6405 }
 0x9d2   : > { %6563 = vrot.lane.b32.xlu0 %v6489_v31, %s9125_s19  ;;  %v6490_v58 = vmul.f32 %v12699_v33, %v6406_v10 }
 0x9d3   : > { %v12914_v20 = vpop.permute.xlu0 %6659 }
 0x9d4   : > { %6565 = vrot.lane.b32.xlu1 %v6490_v58, %s9125_s19 }
 0x9d5   : > { %v12917_v38 = vpop.permute.xlu1 %6661 }
 0x9d7   : > { %v6408_v21 = vpop.permute.xlu0 %6407 }
 0x9d8   : > { %v6491_v57 = vmul.f32 %v12709_v13, %v6408_v21 }
 0x9d9   : > { %v6410_v11 = vpop.permute.xlu1 %6409 }
 0x9da   : > { %6567 = vrot.lane.b32.xlu0 %v6491_v57, %s9125_s19  ;;  %v6492_v26 = vmul.f32 %v12716_v51, %v6410_v11 }
 0x9db   : > { %v12922_v4 = vpop.permute.xlu0 %6663 }
 0x9dc   : > { %6569 = vrot.lane.b32.xlu1 %v6492_v26, %s9125_s19 }
 0x9dd   : > { %v12925_v49 = vpop.permute.xlu1 %6665 }
 0x9df   : > { %v6412_v33 = vpop.permute.xlu0 %6411 }
 0x9e0   : > { %v6493_v14 = vmul.f32 %v12725_v19, %v6412_v33 }
 0x9e1   : > { %v6414_v47 = vpop.permute.xlu1 %6413 }
 0x9e2   : > { %6571 = vrot.lane.b32.xlu0 %v6493_v14, %s9125_s19  ;;  %v6494_v7 = vmul.f32 %v12731_v44, %v6414_v47 }
 0x9e3   : > { %v12930_v13 = vpop.permute.xlu0 %6667 }
 0x9e4   : > { %6573 = vrot.lane.b32.xlu1 %v6494_v7, %s9125_s19 }
 0x9e5   : > { %v12933_v53 = vpop.permute.xlu1 %6669 }
 0x9e7   : > { %v6416_v51 = vpop.permute.xlu0 %6415 }
 0x9e8   : > { %v6495_v40 = vmul.f32 %v12739_v2, %v6416_v51  ;;  %v14069_v51 = vld [vmem:[#allocation23_spill] sm:$0xff] }
 0x9e9   : > { %v6418_v9 = vpop.permute.xlu1 %6417 }
 0x9ea   : > { %6575 = vrot.lane.b32.xlu0 %v6495_v40, %s9125_s19  ;;  %v6496_v41 = vmul.f32 %v12747_v32, %v6418_v9 }
 0x9eb   : > { %v12938_v19 = vpop.permute.xlu0 %6671 }
 0x9ec   : > { %6577 = vrot.lane.b32.xlu1 %v6496_v41, %s9125_s19  ;;  %v14070_v41 = vld [vmem:[#allocation27_spill] sm:$0xff] }
 0x9ed   : > { %v12941_v50 = vpop.permute.xlu1 %6673 }
 0x9ef   : > { %v6420_v44 = vpop.permute.xlu0 %6419 }
 0x9f0   : > { %v6497_v15 = vmul.f32 %v12758_v62, %v6420_v44 }
 0x9f1   : > { %v6422_v0 = vpop.permute.xlu1 %6421 }
 0x9f2   : > { %6579 = vrot.lane.b32.xlu0 %v6497_v15, %s9125_s19  ;;  %v6498_v55 = vmul.f32 %v12764_v35, %v6422_v0 }
 0x9f3   : > { %v12946_v2 = vpop.permute.xlu0 %6675 }
 0x9f4   : > { %6581 = vrot.lane.b32.xlu1 %v6498_v55, %s9125_s19 }
 0x9f5   : > { %v12949_v29 = vpop.permute.xlu1 %6677 }
 0x9f7   : > { %v6424_v32 = vpop.permute.xlu0 %6423 }
 0x9f8   : > { %v6499_v34 = vmul.f32 %v12774_v18, %v6424_v32 }
 0x9f9   : > { %v6426_v37 = vpop.permute.xlu1 %6425 }
 0x9fa   : > { %6583 = vrot.lane.b32.xlu0 %v6499_v34, %s9125_s19  ;;  %v6500_v54 = vmul.f32 %v12778_v42, %v6426_v37 }
 0x9fb   : > { %v12954_v62 = vpop.permute.xlu0 %6679 }
 0x9fc   : > { %6585 = vrot.lane.b32.xlu1 %v6500_v54, %s9125_s19 }
 0x9fd   : > { %v12957_v24 = vpop.permute.xlu1 %6681 }
 0x9ff   : > { %v6428_v35 = vpop.permute.xlu0 %6427 }
 0xa00   : > { %v6501_v36 = vmul.f32 %v12789_v6, %v6428_v35 }
 0xa01   : > { %v6430_v28 = vpop.permute.xlu1 %6429 }
 0xa02   : > { %6587 = vrot.lane.b32.xlu0 %v6501_v36, %s9125_s19  ;;  %v6502_v43 = vmul.f32 %v12795_v61, %v6430_v28 }
 0xa03   : > { %v12962_v18 = vpop.permute.xlu0 %6683 }
 0xa04   : > { %6589 = vrot.lane.b32.xlu1 %v6502_v43, %s9125_s19 }
 0xa05   : > { %v12965_v1 = vpop.permute.xlu1 %6685 }
 0xa07   : > { %v6432_v42 = vpop.permute.xlu0 %6431 }
 0xa08   : > { %v6503_v31 = vmul.f32 %v12803_v45, %v6432_v42 }
 0xa09   : > { %v6434_v10 = vpop.permute.xlu1 %6433 }
 0xa0a   : > { %6591 = vrot.lane.b32.xlu0 %v6503_v31, %s9125_s19  ;;  %v6504_v58 = vmul.f32 %v12811_v39, %v6434_v10 }
 0xa0b   : > { %v12970_v6 = vpop.permute.xlu0 %6687 }
 0xa0c   : > { %6593 = vrot.lane.b32.xlu1 %v6504_v58, %s9125_s19 }
 0xa0d   : > { %v12973_v21 = vpop.permute.xlu1 %6689 }
 0xa0f   : > { %v6436_v61 = vpop.permute.xlu0 %6435 }
 0xa10   : > { %v6505_v57 = vmul.f32 %v12814_v59, %v6436_v61 }
 0xa11   : > { %v6438_v11 = vpop.permute.xlu1 %6437 }
 0xa12   : > { %6595 = vrot.lane.b32.xlu0 %v6505_v57, %s9125_s19  ;;  %v6506_v45 = vmul.f32 %v12821_v56, %v6438_v11 }
 0xa13   : > { %v12978_v26 = vpop.permute.xlu0 %6691 }
 0xa14   : > { %6597 = vrot.lane.b32.xlu1 %v6506_v45, %s9125_s19 }
 0xa15   : > { %v12981_v39 = vpop.permute.xlu1 %6693 }
 0xa17   : > { %v6440_v33 = vpop.permute.xlu0 %6439 }
 0xa18   : > { %v6507_v14 = vmul.f32 %v12832_v25, %v6440_v33 }
 0xa19   : > { %v6442_v47 = vpop.permute.xlu1 %6441 }
 0xa1a   : > { %6599 = vrot.lane.b32.xlu0 %v6507_v14, %s9125_s19  ;;  %v6508_v59 = vmul.f32 %v12836_v22, %v6442_v47 }
 0xa1b   : > { %v12986_v7 = vpop.permute.xlu0 %6695 }
 0xa1c   : > { %6601 = vrot.lane.b32.xlu1 %v6508_v59, %s9125_s19 }
 0xa1d   : > { %v12989_v56 = vpop.permute.xlu1 %6697 }
 0xa1f   : > { %v6544_v25 = vpop.permute.xlu0 %6543 }
 0xa20   : > { %v6735_v22 = vsel %vm1461_vm2, %v6544_v25, %v14069_v51 }
 0xa21   : > { %v6768_v40 = vsel %vm6767_vm4, %v6735_v22, %v12852_v16  ;;  %v6546_v9 = vpop.permute.xlu1 %6545 }
 0xa22   : > { %6801 = vst.msk [vmem:[%s12996_s13] sm:$0xff] %vm6800_vm5, %v6768_v40  ;;  %v6736_v44 = vsel %vm1461_vm2, %v6546_v9, %v14070_v41 }
 0xa23   : > { %v6444_v15 = vpop.permute.xlu0 %6443  ;;  %v6769_v16 = vsel %vm6767_vm4, %v6736_v44, %v12859_v52 }
 0xa24   : > { %v6509_v0 = vmul.f32 %v12849_v23, %v6444_v15  ;;  %6802 = vst.msk [vmem:[%s12996_s13 + $0x8] sm:$0xff] %vm6800_vm5, %v6769_v16 }
 0xa25   : > { %9071 = shalt.err (!%p9068_p3)
}
 0xa26   : > { %s9072_s29 = scalar_lea.hbm %s13008_s22, 4096  ;;  %s9076_s25 = scalar_lea.hbm %s13259_s11, 8192 }
 0xa27   : > { %p9073_p4 = scmp.ne.s32.totalorder %s13008_s22, %s9072_s29  ;;  %p9077_p9 = scmp.lt.u32.totalorder %s13008_s22, %s13259_s11 }
 0xa28   : > { %p9078_p10 = scmp.lt.u32.totalorder %s9076_s25, %s9072_s29  ;;  %p9080_p12 = scmp.lt.u32.totalorder %s9072_s29, %s13008_s22 }
 0xa29   : > { %p9074_p7 = pnand %p9073_p4, %p9228_p5 }
 0xa2a   : > { %p9079_p11 = por %p9078_p10, %p9077_p9 }
 0xa2b   : > { %p9075_p8 = pneg %p9074_p7 }
 0xa2c   : > { %p9081_p13 = por %p9080_p12, %p9079_p11 }
 0xa2e   : > { %p9082_p0 = pnand %p9081_p13, %p9075_p8 }
 0xa30   : > { %9085 = shalt.err (!%p9082_p0)
}
 0xa31   : > { %s9128_s15 = smov 128   ;;  %s9129_s14 = smov 8   ;;  %v6446_v23 = vpop.permute.xlu1 %6445  ;;  %6603 = vrot.lane.b32.xlu0 %v6509_v0, %s9125_s19  ;;  %v6548_v55 = vpop.permute.xlu0 %6547  ;;  %v14071_v32 = vld [vmem:[#allocation24_spill] sm:$0xff]  ;;  %v14075_v31 = vld [vmem:[#allocation30_spill] sm:$0xff]  ;;  %v14077_v11 = vld [vmem:[#allocation33_spill] sm:$0xff] }
 0xa32   : > { %7857 = dma.vmem_to_hbm [thread:$0]  (%p9228_p5), %s13013_s26, 4096, %s13008_s22, %s13022_s21, %s9128_s15, %s9128_s15, %s9129_s14   ;;  %v6510_v52 = vmul.f32 %v12854_v30, %v6446_v23  ;;  %v6737_v34 = vsel %vm1461_vm2, %v6548_v55, %v14071_v32  ;;  %v14073_v35 = vld [vmem:[#allocation28_spill] sm:$0xff]  ;;  %v14078_v14 = vld [vmem:[#allocation62_spill] sm:$0xff]  ;;  %v14079_v25 = vld [vmem:[#allocation63_spill] sm:$0xff] }
 0xa33   : > { %v6770_v37 = vsel %vm6767_vm4, %v6737_v34, %v12878_v46  ;;  %s14072_s27 = smov 64   ;;  %v14074_v46 = vld [vmem:[#allocation61_spill] sm:$0xff]  ;;  %v14076_v58 = vld [vmem:[#allocation32_spill] sm:$0xff]  ;;  %v14082_v0 = vld [vmem:[#allocation66_spill] sm:$0xff] }
 0xa34   : > { %6605 = vrot.lane.b32.xlu1 %v6510_v52, %s9125_s19  ;;  %6803 = vst.msk [vmem:[%s12996_s13 + $0x10] sm:$0xff] %vm6800_vm5, %v6770_v37  ;;  %v14080_v40 = vld [vmem:[#allocation64_spill] sm:$0xff]  ;;  %v14081_v44 = vld [vmem:[#allocation65_spill] sm:$0xff]  ;;  %v14083_v55 = vld [vmem:[#allocation67_spill] sm:$0xff] }
 0xa35   : > { %v6550_v54 = vpop.permute.xlu1 %6549  ;;  %6699 = vrot.lane.b32.xlu0 %v12868_v5, %s14072_s27  ;;  %v6552_v28 = vpop.permute.xlu0 %6551  ;;  %v14084_v37 = vld [vmem:[#allocation68_spill] sm:$0xff] }
 0xa36   : > { %v6738_v30 = vsel %vm1461_vm2, %v6550_v54, %v14073_v35  ;;  %v6739_v43 = vsel %vm1461_vm2, %v6552_v28, %v14074_v46  ;;  %v14086_v46 = vld [vmem:[#allocation70_spill] sm:$0xff] }
 0xa37   : > { %v6771_v36 = vsel %vm6767_vm4, %v6738_v30, %v12884_v48  ;;  %v6772_v5 = vsel %vm6767_vm4, %v6739_v43, %v12890_v27  ;;  %v14085_v30 = vld [vmem:[#allocation69_spill] sm:$0xff] }
 0xa38   : > { %6804 = vst.msk [vmem:[%s12996_s13 + $0x18] sm:$0xff] %vm6800_vm5, %v6771_v36  ;;  %6701 = vrot.lane.b32.xlu1 %v12873_v60, %s14072_s27  ;;  %6805 = vst.msk [vmem:[%s12996_s13 + $0x20] sm:$0xff] %vm6800_vm5, %v6772_v5 }
 0xa39   : > { %v6554_v42 = vpop.permute.xlu1 %6553  ;;  %v6556_v60 = vpop.permute.xlu0 %6555 }
 0xa3a   : > { %v6740_v48 = vsel %vm1461_vm2, %v6554_v42, %v14075_v31  ;;  %v6741_v61 = vsel %vm1461_vm2, %v6556_v60, %v14076_v58  ;;  %v14087_v42 = vld [vmem:[#allocation71_spill] sm:$0xff] }
 0xa3b   : > { %v6773_v10 = vsel %vm6767_vm4, %v6740_v48, %v12893_v17  ;;  %v6774_v27 = vsel %vm6767_vm4, %v6741_v61, %v12898_v8  ;;  %v14089_v61 = vld [vmem:[#allocation73_spill] sm:$0xff] }
 0xa3c   : > { %6806 = vst.msk [vmem:[%s12996_s13 + $0x28] sm:$0xff] %vm6800_vm5, %v6773_v10  ;;  %6807 = vst.msk [vmem:[%s12996_s13 + $0x30] sm:$0xff] %vm6800_vm5, %v6774_v27  ;;  %v14088_v10 = vld [vmem:[#allocation72_spill] sm:$0xff] }
 0xa3d   : > { %v6558_v57 = vpop.permute.xlu1 %6557  ;;  %v6560_v33 = vpop.permute.xlu0 %6559 }
 0xa3e   : > { %v6742_v45 = vsel %vm1461_vm2, %v6558_v57, %v14077_v11  ;;  %v6743_v47 = vsel %vm1461_vm2, %v6560_v33, %v14078_v14  ;;  %v14090_v11 = vld [vmem:[#allocation40_spill] sm:$0xff]  ;;  %v14091_v33 = vld [vmem:[#allocation42_spill] sm:$0xff] }
 0xa3f   : > { %v6775_v17 = vsel %vm6767_vm4, %v6742_v45, %v12901_v3  ;;  %v6776_v8 = vsel %vm6767_vm4, %v6743_v47, %v12906_v12 }
 0xa40   : > { %6808 = vst.msk [vmem:[%s12996_s13 + $0x38] sm:$0xff] %vm6800_vm5, %v6775_v17  ;;  %6809 = vst.msk [vmem:[%s12996_s13 + $0x40] sm:$0xff] %vm6800_vm5, %v6776_v8  ;;  %v14092_v8 = vld [vmem:[#allocation74_spill] sm:$0xff] }
 0xa41   : > { %v6562_v59 = vpop.permute.xlu1 %6561 }
 0xa42   : > { %v6744_v51 = vsel %vm1461_vm2, %v6562_v59, %v14079_v25 }
 0xa43   : > { %v6777_v3 = vsel %vm6767_vm4, %v6744_v51, %v12909_v63  ;;  %v14093_v51 = vld [vmem:[#allocation75_spill] sm:$0xff] }
 0xa44   : > { %6810 = vst.msk [vmem:[%s12996_s13 + $0x48] sm:$0xff] %vm6800_vm5, %v6777_v3  ;;  %v6564_v22 = vpop.permute.xlu0 %6563 }
 0xa45   : > { %v6745_v9 = vsel %vm1461_vm2, %v6564_v22, %v14080_v40  ;;  %v14094_v40 = vld [vmem:[#allocation76_spill] sm:$0xff] }
 0xa46   : > { %v6778_v12 = vsel %vm6767_vm4, %v6745_v9, %v12914_v20  ;;  %v6566_v41 = vpop.permute.xlu1 %6565 }
 0xa47   : > { %6811 = vst.msk [vmem:[%s12996_s13 + $0x50] sm:$0xff] %vm6800_vm5, %v6778_v12  ;;  %v6746_v15 = vsel %vm1461_vm2, %v6566_v41, %v14081_v44  ;;  %v14095_v41 = vld [vmem:[#allocation77_spill] sm:$0xff] }
 0xa48   : > { %v6779_v63 = vsel %vm6767_vm4, %v6746_v15, %v12917_v38 }
 0xa49   : > { %6812 = vst.msk [vmem:[%s12996_s13 + $0x58] sm:$0xff] %vm6800_vm5, %v6779_v63  ;;  %v14096_v63 = vld [vmem:[#allocation78_spill] sm:$0xff] }
 0xa4c   : > { %v6568_v16 = vpop.permute.xlu0 %6567 }
 0xa4d   : > { %v6747_v23 = vsel %vm1461_vm2, %v6568_v16, %v14082_v0 }
 0xa4e   : > { %v6780_v20 = vsel %vm6767_vm4, %v6747_v23, %v12922_v4  ;;  %v6570_v52 = vpop.permute.xlu1 %6569  ;;  %v14097_v23 = vld [vmem:[#allocation44_spill] sm:$0xff] }
 0xa4f   : > { %6813 = vst.msk [vmem:[%s12996_s13 + $0x60] sm:$0xff] %vm6800_vm5, %v6780_v20  ;;  %v6748_v32 = vsel %vm1461_vm2, %v6570_v52, %v14083_v55  ;;  %v14098_v55 = vld [vmem:[#allocation45_spill] sm:$0xff] }
 0xa50   : > { %v6781_v38 = vsel %vm6767_vm4, %v6748_v32, %v12925_v49 }
 0xa51   : > { %6814 = vst.msk [vmem:[%s12996_s13 + $0x68] sm:$0xff] %vm6800_vm5, %v6781_v38 }
 0xa54   : > { %v6572_v34 = vpop.permute.xlu0 %6571 }
 0xa55   : > { %v6749_v54 = vsel %vm1461_vm2, %v6572_v34, %v14084_v37  ;;  %v14099_v34 = vld [vmem:[#allocation46_spill] sm:$0xff] }
 0xa56   : > { %v6782_v4 = vsel %vm6767_vm4, %v6749_v54, %v12930_v13  ;;  %v6574_v35 = vpop.permute.xlu1 %6573 }
 0xa57   : > { %6815 = vst.msk [vmem:[%s12996_s13 + $0x70] sm:$0xff] %vm6800_vm5, %v6782_v4  ;;  %v6750_v36 = vsel %vm1461_vm2, %v6574_v35, %v14085_v30  ;;  %v14100_v35 = vld [vmem:[#allocation79_spill] sm:$0xff] }
 0xa58   : > { %v6783_v49 = vsel %vm6767_vm4, %v6750_v36, %v12933_v53 }
 0xa59   : > { %6816 = vst.msk [vmem:[%s12996_s13 + $0x78] sm:$0xff] %vm6800_vm5, %v6783_v49 }
 0xa5c   : > { %v6576_v28 = vpop.permute.xlu0 %6575 }
 0xa5d   : > { %v6751_v43 = vsel %vm1461_vm2, %v6576_v28, %v14086_v46 }
 0xa5e   : > { %v6784_v13 = vsel %vm6767_vm4, %v6751_v43, %v12938_v19  ;;  %v6578_v5 = vpop.permute.xlu1 %6577 }
 0xa5f   : > { %6817 = vst.msk [vmem:[%s12996_s13 + $0x80] sm:$0xff] %vm6800_vm5, %v6784_v13  ;;  %v6752_v31 = vsel %vm1461_vm2, %v6578_v5, %v14087_v42 }
 0xa60   : > { %v6785_v53 = vsel %vm6767_vm4, %v6752_v31, %v12941_v50 }
 0xa61   : > { %6818 = vst.msk [vmem:[%s12996_s13 + $0x88] sm:$0xff] %vm6800_vm5, %v6785_v53 }
 0xa64   : > { %v6580_v48 = vpop.permute.xlu0 %6579 }
 0xa65   : > { %v6753_v60 = vsel %vm1461_vm2, %v6580_v48, %v14088_v10 }
 0xa66   : > { %v6786_v19 = vsel %vm6767_vm4, %v6753_v60, %v12946_v2  ;;  %v6582_v58 = vpop.permute.xlu1 %6581 }
 0xa67   : > { %6819 = vst.msk [vmem:[%s12996_s13 + $0x90] sm:$0xff] %vm6800_vm5, %v6786_v19  ;;  %v6754_v27 = vsel %vm1461_vm2, %v6582_v58, %v14089_v61 }
 0xa68   : > { %v6787_v50 = vsel %vm6767_vm4, %v6754_v27, %v12949_v29 }
 0xa69   : > { %6820 = vst.msk [vmem:[%s12996_s13 + $0x98] sm:$0xff] %vm6800_vm5, %v6787_v50 }
 0xa6c   : > { %v6584_v57 = vpop.permute.xlu0 %6583 }
 0xa6d   : > { %v6755_v45 = vsel %vm1461_vm2, %v6584_v57, %v14090_v11 }
 0xa6e   : > { %v6788_v2 = vsel %vm6767_vm4, %v6755_v45, %v12954_v62  ;;  %v6586_v17 = vpop.permute.xlu1 %6585 }
 0xa6f   : > { %6821 = vst.msk [vmem:[%s12996_s13 + $0xa0] sm:$0xff] %vm6800_vm5, %v6788_v2  ;;  %v6756_v14 = vsel %vm1461_vm2, %v6586_v17, %v14091_v33 }
 0xa70   : > { %v6789_v29 = vsel %vm6767_vm4, %v6756_v14, %v12957_v24 }
 0xa71   : > { %6822 = vst.msk [vmem:[%s12996_s13 + $0xa8] sm:$0xff] %vm6800_vm5, %v6789_v29 }
 0xa74   : > { %v6588_v47 = vpop.permute.xlu0 %6587 }
 0xa75   : > { %v6757_v59 = vsel %vm1461_vm2, %v6588_v47, %v14092_v8 }
 0xa76   : > { %v6790_v62 = vsel %vm6767_vm4, %v6757_v59, %v12962_v18  ;;  %v6590_v25 = vpop.permute.xlu1 %6589 }
 0xa77   : > { %6823 = vst.msk [vmem:[%s12996_s13 + $0xb0] sm:$0xff] %vm6800_vm5, %v6790_v62  ;;  %v6758_v3 = vsel %vm1461_vm2, %v6590_v25, %v14093_v51 }
 0xa78   : > { %v6791_v24 = vsel %vm6767_vm4, %v6758_v3, %v12965_v1 }
 0xa79   : > { %6824 = vst.msk [vmem:[%s12996_s13 + $0xb8] sm:$0xff] %vm6800_vm5, %v6791_v24 }
 0xa7c   : > { %v6592_v22 = vpop.permute.xlu0 %6591 }
 0xa7d   : > { %v6759_v9 = vsel %vm1461_vm2, %v6592_v22, %v14094_v40 }
 0xa7e   : > { %v6792_v18 = vsel %vm6767_vm4, %v6759_v9, %v12970_v6  ;;  %v6594_v12 = vpop.permute.xlu1 %6593 }
 0xa7f   : > { %6825 = vst.msk [vmem:[%s12996_s13 + $0xc0] sm:$0xff] %vm6800_vm5, %v6792_v18  ;;  %v6760_v44 = vsel %vm1461_vm2, %v6594_v12, %v14095_v41 }
 0xa80   : > { %v6793_v1 = vsel %vm6767_vm4, %v6760_v44, %v12973_v21 }
 0xa81   : > { %6826 = vst.msk [vmem:[%s12996_s13 + $0xc8] sm:$0xff] %vm6800_vm5, %v6793_v1 }
 0xa84   : > { %v6596_v15 = vpop.permute.xlu0 %6595 }
 0xa85   : > { %v6761_v16 = vsel %vm1461_vm2, %v6596_v15, %v14096_v63 }
 0xa86   : > { %v6794_v6 = vsel %vm6767_vm4, %v6761_v16, %v12978_v26  ;;  %v6598_v0 = vpop.permute.xlu1 %6597 }
 0xa87   : > { %6827 = vst.msk [vmem:[%s12996_s13 + $0xd0] sm:$0xff] %vm6800_vm5, %v6794_v6  ;;  %v6762_v20 = vsel %vm1461_vm2, %v6598_v0, %v14097_v23 }
 0xa88   : > { %v6795_v21 = vsel %vm6767_vm4, %v6762_v20, %v12981_v39 }
 0xa89   : > { %6828 = vst.msk [vmem:[%s12996_s13 + $0xd8] sm:$0xff] %vm6800_vm5, %v6795_v21 }
 0xa8c   : > { %v6600_v52 = vpop.permute.xlu0 %6599 }
 0xa8d   : > { %v6763_v32 = vsel %vm1461_vm2, %v6600_v52, %v14098_v55 }
 0xa8e   : > { %v6796_v26 = vsel %vm6767_vm4, %v6763_v32, %v12986_v7  ;;  %v6602_v38 = vpop.permute.xlu1 %6601  ;;  %v14101_v7 = vld [vmem:[#allocation80_spill] sm:$0xff] }
 0xa8f   : > { %6829 = vst.msk [vmem:[%s12996_s13 + $0xe0] sm:$0xff] %vm6800_vm5, %v6796_v26  ;;  %v6764_v37 = vsel %vm1461_vm2, %v6602_v38, %v14099_v34 }
 0xa90   : > { %v6797_v54 = vsel %vm6767_vm4, %v6764_v37, %v12989_v56 }
 0xa91   : > { %6830 = vst.msk [vmem:[%s12996_s13 + $0xe8] sm:$0xff] %vm6800_vm5, %v6797_v54 }
 0xaa3   : > { %v6604_v39 = vpop.permute.xlu0 %6603 }
 0xaa4   : > { %v6765_v30 = vsel %vm1461_vm2, %v6604_v39, %v14100_v35 }
 0xaa6   : > { %v6606_v4 = vpop.permute.xlu1 %6605 }
 0xaa7   : > { %v6700_v36 = vpop.permute.xlu0 %6699  ;;  %v6766_v28 = vsel %vm1461_vm2, %v6606_v4, %v14101_v7 }
 0xaa8   : > { %v6798_v49 = vsel %vm6767_vm4, %v6765_v30, %v6700_v36 }
 0xaa9   : > { %6831 = vst.msk [vmem:[%s12996_s13 + $0xf0] sm:$0xff] %vm6800_vm5, %v6798_v49 }
 0xaaa   : > { %v6702_v46 = vpop.permute.xlu1 %6701 }
 0xaab   : > { %v6799_v43 = vsel %vm6767_vm4, %v6766_v28, %v6702_v46 }
 0xaac   : > { %6832 = vst.msk [vmem:[%s12996_s13 + $0xf8] sm:$0xff] %vm6800_vm5, %v6799_v43 }
 0xaad PF: > { %p7863_p5 = scmp.ge.s32.totalorder %s9120_s20, 2  ;;  %s6878_s16 = sand.u32 1, %s9108_s17  }
 0xaae   : > { %s6879_s19 = scalar_lea.sflag [#allocation3], %s6878_s16 }
 0xaaf   : > { %p7860_p1 = pnand %p7863_p5, %p9232_p6 }
 0xab1   : > { %9103 = dma.done.wait (!%p7860_p1), %s6879_s19, 4096  }
 0xab2   : > { %9105 = vsyncadd (!%p7860_p1), %s6879_s19, 4294963200  ;;  %s14102_s22 = sld [smem:[#allocation5_spill]]  ;;  %s14103_s19 = sld [smem:[#allocation6_spill]] }
 0xab3   : > { %p22_p2 = scmp.ge.s32.totalorder %s9215_s23, 4   ;;  %s14104_s17 = smov %s9112_s18 }
 0xab4   : > { %s14106_s20 = smov %s9215_s23 }
 0xab5   :  { %24 = sbr.rel (!%p22_p2) target bundleno = 3 (0x3), region = 110 }
 0xab8   : > { %s14105_s18 = smov %s14102_s22 }
 0xabc   :  { %6884 = vsyncpa [#allocation3], 1 }
 0xabd   :  { %6886 = vsyncpa [#allocation3 + $0x1], 1 }

</bundles_post_ra>
